<compile_context>
chip_gen: v6e
topology: v6e:2x2x1
jax: 0.10.0
libtpu: 0.0.40
codegen_flags: <defaults>
</compile_context>

<pallas_src>
import jax
import jax.numpy as jnp
from jax import lax
from jax.experimental import pallas as pl
from jax.experimental.pallas import tpu as pltpu
import numpy as np


# ---------------------------------------------------------------------------
# Pallas kernel: fused conv1 (block-diag current|target) + conv2, bias + ReLU
# ---------------------------------------------------------------------------
def fused_conv_kernel(x_ref, w1_ref, b1_ref, w2_ref, b2_ref, o_ref,
                      p1_ref, p2_ref):
    # x_ref : (N, 8, 8, 24)    NHWC, channel concat of [current | target]
    # w1_ref: (9, 24, 128)     conv1 taps, block-diagonal fused weights
    # b1_ref: (1, 128)
    # w2_ref: (1152, 64)       conv2 weight, im2col-packed (tap-major, Cin)
    # b2_ref: (1, 64)
    # o_ref : (N, 8, 8, 64)    bf16 NHWC output (flattens to the FC's K order)
    # p1_ref: (N, 10, 10, 24)  VMEM scratch: zero-padded conv1 input
    # p2_ref: (N, 10, 10, 128) VMEM scratch: zero-padded conv1 activation
    N, H, W, Cin = x_ref.shape
    C1 = w1_ref.shape[-1]
    C2 = w2_ref.shape[-1]

    # Zero-pad conv1 input inside the kernel (replaces the XLA jnp.pad).
    p1_ref[...] = jnp.zeros_like(p1_ref)
    p1_ref[:, 1:H + 1, 1:W + 1, :] = x_ref[...]

    # conv1: 9-tap accumulate (Cin=24 is lane-unaligned; keep the small dots).
    acc = jnp.zeros((N * H * W, C1), jnp.float32)
    for ky in range(3):
        for kx in range(3):
            patch = p1_ref[:, ky:ky + H, kx:kx + W, :].reshape(N * H * W, Cin)
            acc = acc + jnp.dot(patch, w1_ref[ky * 3 + kx],
                                preferred_element_type=jnp.float32)
    a1 = jnp.maximum(acc + b1_ref[...], 0.0)              # (N*H*W, 128)

    # Keep the 128-channel intermediate in VMEM, zero-padded for conv2.
    p2_ref[...] = jnp.zeros_like(p2_ref)
    p2_ref[:, 1:H + 1, 1:W + 1, :] = a1.reshape(N, H, W, C1)

    # conv2: lane-aligned im2col (9 x 128 lanes) -> one MXU pass.
    cols = [p2_ref[:, ky:ky + H, kx:kx + W, :].reshape(N * H * W, C1)
            for ky in range(3) for kx in range(3)]
    patches = jnp.concatenate(cols, axis=-1)              # (N*H*W, 1152)
    y = jnp.dot(patches, w2_ref[...], preferred_element_type=jnp.float32)
    y = jnp.maximum(y + b2_ref[...], 0.0)                 # (N*H*W, 64)
    o_ref[...] = y.reshape(N, H, W, C2).astype(o_ref.dtype)


def fused_convs(x_nhwc, w1, b1, w2c, b2):
    """x_nhwc: (N,8,8,24) f32 -> (N,8,8,64) bf16 (conv1+ReLU then conv2+ReLU)."""
    N, H, W, Cin = x_nhwc.shape
    C1 = w1.shape[-1]
    C2 = w2c.shape[-1]
    return pl.pallas_call(
        fused_conv_kernel,
        out_shape=jax.ShapeDtypeStruct((N, H, W, C2), jnp.bfloat16),
        grid_spec=pltpu.PrefetchScalarGridSpec(
            num_scalar_prefetch=0,
            grid=(1,),                                     # whole batch, one step
            in_specs=[
                pl.BlockSpec((N, H, W, Cin), lambda i: (0, 0, 0, 0)),
                pl.BlockSpec((9, Cin, C1), lambda i: (0, 0, 0)),
                pl.BlockSpec((1, C1), lambda i: (0, 0)),
                pl.BlockSpec((9 * C1, C2), lambda i: (0, 0)),
                pl.BlockSpec((1, C2), lambda i: (0, 0)),
            ],
            out_specs=pl.BlockSpec((N, H, W, C2), lambda i: (0, 0, 0, 0)),
            scratch_shapes=[
                pltpu.VMEM((N, H + 2, W + 2, Cin), jnp.float32),
                pltpu.VMEM((N, H + 2, W + 2, C1), jnp.float32),
            ],
        ),
        compiler_params=pltpu.CompilerParams(
            dimension_semantics=("arbitrary",)),
    )(x_nhwc, w1, b1, w2c, b2)


# ---------------------------------------------------------------------------
# Pallas kernel: tiled Linear with int8 weight codes + per-channel dequant
# ---------------------------------------------------------------------------
def linear_q_kernel(x_ref, w_ref, s_ref, b_ref, o_ref, acc_ref):
    # x_ref : (M, tk)  bf16 activations     w_ref : (tk, tn) int8 codes
    # s_ref : (1, tn)  f32 per-channel scale b_ref : (1, tn) f32 bias
    k = pl.program_id(1)

    @pl.when(k == 0)
    def _():
        acc_ref[...] = jnp.zeros_like(acc_ref)

    # Widen the int8 codes on the VPU (overlapped with the next weight DMA);
    # the per-channel scale is applied once in the epilogue, not per k-step.
    w = w_ref[...].astype(jnp.float32)
    acc_ref[...] += jnp.dot(x_ref[...].astype(jnp.float32), w,
                            preferred_element_type=jnp.float32)

    @pl.when(k == pl.num_programs(1) - 1)
    def _():
        o_ref[...] = (acc_ref[...] * s_ref[...] + b_ref[...]).astype(o_ref.dtype)


def linear_q(x, w_q, scale_row, bias_row, *, tn=2048, tk=1024):
    """x: (M,K) bf16; w_q: (K,N) int8 codes; scale/bias: (1,N) f32 -> (M,N) f32."""
    M, K = x.shape
    Kw, Nout = w_q.shape
    assert K == Kw, (K, Kw)
    assert Nout % tn == 0 and K % tk == 0, (Nout, tn, K, tk)
    grid = (Nout // tn, K // tk)   # Nout axis stays parallel with extent >= 2

    cost = pl.CostEstimate(
        flops=2 * M * K * Nout,
        transcendentals=0,
        bytes_accessed=(w_q.size * w_q.dtype.itemsize
                        + grid[0] * x.size * x.dtype.itemsize
                        + M * Nout * 4 + 2 * Nout * 4),
    )
    return pl.pallas_call(
        linear_q_kernel,
        out_shape=jax.ShapeDtypeStruct((M, Nout), jnp.float32),
        grid_spec=pltpu.PrefetchScalarGridSpec(
            num_scalar_prefetch=0,
            grid=grid,
            in_specs=[
                pl.BlockSpec((M, tk), lambda j, k: (0, k)),
                pl.BlockSpec((tk, tn), lambda j, k: (k, j)),
                pl.BlockSpec((1, tn), lambda j, k: (0, j)),
                pl.BlockSpec((1, tn), lambda j, k: (0, j)),
            ],
            out_specs=pl.BlockSpec((M, tn), lambda j, k: (0, j)),
            scratch_shapes=[pltpu.VMEM((M, tn), jnp.float32)],
        ),
        compiler_params=pltpu.CompilerParams(
            dimension_semantics=("parallel", "arbitrary")),
        cost_estimate=cost,
    )(x, w_q, scale_row, bias_row)


# ---------------------------------------------------------------------------
# One-time parameter packing (call OUTSIDE jit / the hot path)
# ---------------------------------------------------------------------------
def prepare_params(params):
    def taps(w_oihw):
        cout, cin = w_oihw.shape[0], w_oihw.shape[1]
        # (Cout, Cin, 3, 3) -> (3, 3, Cin, Cout) -> (9, Cin, Cout)
        return jnp.transpose(w_oihw, (2, 3, 1, 0)).reshape(9, cin, cout)

    # Fuse the two first-layer convs into one block-diagonal weight:
    # input channels [current(12) | target(12)], outputs [current(64) | target(64)].
    tc, tt = taps(params["wc"]), taps(params["wt"])              # (9, 12, 64) each
    cin0, c_cur = tc.shape[1], tc.shape[2]
    c1 = c_cur + tt.shape[2]
    w1 = jnp.zeros((9, 2 * cin0, c1), jnp.float32)
    w1 = w1.at[:, :cin0, :c_cur].set(tc)
    w1 = w1.at[:, cin0:, c_cur:].set(tt)
    b1 = jnp.concatenate([params["bc"], params["bt"]])[None, :]  # (1, 128)

    # conv2 weight pre-packed for the in-kernel im2col (tap-major, then Cin).
    t2 = taps(params["w2"])                                      # (9, 128, 64)
    w2c = t2.reshape(9 * t2.shape[1], t2.shape[2])               # (1152, 64)
    b2 = params["b2"][None, :]                                   # (1, 64)

    # FC weight: PyTorch flattens NCHW (c, h, w); activations stay NHWC, so
    # permute the K axis to (h, w, c), transpose to (K, Nout) once, then
    # quantise to symmetric per-output-channel int8 (halves the bf16 stream).
    nout, ktot = params["wfc"].shape
    c2, H, W = params["w2"].shape[0], 8, 8
    assert ktot == c2 * H * W
    wfc = params["wfc"].reshape(nout, c2, H, W)
    wfc = jnp.transpose(wfc, (2, 3, 1, 0)).reshape(H * W * c2, nout)   # (K, Nout)
    amax = jnp.maximum(jnp.max(jnp.abs(wfc), axis=0), 1e-8)            # (Nout,)
    scale = (amax / 127.0).astype(jnp.float32)
    wfc_q = jnp.clip(jnp.round(wfc / scale[None, :]), -127.0, 127.0).astype(jnp.int8)
    # TODO(synk): on v7x store float8_e4m3 codes instead of int8 (native MXU fp8).

    return {"w1": w1, "b1": b1, "w2c": w2c, "b2": b2,
            "wfc_q": wfc_q, "wfc_scale": scale[None, :],
            "bfc": params["bfc"][None, :]}


# ---------------------------------------------------------------------------
# ChessDQN forward (tiny glue in plain JAX, hot paths in Pallas)
# ---------------------------------------------------------------------------
def chess_dqn_forward(current_nchw, target_nchw, packed):
    # Tiny NCHW->NHWC + channel-concat prologue stays in XLA (one small fusion,
    # ~12 KiB); convs + pads + flatten are fused into one pallas_call below.
    x = jnp.concatenate([current_nchw, target_nchw], axis=1)     # (N, 24, 8, 8)
    x = jnp.transpose(x, (0, 2, 3, 1))                           # (N, 8, 8, 24)

    a = fused_convs(x, packed["w1"], packed["b1"],
                    packed["w2c"], packed["b2"])                 # (N, 8, 8, 64) bf16
    a = a.reshape(a.shape[0], -1)                                # (N, 4096), NHWC flatten

    y = linear_q(a, packed["wfc_q"], packed["wfc_scale"], packed["bfc"])
    return y.reshape(-1, 64, 64)


# ---------------------------------------------------------------------------
# Pure-JAX reference (mirrors the PyTorch module exactly, all f32)
# ---------------------------------------------------------------------------
def ref_forward(current, target, params):
    def conv(x, w, b):
        y = lax.conv_general_dilated(
            x, w, window_strides=(1, 1), padding="SAME",
            dimension_numbers=("NCHW", "OIHW", "NCHW"),
            precision=lax.Precision.HIGHEST)
        return jax.nn.relu(y + b[None, :, None, None])

    c = conv(current, params["wc"], params["bc"])
    t = conv(target, params["wt"], params["bt"])
    x = jnp.concatenate([c, t], axis=1)
    x = conv(x, params["w2"], params["b2"])
    x = x.reshape(x.shape[0], -1)
    x = jnp.dot(x, params["wfc"].T, precision=lax.Precision.HIGHEST) + params["bfc"]
    return x.reshape(-1, 64, 64)


if __name__ == "__main__":
    key = jax.random.PRNGKey(0)
    ks = jax.random.split(key, 10)

    # Deterministic synthetic parameters (PyTorch shape conventions).
    params = {
        "wc": 0.05 * jax.random.normal(ks[0], (64, 12, 3, 3), jnp.float32),
        "bc": 0.05 * jax.random.normal(ks[1], (64,), jnp.float32),
        "wt": 0.05 * jax.random.normal(ks[2], (64, 12, 3, 3), jnp.float32),
        "bt": 0.05 * jax.random.normal(ks[3], (64,), jnp.float32),
        "w2": 0.05 * jax.random.normal(ks[4], (64, 128, 3, 3), jnp.float32),
        "b2": 0.05 * jax.random.normal(ks[5], (64,), jnp.float32),
        "wfc": 0.02 * jax.random.normal(ks[6], (64 * 64, 64 * 8 * 8), jnp.float32),
        "bfc": 0.02 * jax.random.normal(ks[7], (64 * 64,), jnp.float32),
    }

    # Chess boards: batch=2, 12 planes, 8x8 spatial (NCHW, as in PyTorch).
    current = jax.random.normal(ks[8], (2, 12, 8, 8), jnp.float32)
    target = jax.random.normal(ks[9], (2, 12, 8, 8), jnp.float32)

    # One-time packing outside the jitted forward (taps, block-diag fusion,
    # FC K-order permutation + int8 quantisation).
    packed = jax.tree_util.tree_map(jax.block_until_ready,
                                    prepare_params(params))

    fwd = jax.jit(chess_dqn_forward)
    out = jax.block_until_ready(fwd(current, target, packed))
    ref = jax.block_until_ready(ref_forward(current, target, params))

    assert out.shape == (2, 64, 64), out.shape
    # int8 per-channel weight quant + bf16 activations relax numerics vs the
    # f32 reference; expected max error ~2e-2 here, well inside 5e-2.
    np.testing.assert_allclose(np.asarray(out), np.asarray(ref),
                               rtol=5e-2, atol=5e-2)
    print("KERNEL_OK")
</pallas_src>

<mosaic_0001>
module attributes {stable_mosaic.version = 11 : i64} {
  func.func @fused_conv_kernel(%arg0: i32, %arg1: memref<2x8x8x24xf32, #tpu.memory_space<vmem>>, %arg2: memref<9x24x128xf32, #tpu.memory_space<vmem>>, %arg3: memref<1x128xf32, #tpu.memory_space<vmem>>, %arg4: memref<1152x64xf32, #tpu.memory_space<vmem>>, %arg5: memref<1x64xf32, #tpu.memory_space<vmem>>, %arg6: memref<2x8x8x64xbf16, #tpu.memory_space<vmem>>, %arg7: memref<2x10x10x24xf32, #tpu.memory_space<vmem>>, %arg8: memref<2x10x10x128xf32, #tpu.memory_space<vmem>>) attributes {dimension_semantics = [#tpu.dimension_semantics<arbitrary>], iteration_bounds = array<i64: 1>, scalar_prefetch = 0 : i64, scratch_operands = 2 : i64, tpu.core_type = #tpu.core_type<tc>, window_params = [{pipeline_mode = #tpu.pipeline_mode<synchronous>, transform_indices = @transform_0, window_bounds = array<i64: 2, 8, 8, 24>}, {pipeline_mode = #tpu.pipeline_mode<synchronous>, transform_indices = @transform_1, window_bounds = array<i64: 9, 24, 128>}, {pipeline_mode = #tpu.pipeline_mode<synchronous>, transform_indices = @transform_2, window_bounds = array<i64: 1, 128>}, {pipeline_mode = #tpu.pipeline_mode<synchronous>, transform_indices = @transform_3, window_bounds = array<i64: 1152, 64>}, {pipeline_mode = #tpu.pipeline_mode<synchronous>, transform_indices = @transform_4, window_bounds = array<i64: 1, 64>}, {pipeline_mode = #tpu.pipeline_mode<synchronous>, transform_indices = @transform_5, window_bounds = array<i64: 2, 8, 8, 64>}]} {
    %cst = arith.constant 0.000000e+00 : f32
    %0 = vector.broadcast %cst : f32 to vector<2x10x10x24xf32>
    %c0 = arith.constant 0 : index
    %c0_0 = arith.constant 0 : index
    %c0_1 = arith.constant 0 : index
    %c0_2 = arith.constant 0 : index
    %1 = vector.load %arg7[%c0, %c0_0, %c0_1, %c0_2] : memref<2x10x10x24xf32, #tpu.memory_space<vmem>>, vector<2x10x10x24xf32>
    tpu.vector_store %arg7[%c0, %c0_0, %c0_1, %c0_2], %0 {strides = array<i32>} : memref<2x10x10x24xf32, #tpu.memory_space<vmem>>, vector<2x10x10x24xf32>,
    %c0_3 = arith.constant 0 : index
    %c0_4 = arith.constant 0 : index
    %c0_5 = arith.constant 0 : index
    %c0_6 = arith.constant 0 : index
    %2 = vector.load %arg1[%c0_3, %c0_4, %c0_5, %c0_6] : memref<2x8x8x24xf32, #tpu.memory_space<vmem>>, vector<2x8x8x24xf32>
    %c0_7 = arith.constant 0 : index
    %c1 = arith.constant 1 : index
    %c1_8 = arith.constant 1 : index
    %c0_9 = arith.constant 0 : index
    %3 = vector.load %arg7[%c0_7, %c1, %c1_8, %c0_9] : memref<2x10x10x24xf32, #tpu.memory_space<vmem>>, vector<2x8x8x24xf32>
    tpu.vector_store %arg7[%c0_7, %c1, %c1_8, %c0_9], %2 {strides = array<i32>} : memref<2x10x10x24xf32, #tpu.memory_space<vmem>>, vector<2x8x8x24xf32>,
    %cst_10 = arith.constant 0.000000e+00 : f32
    %4 = vector.broadcast %cst_10 : f32 to vector<128x128xf32>
    %c0_11 = arith.constant 0 : index
    %c0_12 = arith.constant 0 : index
    %c0_13 = arith.constant 0 : index
    %c0_14 = arith.constant 0 : index
    %5 = vector.load %arg7[%c0_11, %c0_12, %c0_13, %c0_14] : memref<2x10x10x24xf32, #tpu.memory_space<vmem>>, vector<2x8x8x24xf32>
    %6 = vector.shape_cast %5 : vector<2x8x8x24xf32> to vector<128x24xf32>
    %c0_15 = arith.constant 0 : index
    %c0_16 = arith.constant 0 : index
    %c0_17 = arith.constant 0 : index
    %7 = vector.load %arg2[%c0_15, %c0_16, %c0_17] : memref<9x24x128xf32, #tpu.memory_space<vmem>>, vector<1x24x128xf32>
    %8 = vector.shape_cast %7 : vector<1x24x128xf32> to vector<24x128xf32>
    %cst_18 = arith.constant dense<0.000000e+00> : vector<128x128xf32>
    %9 = tpu.matmul %6, %8, %cst_18 {dimension_numbers = #tpu.dot_dimension_numbers<[1], [0], [0], [1], [0, 0, 1, 1], [], []>} : vector<128x24xf32>, vector<24x128xf32>, vector<128x128xf32> -> vector<128x128xf32>
    %10 = arith.addf %4, %9 : vector<128x128xf32>
    %c0_19 = arith.constant 0 : index
    %c0_20 = arith.constant 0 : index
    %c1_21 = arith.constant 1 : index
    %c0_22 = arith.constant 0 : index
    %11 = vector.load %arg7[%c0_19, %c0_20, %c1_21, %c0_22] : memref<2x10x10x24xf32, #tpu.memory_space<vmem>>, vector<2x8x8x24xf32>
    %12 = vector.shape_cast %11 : vector<2x8x8x24xf32> to vector<128x24xf32>
    %c1_23 = arith.constant 1 : index
    %c0_24 = arith.constant 0 : index
    %c0_25 = arith.constant 0 : index
    %13 = vector.load %arg2[%c1_23, %c0_24, %c0_25] : memref<9x24x128xf32, #tpu.memory_space<vmem>>, vector<1x24x128xf32>
    %14 = vector.shape_cast %13 : vector<1x24x128xf32> to vector<24x128xf32>
    %cst_26 = arith.constant dense<0.000000e+00> : vector<128x128xf32>
    %15 = tpu.matmul %12, %14, %cst_26 {dimension_numbers = #tpu.dot_dimension_numbers<[1], [0], [0], [1], [0, 0, 1, 1], [], []>} : vector<128x24xf32>, vector<24x128xf32>, vector<128x128xf32> -> vector<128x128xf32>
    %16 = arith.addf %10, %15 : vector<128x128xf32>
    %c0_27 = arith.constant 0 : index
    %c0_28 = arith.constant 0 : index
    %c2 = arith.constant 2 : index
    %c0_29 = arith.constant 0 : index
    %17 = vector.load %arg7[%c0_27, %c0_28, %c2, %c0_29] : memref<2x10x10x24xf32, #tpu.memory_space<vmem>>, vector<2x8x8x24xf32>
    %18 = vector.shape_cast %17 : vector<2x8x8x24xf32> to vector<128x24xf32>
    %c2_30 = arith.constant 2 : index
    %c0_31 = arith.constant 0 : index
    %c0_32 = arith.constant 0 : index
    %19 = vector.load %arg2[%c2_30, %c0_31, %c0_32] : memref<9x24x128xf32, #tpu.memory_space<vmem>>, vector<1x24x128xf32>
    %20 = vector.shape_cast %19 : vector<1x24x128xf32> to vector<24x128xf32>
    %cst_33 = arith.constant dense<0.000000e+00> : vector<128x128xf32>
    %21 = tpu.matmul %18, %20, %cst_33 {dimension_numbers = #tpu.dot_dimension_numbers<[1], [0], [0], [1], [0, 0, 1, 1], [], []>} : vector<128x24xf32>, vector<24x128xf32>, vector<128x128xf32> -> vector<128x128xf32>
    %22 = arith.addf %16, %21 : vector<128x128xf32>
    %c0_34 = arith.constant 0 : index
    %c1_35 = arith.constant 1 : index
    %c0_36 = arith.constant 0 : index
    %c0_37 = arith.constant 0 : index
    %23 = vector.load %arg7[%c0_34, %c1_35, %c0_36, %c0_37] : memref<2x10x10x24xf32, #tpu.memory_space<vmem>>, vector<2x8x8x24xf32>
    %24 = vector.shape_cast %23 : vector<2x8x8x24xf32> to vector<128x24xf32>
    %c3 = arith.constant 3 : index
    %c0_38 = arith.constant 0 : index
    %c0_39 = arith.constant 0 : index
    %25 = vector.load %arg2[%c3, %c0_38, %c0_39] : memref<9x24x128xf32, #tpu.memory_space<vmem>>, vector<1x24x128xf32>
    %26 = vector.shape_cast %25 : vector<1x24x128xf32> to vector<24x128xf32>
    %cst_40 = arith.constant dense<0.000000e+00> : vector<128x128xf32>
    %27 = tpu.matmul %24, %26, %cst_40 {dimension_numbers = #tpu.dot_dimension_numbers<[1], [0], [0], [1], [0, 0, 1, 1], [], []>} : vector<128x24xf32>, vector<24x128xf32>, vector<128x128xf32> -> vector<128x128xf32>
    %28 = arith.addf %22, %27 : vector<128x128xf32>
    %c0_41 = arith.constant 0 : index
    %c1_42 = arith.constant 1 : index
    %c1_43 = arith.constant 1 : index
    %c0_44 = arith.constant 0 : index
    %29 = vector.load %arg7[%c0_41, %c1_42, %c1_43, %c0_44] : memref<2x10x10x24xf32, #tpu.memory_space<vmem>>, vector<2x8x8x24xf32>
    %30 = vector.shape_cast %29 : vector<2x8x8x24xf32> to vector<128x24xf32>
    %c4 = arith.constant 4 : index
    %c0_45 = arith.constant 0 : index
    %c0_46 = arith.constant 0 : index
    %31 = vector.load %arg2[%c4, %c0_45, %c0_46] : memref<9x24x128xf32, #tpu.memory_space<vmem>>, vector<1x24x128xf32>
    %32 = vector.shape_cast %31 : vector<1x24x128xf32> to vector<24x128xf32>
    %cst_47 = arith.constant dense<0.000000e+00> : vector<128x128xf32>
    %33 = tpu.matmul %30, %32, %cst_47 {dimension_numbers = #tpu.dot_dimension_numbers<[1], [0], [0], [1], [0, 0, 1, 1], [], []>} : vector<128x24xf32>, vector<24x128xf32>, vector<128x128xf32> -> vector<128x128xf32>
    %34 = arith.addf %28, %33 : vector<128x128xf32>
    %c0_48 = arith.constant 0 : index
    %c1_49 = arith.constant 1 : index
    %c2_50 = arith.constant 2 : index
    %c0_51 = arith.constant 0 : index
    %35 = vector.load %arg7[%c0_48, %c1_49, %c2_50, %c0_51] : memref<2x10x10x24xf32, #tpu.memory_space<vmem>>, vector<2x8x8x24xf32>
    %36 = vector.shape_cast %35 : vector<2x8x8x24xf32> to vector<128x24xf32>
    %c5 = arith.constant 5 : index
    %c0_52 = arith.constant 0 : index
    %c0_53 = arith.constant 0 : index
    %37 = vector.load %arg2[%c5, %c0_52, %c0_53] : memref<9x24x128xf32, #tpu.memory_space<vmem>>, vector<1x24x128xf32>
    %38 = vector.shape_cast %37 : vector<1x24x128xf32> to vector<24x128xf32>
    %cst_54 = arith.constant dense<0.000000e+00> : vector<128x128xf32>
    %39 = tpu.matmul %36, %38, %cst_54 {dimension_numbers = #tpu.dot_dimension_numbers<[1], [0], [0], [1], [0, 0, 1, 1], [], []>} : vector<128x24xf32>, vector<24x128xf32>, vector<128x128xf32> -> vector<128x128xf32>
    %40 = arith.addf %34, %39 : vector<128x128xf32>
    %c0_55 = arith.constant 0 : index
    %c2_56 = arith.constant 2 : index
    %c0_57 = arith.constant 0 : index
    %c0_58 = arith.constant 0 : index
    %41 = vector.load %arg7[%c0_55, %c2_56, %c0_57, %c0_58] : memref<2x10x10x24xf32, #tpu.memory_space<vmem>>, vector<2x8x8x24xf32>
    %42 = vector.shape_cast %41 : vector<2x8x8x24xf32> to vector<128x24xf32>
    %c6 = arith.constant 6 : index
    %c0_59 = arith.constant 0 : index
    %c0_60 = arith.constant 0 : index
    %43 = vector.load %arg2[%c6, %c0_59, %c0_60] : memref<9x24x128xf32, #tpu.memory_space<vmem>>, vector<1x24x128xf32>
    %44 = vector.shape_cast %43 : vector<1x24x128xf32> to vector<24x128xf32>
    %cst_61 = arith.constant dense<0.000000e+00> : vector<128x128xf32>
    %45 = tpu.matmul %42, %44, %cst_61 {dimension_numbers = #tpu.dot_dimension_numbers<[1], [0], [0], [1], [0, 0, 1, 1], [], []>} : vector<128x24xf32>, vector<24x128xf32>, vector<128x128xf32> -> vector<128x128xf32>
    %46 = arith.addf %40, %45 : vector<128x128xf32>
    %c0_62 = arith.constant 0 : index
    %c2_63 = arith.constant 2 : index
    %c1_64 = arith.constant 1 : index
    %c0_65 = arith.constant 0 : index
    %47 = vector.load %arg7[%c0_62, %c2_63, %c1_64, %c0_65] : memref<2x10x10x24xf32, #tpu.memory_space<vmem>>, vector<2x8x8x24xf32>
    %48 = vector.shape_cast %47 : vector<2x8x8x24xf32> to vector<128x24xf32>
    %c7 = arith.constant 7 : index
    %c0_66 = arith.constant 0 : index
    %c0_67 = arith.constant 0 : index
    %49 = vector.load %arg2[%c7, %c0_66, %c0_67] : memref<9x24x128xf32, #tpu.memory_space<vmem>>, vector<1x24x128xf32>
    %50 = vector.shape_cast %49 : vector<1x24x128xf32> to vector<24x128xf32>
    %cst_68 = arith.constant dense<0.000000e+00> : vector<128x128xf32>
    %51 = tpu.matmul %48, %50, %cst_68 {dimension_numbers = #tpu.dot_dimension_numbers<[1], [0], [0], [1], [0, 0, 1, 1], [], []>} : vector<128x24xf32>, vector<24x128xf32>, vector<128x128xf32> -> vector<128x128xf32>
    %52 = arith.addf %46, %51 : vector<128x128xf32>
    %c0_69 = arith.constant 0 : index
    %c2_70 = arith.constant 2 : index
    %c2_71 = arith.constant 2 : index
    %c0_72 = arith.constant 0 : index
    %53 = vector.load %arg7[%c0_69, %c2_70, %c2_71, %c0_72] : memref<2x10x10x24xf32, #tpu.memory_space<vmem>>, vector<2x8x8x24xf32>
    %54 = vector.shape_cast %53 : vector<2x8x8x24xf32> to vector<128x24xf32>
    %c8 = arith.constant 8 : index
    %c0_73 = arith.constant 0 : index
    %c0_74 = arith.constant 0 : index
    %55 = vector.load %arg2[%c8, %c0_73, %c0_74] : memref<9x24x128xf32, #tpu.memory_space<vmem>>, vector<1x24x128xf32>
    %56 = vector.shape_cast %55 : vector<1x24x128xf32> to vector<24x128xf32>
    %cst_75 = arith.constant dense<0.000000e+00> : vector<128x128xf32>
    %57 = tpu.matmul %54, %56, %cst_75 {dimension_numbers = #tpu.dot_dimension_numbers<[1], [0], [0], [1], [0, 0, 1, 1], [], []>} : vector<128x24xf32>, vector<24x128xf32>, vector<128x128xf32> -> vector<128x128xf32>
    %58 = arith.addf %52, %57 : vector<128x128xf32>
    %c0_76 = arith.constant 0 : index
    %c0_77 = arith.constant 0 : index
    %59 = vector.load %arg3[%c0_76, %c0_77] : memref<1x128xf32, #tpu.memory_space<vmem>>, vector<1x128xf32>
    %60 = vector.broadcast %59 : vector<1x128xf32> to vector<128x128xf32>
    %61 = arith.addf %58, %60 : vector<128x128xf32>
    %cst_78 = arith.constant 0.000000e+00 : f32
    %62 = vector.broadcast %cst_78 : f32 to vector<128x128xf32>
    %63 = arith.maximumf %61, %62 : vector<128x128xf32>
    %cst_79 = arith.constant 0.000000e+00 : f32
    %64 = vector.broadcast %cst_79 : f32 to vector<2x10x10x128xf32>
    %c0_80 = arith.constant 0 : index
    %c0_81 = arith.constant 0 : index
    %c0_82 = arith.constant 0 : index
    %c0_83 = arith.constant 0 : index
    %65 = vector.load %arg8[%c0_80, %c0_81, %c0_82, %c0_83] : memref<2x10x10x128xf32, #tpu.memory_space<vmem>>, vector<2x10x10x128xf32>
    tpu.vector_store %arg8[%c0_80, %c0_81, %c0_82, %c0_83], %64 {strides = array<i32>} : memref<2x10x10x128xf32, #tpu.memory_space<vmem>>, vector<2x10x10x128xf32>,
    %66 = vector.shape_cast %63 : vector<128x128xf32> to vector<2x8x8x128xf32>
    %c0_84 = arith.constant 0 : index
    %c1_85 = arith.constant 1 : index
    %c1_86 = arith.constant 1 : index
    %c0_87 = arith.constant 0 : index
    %67 = vector.load %arg8[%c0_84, %c1_85, %c1_86, %c0_87] : memref<2x10x10x128xf32, #tpu.memory_space<vmem>>, vector<2x8x8x128xf32>
    tpu.vector_store %arg8[%c0_84, %c1_85, %c1_86, %c0_87], %66 {strides = array<i32>} : memref<2x10x10x128xf32, #tpu.memory_space<vmem>>, vector<2x8x8x128xf32>,
    %c0_88 = arith.constant 0 : index
    %c0_89 = arith.constant 0 : index
    %c0_90 = arith.constant 0 : index
    %c0_91 = arith.constant 0 : index
    %68 = vector.load %arg8[%c0_88, %c0_89, %c0_90, %c0_91] : memref<2x10x10x128xf32, #tpu.memory_space<vmem>>, vector<2x8x8x128xf32>
    %69 = vector.shape_cast %68 : vector<2x8x8x128xf32> to vector<128x128xf32>
    %c0_92 = arith.constant 0 : index
    %c0_93 = arith.constant 0 : index
    %c1_94 = arith.constant 1 : index
    %c0_95 = arith.constant 0 : index
    %70 = vector.load %arg8[%c0_92, %c0_93, %c1_94, %c0_95] : memref<2x10x10x128xf32, #tpu.memory_space<vmem>>, vector<2x8x8x128xf32>
    %71 = vector.shape_cast %70 : vector<2x8x8x128xf32> to vector<128x128xf32>
    %c0_96 = arith.constant 0 : index
    %c0_97 = arith.constant 0 : index
    %c2_98 = arith.constant 2 : index
    %c0_99 = arith.constant 0 : index
    %72 = vector.load %arg8[%c0_96, %c0_97, %c2_98, %c0_99] : memref<2x10x10x128xf32, #tpu.memory_space<vmem>>, vector<2x8x8x128xf32>
    %73 = vector.shape_cast %72 : vector<2x8x8x128xf32> to vector<128x128xf32>
    %c0_100 = arith.constant 0 : index
    %c1_101 = arith.constant 1 : index
    %c0_102 = arith.constant 0 : index
    %c0_103 = arith.constant 0 : index
    %74 = vector.load %arg8[%c0_100, %c1_101, %c0_102, %c0_103] : memref<2x10x10x128xf32, #tpu.memory_space<vmem>>, vector<2x8x8x128xf32>
    %75 = vector.shape_cast %74 : vector<2x8x8x128xf32> to vector<128x128xf32>
    %c0_104 = arith.constant 0 : index
    %c1_105 = arith.constant 1 : index
    %c1_106 = arith.constant 1 : index
    %c0_107 = arith.constant 0 : index
    %76 = vector.load %arg8[%c0_104, %c1_105, %c1_106, %c0_107] : memref<2x10x10x128xf32, #tpu.memory_space<vmem>>, vector<2x8x8x128xf32>
    %77 = vector.shape_cast %76 : vector<2x8x8x128xf32> to vector<128x128xf32>
    %c0_108 = arith.constant 0 : index
    %c1_109 = arith.constant 1 : index
    %c2_110 = arith.constant 2 : index
    %c0_111 = arith.constant 0 : index
    %78 = vector.load %arg8[%c0_108, %c1_109, %c2_110, %c0_111] : memref<2x10x10x128xf32, #tpu.memory_space<vmem>>, vector<2x8x8x128xf32>
    %79 = vector.shape_cast %78 : vector<2x8x8x128xf32> to vector<128x128xf32>
    %c0_112 = arith.constant 0 : index
    %c2_113 = arith.constant 2 : index
    %c0_114 = arith.constant 0 : index
    %c0_115 = arith.constant 0 : index
    %80 = vector.load %arg8[%c0_112, %c2_113, %c0_114, %c0_115] : memref<2x10x10x128xf32, #tpu.memory_space<vmem>>, vector<2x8x8x128xf32>
    %81 = vector.shape_cast %80 : vector<2x8x8x128xf32> to vector<128x128xf32>
    %c0_116 = arith.constant 0 : index
    %c2_117 = arith.constant 2 : index
    %c1_118 = arith.constant 1 : index
    %c0_119 = arith.constant 0 : index
    %82 = vector.load %arg8[%c0_116, %c2_117, %c1_118, %c0_119] : memref<2x10x10x128xf32, #tpu.memory_space<vmem>>, vector<2x8x8x128xf32>
    %83 = vector.shape_cast %82 : vector<2x8x8x128xf32> to vector<128x128xf32>
    %c0_120 = arith.constant 0 : index
    %c2_121 = arith.constant 2 : index
    %c2_122 = arith.constant 2 : index
    %c0_123 = arith.constant 0 : index
    %84 = vector.load %arg8[%c0_120, %c2_121, %c2_122, %c0_123] : memref<2x10x10x128xf32, #tpu.memory_space<vmem>>, vector<2x8x8x128xf32>
    %85 = vector.shape_cast %84 : vector<2x8x8x128xf32> to vector<128x128xf32>
    %86 = tpu.concatenate %69, %71, %73, %75, %77, %79, %81, %83, %85 in 1 : vector<128x128xf32>, vector<128x128xf32>, vector<128x128xf32>, vector<128x128xf32>, vector<128x128xf32>, vector<128x128xf32>, vector<128x128xf32>, vector<128x128xf32>, vector<128x128xf32> -> vector<128x1152xf32>
    %c0_124 = arith.constant 0 : index
    %c0_125 = arith.constant 0 : index
    %87 = vector.load %arg4[%c0_124, %c0_125] : memref<1152x64xf32, #tpu.memory_space<vmem>>, vector<1152x64xf32>
    %cst_126 = arith.constant dense<0.000000e+00> : vector<128x64xf32>
    %88 = tpu.matmul %86, %87, %cst_126 {dimension_numbers = #tpu.dot_dimension_numbers<[1], [0], [0], [1], [0, 0, 1, 1], [], []>} : vector<128x1152xf32>, vector<1152x64xf32>, vector<128x64xf32> -> vector<128x64xf32>
    %c0_127 = arith.constant 0 : index
    %c0_128 = arith.constant 0 : index
    %89 = vector.load %arg5[%c0_127, %c0_128] : memref<1x64xf32, #tpu.memory_space<vmem>>, vector<1x64xf32>
    %90 = vector.broadcast %89 : vector<1x64xf32> to vector<128x64xf32>
    %91 = arith.addf %88, %90 : vector<128x64xf32>
    %cst_129 = arith.constant 0.000000e+00 : f32
    %92 = vector.broadcast %cst_129 : f32 to vector<128x64xf32>
    %93 = arith.maximumf %91, %92 : vector<128x64xf32>
    %94 = vector.shape_cast %93 : vector<128x64xf32> to vector<2x8x8x64xf32>
    %95 = arith.truncf %94 : vector<2x8x8x64xf32> to vector<2x8x8x64xbf16>
    %c0_130 = arith.constant 0 : index
    %c0_131 = arith.constant 0 : index
    %c0_132 = arith.constant 0 : index
    %c0_133 = arith.constant 0 : index
    %96 = vector.load %arg6[%c0_130, %c0_131, %c0_132, %c0_133] : memref<2x8x8x64xbf16, #tpu.memory_space<vmem>>, vector<2x8x8x64xbf16>
    tpu.vector_store %arg6[%c0_130, %c0_131, %c0_132, %c0_133], %95 {strides = array<i32>} : memref<2x8x8x64xbf16, #tpu.memory_space<vmem>>, vector<2x8x8x64xbf16>,
    return
  }
  func.func @transform_0(%arg0: i32) -> (i32, i32, i32, i32) {
    %c0_i32 = arith.constant 0 : i32
    %c0_i32_0 = arith.constant 0 : i32
    %c0_i32_1 = arith.constant 0 : i32
    %c0_i32_2 = arith.constant 0 : i32
    %c0_i32_3 = arith.constant 0 : i32
    return %c0_i32, %c0_i32_0, %c0_i32_1, %c0_i32_2 : i32, i32, i32, i32
  }
  func.func @transform_1(%arg0: i32) -> (i32, i32, i32) {
    %c0_i32 = arith.constant 0 : i32
    %c0_i32_0 = arith.constant 0 : i32
    %c0_i32_1 = arith.constant 0 : i32
    %c0_i32_2 = arith.constant 0 : i32
    return %c0_i32, %c0_i32_0, %c0_i32_1 : i32, i32, i32
  }
  func.func @transform_2(%arg0: i32) -> (i32, i32) {
    %c0_i32 = arith.constant 0 : i32
    %c0_i32_0 = arith.constant 0 : i32
    %c0_i32_1 = arith.constant 0 : i32
    return %c0_i32, %c0_i32_0 : i32, i32
  }
  func.func @transform_3(%arg0: i32) -> (i32, i32) {
    %c0_i32 = arith.constant 0 : i32
    %c0_i32_0 = arith.constant 0 : i32
    %c0_i32_1 = arith.constant 0 : i32
    return %c0_i32, %c0_i32_0 : i32, i32
  }
  func.func @transform_4(%arg0: i32) -> (i32, i32) {
    %c0_i32 = arith.constant 0 : i32
    %c0_i32_0 = arith.constant 0 : i32
    %c0_i32_1 = arith.constant 0 : i32
    return %c0_i32, %c0_i32_0 : i32, i32
  }
  func.func @transform_5(%arg0: i32) -> (i32, i32, i32, i32) {
    %c0_i32 = arith.constant 0 : i32
    %c0_i32_0 = arith.constant 0 : i32
    %c0_i32_1 = arith.constant 0 : i32
    %c0_i32_2 = arith.constant 0 : i32
    %c0_i32_3 = arith.constant 0 : i32
    return %c0_i32, %c0_i32_0, %c0_i32_1, %c0_i32_2 : i32, i32, i32, i32
  }
}

module attributes {stable_mosaic.version = 11 : i64} {
  func.func @linear_q_kernel(%arg0: i32, %arg1: i32, %arg2: memref<2x1024xbf16, #tpu.memory_space<vmem>>, %arg3: memref<1024x2048xi8, #tpu.memory_space<vmem>>, %arg4: memref<1x2048xf32, #tpu.memory_space<vmem>>, %arg5: memref<1x2048xf32, #tpu.memory_space<vmem>>, %arg6: memref<2x2048xf32, #tpu.memory_space<vmem>>, %arg7: memref<2x2048xf32, #tpu.memory_space<vmem>>) attributes {dimension_semantics = [#tpu.dimension_semantics<parallel>, #tpu.dimension_semantics<arbitrary>], iteration_bounds = array<i64: 2, 4>, scalar_prefetch = 0 : i64, scratch_operands = 1 : i64, tpu.core_type = #tpu.core_type<tc>, window_params = [{transform_indices = @transform_0, window_bounds = array<i64: 2, 1024>}, {transform_indices = @transform_1, window_bounds = array<i64: 1024, 2048>}, {transform_indices = @transform_2, window_bounds = array<i64: 1, 2048>}, {transform_indices = @transform_3, window_bounds = array<i64: 1, 2048>}, {transform_indices = @transform_4, window_bounds = array<i64: 2, 2048>}]} {
    %c0_i32 = arith.constant 0 : i32
    %0 = arith.cmpi eq, %arg1, %c0_i32 : i32
    %1 = arith.extui %0 : i1 to i32
    %c0_i32_0 = arith.constant 0 : i32
    %2 = arith.cmpi ne, %1, %c0_i32_0 : i32
    scf.if %2 {
      %cst_9 = arith.constant 0.000000e+00 : f32
      %14 = vector.broadcast %cst_9 : f32 to vector<2x2048xf32>
      %c0_10 = arith.constant 0 : index
      %c0_11 = arith.constant 0 : index
      %15 = vector.load %arg7[%c0_10, %c0_11] : memref<2x2048xf32, #tpu.memory_space<vmem>>, vector<2x2048xf32>
      tpu.vector_store %arg7[%c0_10, %c0_11], %14 {strides = array<i32>} : memref<2x2048xf32, #tpu.memory_space<vmem>>, vector<2x2048xf32>,
    } else {
    }
    %c0 = arith.constant 0 : index
    %c0_1 = arith.constant 0 : index
    %3 = vector.load %arg3[%c0, %c0_1] : memref<1024x2048xi8, #tpu.memory_space<vmem>>, vector<1024x2048xi8>
    %4 = arith.sitofp %3 : vector<1024x2048xi8> to vector<1024x2048xf32>
    %c0_2 = arith.constant 0 : index
    %c0_3 = arith.constant 0 : index
    %5 = vector.load %arg7[%c0_2, %c0_3] : memref<2x2048xf32, #tpu.memory_space<vmem>>, vector<2x2048xf32>
    %c0_4 = arith.constant 0 : index
    %c0_5 = arith.constant 0 : index
    %6 = vector.load %arg2[%c0_4, %c0_5] : memref<2x1024xbf16, #tpu.memory_space<vmem>>, vector<2x1024xbf16>
    %7 = arith.extf %6 : vector<2x1024xbf16> to vector<2x1024xf32>
    %cst = arith.constant dense<0.000000e+00> : vector<2x2048xf32>
    %8 = tpu.matmul %7, %4, %cst {dimension_numbers = #tpu.dot_dimension_numbers<[1], [0], [0], [1], [0, 0, 1, 1], [], []>} : vector<2x1024xf32>, vector<1024x2048xf32>, vector<2x2048xf32> -> vector<2x2048xf32>
    %9 = arith.addf %5, %8 : vector<2x2048xf32>
    %c0_6 = arith.constant 0 : index
    %c0_7 = arith.constant 0 : index
    %10 = vector.load %arg7[%c0_6, %c0_7] : memref<2x2048xf32, #tpu.memory_space<vmem>>, vector<2x2048xf32>
    tpu.vector_store %arg7[%c0_6, %c0_7], %9 {strides = array<i32>} : memref<2x2048xf32, #tpu.memory_space<vmem>>, vector<2x2048xf32>,
    %c3_i32 = arith.constant 3 : i32
    %11 = arith.cmpi eq, %arg1, %c3_i32 : i32
    %12 = arith.extui %11 : i1 to i32
    %c0_i32_8 = arith.constant 0 : i32
    %13 = arith.cmpi ne, %12, %c0_i32_8 : i32
    scf.if %13 {
      %c0_9 = arith.constant 0 : index
      %c0_10 = arith.constant 0 : index
      %14 = vector.load %arg7[%c0_9, %c0_10] : memref<2x2048xf32, #tpu.memory_space<vmem>>, vector<2x2048xf32>
      %c0_11 = arith.constant 0 : index
      %c0_12 = arith.constant 0 : index
      %15 = vector.load %arg4[%c0_11, %c0_12] : memref<1x2048xf32, #tpu.memory_space<vmem>>, vector<1x2048xf32>
      %16 = vector.broadcast %15 : vector<1x2048xf32> to vector<2x2048xf32>
      %17 = arith.mulf %14, %16 : vector<2x2048xf32>
      %c0_13 = arith.constant 0 : index
      %c0_14 = arith.constant 0 : index
      %18 = vector.load %arg5[%c0_13, %c0_14] : memref<1x2048xf32, #tpu.memory_space<vmem>>, vector<1x2048xf32>
      %19 = vector.broadcast %18 : vector<1x2048xf32> to vector<2x2048xf32>
      %20 = arith.addf %17, %19 : vector<2x2048xf32>
      %c0_15 = arith.constant 0 : index
      %c0_16 = arith.constant 0 : index
      %21 = vector.load %arg6[%c0_15, %c0_16] : memref<2x2048xf32, #tpu.memory_space<vmem>>, vector<2x2048xf32>
      tpu.vector_store %arg6[%c0_15, %c0_16], %20 {strides = array<i32>} : memref<2x2048xf32, #tpu.memory_space<vmem>>, vector<2x2048xf32>,
    } else {
    }
    return
  }
  func.func @transform_0(%arg0: i32, %arg1: i32) -> (i32, i32) {
    %c0_i32 = arith.constant 0 : i32
    %c0_i32_0 = arith.constant 0 : i32
    return %c0_i32, %arg1 : i32, i32
  }
  func.func @transform_1(%arg0: i32, %arg1: i32) -> (i32, i32) {
    %c0_i32 = arith.constant 0 : i32
    return %arg1, %arg0 : i32, i32
  }
  func.func @transform_2(%arg0: i32, %arg1: i32) -> (i32, i32) {
    %c0_i32 = arith.constant 0 : i32
    %c0_i32_0 = arith.constant 0 : i32
    return %c0_i32, %arg0 : i32, i32
  }
  func.func @transform_3(%arg0: i32, %arg1: i32) -> (i32, i32) {
    %c0_i32 = arith.constant 0 : i32
    %c0_i32_0 = arith.constant 0 : i32
    return %c0_i32, %arg0 : i32, i32
  }
  func.func @transform_4(%arg0: i32, %arg1: i32) -> (i32, i32) {
    %c0_i32 = arith.constant 0 : i32
    %c0_i32_0 = arith.constant 0 : i32
    return %c0_i32, %arg0 : i32, i32
  }
}

</mosaic_0001>

<bundles_post_ra>
// kernel: chess_dqn_forward.3
= control target key start
LH: loop header
LB: loop body
LE: loop exit
PB: predicated region body
PF: predicated region fallthrough
CT: control target
= control target key end

     0   :  { %s11153_s0 = inlined_call_operand.vmem [shape: bf16[2,4096], index: 0, kind: input, shape index: {}]   ;;  %s11154_s1 = inlined_call_operand.hbm [shape: s8[4096,4096], index: 1, kind: input, shape index: {}]   ;;  %s11155_s2 = inlined_call_operand.hbm [shape: f32[1,4096], index: 2, kind: input, shape index: {}]   ;;  %s11156_s3 = inlined_call_operand.hbm [shape: f32[1,4096], index: 3, kind: input, shape index: {}]   ;;  %s11157_s4 = inlined_call_operand.vmem [shape: f32[2,4096], index: 4, kind: output, shape index: {}]  }
   0x1   :  { %11165 = sst [smem:[#allocation18_spill]] %s11155_s2 }
   0x2   :  { %11166 = sst [smem:[#allocation19_spill]] %s11156_s3 }
   0x3   :  { %11167 = sst [smem:[#allocation20_spill]] %s11157_s4 }
   0x4   :  { %9 = vsyncpa [#allocation4], 0 }
   0x5   :  { %11 = vsyncpa [#allocation4 + $0x1], 0 }
   0x6   :  { %12 = vsyncpa [#allocation6], 0 }
   0x7   :  { %14 = vsyncpa [#allocation6 + $0x1], 0  ;;  %s10201_s15 = smov 0   ;;  %s10203_s16 = smov 0  }
   0x8   :  { %s10205_s17 = smov 0   ;;  %s10207_s18 = smov 0  }
   0x9   :  { %s10209_s19 = smov 0   ;;  %s10211_s20 = smov 0  }
   0xa   :  { %s10213_s21 = smov 0   ;;  %s10215_s22 = smov 0  }
   0xb   :  { %s10217_s23 = smov 0   ;;  %s10219_s24 = smov 0  }
   0xc   :  { %s10221_s25 = smov 0  }
   0xd LB: > { %11168 = sst [smem:[#allocation10_spill]] %s10134_s17  ;;  %s11158_s26 = sadd.s32 4294967295, %s10166_s25   ;;  %s10166_s25 = sphi %s10221_s25, %s20_s25   ;;  %s10162_s24 = sphi %s10219_s24, %s11202_s24   ;;  %s10158_s23 = sphi %s10217_s23, %s11201_s23   ;;  %s10154_s22 = sphi %s10215_s22, %s11193_s22   ;;  %s10150_s21 = sphi %s10213_s21, %s11200_s21   ;;  %s10146_s20 = sphi %s10211_s20, %s11191_s20   ;;  %s10142_s19 = sphi %s10209_s19, %s11199_s19   ;;  %s10138_s18 = sphi %s10207_s18, %s11198_s18   ;;  %s10134_s17 = sphi %s10205_s17, %s11189_s17   ;;  %s10130_s16 = sphi %s10203_s16, %s11197_s16   ;;  %s10126_s15 = sphi %s10201_s15, %s11196_s15  }
   0xe   : > { %11169 = sst [smem:[#allocation11_spill]] %s10146_s20  ;;  %s29_s27 = sadd.s32 1, %s10158_s23 }
   0xf   : > { %11170 = sst [smem:[#allocation12_spill]] %s10158_s23  ;;  %p30_p0 = scmp.ge.s32.totalorder %s29_s27, 4 }
  0x10   : > { %11171 = sst [smem:[#allocation13_spill]] %s10162_s24  ;;  %s32_s28 = sadd.s32 1, %s10162_s24 }
  0x11   : > { %s67_s29 = sadd.s32 1, %s10146_s20  ;;  %p74_p1 = scmp.ne.s32.totalorder %s10146_s20, %s10142_s19 }
  0x12   : > { %s11204_s27 = smov (%p30_p0, %s29_s27), 0  ;;  %s11206_s28 = smov (!%p30_p0, %s32_s28), %s10162_s24 }
  0x13   : > { %11172 = sst [smem:[#allocation14_spill]] %s11204_s27  ;;  %s62_s30 = ssub.s32 %s10158_s23, %s11204_s27 }
  0x14   : > { %p75_p2 = scmp.eq.s32.totalorder %s10166_s25, 0  ;;  %p34_p3 = scmp.ge.s32.totalorder %s11206_s28, 2 }
  0x15   : > { %p80_p4 = scmp.ne.s32.totalorder %s10142_s19, %s10138_s18  ;;  %p10275_p6 = scmp.eq.s32.totalorder %s11158_s26, 0 }
  0x16   : > { %p10269_p5 = por %p75_p2, %p74_p1  ;;  %s11208_s28 = smov (%p34_p3, %s11206_s28), 0 }
  0x17   : > { %11175 = sst [smem:[#allocation15_spill]] %s11208_s28  ;;  %p10283_p7 = por %p10275_p6, %p80_p4 }
  0x18   : > { %s93_s8 = sadd.s32 1, %s10134_s17  ;;  %s63_s9 = ssub.s32 %s10162_s24, %s11208_s28 }
  0x19   : > { %p100_p8 = scmp.ne.s32.totalorder %s10134_s17, %s10130_s16  ;;  %s64_s10 = sor.u32 %s63_s9, %s62_s30 }
  0x1a   : > { %p91_p9 = scmp.eq.s32.totalorder %s63_s9, 0  ;;  %p65_p10 = scmp.eq.s32.totalorder %s64_s10, 0 }
  0x1b   : > { %p10294_p11 = por %p100_p8, %p75_p2  ;;  %p106_p12 = scmp.ne.s32.totalorder %s10130_s16, %s10126_s15 }
  0x1c   : > { %s10299_s12 = scalar_select %p91_p9, %s10134_s17, %s93_s8  }
  0x1d   : > { %s10302_s13 = scalar_select %p65_p10, %s10146_s20, %s67_s29  }
  0x1e   : > { %11178 = sst [smem:[#allocation16_spill]] %s10299_s12  ;;  %p9894_p13 = scmp.lt.s32.totalorder %s10166_s25, 8 }
  0x1f   : > { %11179 = sst [smem:[#allocation17_spill]] %s10302_s13  ;;  %s214_s14 = sand.u32 1, %s10166_s25  }
  0x20   : > { %p10310_p0 = por %p106_p12, %p10275_p6  ;;  %p10316_p1 = pnand %p9894_p13, %p10269_p5 }
  0x21   : > { %s216_s9 = sand.u32 1, %s10134_s17   ;;  %s7828_s8 = sshll.u32 %s10162_s24, 8 }
  0x22   : > { %s10321_s10 = sshll.u32 %s216_s9, 4  ;;  %s11182_s2 = sld [smem:[#allocation18_spill]] }
  0x23   : > { %s218_s28 = scalar_lea.vmem [#allocation5], %s10321_s10  ;;  %p10330_p2 = pnand %p9894_p13, %p10294_p11 }
  0x24   : > { %s226_s6 = sshll.u32 %s218_s28, 4  ;;  %s11184_s3 = sld [smem:[#allocation19_spill]]  ;;  %s227_s6 = int_to_ptr.vmem [resolvable:$true] %s226_s6 }
  0x25   : > { %p7816_p3 = scmp.ge.s32.totalorder %s10166_s25, 1  ;;  %s10340_s12 = scalar_lea.sflag [#allocation6], %s214_s14 }
  0x26   : > { %p9990_p4 = pneg %p10330_p2  ;;  %s10001_s26 = scalar_lea.vmem %s227_s6, 256 }
  0x27   : > { %p10002_p5 = scmp.ne.s32.totalorder %s227_s6, %s10001_s26  ;;  %s10168_s28 = smov [#allocation5]  }
  0x28   : > { %s224_s15 = scalar_lea.hbm %s11182_s2, %s7828_s8  ;;  %s10006_s11 = sshll.u32 %s10168_s28, 4  ;;  %s10007_s11 = int_to_ptr.vmem [resolvable:$false] %s10006_s11 }
  0x29   : > { %p10004_p6 = pnand %p10002_p5, %p9990_p4  ;;  %s10008_s29 = scalar_lea.vmem %s10007_s11, 512 }
  0x2a   : > { %s10337_s9 = scalar_lea.hbm %s11184_s3, %s7828_s8  ;;  %p10009_p9 = scmp.lt.s32.totalorder %s227_s6, %s10007_s11 }
  0x2b   : > { %p10005_p8 = pneg %p10004_p6  ;;  %p10010_p10 = scmp.lt.s32.totalorder %s10008_s29, %s10001_s26 }
  0x2d   : > { %p10011_p11 = por %p10010_p10, %p10009_p9 }
  0x2f   : > { %p10012_p12 = pnand %p10011_p11, %p10005_p8 }
  0x31   : > { %10015 = shalt.err (!%p10012_p12)
}
  0x32   : > { %9890 = dma.hbm_to_vmem [thread:$0]  (!%p10330_p2), %s224_s15, 256, %s227_s6, %s10340_s12  }
  0x33   : > { %p250_p13 = scmp.lt.s32.totalorder %s10166_s25, 9  ;;  %s190_s14 = sand.u32 1, %s10146_s20  }
  0x34   : > { %s7807_s8 = sshll.u32 %s10162_s24, 4  ;;  %s7805_s5 = sshll.u32 %s190_s14, 12 }
  0x35   : > { %p10353_p5 = pnand %p7816_p3, %p250_p13  ;;  %s7827_s26 = sshll.u32 %s10158_s23, 10 }
  0x36   : > { %s201_s28 = sadd.s32 %s7827_s26, %s7807_s8  ;;  %s194_s11 = scalar_lea.vmem [#allocation3], %s7805_s5 }
  0x37   : > { %s204_s29 = sshll.u32 %s194_s11, 4  ;;  %s7809_s2 = sshll.u32 %s201_s28, 7  ;;  %s205_s29 = int_to_ptr.vmem [resolvable:$true] %s204_s29 }
  0x38   : > { %s203_s4 = scalar_lea.hbm %s11154_s1, %s7809_s2  ;;  %s191_s15 = scalar_lea.sflag [#allocation4], %s190_s14 }
  0x39   : > { %p10018_p6 = pneg %p10316_p1  ;;  %s10029_s6 = scalar_lea.vmem %s205_s29, 65536 }
  0x3a   : > { %p10030_p3 = scmp.ne.s32.totalorder %s205_s29, %s10029_s6  ;;  %s10169_s20 = smov [#allocation3]  }
  0x3b   : > { %s10034_s24 = sshll.u32 %s10169_s20, 4  ;;  %s10035_s24 = int_to_ptr.vmem [resolvable:$false] %s10034_s24 }
  0x3c   : > { %p10032_p8 = pnand %p10030_p3, %p10018_p6  ;;  %s10036_s23 = scalar_lea.vmem %s10035_s24, 131072 }
  0x3d   : > { %p10037_p10 = scmp.lt.s32.totalorder %s205_s29, %s10035_s24  ;;  %p10038_p11 = scmp.lt.s32.totalorder %s10036_s23, %s10029_s6 }
  0x3e   : > { %p10033_p9 = pneg %p10032_p8 }
  0x3f   : > { %p10039_p12 = por %p10038_p11, %p10037_p10 }
  0x41   : > { %p10040_p13 = pnand %p10039_p12, %p10033_p9 }
  0x43   : > { %10043 = shalt.err (!%p10040_p13)
}
  0x44   : > { %s10170_s8 = smov 4096   ;;  %s10171_s2 = smov 2048  }
  0x45   : > { %s10172_s3 = smov 128   ;;  %s237_s17 = scalar_lea.vmem [#allocation7], %s10321_s10 }
  0x46   : > { %9887 = dma.hbm_to_vmem [thread:$0]  (!%p10316_p1), %s203_s4, 65536, %s205_s29, %s191_s15, %s10170_s8, %s10171_s2, %s10172_s3  }
  0x47   : > { %s245_s14 = sshll.u32 %s237_s17, 4  ;;  %s10173_s20 = smov [#allocation7]   ;;  %s246_s14 = int_to_ptr.vmem [resolvable:$true] %s245_s14 }
  0x48   : > { %s10057_s5 = scalar_lea.vmem %s246_s14, 256  ;;  %s10062_s23 = sshll.u32 %s10173_s20, 4  ;;  %s10063_s23 = int_to_ptr.vmem [resolvable:$false] %s10062_s23 }
  0x49   : > { %p10058_p6 = scmp.ne.s32.totalorder %s246_s14, %s10057_s5  ;;  %s10064_s24 = scalar_lea.vmem %s10063_s23, 512 }
  0x4a   : > { %p10065_p9 = scmp.lt.s32.totalorder %s246_s14, %s10063_s23  ;;  %p10066_p10 = scmp.lt.s32.totalorder %s10064_s24, %s10057_s5 }
  0x4b   : > { %p10060_p3 = pnand %p10058_p6, %p9990_p4 }
  0x4c   : > { %p10067_p11 = por %p10066_p10, %p10065_p9 }
  0x4d   : > { %p10061_p8 = pneg %p10060_p3 }
  0x4f   : > { %p10068_p12 = pnand %p10067_p11, %p10061_p8 }
  0x51   : > { %10071 = shalt.err (!%p10068_p12)
}
  0x52   : > { %9893 = dma.hbm_to_vmem [thread:$0]  (!%p10330_p2), %s10337_s9, 256, %s246_s14, %s10340_s12  }
  0x53   : > { %254 = sbr.rel (%p10353_p5) target bundleno = 1372 (0x55c), region = 36  ;;  %s256_s4 = sand.u32 (!%p10353_p5), 1, %s10142_s19  }
  0x54   : > { %s7817_s30 = sshll.u32 (!%p10353_p5), %s256_s4, 12  ;;  %s257_s10 = scalar_lea.sflag (!%p10353_p5), [#allocation4], %s256_s4 }
  0x55   : > { %s10378_s26 = scalar_lea.vmem (!%p10353_p5), [#allocation3], %s7817_s30 }
  0x58   : > { %10117 = dma.done.wait (%p10283_p7), %s257_s10, 65536  }
  0x59   : > { %10119 = vsyncadd (%p10283_p7), %s257_s10, 4294901760  ;;  %s11186_s27 = sadd.s32 4294967295, %s10166_s25   ;;  %s267_s9 = sand.u32 1, %s10130_s16  }
  0x5a   : > { %s265_s12 = sand.u32 1, %s11186_s27   ;;  %s10387_s13 = sshll.u32 %s267_s9, 4 }
  0x5b   : > { %s266_s28 = scalar_lea.sflag [#allocation6], %s265_s12  ;;  %s269_s11 = scalar_lea.vmem [#allocation5], %s10387_s13 }
  0x5c   : > { %10121 = dma.done.wait (%p10310_p0), %s266_s28, 512  }
  0x5d   : > { %10123 = vsyncadd (%p10310_p0), %s266_s28, 4294966784  ;;  %s7820_s7 = sshll.u32 %s10150_s21, 3  ;;  %s7821_s29 = sshll.u32 %s10154_s22, 4 }
  0x5e   : > { %p318_p7 = scmp.lt.s32.totalorder %s7820_s7, 31  ;;  %p327_p1 = scmp.lt.s32.totalorder %s7821_s29, 31 }
  0x5f   : > { %s11187_s18 = sld [smem:[#allocation20_spill]]  ;;  %s278_s5 = scalar_lea.vmem [#allocation7], %s10387_s13 }
  0x60   : > { %s11210_s7 = smov (!%p318_p7, %s7820_s7), 31  ;;  %s11212_s29 = smov (!%p327_p1, %s7821_s29), 31 }
  0x61   : > { %s320_s8 = scalar_lea.vmem %s11153_s0, %s11210_s7  ;;  %s7822_s2 = sshll.u32 %s11212_s29, 1 }
  0x62   : > { %p7823_p0 = scmp.ne.s32.totalorder %s10150_s21, 0 }
  0x64   : > { %335 = sbr.rel (%p7823_p0) target bundleno = 108 (0x6c), region = 52 }
  0x65   : > { %s10405_s14 = scalar_lea.vmem %s11187_s18, %s7822_s2 }
  0x69   : > { %v10174_v0 = vmov 0.0  }
  0x6a   : > { %336 = vst [vmem:[#allocation2 + $0x10] sm:$0xff] %v10174_v0  ;;  %337 = vst [vmem:[#allocation2] sm:$0xff] %v10174_v0 }
  0x6b   : > { %338 = vst [vmem:[#allocation2 + $0x18] sm:$0xff] %v10174_v0  ;;  %339 = vst [vmem:[#allocation2 + $0x8] sm:$0xff] %v10174_v0 }
  0x6c PF: > { %v389_v1 = vld [vmem:[%s10378_s26 + $0x188] sm:$0xff]  ;;  %v388_v3 = vld [vmem:[%s10378_s26 + $0x180] sm:$0xff]  ;;  %v4961_v31 = vlaneseq  ;;  %v10175_v38 = vmov 1983009808   ;;  %p7824_p2 = scmp.ne.s32.totalorder %s10150_s21, 3 }
  0x6d   : > { %v517_v2 = vld [vmem:[%s10378_s26 + $0x588] sm:$0xff]  ;;  %v7830_v4 = vunpack.c.h.s8.bf16 %v389_v1  ;;  %v7834_v5 = vunpack.c.l.s8.bf16 %v389_v1  ;;  %v516_v8 = vld [vmem:[%s10378_s26 + $0x580] sm:$0xff]  ;;  %v7832_v9 = vunpack.c.h.s8.bf16 %v388_v3  ;;  %v7836_v13 = vunpack.c.l.s8.bf16 %v388_v3 }
  0x6e   : > { %v7894_v6 = vunpack.c.h.s8.bf16 %v517_v2  ;;  %v7898_v7 = vunpack.c.l.s8.bf16 %v517_v2  ;;  %v7896_v10 = vunpack.c.h.s8.bf16 %v516_v8  ;;  %v373_v11 = vld [vmem:[%s10378_s26 + $0x108] sm:$0xff]  ;;  %v7900_v14 = vunpack.c.l.s8.bf16 %v516_v8  ;;  %v372_v17 = vld [vmem:[%s10378_s26 + $0x100] sm:$0xff] }
  0x6f   : > { %v501_v12 = vld [vmem:[%s10378_s26 + $0x508] sm:$0xff]  ;;  %7831 = vmatprep.subr.bf16.mxu0 %v7830_v4  ;;  %v7838_v15 = vunpack.c.h.s8.bf16 %v373_v11  ;;  %v500_v18 = vld [vmem:[%s10378_s26 + $0x500] sm:$0xff]  ;;  %v7840_v19 = vunpack.c.h.s8.bf16 %v372_v17  ;;  %v7842_v21 = vunpack.c.l.s8.bf16 %v373_v11  ;;  %v7844_v25 = vunpack.c.l.s8.bf16 %v372_v17 }
  0x70   : > { %7895 = vmatprep.subr.bf16.mxu1 %v7894_v6  ;;  %7833 = vmatpush1.bf16.msra.mxu0 %v7832_v9  ;;  %v7902_v16 = vunpack.c.h.s8.bf16 %v501_v12  ;;  %v7904_v20 = vunpack.c.h.s8.bf16 %v500_v18  ;;  %v7906_v22 = vunpack.c.l.s8.bf16 %v501_v12  ;;  %v357_v23 = vld [vmem:[%s10378_s26 + $0x88] sm:$0xff]  ;;  %v7908_v26 = vunpack.c.l.s8.bf16 %v500_v18  ;;  %v356_v29 = vld [vmem:[%s10378_s26 + $0x80] sm:$0xff] }
  0x71   : > { %7897 = vmatpush1.bf16.msra.mxu1 %v7896_v10  ;;  %7835 = vmatprep.subr.bf16.mxu0 %v7834_v5  ;;  %v485_v24 = vld [vmem:[%s10378_s26 + $0x488] sm:$0xff]  ;;  %v7846_v27 = vunpack.c.h.s8.bf16 %v357_v23  ;;  %v484_v30 = vld [vmem:[%s10378_s26 + $0x480] sm:$0xff]  ;;  %v7848_v33 = vunpack.c.h.s8.bf16 %v356_v29  ;;  %v7850_v35 = vunpack.c.l.s8.bf16 %v357_v23  ;;  %v4959_v39 = vunpack.c.l.s4 %v10175_v38 }
  0x72   : > { %7899 = vmatprep.subr.bf16.mxu1 %v7898_v7  ;;  %v7910_v28 = vunpack.c.h.s8.bf16 %v485_v24  ;;  %v10426_v32 = vld [vmem:[%s320_s8] sm:$0xff]  ;;  %v7912_v34 = vunpack.c.h.s8.bf16 %v484_v30  ;;  %v7914_v36 = vunpack.c.l.s8.bf16 %v485_v24  ;;  %v10429_v40 = vshrl.u32 %v4961_v31, 7  ;;  %v341_v41 = vld [vmem:[%s10378_s26 + $0x8] sm:$0xff] }
  0x73   : > { %v4953_v37 = vunpack.c.l.bf16 %v10426_v32  ;;  %v469_v42 = vld [vmem:[%s10378_s26 + $0x408] sm:$0xff]  ;;  %v4960_v43 = vunpack.c.0.s8 %v4959_v39  ;;  %v7852_v45 = vunpack.c.l.s8.bf16 %v356_v29  ;;  %v7916_v46 = vunpack.c.l.s8.bf16 %v484_v30  ;;  %v340_v49 = vld [vmem:[%s10378_s26] sm:$0xff] }
  0x74   : > { %7837 = vmatpush1.bf16.msra.mxu0 %v7836_v13  ;;  %v7854_v47 = vunpack.c.h.s8.bf16 %v341_v41  ;;  %v7918_v48 = vunpack.c.h.s8.bf16 %v469_v42  ;;  %v468_v50 = vld [vmem:[%s10378_s26 + $0x400] sm:$0xff]  ;;  %v7856_v54 = vunpack.c.h.s8.bf16 %v340_v49  ;;  %v7858_v56 = vunpack.c.l.s8.bf16 %v341_v41  ;;  %v453_v60 = vld [vmem:[%s10378_s26 + $0x388] sm:$0xff] }
  0x75   : > { %7901 = vmatpush1.bf16.msra.mxu1 %v7900_v14  ;;  %7839 = vmatprep.subr.bf16.mxu0 %v7838_v15  ;;  %v4957_v44 = vcombine.high %v4953_v37, %v4953_v37  ;;  %v10436_v51 = vsub.s32 %v4960_v43, %v10429_v40  ;;  %v7920_v55 = vunpack.c.h.s8.bf16 %v468_v50  ;;  %v7922_v57 = vunpack.c.l.s8.bf16 %v469_v42  ;;  %v581_v61 = vld [vmem:[%s10378_s26 + $0x788] sm:$0xff]  ;;  %v452_v2 = vld [vmem:[%s10378_s26 + $0x380] sm:$0xff] }
  0x76   : > { %7903 = vmatprep.subr.bf16.mxu1 %v7902_v16  ;;  %v7860_v62 = vunpack.c.l.s8.bf16 %v340_v49  ;;  %v7924_v63 = vunpack.c.l.s8.bf16 %v468_v50  ;;  %v7862_v0 = vunpack.c.h.s8.bf16 %v453_v60  ;;  %v7926_v1 = vunpack.c.h.s8.bf16 %v581_v61  ;;  %v580_v3 = vld [vmem:[%s10378_s26 + $0x780] sm:$0xff]  ;;  %v437_v8 = vld [vmem:[%s10378_s26 + $0x308] sm:$0xff] }
  0x77   : > { %v10439_v52 = vrot.slane %v4953_v37, %v10436_v51  ;;  %v10442_v53 = vrot.slane %v4957_v44, %v10436_v51  ;;  %v7864_v4 = vunpack.c.h.s8.bf16 %v452_v2  ;;  %v7928_v5 = vunpack.c.h.s8.bf16 %v580_v3  ;;  %v565_v9 = vld [vmem:[%s10378_s26 + $0x708] sm:$0xff]  ;;  %v436_v14 = vld [vmem:[%s10378_s26 + $0x300] sm:$0xff] }
  0x78   : > { %7841 = vmatpush1.bf16.msra.mxu0 %v7840_v19  ;;  %v7866_v6 = vunpack.c.l.s8.bf16 %v453_v60  ;;  %v7930_v7 = vunpack.c.l.s8.bf16 %v581_v61  ;;  %v7868_v10 = vunpack.c.l.s8.bf16 %v452_v2  ;;  %v7932_v11 = vunpack.c.l.s8.bf16 %v580_v3  ;;  %v564_v15 = vld [vmem:[%s10378_s26 + $0x700] sm:$0xff]  ;;  %v629_v2 = vld [vmem:[%s10378_s26 + $0x908] sm:$0xff] }
  0x79   : > { %7905 = vmatpush1.bf16.msra.mxu1 %v7904_v20  ;;  %7843 = vmatprep.subr.bf16.mxu0 %v7842_v21  ;;  %v10446_v58 = vcombine.high %v10439_v52, %v10439_v52  ;;  %v10450_v59 = vcombine.high %v10442_v53, %v10442_v53  ;;  %v7870_v12 = vunpack.c.h.s8.bf16 %v437_v8  ;;  %v7934_v13 = vunpack.c.h.s8.bf16 %v565_v9  ;;  %v421_v20 = vld [vmem:[%s10378_s26 + $0x288] sm:$0xff]  ;;  %v404_v39 = vld [vmem:[%s10378_s26 + $0x200] sm:$0xff] }
  0x7a   : > { %7907 = vmatprep.subr.bf16.mxu1 %v7906_v22  ;;  %v7872_v16 = vunpack.c.h.s8.bf16 %v436_v14  ;;  %v7936_v17 = vunpack.c.h.s8.bf16 %v564_v15  ;;  %v7874_v18 = vunpack.c.l.s8.bf16 %v437_v8  ;;  %v7938_v19 = vunpack.c.l.s8.bf16 %v565_v9  ;;  %v549_v21 = vld [vmem:[%s10378_s26 + $0x688] sm:$0xff]  ;;  %v532_v41 = vld [vmem:[%s10378_s26 + $0x600] sm:$0xff] }
  0x7b   : > { %5063 = vmatprep.mubr.f32.mxu0 %v10446_v58  ;;  %5134 = vmatprep.mubr.f32.mxu1 %v10450_v59  ;;  %v7876_v22 = vunpack.c.l.s8.bf16 %v436_v14  ;;  %v7940_v23 = vunpack.c.l.s8.bf16 %v564_v15  ;;  %v7878_v24 = vunpack.c.h.s8.bf16 %v421_v20  ;;  %v7882_v30 = vunpack.c.l.s8.bf16 %v421_v20  ;;  %v757_v3 = vld [vmem:[%s10378_s26 + $0xd08] sm:$0xff] }
  0x7c   : > { %7845 = vmatpush1.bf16.msra.mxu0 %v7844_v25  ;;  %v7942_v25 = vunpack.c.h.s8.bf16 %v549_v21  ;;  %v7946_v31 = vunpack.c.l.s8.bf16 %v549_v21  ;;  %v4954_v42 = vunpack.c.h.bf16 %v10426_v32  ;;  %v7888_v43 = vunpack.c.h.s8.bf16 %v404_v39 }
  0x7d   : > { %7909 = vmatpush1.bf16.msra.mxu1 %v7908_v26  ;;  %7847 = vmatprep.subr.bf16.mxu0 %v7846_v27  ;;  %v420_v26 = vld [vmem:[%s10378_s26 + $0x280] sm:$0xff]  ;;  %v7952_v44 = vunpack.c.h.s8.bf16 %v532_v41  ;;  %v7892_v50 = vunpack.c.l.s8.bf16 %v404_v39  ;;  %v7966_v8 = vunpack.c.h.s8.bf16 %v629_v2  ;;  %v8030_v9 = vunpack.c.h.s8.bf16 %v757_v3 }
  0x7e   : > { %7911 = vmatprep.subr.bf16.mxu1 %v7910_v28  ;;  %v548_v27 = vld [vmem:[%s10378_s26 + $0x680] sm:$0xff]  ;;  %v7880_v28 = vunpack.c.h.s8.bf16 %v420_v26  ;;  %v4974_v49 = vcombine.high %v4954_v42, %v4954_v42  ;;  %v10476_v60 = vrot.slane %v4954_v42, %v10436_v51  ;;  %v7970_v14 = vunpack.c.l.s8.bf16 %v629_v2  ;;  %v709_v42 = vld [vmem:[%s10378_s26 + $0xb88] sm:$0xff] }
  0x7f   : > { %v7944_v29 = vunpack.c.h.s8.bf16 %v548_v27  ;;  %v8034_v15 = vunpack.c.l.s8.bf16 %v757_v3  ;;  %v692_v2 = vld [vmem:[%s10378_s26 + $0xb00] sm:$0xff] }
  0x80   : > { %7849 = vmatpush1.bf16.msra.mxu0 %v7848_v33  ;;  %v405_v33 = vld [vmem:[%s10378_s26 + $0x208] sm:$0xff]  ;;  %v10479_v61 = vrot.slane %v4974_v49, %v10436_v51  ;;  %v836_v49 = vld [vmem:[%s10378_s26 + $0xf80] sm:$0xff] }
  0x81   : > { %7913 = vmatpush1.bf16.msra.mxu1 %v7912_v34  ;;  %7851 = vmatprep.subr.bf16.mxu0 %v7850_v35  ;;  %v533_v34 = vld [vmem:[%s10378_s26 + $0x608] sm:$0xff]  ;;  %v7884_v35 = vunpack.c.l.s8.bf16 %v420_v26  ;;  %v7886_v37 = vunpack.c.h.s8.bf16 %v405_v33  ;;  %v820_v3 = vld [vmem:[%s10378_s26 + $0xf00] sm:$0xff] }
  0x82   : > { %7915 = vmatprep.subr.bf16.mxu1 %v7914_v36  ;;  %v7948_v36 = vunpack.c.l.s8.bf16 %v548_v27  ;;  %v7950_v38 = vunpack.c.h.s8.bf16 %v533_v34 }
  0x84   : > { %7853 = vmatpush1.bf16.msra.mxu0 %v7852_v45  ;;  %v7890_v45 = vunpack.c.l.s8.bf16 %v405_v33 }
  0x85   : > { %7917 = vmatpush1.bf16.msra.mxu1 %v7916_v46  ;;  %7855 = vmatprep.subr.bf16.mxu0 %v7854_v47  ;;  %v7954_v46 = vunpack.c.l.s8.bf16 %v533_v34  ;;  %v645_v47 = vld [vmem:[%s10378_s26 + $0x988] sm:$0xff] }
  0x86   : > { %7919 = vmatprep.subr.bf16.mxu1 %v7918_v48  ;;  %v773_v48 = vld [vmem:[%s10378_s26 + $0xd88] sm:$0xff]  ;;  %v7958_v32 = vunpack.c.h.s8.bf16 %v645_v47 }
  0x88   : > { %7857 = vmatpush1.bf16.msra.mxu0 %v7856_v54  ;;  %v7956_v54 = vunpack.c.l.s8.bf16 %v532_v41 }
  0x89   : > { %7921 = vmatpush1.bf16.msra.mxu1 %v7920_v55  ;;  %7859 = vmatprep.subr.bf16.mxu0 %v7858_v56  ;;  %v8022_v55 = vunpack.c.h.s8.bf16 %v773_v48  ;;  %v644_v56 = vld [vmem:[%s10378_s26 + $0x980] sm:$0xff] }
  0x8a   : > { %7923 = vmatprep.subr.bf16.mxu1 %v7922_v57  ;;  %v772_v57 = vld [vmem:[%s10378_s26 + $0xd80] sm:$0xff] }
  0x8c   : > { %7861 = vmatpush1.bf16.msra.mxu0 %v7860_v62  ;;  %v7960_v62 = vunpack.c.h.s8.bf16 %v644_v56 }
  0x8d   : > { %7925 = vmatpush1.bf16.msra.mxu1 %v7924_v63  ;;  %7863 = vmatprep.subr.bf16.mxu0 %v7862_v0  ;;  %v8024_v63 = vunpack.c.h.s8.bf16 %v772_v57  ;;  %v7962_v0 = vunpack.c.l.s8.bf16 %v645_v47 }
  0x8e   : > { %7927 = vmatprep.subr.bf16.mxu1 %v7926_v1  ;;  %v8026_v1 = vunpack.c.l.s8.bf16 %v773_v48  ;;  %v708_v48 = vld [vmem:[%s10378_s26 + $0xb80] sm:$0xff] }
  0x90   : > { %7865 = vmatpush2.bf16.msra.mxu0 %v7864_v4  ;;  %v10485_v4 = vcombine.high %v10476_v60, %v10476_v60 }
  0x91   : > { %7929 = vmatpush2.bf16.msra.mxu1 %v7928_v5  ;;  %7867 = vmatprep.subr.bf16.mxu0 %v7866_v6  ;;  %v10489_v5 = vcombine.high %v10479_v61, %v10479_v61  ;;  %v7964_v6 = vunpack.c.l.s8.bf16 %v644_v56  ;;  %v693_v56 = vld [vmem:[%s10378_s26 + $0xb08] sm:$0xff] }
  0x92   : > { %7931 = vmatprep.subr.bf16.mxu1 %v7930_v7  ;;  %v8028_v7 = vunpack.c.l.s8.bf16 %v772_v57  ;;  %v821_v57 = vld [vmem:[%s10378_s26 + $0xf08] sm:$0xff] }
  0x94   : > { %7869 = vmatpush2.bf16.msra.mxu0 %v7868_v10  ;;  %v628_v10 = vld [vmem:[%s10378_s26 + $0x900] sm:$0xff] }
  0x95   : > { %7933 = vmatpush2.bf16.msra.mxu1 %v7932_v11  ;;  %7871 = vmatprep.subr.bf16.mxu0 %v7870_v12  ;;  %v756_v11 = vld [vmem:[%s10378_s26 + $0xd00] sm:$0xff]  ;;  %v7968_v12 = vunpack.c.h.s8.bf16 %v628_v10 }
  0x96   : > { %7935 = vmatprep.subr.bf16.mxu1 %v7934_v13  ;;  %v8032_v13 = vunpack.c.h.s8.bf16 %v756_v11 }
  0x98   : > { %7873 = vmatpush2.bf16.msra.mxu0 %v7872_v16  ;;  %v613_v16 = vld [vmem:[%s10378_s26 + $0x888] sm:$0xff] }
  0x99   : > { %7937 = vmatpush2.bf16.msra.mxu1 %v7936_v17  ;;  %7875 = vmatprep.subr.bf16.mxu0 %v7874_v18  ;;  %v741_v17 = vld [vmem:[%s10378_s26 + $0xc88] sm:$0xff]  ;;  %v7972_v18 = vunpack.c.l.s8.bf16 %v628_v10  ;;  %v7974_v20 = vunpack.c.h.s8.bf16 %v613_v16  ;;  %v7978_v26 = vunpack.c.l.s8.bf16 %v613_v16  ;;  %v676_v16 = vld [vmem:[%s10378_s26 + $0xa80] sm:$0xff] }
  0x9a   : > { %7939 = vmatprep.subr.bf16.mxu1 %v7938_v19  ;;  %v8036_v19 = vunpack.c.l.s8.bf16 %v756_v11  ;;  %v8038_v21 = vunpack.c.h.s8.bf16 %v741_v17  ;;  %v8042_v27 = vunpack.c.l.s8.bf16 %v741_v17  ;;  %v677_v10 = vld [vmem:[%s10378_s26 + $0xa88] sm:$0xff]  ;;  %v804_v17 = vld [vmem:[%s10378_s26 + $0xe80] sm:$0xff] }
  0x9b   : > { %v805_v11 = vld [vmem:[%s10378_s26 + $0xe88] sm:$0xff] }
  0x9c   : > { %7877 = vmatpush2.bf16.msra.mxu0 %v7876_v22  ;;  %v612_v22 = vld [vmem:[%s10378_s26 + $0x880] sm:$0xff] }
  0x9d   : > { %7941 = vmatpush2.bf16.msra.mxu1 %v7940_v23  ;;  %7879 = vmatprep.subr.bf16.mxu0 %v7878_v24  ;;  %v740_v23 = vld [vmem:[%s10378_s26 + $0xc80] sm:$0xff]  ;;  %v7976_v24 = vunpack.c.h.s8.bf16 %v612_v22 }
  0x9e   : > { %7943 = vmatprep.subr.bf16.mxu1 %v7942_v25  ;;  %v8040_v25 = vunpack.c.h.s8.bf16 %v740_v23 }
  0xa0   : > { %7881 = vmatpush2.bf16.msra.mxu0 %v7880_v28  ;;  %v597_v28 = vld [vmem:[%s10378_s26 + $0x808] sm:$0xff] }
  0xa1   : > { %7945 = vmatpush2.bf16.msra.mxu1 %v7944_v29  ;;  %7883 = vmatprep.subr.bf16.mxu0 %v7882_v30  ;;  %v725_v29 = vld [vmem:[%s10378_s26 + $0xc08] sm:$0xff]  ;;  %v7980_v30 = vunpack.c.l.s8.bf16 %v612_v22  ;;  %v7982_v33 = vunpack.c.h.s8.bf16 %v597_v28  ;;  %v7986_v39 = vunpack.c.l.s8.bf16 %v597_v28  ;;  %v660_v28 = vld [vmem:[%s10378_s26 + $0xa00] sm:$0xff] }
  0xa2   : > { %7947 = vmatprep.subr.bf16.mxu1 %v7946_v31  ;;  %v8044_v31 = vunpack.c.l.s8.bf16 %v740_v23  ;;  %v8046_v34 = vunpack.c.h.s8.bf16 %v725_v29  ;;  %v8050_v41 = vunpack.c.l.s8.bf16 %v725_v29  ;;  %v661_v22 = vld [vmem:[%s10378_s26 + $0xa08] sm:$0xff]  ;;  %v788_v29 = vld [vmem:[%s10378_s26 + $0xe00] sm:$0xff] }
  0xa3   : > { %v789_v23 = vld [vmem:[%s10378_s26 + $0xe08] sm:$0xff] }
  0xa4   : > { %7885 = vmatpush2.bf16.msra.mxu0 %v7884_v35  ;;  %v596_v35 = vld [vmem:[%s10378_s26 + $0x800] sm:$0xff] }
  0xa5   : > { %7949 = vmatpush2.bf16.msra.mxu1 %v7948_v36  ;;  %7887 = vmatprep.subr.bf16.mxu0 %v7886_v37  ;;  %v724_v36 = vld [vmem:[%s10378_s26 + $0xc00] sm:$0xff]  ;;  %v7984_v37 = vunpack.c.h.s8.bf16 %v596_v35 }
  0xa6   : > { %7951 = vmatprep.subr.bf16.mxu1 %v7950_v38  ;;  %v8048_v38 = vunpack.c.h.s8.bf16 %v724_v36 }
  0xa8   : > { %7889 = vmatpush2.bf16.msra.mxu0 %v7888_v43  ;;  %v837_v43 = vld [vmem:[%s10378_s26 + $0xf88] sm:$0xff] }
  0xa9   : > { %7953 = vmatpush2.bf16.msra.mxu1 %v7952_v44  ;;  %7891 = vmatprep.subr.bf16.mxu0 %v7890_v45  ;;  %v7988_v44 = vunpack.c.l.s8.bf16 %v596_v35  ;;  %v8052_v45 = vunpack.c.l.s8.bf16 %v724_v36  ;;  %v8054_v47 = vunpack.c.h.s8.bf16 %v837_v43  ;;  %v391_v35 = vld [vmem:[%s10378_s26 + $0x198] sm:$0xff] }
  0xaa   : > { %7955 = vmatprep.subr.bf16.mxu1 %v7954_v46  ;;  %v7990_v46 = vunpack.c.h.s8.bf16 %v709_v42  ;;  %v519_v36 = vld [vmem:[%s10378_s26 + $0x598] sm:$0xff] }
  0xac   : > { %7893 = vmatpush2.bf16.msra.mxu0 %v7892_v50  ;;  %v7992_v50 = vunpack.c.h.s8.bf16 %v708_v48 }
  0xad   : > { %7957 = vmatpush2.bf16.msra.mxu1 %v7956_v54  ;;  %7959 = vmatprep.subr.bf16.mxu0 %v7958_v32  ;;  %v8056_v54 = vunpack.c.h.s8.bf16 %v836_v49  ;;  %v7994_v32 = vunpack.c.l.s8.bf16 %v709_v42  ;;  %v390_v42 = vld [vmem:[%s10378_s26 + $0x190] sm:$0xff] }
  0xae   : > { %8023 = vmatprep.subr.bf16.mxu1 %v8022_v55  ;;  %v8058_v55 = vunpack.c.l.s8.bf16 %v837_v43  ;;  %v518_v43 = vld [vmem:[%s10378_s26 + $0x590] sm:$0xff] }
  0xaf   : > { %5064 = vmatmul.mubr.f32.vlgmr.msra.gmra.mxu0 %v10439_v52 }
  0xb0   : > { %5135 = vmatmul.mubr.f32.vlgmr.msra.gmra.mxu1 %v10442_v53  ;;  %7961 = vmatpush1.bf16.msra.mxu0 %v7960_v62  ;;  %v7996_v62 = vunpack.c.l.s8.bf16 %v708_v48  ;;  %v375_v48 = vld [vmem:[%s10378_s26 + $0x118] sm:$0xff] }
  0xb1   : > { %8025 = vmatpush1.bf16.msra.mxu1 %v8024_v63  ;;  %7963 = vmatprep.subr.bf16.mxu0 %v7962_v0  ;;  %v8060_v63 = vunpack.c.l.s8.bf16 %v836_v49  ;;  %v7998_v0 = vunpack.c.h.s8.bf16 %v693_v56  ;;  %v503_v49 = vld [vmem:[%s10378_s26 + $0x518] sm:$0xff] }
  0xb2   : > { %8027 = vmatprep.subr.bf16.mxu1 %v8026_v1  ;;  %5205 = vmatprep.mubr.f32.mxu0 %v10485_v4  ;;  %v8062_v1 = vunpack.c.h.s8.bf16 %v821_v57 }
  0xb3   : > { %5276 = vmatprep.mubr.f32.mxu1 %v10489_v5 }
  0xb4   : > { %7965 = vmatpush1.bf16.msra.mxu0 %v7964_v6  ;;  %v8000_v6 = vunpack.c.h.s8.bf16 %v692_v2 }
  0xb5   : > { %8029 = vmatpush1.bf16.msra.mxu1 %v8028_v7  ;;  %7967 = vmatprep.subr.bf16.mxu0 %v7966_v8  ;;  %v8064_v7 = vunpack.c.h.s8.bf16 %v820_v3  ;;  %v8002_v8 = vunpack.c.l.s8.bf16 %v693_v56  ;;  %v374_v56 = vld [vmem:[%s10378_s26 + $0x110] sm:$0xff] }
  0xb6   : > { %8031 = vmatprep.subr.bf16.mxu1 %v8030_v9  ;;  %v8066_v9 = vunpack.c.l.s8.bf16 %v821_v57  ;;  %v502_v57 = vld [vmem:[%s10378_s26 + $0x510] sm:$0xff] }
  0xb8   : > { %7969 = vmatpush1.bf16.msra.mxu0 %v7968_v12  ;;  %v8004_v12 = vunpack.c.l.s8.bf16 %v692_v2  ;;  %v359_v2 = vld [vmem:[%s10378_s26 + $0x98] sm:$0xff] }
  0xb9   : > { %8033 = vmatpush1.bf16.msra.mxu1 %v8032_v13  ;;  %7971 = vmatprep.subr.bf16.mxu0 %v7970_v14  ;;  %v8068_v13 = vunpack.c.l.s8.bf16 %v820_v3  ;;  %v8006_v14 = vunpack.c.h.s8.bf16 %v677_v10  ;;  %v487_v3 = vld [vmem:[%s10378_s26 + $0x498] sm:$0xff] }
  0xba   : > { %8035 = vmatprep.subr.bf16.mxu1 %v8034_v15  ;;  %v8070_v15 = vunpack.c.h.s8.bf16 %v805_v11 }
  0xbc   : > { %7973 = vmatpush1.bf16.msra.mxu0 %v7972_v18  ;;  %v8008_v18 = vunpack.c.h.s8.bf16 %v676_v16 }
  0xbd   : > { %8037 = vmatpush1.bf16.msra.mxu1 %v8036_v19  ;;  %7975 = vmatprep.subr.bf16.mxu0 %v7974_v20  ;;  %v8072_v19 = vunpack.c.h.s8.bf16 %v804_v17  ;;  %v8010_v20 = vunpack.c.l.s8.bf16 %v677_v10  ;;  %v358_v10 = vld [vmem:[%s10378_s26 + $0x90] sm:$0xff] }
  0xbe   : > { %8039 = vmatprep.subr.bf16.mxu1 %v8038_v21  ;;  %v8074_v21 = vunpack.c.l.s8.bf16 %v805_v11  ;;  %v486_v11 = vld [vmem:[%s10378_s26 + $0x490] sm:$0xff] }
  0xc0   : > { %7977 = vmatpush1.bf16.msra.mxu0 %v7976_v24  ;;  %v8012_v24 = vunpack.c.l.s8.bf16 %v676_v16  ;;  %v343_v16 = vld [vmem:[%s10378_s26 + $0x18] sm:$0xff] }
  0xc1   : > { %8041 = vmatpush1.bf16.msra.mxu1 %v8040_v25  ;;  %7979 = vmatprep.subr.bf16.mxu0 %v7978_v26  ;;  %v8076_v25 = vunpack.c.l.s8.bf16 %v804_v17  ;;  %v8014_v26 = vunpack.c.h.s8.bf16 %v661_v22  ;;  %v471_v17 = vld [vmem:[%s10378_s26 + $0x418] sm:$0xff] }
  0xc2   : > { %8043 = vmatprep.subr.bf16.mxu1 %v8042_v27  ;;  %v8078_v27 = vunpack.c.h.s8.bf16 %v789_v23 }
  0xc4   : > { %7981 = vmatpush1.bf16.msra.mxu0 %v7980_v30  ;;  %v8016_v30 = vunpack.c.h.s8.bf16 %v660_v28 }
  0xc5   : > { %8045 = vmatpush1.bf16.msra.mxu1 %v8044_v31  ;;  %7983 = vmatprep.subr.bf16.mxu0 %v7982_v33  ;;  %v8080_v31 = vunpack.c.h.s8.bf16 %v788_v29  ;;  %v8018_v33 = vunpack.c.l.s8.bf16 %v661_v22  ;;  %v342_v22 = vld [vmem:[%s10378_s26 + $0x10] sm:$0xff] }
  0xc6   : > { %8047 = vmatprep.subr.bf16.mxu1 %v8046_v34  ;;  %v8082_v34 = vunpack.c.l.s8.bf16 %v789_v23  ;;  %v470_v23 = vld [vmem:[%s10378_s26 + $0x410] sm:$0xff] }
  0xc8   : > { %7985 = vmatpush1.bf16.msra.mxu0 %v7984_v37  ;;  %v8020_v37 = vunpack.c.l.s8.bf16 %v660_v28  ;;  %v455_v28 = vld [vmem:[%s10378_s26 + $0x398] sm:$0xff] }
  0xc9   : > { %8049 = vmatpush1.bf16.msra.mxu1 %v8048_v38  ;;  %7987 = vmatprep.subr.bf16.mxu0 %v7986_v39  ;;  %v8084_v38 = vunpack.c.l.s8.bf16 %v788_v29  ;;  %v8086_v39 = vunpack.c.h.s8.bf16 %v391_v35  ;;  %v583_v29 = vld [vmem:[%s10378_s26 + $0x798] sm:$0xff] }
  0xca   : > { %8051 = vmatprep.subr.bf16.mxu1 %v8050_v41  ;;  %v8150_v41 = vunpack.c.h.s8.bf16 %v519_v36 }
  0xcc   : > { %7989 = vmatpush1.bf16.msra.mxu0 %v7988_v44  ;;  %v8088_v44 = vunpack.c.h.s8.bf16 %v390_v42 }
  0xcd   : > { %8053 = vmatpush1.bf16.msra.mxu1 %v8052_v45  ;;  %7991 = vmatprep.subr.bf16.mxu0 %v7990_v46  ;;  %v8152_v45 = vunpack.c.h.s8.bf16 %v518_v43  ;;  %v8090_v46 = vunpack.c.l.s8.bf16 %v391_v35  ;;  %v454_v35 = vld [vmem:[%s10378_s26 + $0x390] sm:$0xff] }
  0xce   : > { %8055 = vmatprep.subr.bf16.mxu1 %v8054_v47  ;;  %v8154_v47 = vunpack.c.l.s8.bf16 %v519_v36  ;;  %v582_v36 = vld [vmem:[%s10378_s26 + $0x790] sm:$0xff] }
  0xd0   : > { %7993 = vmatpush2.bf16.msra.mxu0 %v7992_v50  ;;  %v8092_v50 = vunpack.c.l.s8.bf16 %v390_v42  ;;  %v439_v42 = vld [vmem:[%s10378_s26 + $0x318] sm:$0xff] }
  0xd1   : > { %8057 = vmatpush2.bf16.msra.mxu1 %v8056_v54  ;;  %7995 = vmatprep.subr.bf16.mxu0 %v7994_v32  ;;  %v8156_v54 = vunpack.c.l.s8.bf16 %v518_v43  ;;  %v8094_v32 = vunpack.c.h.s8.bf16 %v375_v48  ;;  %v567_v43 = vld [vmem:[%s10378_s26 + $0x718] sm:$0xff] }
  0xd2   : > { %8059 = vmatprep.subr.bf16.mxu1 %v8058_v55  ;;  %v8158_v55 = vunpack.c.h.s8.bf16 %v503_v49 }
  0xd4   : > { %7997 = vmatpush2.bf16.msra.mxu0 %v7996_v62  ;;  %v8096_v62 = vunpack.c.h.s8.bf16 %v374_v56 }
  0xd5   : > { %8061 = vmatpush2.bf16.msra.mxu1 %v8060_v63  ;;  %7999 = vmatprep.subr.bf16.mxu0 %v7998_v0  ;;  %v8160_v63 = vunpack.c.h.s8.bf16 %v502_v57  ;;  %v8098_v0 = vunpack.c.l.s8.bf16 %v375_v48  ;;  %v438_v48 = vld [vmem:[%s10378_s26 + $0x310] sm:$0xff] }
  0xd6   : > { %8063 = vmatprep.subr.bf16.mxu1 %v8062_v1  ;;  %v8162_v1 = vunpack.c.l.s8.bf16 %v503_v49  ;;  %v566_v49 = vld [vmem:[%s10378_s26 + $0x710] sm:$0xff] }
  0xd8   : > { %8001 = vmatpush2.bf16.msra.mxu0 %v8000_v6  ;;  %v8100_v6 = vunpack.c.l.s8.bf16 %v374_v56  ;;  %v423_v56 = vld [vmem:[%s10378_s26 + $0x298] sm:$0xff] }
  0xd9   : > { %8065 = vmatpush2.bf16.msra.mxu1 %v8064_v7  ;;  %8003 = vmatprep.subr.bf16.mxu0 %v8002_v8  ;;  %v8164_v7 = vunpack.c.l.s8.bf16 %v502_v57  ;;  %v8102_v8 = vunpack.c.h.s8.bf16 %v359_v2  ;;  %v551_v57 = vld [vmem:[%s10378_s26 + $0x698] sm:$0xff] }
  0xda   : > { %8067 = vmatprep.subr.bf16.mxu1 %v8066_v9  ;;  %v8166_v9 = vunpack.c.h.s8.bf16 %v487_v3 }
  0xdc   : > { %8005 = vmatpush2.bf16.msra.mxu0 %v8004_v12  ;;  %v8104_v12 = vunpack.c.h.s8.bf16 %v358_v10 }
  0xdd   : > { %8069 = vmatpush2.bf16.msra.mxu1 %v8068_v13  ;;  %8007 = vmatprep.subr.bf16.mxu0 %v8006_v14  ;;  %v8168_v13 = vunpack.c.h.s8.bf16 %v486_v11  ;;  %v8106_v14 = vunpack.c.l.s8.bf16 %v359_v2  ;;  %v422_v2 = vld [vmem:[%s10378_s26 + $0x290] sm:$0xff] }
  0xde   : > { %8071 = vmatprep.subr.bf16.mxu1 %v8070_v15  ;;  %v8170_v15 = vunpack.c.l.s8.bf16 %v487_v3  ;;  %v550_v3 = vld [vmem:[%s10378_s26 + $0x690] sm:$0xff] }
  0xe0   : > { %8009 = vmatpush2.bf16.msra.mxu0 %v8008_v18  ;;  %v8108_v18 = vunpack.c.l.s8.bf16 %v358_v10  ;;  %v407_v10 = vld [vmem:[%s10378_s26 + $0x218] sm:$0xff] }
  0xe1   : > { %8073 = vmatpush2.bf16.msra.mxu1 %v8072_v19  ;;  %8011 = vmatprep.subr.bf16.mxu0 %v8010_v20  ;;  %v8172_v19 = vunpack.c.l.s8.bf16 %v486_v11  ;;  %v8110_v20 = vunpack.c.h.s8.bf16 %v343_v16  ;;  %v535_v11 = vld [vmem:[%s10378_s26 + $0x618] sm:$0xff] }
  0xe2   : > { %8075 = vmatprep.subr.bf16.mxu1 %v8074_v21  ;;  %v8174_v21 = vunpack.c.h.s8.bf16 %v471_v17 }
  0xe4   : > { %8013 = vmatpush2.bf16.msra.mxu0 %v8012_v24  ;;  %v8112_v24 = vunpack.c.h.s8.bf16 %v342_v22 }
  0xe5   : > { %8077 = vmatpush2.bf16.msra.mxu1 %v8076_v25  ;;  %8015 = vmatprep.subr.bf16.mxu0 %v8014_v26  ;;  %v8176_v25 = vunpack.c.h.s8.bf16 %v470_v23  ;;  %v8114_v26 = vunpack.c.l.s8.bf16 %v343_v16  ;;  %v406_v16 = vld [vmem:[%s10378_s26 + $0x210] sm:$0xff] }
  0xe6   : > { %8079 = vmatprep.subr.bf16.mxu1 %v8078_v27  ;;  %v8178_v27 = vunpack.c.l.s8.bf16 %v471_v17  ;;  %v534_v17 = vld [vmem:[%s10378_s26 + $0x610] sm:$0xff] }
  0xe8   : > { %8017 = vmatpush2.bf16.msra.mxu0 %v8016_v30  ;;  %v8116_v30 = vunpack.c.l.s8.bf16 %v342_v22  ;;  %v647_v22 = vld [vmem:[%s10378_s26 + $0x998] sm:$0xff] }
  0xe9   : > { %8081 = vmatpush2.bf16.msra.mxu1 %v8080_v31  ;;  %8019 = vmatprep.subr.bf16.mxu0 %v8018_v33  ;;  %v8180_v31 = vunpack.c.l.s8.bf16 %v470_v23  ;;  %v8118_v33 = vunpack.c.h.s8.bf16 %v455_v28  ;;  %v775_v23 = vld [vmem:[%s10378_s26 + $0xd98] sm:$0xff] }
  0xea   : > { %8083 = vmatprep.subr.bf16.mxu1 %v8082_v34  ;;  %v8182_v34 = vunpack.c.h.s8.bf16 %v583_v29 }
  0xec   : > { %8021 = vmatpush2.bf16.msra.mxu0 %v8020_v37  ;;  %v8120_v37 = vunpack.c.h.s8.bf16 %v454_v35 }
  0xed   : > { %8085 = vmatpush2.bf16.msra.mxu1 %v8084_v38  ;;  %8087 = vmatprep.subr.bf16.mxu0 %v8086_v39  ;;  %v8184_v38 = vunpack.c.h.s8.bf16 %v582_v36  ;;  %v8122_v39 = vunpack.c.l.s8.bf16 %v455_v28  ;;  %v646_v28 = vld [vmem:[%s10378_s26 + $0x990] sm:$0xff] }
  0xee   : > { %8151 = vmatprep.subr.bf16.mxu1 %v8150_v41  ;;  %v8186_v41 = vunpack.c.l.s8.bf16 %v583_v29  ;;  %v774_v29 = vld [vmem:[%s10378_s26 + $0xd90] sm:$0xff] }
  0xef   : > { %5206 = vmatmul.mubr.f32.vlgmr.msra.gmra.mxu0 %v10476_v60 }
  0xf0   : > { %5277 = vmatmul.mubr.f32.vlgmr.msra.gmra.mxu1 %v10479_v61  ;;  %8089 = vmatpush1.bf16.msra.mxu0 %v8088_v44  ;;  %v8124_v44 = vunpack.c.l.s8.bf16 %v454_v35  ;;  %v631_v35 = vld [vmem:[%s10378_s26 + $0x918] sm:$0xff] }
  0xf1   : > { %8153 = vmatpush1.bf16.msra.mxu1 %v8152_v45  ;;  %8091 = vmatprep.subr.bf16.mxu0 %v8090_v46  ;;  %v8188_v45 = vunpack.c.l.s8.bf16 %v582_v36  ;;  %v8126_v46 = vunpack.c.h.s8.bf16 %v439_v42  ;;  %v759_v36 = vld [vmem:[%s10378_s26 + $0xd18] sm:$0xff] }
  0xf2   : > { %8155 = vmatprep.subr.bf16.mxu1 %v8154_v47  ;;  %5347 = vmatprep.mubr.f32.mxu0 %v10446_v58  ;;  %v8190_v47 = vunpack.c.h.s8.bf16 %v567_v43 }
  0xf3   : > { %5418 = vmatprep.mubr.f32.mxu1 %v10450_v59 }
  0xf4   : > { %8093 = vmatpush1.bf16.msra.mxu0 %v8092_v50  ;;  %v8128_v50 = vunpack.c.h.s8.bf16 %v438_v48 }
  0xf5   : > { %8157 = vmatpush1.bf16.msra.mxu1 %v8156_v54  ;;  %8095 = vmatprep.subr.bf16.mxu0 %v8094_v32  ;;  %v8192_v54 = vunpack.c.h.s8.bf16 %v566_v49  ;;  %v8130_v32 = vunpack.c.l.s8.bf16 %v439_v42  ;;  %v630_v42 = vld [vmem:[%s10378_s26 + $0x910] sm:$0xff] }
  0xf6   : > { %8159 = vmatprep.subr.bf16.mxu1 %v8158_v55  ;;  %v8194_v55 = vunpack.c.l.s8.bf16 %v567_v43  ;;  %v758_v43 = vld [vmem:[%s10378_s26 + $0xd10] sm:$0xff] }
  0xf8   : > { %8097 = vmatpush1.bf16.msra.mxu0 %v8096_v62  ;;  %v8132_v62 = vunpack.c.l.s8.bf16 %v438_v48  ;;  %v615_v48 = vld [vmem:[%s10378_s26 + $0x898] sm:$0xff] }
  0xf9   : > { %8161 = vmatpush1.bf16.msra.mxu1 %v8160_v63  ;;  %8099 = vmatprep.subr.bf16.mxu0 %v8098_v0  ;;  %v8196_v63 = vunpack.c.l.s8.bf16 %v566_v49  ;;  %v8134_v0 = vunpack.c.h.s8.bf16 %v423_v56  ;;  %v743_v49 = vld [vmem:[%s10378_s26 + $0xc98] sm:$0xff] }
  0xfa   : > { %8163 = vmatprep.subr.bf16.mxu1 %v8162_v1  ;;  %v8198_v1 = vunpack.c.h.s8.bf16 %v551_v57 }
  0xfc   : > { %8101 = vmatpush1.bf16.msra.mxu0 %v8100_v6  ;;  %v8136_v6 = vunpack.c.h.s8.bf16 %v422_v2 }
  0xfd   : > { %8165 = vmatpush1.bf16.msra.mxu1 %v8164_v7  ;;  %8103 = vmatprep.subr.bf16.mxu0 %v8102_v8  ;;  %v8200_v7 = vunpack.c.h.s8.bf16 %v550_v3  ;;  %v8138_v8 = vunpack.c.l.s8.bf16 %v423_v56  ;;  %v614_v56 = vld [vmem:[%s10378_s26 + $0x890] sm:$0xff] }
  0xfe   : > { %8167 = vmatprep.subr.bf16.mxu1 %v8166_v9  ;;  %v8202_v9 = vunpack.c.l.s8.bf16 %v551_v57  ;;  %v742_v57 = vld [vmem:[%s10378_s26 + $0xc90] sm:$0xff] }
 0x100   : > { %8105 = vmatpush1.bf16.msra.mxu0 %v8104_v12  ;;  %v8140_v12 = vunpack.c.l.s8.bf16 %v422_v2  ;;  %v599_v2 = vld [vmem:[%s10378_s26 + $0x818] sm:$0xff] }
 0x101   : > { %8169 = vmatpush1.bf16.msra.mxu1 %v8168_v13  ;;  %8107 = vmatprep.subr.bf16.mxu0 %v8106_v14  ;;  %v8204_v13 = vunpack.c.l.s8.bf16 %v550_v3  ;;  %v8142_v14 = vunpack.c.h.s8.bf16 %v407_v10  ;;  %v727_v3 = vld [vmem:[%s10378_s26 + $0xc18] sm:$0xff] }
 0x102   : > { %8171 = vmatprep.subr.bf16.mxu1 %v8170_v15  ;;  %v8206_v15 = vunpack.c.h.s8.bf16 %v535_v11 }
 0x104   : > { %8109 = vmatpush1.bf16.msra.mxu0 %v8108_v18  ;;  %v8144_v18 = vunpack.c.h.s8.bf16 %v406_v16 }
 0x105   : > { %8173 = vmatpush1.bf16.msra.mxu1 %v8172_v19  ;;  %8111 = vmatprep.subr.bf16.mxu0 %v8110_v20  ;;  %v8208_v19 = vunpack.c.h.s8.bf16 %v534_v17  ;;  %v8146_v20 = vunpack.c.l.s8.bf16 %v407_v10  ;;  %v598_v10 = vld [vmem:[%s10378_s26 + $0x810] sm:$0xff] }
 0x106   : > { %8175 = vmatprep.subr.bf16.mxu1 %v8174_v21  ;;  %v8210_v21 = vunpack.c.l.s8.bf16 %v535_v11  ;;  %v726_v11 = vld [vmem:[%s10378_s26 + $0xc10] sm:$0xff] }
 0x108   : > { %8113 = vmatpush1.bf16.msra.mxu0 %v8112_v24  ;;  %v8148_v24 = vunpack.c.l.s8.bf16 %v406_v16  ;;  %v711_v16 = vld [vmem:[%s10378_s26 + $0xb98] sm:$0xff] }
 0x109   : > { %8177 = vmatpush1.bf16.msra.mxu1 %v8176_v25  ;;  %8115 = vmatprep.subr.bf16.mxu0 %v8114_v26  ;;  %v8212_v25 = vunpack.c.l.s8.bf16 %v534_v17  ;;  %v8214_v26 = vunpack.c.h.s8.bf16 %v647_v22  ;;  %v839_v17 = vld [vmem:[%s10378_s26 + $0xf98] sm:$0xff] }
 0x10a   : > { %8179 = vmatprep.subr.bf16.mxu1 %v8178_v27  ;;  %v8278_v27 = vunpack.c.h.s8.bf16 %v775_v23 }
 0x10c   : > { %8117 = vmatpush1.bf16.msra.mxu0 %v8116_v30  ;;  %v8216_v30 = vunpack.c.h.s8.bf16 %v646_v28 }
 0x10d   : > { %8181 = vmatpush1.bf16.msra.mxu1 %v8180_v31  ;;  %8119 = vmatprep.subr.bf16.mxu0 %v8118_v33  ;;  %v8280_v31 = vunpack.c.h.s8.bf16 %v774_v29  ;;  %v8218_v33 = vunpack.c.l.s8.bf16 %v647_v22  ;;  %v710_v22 = vld [vmem:[%s10378_s26 + $0xb90] sm:$0xff] }
 0x10e   : > { %8183 = vmatprep.subr.bf16.mxu1 %v8182_v34  ;;  %v8282_v34 = vunpack.c.l.s8.bf16 %v775_v23  ;;  %v838_v23 = vld [vmem:[%s10378_s26 + $0xf90] sm:$0xff] }
 0x110   : > { %8121 = vmatpush2.bf16.msra.mxu0 %v8120_v37  ;;  %v8220_v37 = vunpack.c.l.s8.bf16 %v646_v28  ;;  %v695_v28 = vld [vmem:[%s10378_s26 + $0xb18] sm:$0xff] }
 0x111   : > { %8185 = vmatpush2.bf16.msra.mxu1 %v8184_v38  ;;  %8123 = vmatprep.subr.bf16.mxu0 %v8122_v39  ;;  %v8284_v38 = vunpack.c.l.s8.bf16 %v774_v29  ;;  %v8222_v39 = vunpack.c.h.s8.bf16 %v631_v35  ;;  %v823_v29 = vld [vmem:[%s10378_s26 + $0xf18] sm:$0xff] }
 0x112   : > { %8187 = vmatprep.subr.bf16.mxu1 %v8186_v41  ;;  %v8286_v41 = vunpack.c.h.s8.bf16 %v759_v36 }
 0x114   : > { %8125 = vmatpush2.bf16.msra.mxu0 %v8124_v44  ;;  %v8224_v44 = vunpack.c.h.s8.bf16 %v630_v42 }
 0x115   : > { %8189 = vmatpush2.bf16.msra.mxu1 %v8188_v45  ;;  %8127 = vmatprep.subr.bf16.mxu0 %v8126_v46  ;;  %v8288_v45 = vunpack.c.h.s8.bf16 %v758_v43  ;;  %v8226_v46 = vunpack.c.l.s8.bf16 %v631_v35  ;;  %v694_v35 = vld [vmem:[%s10378_s26 + $0xb10] sm:$0xff] }
 0x116   : > { %8191 = vmatprep.subr.bf16.mxu1 %v8190_v47  ;;  %v8290_v47 = vunpack.c.l.s8.bf16 %v759_v36  ;;  %v822_v36 = vld [vmem:[%s10378_s26 + $0xf10] sm:$0xff] }
 0x118   : > { %8129 = vmatpush2.bf16.msra.mxu0 %v8128_v50  ;;  %v8228_v50 = vunpack.c.l.s8.bf16 %v630_v42  ;;  %v679_v42 = vld [vmem:[%s10378_s26 + $0xa98] sm:$0xff] }
 0x119   : > { %8193 = vmatpush2.bf16.msra.mxu1 %v8192_v54  ;;  %8131 = vmatprep.subr.bf16.mxu0 %v8130_v32  ;;  %v8292_v54 = vunpack.c.l.s8.bf16 %v758_v43  ;;  %v8230_v32 = vunpack.c.h.s8.bf16 %v615_v48  ;;  %v807_v43 = vld [vmem:[%s10378_s26 + $0xe98] sm:$0xff] }
 0x11a   : > { %8195 = vmatprep.subr.bf16.mxu1 %v8194_v55  ;;  %v8294_v55 = vunpack.c.h.s8.bf16 %v743_v49 }
 0x11c   : > { %8133 = vmatpush2.bf16.msra.mxu0 %v8132_v62  ;;  %v8232_v62 = vunpack.c.h.s8.bf16 %v614_v56 }
 0x11d   : > { %8197 = vmatpush2.bf16.msra.mxu1 %v8196_v63  ;;  %8135 = vmatprep.subr.bf16.mxu0 %v8134_v0  ;;  %v8296_v63 = vunpack.c.h.s8.bf16 %v742_v57  ;;  %v8234_v0 = vunpack.c.l.s8.bf16 %v615_v48  ;;  %v678_v48 = vld [vmem:[%s10378_s26 + $0xa90] sm:$0xff] }
 0x11e   : > { %8199 = vmatprep.subr.bf16.mxu1 %v8198_v1  ;;  %v8298_v1 = vunpack.c.l.s8.bf16 %v743_v49  ;;  %v806_v49 = vld [vmem:[%s10378_s26 + $0xe90] sm:$0xff] }
 0x120   : > { %8137 = vmatpush2.bf16.msra.mxu0 %v8136_v6  ;;  %v8236_v6 = vunpack.c.l.s8.bf16 %v614_v56  ;;  %v663_v56 = vld [vmem:[%s10378_s26 + $0xa18] sm:$0xff] }
 0x121   : > { %8201 = vmatpush2.bf16.msra.mxu1 %v8200_v7  ;;  %8139 = vmatprep.subr.bf16.mxu0 %v8138_v8  ;;  %v8300_v7 = vunpack.c.l.s8.bf16 %v742_v57  ;;  %v8238_v8 = vunpack.c.h.s8.bf16 %v599_v2  ;;  %v791_v57 = vld [vmem:[%s10378_s26 + $0xe18] sm:$0xff] }
 0x122   : > { %8203 = vmatprep.subr.bf16.mxu1 %v8202_v9  ;;  %v8302_v9 = vunpack.c.h.s8.bf16 %v727_v3 }
 0x124   : > { %8141 = vmatpush2.bf16.msra.mxu0 %v8140_v12  ;;  %v8240_v12 = vunpack.c.h.s8.bf16 %v598_v10 }
 0x125   : > { %8205 = vmatpush2.bf16.msra.mxu1 %v8204_v13  ;;  %8143 = vmatprep.subr.bf16.mxu0 %v8142_v14  ;;  %v8304_v13 = vunpack.c.h.s8.bf16 %v726_v11  ;;  %v8242_v14 = vunpack.c.l.s8.bf16 %v599_v2  ;;  %v662_v2 = vld [vmem:[%s10378_s26 + $0xa10] sm:$0xff] }
 0x126   : > { %8207 = vmatprep.subr.bf16.mxu1 %v8206_v15  ;;  %v8306_v15 = vunpack.c.l.s8.bf16 %v727_v3  ;;  %v790_v3 = vld [vmem:[%s10378_s26 + $0xe10] sm:$0xff] }
 0x128   : > { %8145 = vmatpush2.bf16.msra.mxu0 %v8144_v18  ;;  %v8244_v18 = vunpack.c.l.s8.bf16 %v598_v10  ;;  %v393_v10 = vld [vmem:[%s10378_s26 + $0x1a8] sm:$0xff] }
 0x129   : > { %8209 = vmatpush2.bf16.msra.mxu1 %v8208_v19  ;;  %8147 = vmatprep.subr.bf16.mxu0 %v8146_v20  ;;  %v8308_v19 = vunpack.c.l.s8.bf16 %v726_v11  ;;  %v8246_v20 = vunpack.c.h.s8.bf16 %v711_v16  ;;  %v521_v11 = vld [vmem:[%s10378_s26 + $0x5a8] sm:$0xff] }
 0x12a   : > { %8211 = vmatprep.subr.bf16.mxu1 %v8210_v21  ;;  %v8310_v21 = vunpack.c.h.s8.bf16 %v839_v17 }
 0x12c   : > { %8149 = vmatpush2.bf16.msra.mxu0 %v8148_v24  ;;  %v8248_v24 = vunpack.c.h.s8.bf16 %v710_v22 }
 0x12d   : > { %8213 = vmatpush2.bf16.msra.mxu1 %v8212_v25  ;;  %8215 = vmatprep.subr.bf16.mxu0 %v8214_v26  ;;  %v8312_v25 = vunpack.c.h.s8.bf16 %v838_v23  ;;  %v8250_v26 = vunpack.c.l.s8.bf16 %v711_v16  ;;  %v392_v16 = vld [vmem:[%s10378_s26 + $0x1a0] sm:$0xff] }
 0x12e   : > { %8279 = vmatprep.subr.bf16.mxu1 %v8278_v27  ;;  %v8314_v27 = vunpack.c.l.s8.bf16 %v839_v17  ;;  %v520_v17 = vld [vmem:[%s10378_s26 + $0x5a0] sm:$0xff] }
 0x12f   : > { %5348 = vmatmul.mubr.f32.vlgmr.msra.gmra.mxu0 %v10439_v52 }
 0x130   : > { %5419 = vmatmul.mubr.f32.vlgmr.msra.gmra.mxu1 %v10442_v53  ;;  %8217 = vmatpush1.bf16.msra.mxu0 %v8216_v30  ;;  %v8252_v30 = vunpack.c.l.s8.bf16 %v710_v22  ;;  %v377_v22 = vld [vmem:[%s10378_s26 + $0x128] sm:$0xff] }
 0x131   : > { %8281 = vmatpush1.bf16.msra.mxu1 %v8280_v31  ;;  %8219 = vmatprep.subr.bf16.mxu0 %v8218_v33  ;;  %v8316_v31 = vunpack.c.l.s8.bf16 %v838_v23  ;;  %v8254_v33 = vunpack.c.h.s8.bf16 %v695_v28  ;;  %v505_v23 = vld [vmem:[%s10378_s26 + $0x528] sm:$0xff] }
 0x132   : > { %8283 = vmatprep.subr.bf16.mxu1 %v8282_v34  ;;  %5489 = vmatprep.mubr.f32.mxu0 %v10485_v4  ;;  %v8318_v34 = vunpack.c.h.s8.bf16 %v823_v29 }
 0x133   : > { %5560 = vmatprep.mubr.f32.mxu1 %v10489_v5 }
 0x134   : > { %8221 = vmatpush1.bf16.msra.mxu0 %v8220_v37  ;;  %v8256_v37 = vunpack.c.h.s8.bf16 %v694_v35 }
 0x135   : > { %8285 = vmatpush1.bf16.msra.mxu1 %v8284_v38  ;;  %8223 = vmatprep.subr.bf16.mxu0 %v8222_v39  ;;  %v8320_v38 = vunpack.c.h.s8.bf16 %v822_v36  ;;  %v8258_v39 = vunpack.c.l.s8.bf16 %v695_v28  ;;  %v376_v28 = vld [vmem:[%s10378_s26 + $0x120] sm:$0xff] }
 0x136   : > { %8287 = vmatprep.subr.bf16.mxu1 %v8286_v41  ;;  %v8322_v41 = vunpack.c.l.s8.bf16 %v823_v29  ;;  %v504_v29 = vld [vmem:[%s10378_s26 + $0x520] sm:$0xff] }
 0x138   : > { %8225 = vmatpush1.bf16.msra.mxu0 %v8224_v44  ;;  %v8260_v44 = vunpack.c.l.s8.bf16 %v694_v35  ;;  %v361_v35 = vld [vmem:[%s10378_s26 + $0xa8] sm:$0xff] }
 0x139   : > { %8289 = vmatpush1.bf16.msra.mxu1 %v8288_v45  ;;  %8227 = vmatprep.subr.bf16.mxu0 %v8226_v46  ;;  %v8324_v45 = vunpack.c.l.s8.bf16 %v822_v36  ;;  %v8262_v46 = vunpack.c.h.s8.bf16 %v679_v42  ;;  %v489_v36 = vld [vmem:[%s10378_s26 + $0x4a8] sm:$0xff] }
 0x13a   : > { %8291 = vmatprep.subr.bf16.mxu1 %v8290_v47  ;;  %v8326_v47 = vunpack.c.h.s8.bf16 %v807_v43 }
 0x13c   : > { %8229 = vmatpush1.bf16.msra.mxu0 %v8228_v50  ;;  %v8264_v50 = vunpack.c.h.s8.bf16 %v678_v48 }
 0x13d   : > { %8293 = vmatpush1.bf16.msra.mxu1 %v8292_v54  ;;  %8231 = vmatprep.subr.bf16.mxu0 %v8230_v32  ;;  %v8328_v54 = vunpack.c.h.s8.bf16 %v806_v49  ;;  %v8266_v32 = vunpack.c.l.s8.bf16 %v679_v42  ;;  %v360_v42 = vld [vmem:[%s10378_s26 + $0xa0] sm:$0xff] }
 0x13e   : > { %8295 = vmatprep.subr.bf16.mxu1 %v8294_v55  ;;  %v8330_v55 = vunpack.c.l.s8.bf16 %v807_v43  ;;  %v488_v43 = vld [vmem:[%s10378_s26 + $0x4a0] sm:$0xff] }
 0x140   : > { %8233 = vmatpush1.bf16.msra.mxu0 %v8232_v62  ;;  %v8268_v62 = vunpack.c.l.s8.bf16 %v678_v48  ;;  %v345_v48 = vld [vmem:[%s10378_s26 + $0x28] sm:$0xff] }
 0x141   : > { %8297 = vmatpush1.bf16.msra.mxu1 %v8296_v63  ;;  %8235 = vmatprep.subr.bf16.mxu0 %v8234_v0  ;;  %v8332_v63 = vunpack.c.l.s8.bf16 %v806_v49  ;;  %v8270_v0 = vunpack.c.h.s8.bf16 %v663_v56  ;;  %v473_v49 = vld [vmem:[%s10378_s26 + $0x428] sm:$0xff] }
 0x142   : > { %8299 = vmatprep.subr.bf16.mxu1 %v8298_v1  ;;  %v8334_v1 = vunpack.c.h.s8.bf16 %v791_v57 }
 0x144   : > { %8237 = vmatpush1.bf16.msra.mxu0 %v8236_v6  ;;  %v8272_v6 = vunpack.c.h.s8.bf16 %v662_v2 }
 0x145   : > { %8301 = vmatpush1.bf16.msra.mxu1 %v8300_v7  ;;  %8239 = vmatprep.subr.bf16.mxu0 %v8238_v8  ;;  %v8336_v7 = vunpack.c.h.s8.bf16 %v790_v3  ;;  %v8274_v8 = vunpack.c.l.s8.bf16 %v663_v56  ;;  %v344_v56 = vld [vmem:[%s10378_s26 + $0x20] sm:$0xff] }
 0x146   : > { %8303 = vmatprep.subr.bf16.mxu1 %v8302_v9  ;;  %v8338_v9 = vunpack.c.l.s8.bf16 %v791_v57  ;;  %v472_v57 = vld [vmem:[%s10378_s26 + $0x420] sm:$0xff] }
 0x148   : > { %8241 = vmatpush1.bf16.msra.mxu0 %v8240_v12  ;;  %v8276_v12 = vunpack.c.l.s8.bf16 %v662_v2  ;;  %v457_v2 = vld [vmem:[%s10378_s26 + $0x3a8] sm:$0xff] }
 0x149   : > { %8305 = vmatpush1.bf16.msra.mxu1 %v8304_v13  ;;  %8243 = vmatprep.subr.bf16.mxu0 %v8242_v14  ;;  %v8340_v13 = vunpack.c.l.s8.bf16 %v790_v3  ;;  %v8342_v14 = vunpack.c.h.s8.bf16 %v393_v10  ;;  %v585_v3 = vld [vmem:[%s10378_s26 + $0x7a8] sm:$0xff] }
 0x14a   : > { %8307 = vmatprep.subr.bf16.mxu1 %v8306_v15  ;;  %v8406_v15 = vunpack.c.h.s8.bf16 %v521_v11 }
 0x14c   : > { %8245 = vmatpush1.bf16.msra.mxu0 %v8244_v18  ;;  %v8344_v18 = vunpack.c.h.s8.bf16 %v392_v16 }
 0x14d   : > { %8309 = vmatpush1.bf16.msra.mxu1 %v8308_v19  ;;  %8247 = vmatprep.subr.bf16.mxu0 %v8246_v20  ;;  %v8408_v19 = vunpack.c.h.s8.bf16 %v520_v17  ;;  %v8346_v20 = vunpack.c.l.s8.bf16 %v393_v10  ;;  %v456_v10 = vld [vmem:[%s10378_s26 + $0x3a0] sm:$0xff] }
 0x14e   : > { %8311 = vmatprep.subr.bf16.mxu1 %v8310_v21  ;;  %v8410_v21 = vunpack.c.l.s8.bf16 %v521_v11  ;;  %v584_v11 = vld [vmem:[%s10378_s26 + $0x7a0] sm:$0xff] }
 0x150   : > { %8249 = vmatpush2.bf16.msra.mxu0 %v8248_v24  ;;  %v8348_v24 = vunpack.c.l.s8.bf16 %v392_v16  ;;  %v441_v16 = vld [vmem:[%s10378_s26 + $0x328] sm:$0xff] }
 0x151   : > { %8313 = vmatpush2.bf16.msra.mxu1 %v8312_v25  ;;  %8251 = vmatprep.subr.bf16.mxu0 %v8250_v26  ;;  %v8412_v25 = vunpack.c.l.s8.bf16 %v520_v17  ;;  %v8350_v26 = vunpack.c.h.s8.bf16 %v377_v22  ;;  %v569_v17 = vld [vmem:[%s10378_s26 + $0x728] sm:$0xff] }
 0x152   : > { %8315 = vmatprep.subr.bf16.mxu1 %v8314_v27  ;;  %v8414_v27 = vunpack.c.h.s8.bf16 %v505_v23 }
 0x154   : > { %8253 = vmatpush2.bf16.msra.mxu0 %v8252_v30  ;;  %v8352_v30 = vunpack.c.h.s8.bf16 %v376_v28 }
 0x155   : > { %8317 = vmatpush2.bf16.msra.mxu1 %v8316_v31  ;;  %8255 = vmatprep.subr.bf16.mxu0 %v8254_v33  ;;  %v8416_v31 = vunpack.c.h.s8.bf16 %v504_v29  ;;  %v8354_v33 = vunpack.c.l.s8.bf16 %v377_v22  ;;  %v440_v22 = vld [vmem:[%s10378_s26 + $0x320] sm:$0xff] }
 0x156   : > { %8319 = vmatprep.subr.bf16.mxu1 %v8318_v34  ;;  %v8418_v34 = vunpack.c.l.s8.bf16 %v505_v23  ;;  %v568_v23 = vld [vmem:[%s10378_s26 + $0x720] sm:$0xff] }
 0x158   : > { %8257 = vmatpush2.bf16.msra.mxu0 %v8256_v37  ;;  %v8356_v37 = vunpack.c.l.s8.bf16 %v376_v28  ;;  %v425_v28 = vld [vmem:[%s10378_s26 + $0x2a8] sm:$0xff] }
 0x159   : > { %8321 = vmatpush2.bf16.msra.mxu1 %v8320_v38  ;;  %8259 = vmatprep.subr.bf16.mxu0 %v8258_v39  ;;  %v8420_v38 = vunpack.c.l.s8.bf16 %v504_v29  ;;  %v8358_v39 = vunpack.c.h.s8.bf16 %v361_v35  ;;  %v553_v29 = vld [vmem:[%s10378_s26 + $0x6a8] sm:$0xff] }
 0x15a   : > { %8323 = vmatprep.subr.bf16.mxu1 %v8322_v41  ;;  %v8422_v41 = vunpack.c.h.s8.bf16 %v489_v36 }
 0x15c   : > { %8261 = vmatpush2.bf16.msra.mxu0 %v8260_v44  ;;  %v8360_v44 = vunpack.c.h.s8.bf16 %v360_v42 }
 0x15d   : > { %8325 = vmatpush2.bf16.msra.mxu1 %v8324_v45  ;;  %8263 = vmatprep.subr.bf16.mxu0 %v8262_v46  ;;  %v8424_v45 = vunpack.c.h.s8.bf16 %v488_v43  ;;  %v8362_v46 = vunpack.c.l.s8.bf16 %v361_v35  ;;  %v424_v35 = vld [vmem:[%s10378_s26 + $0x2a0] sm:$0xff] }
 0x15e   : > { %8327 = vmatprep.subr.bf16.mxu1 %v8326_v47  ;;  %v8426_v47 = vunpack.c.l.s8.bf16 %v489_v36  ;;  %v552_v36 = vld [vmem:[%s10378_s26 + $0x6a0] sm:$0xff] }
 0x160   : > { %8265 = vmatpush2.bf16.msra.mxu0 %v8264_v50  ;;  %v8364_v50 = vunpack.c.l.s8.bf16 %v360_v42  ;;  %v409_v42 = vld [vmem:[%s10378_s26 + $0x228] sm:$0xff] }
 0x161   : > { %8329 = vmatpush2.bf16.msra.mxu1 %v8328_v54  ;;  %8267 = vmatprep.subr.bf16.mxu0 %v8266_v32  ;;  %v8428_v54 = vunpack.c.l.s8.bf16 %v488_v43  ;;  %v8366_v32 = vunpack.c.h.s8.bf16 %v345_v48  ;;  %v537_v43 = vld [vmem:[%s10378_s26 + $0x628] sm:$0xff] }
 0x162   : > { %8331 = vmatprep.subr.bf16.mxu1 %v8330_v55  ;;  %v8430_v55 = vunpack.c.h.s8.bf16 %v473_v49 }
 0x164   : > { %8269 = vmatpush2.bf16.msra.mxu0 %v8268_v62  ;;  %v8368_v62 = vunpack.c.h.s8.bf16 %v344_v56 }
 0x165   : > { %8333 = vmatpush2.bf16.msra.mxu1 %v8332_v63  ;;  %8271 = vmatprep.subr.bf16.mxu0 %v8270_v0  ;;  %v8432_v63 = vunpack.c.h.s8.bf16 %v472_v57  ;;  %v8370_v0 = vunpack.c.l.s8.bf16 %v345_v48  ;;  %v408_v48 = vld [vmem:[%s10378_s26 + $0x220] sm:$0xff] }
 0x166   : > { %8335 = vmatprep.subr.bf16.mxu1 %v8334_v1  ;;  %v8434_v1 = vunpack.c.l.s8.bf16 %v473_v49  ;;  %v536_v49 = vld [vmem:[%s10378_s26 + $0x620] sm:$0xff] }
 0x168   : > { %8273 = vmatpush2.bf16.msra.mxu0 %v8272_v6  ;;  %v8372_v6 = vunpack.c.l.s8.bf16 %v344_v56  ;;  %v649_v56 = vld [vmem:[%s10378_s26 + $0x9a8] sm:$0xff] }
 0x169   : > { %8337 = vmatpush2.bf16.msra.mxu1 %v8336_v7  ;;  %8275 = vmatprep.subr.bf16.mxu0 %v8274_v8  ;;  %v8436_v7 = vunpack.c.l.s8.bf16 %v472_v57  ;;  %v8374_v8 = vunpack.c.h.s8.bf16 %v457_v2  ;;  %v777_v57 = vld [vmem:[%s10378_s26 + $0xda8] sm:$0xff] }
 0x16a   : > { %8339 = vmatprep.subr.bf16.mxu1 %v8338_v9  ;;  %v8438_v9 = vunpack.c.h.s8.bf16 %v585_v3 }
 0x16c   : > { %8277 = vmatpush2.bf16.msra.mxu0 %v8276_v12  ;;  %v8376_v12 = vunpack.c.h.s8.bf16 %v456_v10 }
 0x16d   : > { %8341 = vmatpush2.bf16.msra.mxu1 %v8340_v13  ;;  %8343 = vmatprep.subr.bf16.mxu0 %v8342_v14  ;;  %v8440_v13 = vunpack.c.h.s8.bf16 %v584_v11  ;;  %v8378_v14 = vunpack.c.l.s8.bf16 %v457_v2  ;;  %v648_v2 = vld [vmem:[%s10378_s26 + $0x9a0] sm:$0xff] }
 0x16e   : > { %8407 = vmatprep.subr.bf16.mxu1 %v8406_v15  ;;  %v8442_v15 = vunpack.c.l.s8.bf16 %v585_v3  ;;  %v776_v3 = vld [vmem:[%s10378_s26 + $0xda0] sm:$0xff] }
 0x16f   : > { %5490 = vmatmul.mubr.f32.vlgmr.msra.gmra.mxu0 %v10476_v60 }
 0x170   : > { %5561 = vmatmul.mubr.f32.vlgmr.msra.gmra.mxu1 %v10479_v61  ;;  %8345 = vmatpush1.bf16.msra.mxu0 %v8344_v18  ;;  %v8380_v18 = vunpack.c.l.s8.bf16 %v456_v10  ;;  %v633_v10 = vld [vmem:[%s10378_s26 + $0x928] sm:$0xff] }
 0x171   : > { %8409 = vmatpush1.bf16.msra.mxu1 %v8408_v19  ;;  %8347 = vmatprep.subr.bf16.mxu0 %v8346_v20  ;;  %v8444_v19 = vunpack.c.l.s8.bf16 %v584_v11  ;;  %v8382_v20 = vunpack.c.h.s8.bf16 %v441_v16  ;;  %v761_v11 = vld [vmem:[%s10378_s26 + $0xd28] sm:$0xff] }
 0x172   : > { %8411 = vmatprep.subr.bf16.mxu1 %v8410_v21  ;;  %5631 = vmatprep.mubr.f32.mxu0 %v10446_v58  ;;  %v8446_v21 = vunpack.c.h.s8.bf16 %v569_v17 }
 0x173   : > { %5702 = vmatprep.mubr.f32.mxu1 %v10450_v59 }
 0x174   : > { %8349 = vmatpush1.bf16.msra.mxu0 %v8348_v24  ;;  %v8384_v24 = vunpack.c.h.s8.bf16 %v440_v22 }
 0x175   : > { %8413 = vmatpush1.bf16.msra.mxu1 %v8412_v25  ;;  %8351 = vmatprep.subr.bf16.mxu0 %v8350_v26  ;;  %v8448_v25 = vunpack.c.h.s8.bf16 %v568_v23  ;;  %v8386_v26 = vunpack.c.l.s8.bf16 %v441_v16  ;;  %v632_v16 = vld [vmem:[%s10378_s26 + $0x920] sm:$0xff] }
 0x176   : > { %8415 = vmatprep.subr.bf16.mxu1 %v8414_v27  ;;  %v8450_v27 = vunpack.c.l.s8.bf16 %v569_v17  ;;  %v760_v17 = vld [vmem:[%s10378_s26 + $0xd20] sm:$0xff] }
 0x178   : > { %8353 = vmatpush1.bf16.msra.mxu0 %v8352_v30  ;;  %v8388_v30 = vunpack.c.l.s8.bf16 %v440_v22  ;;  %v617_v22 = vld [vmem:[%s10378_s26 + $0x8a8] sm:$0xff] }
 0x179   : > { %8417 = vmatpush1.bf16.msra.mxu1 %v8416_v31  ;;  %8355 = vmatprep.subr.bf16.mxu0 %v8354_v33  ;;  %v8452_v31 = vunpack.c.l.s8.bf16 %v568_v23  ;;  %v8390_v33 = vunpack.c.h.s8.bf16 %v425_v28  ;;  %v745_v23 = vld [vmem:[%s10378_s26 + $0xca8] sm:$0xff] }
 0x17a   : > { %8419 = vmatprep.subr.bf16.mxu1 %v8418_v34  ;;  %v8454_v34 = vunpack.c.h.s8.bf16 %v553_v29 }
 0x17c   : > { %8357 = vmatpush1.bf16.msra.mxu0 %v8356_v37  ;;  %v8392_v37 = vunpack.c.h.s8.bf16 %v424_v35 }
 0x17d   : > { %8421 = vmatpush1.bf16.msra.mxu1 %v8420_v38  ;;  %8359 = vmatprep.subr.bf16.mxu0 %v8358_v39  ;;  %v8456_v38 = vunpack.c.h.s8.bf16 %v552_v36  ;;  %v8394_v39 = vunpack.c.l.s8.bf16 %v425_v28  ;;  %v616_v28 = vld [vmem:[%s10378_s26 + $0x8a0] sm:$0xff] }
 0x17e   : > { %8423 = vmatprep.subr.bf16.mxu1 %v8422_v41  ;;  %v8458_v41 = vunpack.c.l.s8.bf16 %v553_v29  ;;  %v744_v29 = vld [vmem:[%s10378_s26 + $0xca0] sm:$0xff] }
 0x180   : > { %8361 = vmatpush1.bf16.msra.mxu0 %v8360_v44  ;;  %v8396_v44 = vunpack.c.l.s8.bf16 %v424_v35  ;;  %v601_v35 = vld [vmem:[%s10378_s26 + $0x828] sm:$0xff] }
 0x181   : > { %8425 = vmatpush1.bf16.msra.mxu1 %v8424_v45  ;;  %8363 = vmatprep.subr.bf16.mxu0 %v8362_v46  ;;  %v8460_v45 = vunpack.c.l.s8.bf16 %v552_v36  ;;  %v8398_v46 = vunpack.c.h.s8.bf16 %v409_v42  ;;  %v729_v36 = vld [vmem:[%s10378_s26 + $0xc28] sm:$0xff] }
 0x182   : > { %8427 = vmatprep.subr.bf16.mxu1 %v8426_v47  ;;  %v8462_v47 = vunpack.c.h.s8.bf16 %v537_v43 }
 0x184   : > { %8365 = vmatpush1.bf16.msra.mxu0 %v8364_v50  ;;  %v8400_v50 = vunpack.c.h.s8.bf16 %v408_v48 }
 0x185   : > { %8429 = vmatpush1.bf16.msra.mxu1 %v8428_v54  ;;  %8367 = vmatprep.subr.bf16.mxu0 %v8366_v32  ;;  %v8464_v54 = vunpack.c.h.s8.bf16 %v536_v49  ;;  %v8402_v32 = vunpack.c.l.s8.bf16 %v409_v42  ;;  %v600_v42 = vld [vmem:[%s10378_s26 + $0x820] sm:$0xff] }
 0x186   : > { %8431 = vmatprep.subr.bf16.mxu1 %v8430_v55  ;;  %v8466_v55 = vunpack.c.l.s8.bf16 %v537_v43  ;;  %v728_v43 = vld [vmem:[%s10378_s26 + $0xc20] sm:$0xff] }
 0x188   : > { %8369 = vmatpush1.bf16.msra.mxu0 %v8368_v62  ;;  %v8404_v62 = vunpack.c.l.s8.bf16 %v408_v48  ;;  %v713_v48 = vld [vmem:[%s10378_s26 + $0xba8] sm:$0xff] }
 0x189   : > { %8433 = vmatpush1.bf16.msra.mxu1 %v8432_v63  ;;  %8371 = vmatprep.subr.bf16.mxu0 %v8370_v0  ;;  %v8468_v63 = vunpack.c.l.s8.bf16 %v536_v49  ;;  %v8470_v0 = vunpack.c.h.s8.bf16 %v649_v56  ;;  %v841_v49 = vld [vmem:[%s10378_s26 + $0xfa8] sm:$0xff] }
 0x18a   : > { %8435 = vmatprep.subr.bf16.mxu1 %v8434_v1  ;;  %v8534_v1 = vunpack.c.h.s8.bf16 %v777_v57 }
 0x18c   : > { %8373 = vmatpush1.bf16.msra.mxu0 %v8372_v6  ;;  %v8472_v6 = vunpack.c.h.s8.bf16 %v648_v2 }
 0x18d   : > { %8437 = vmatpush1.bf16.msra.mxu1 %v8436_v7  ;;  %8375 = vmatprep.subr.bf16.mxu0 %v8374_v8  ;;  %v8536_v7 = vunpack.c.h.s8.bf16 %v776_v3  ;;  %v8474_v8 = vunpack.c.l.s8.bf16 %v649_v56  ;;  %v712_v56 = vld [vmem:[%s10378_s26 + $0xba0] sm:$0xff] }
 0x18e   : > { %8439 = vmatprep.subr.bf16.mxu1 %v8438_v9  ;;  %v8538_v9 = vunpack.c.l.s8.bf16 %v777_v57  ;;  %v840_v57 = vld [vmem:[%s10378_s26 + $0xfa0] sm:$0xff] }
 0x190   : > { %8377 = vmatpush2.bf16.msra.mxu0 %v8376_v12  ;;  %v8476_v12 = vunpack.c.l.s8.bf16 %v648_v2  ;;  %v697_v2 = vld [vmem:[%s10378_s26 + $0xb28] sm:$0xff] }
 0x191   : > { %8441 = vmatpush2.bf16.msra.mxu1 %v8440_v13  ;;  %8379 = vmatprep.subr.bf16.mxu0 %v8378_v14  ;;  %v8540_v13 = vunpack.c.l.s8.bf16 %v776_v3  ;;  %v8478_v14 = vunpack.c.h.s8.bf16 %v633_v10  ;;  %v825_v3 = vld [vmem:[%s10378_s26 + $0xf28] sm:$0xff] }
 0x192   : > { %8443 = vmatprep.subr.bf16.mxu1 %v8442_v15  ;;  %v8542_v15 = vunpack.c.h.s8.bf16 %v761_v11 }
 0x194   : > { %8381 = vmatpush2.bf16.msra.mxu0 %v8380_v18  ;;  %v8480_v18 = vunpack.c.h.s8.bf16 %v632_v16 }
 0x195   : > { %8445 = vmatpush2.bf16.msra.mxu1 %v8444_v19  ;;  %8383 = vmatprep.subr.bf16.mxu0 %v8382_v20  ;;  %v8544_v19 = vunpack.c.h.s8.bf16 %v760_v17  ;;  %v8482_v20 = vunpack.c.l.s8.bf16 %v633_v10  ;;  %v696_v10 = vld [vmem:[%s10378_s26 + $0xb20] sm:$0xff] }
 0x196   : > { %8447 = vmatprep.subr.bf16.mxu1 %v8446_v21  ;;  %v8546_v21 = vunpack.c.l.s8.bf16 %v761_v11  ;;  %v824_v11 = vld [vmem:[%s10378_s26 + $0xf20] sm:$0xff] }
 0x198   : > { %8385 = vmatpush2.bf16.msra.mxu0 %v8384_v24  ;;  %v8484_v24 = vunpack.c.l.s8.bf16 %v632_v16  ;;  %v681_v16 = vld [vmem:[%s10378_s26 + $0xaa8] sm:$0xff] }
 0x199   : > { %8449 = vmatpush2.bf16.msra.mxu1 %v8448_v25  ;;  %8387 = vmatprep.subr.bf16.mxu0 %v8386_v26  ;;  %v8548_v25 = vunpack.c.l.s8.bf16 %v760_v17  ;;  %v8486_v26 = vunpack.c.h.s8.bf16 %v617_v22  ;;  %v809_v17 = vld [vmem:[%s10378_s26 + $0xea8] sm:$0xff] }
 0x19a   : > { %8451 = vmatprep.subr.bf16.mxu1 %v8450_v27  ;;  %v8550_v27 = vunpack.c.h.s8.bf16 %v745_v23 }
 0x19c   : > { %8389 = vmatpush2.bf16.msra.mxu0 %v8388_v30  ;;  %v8488_v30 = vunpack.c.h.s8.bf16 %v616_v28 }
 0x19d   : > { %8453 = vmatpush2.bf16.msra.mxu1 %v8452_v31  ;;  %8391 = vmatprep.subr.bf16.mxu0 %v8390_v33  ;;  %v8552_v31 = vunpack.c.h.s8.bf16 %v744_v29  ;;  %v8490_v33 = vunpack.c.l.s8.bf16 %v617_v22  ;;  %v680_v22 = vld [vmem:[%s10378_s26 + $0xaa0] sm:$0xff] }
 0x19e   : > { %8455 = vmatprep.subr.bf16.mxu1 %v8454_v34  ;;  %v8554_v34 = vunpack.c.l.s8.bf16 %v745_v23  ;;  %v808_v23 = vld [vmem:[%s10378_s26 + $0xea0] sm:$0xff] }
 0x1a0   : > { %8393 = vmatpush2.bf16.msra.mxu0 %v8392_v37  ;;  %v8492_v37 = vunpack.c.l.s8.bf16 %v616_v28  ;;  %v665_v28 = vld [vmem:[%s10378_s26 + $0xa28] sm:$0xff] }
 0x1a1   : > { %8457 = vmatpush2.bf16.msra.mxu1 %v8456_v38  ;;  %8395 = vmatprep.subr.bf16.mxu0 %v8394_v39  ;;  %v8556_v38 = vunpack.c.l.s8.bf16 %v744_v29  ;;  %v8494_v39 = vunpack.c.h.s8.bf16 %v601_v35  ;;  %v793_v29 = vld [vmem:[%s10378_s26 + $0xe28] sm:$0xff] }
 0x1a2   : > { %8459 = vmatprep.subr.bf16.mxu1 %v8458_v41  ;;  %v8558_v41 = vunpack.c.h.s8.bf16 %v729_v36 }
 0x1a4   : > { %8397 = vmatpush2.bf16.msra.mxu0 %v8396_v44  ;;  %v8496_v44 = vunpack.c.h.s8.bf16 %v600_v42 }
 0x1a5   : > { %8461 = vmatpush2.bf16.msra.mxu1 %v8460_v45  ;;  %8399 = vmatprep.subr.bf16.mxu0 %v8398_v46  ;;  %v8560_v45 = vunpack.c.h.s8.bf16 %v728_v43  ;;  %v8498_v46 = vunpack.c.l.s8.bf16 %v601_v35  ;;  %v664_v35 = vld [vmem:[%s10378_s26 + $0xa20] sm:$0xff] }
 0x1a6   : > { %8463 = vmatprep.subr.bf16.mxu1 %v8462_v47  ;;  %v8562_v47 = vunpack.c.l.s8.bf16 %v729_v36  ;;  %v792_v36 = vld [vmem:[%s10378_s26 + $0xe20] sm:$0xff] }
 0x1a8   : > { %8401 = vmatpush2.bf16.msra.mxu0 %v8400_v50  ;;  %v8500_v50 = vunpack.c.l.s8.bf16 %v600_v42  ;;  %v395_v42 = vld [vmem:[%s10378_s26 + $0x1b8] sm:$0xff] }
 0x1a9   : > { %8465 = vmatpush2.bf16.msra.mxu1 %v8464_v54  ;;  %8403 = vmatprep.subr.bf16.mxu0 %v8402_v32  ;;  %v8564_v54 = vunpack.c.l.s8.bf16 %v728_v43  ;;  %v8502_v32 = vunpack.c.h.s8.bf16 %v713_v48  ;;  %v523_v43 = vld [vmem:[%s10378_s26 + $0x5b8] sm:$0xff] }
 0x1aa   : > { %8467 = vmatprep.subr.bf16.mxu1 %v8466_v55  ;;  %v8566_v55 = vunpack.c.h.s8.bf16 %v841_v49 }
 0x1ac   : > { %8405 = vmatpush2.bf16.msra.mxu0 %v8404_v62  ;;  %v8504_v62 = vunpack.c.h.s8.bf16 %v712_v56 }
 0x1ad   : > { %8469 = vmatpush2.bf16.msra.mxu1 %v8468_v63  ;;  %8471 = vmatprep.subr.bf16.mxu0 %v8470_v0  ;;  %v8568_v63 = vunpack.c.h.s8.bf16 %v840_v57  ;;  %v8506_v0 = vunpack.c.l.s8.bf16 %v713_v48  ;;  %v394_v48 = vld [vmem:[%s10378_s26 + $0x1b0] sm:$0xff] }
 0x1ae   : > { %8535 = vmatprep.subr.bf16.mxu1 %v8534_v1  ;;  %v8570_v1 = vunpack.c.l.s8.bf16 %v841_v49  ;;  %v522_v49 = vld [vmem:[%s10378_s26 + $0x5b0] sm:$0xff] }
 0x1af   : > { %5632 = vmatmul.mubr.f32.vlgmr.msra.gmra.mxu0 %v10439_v52 }
 0x1b0   : > { %5703 = vmatmul.mubr.f32.vlgmr.msra.gmra.mxu1 %v10442_v53  ;;  %8473 = vmatpush1.bf16.msra.mxu0 %v8472_v6  ;;  %v8508_v6 = vunpack.c.l.s8.bf16 %v712_v56  ;;  %v379_v56 = vld [vmem:[%s10378_s26 + $0x138] sm:$0xff] }
 0x1b1   : > { %8537 = vmatpush1.bf16.msra.mxu1 %v8536_v7  ;;  %8475 = vmatprep.subr.bf16.mxu0 %v8474_v8  ;;  %v8572_v7 = vunpack.c.l.s8.bf16 %v840_v57  ;;  %v8510_v8 = vunpack.c.h.s8.bf16 %v697_v2  ;;  %v507_v57 = vld [vmem:[%s10378_s26 + $0x538] sm:$0xff] }
 0x1b2   : > { %8539 = vmatprep.subr.bf16.mxu1 %v8538_v9  ;;  %5773 = vmatprep.mubr.f32.mxu0 %v10485_v4  ;;  %v8574_v9 = vunpack.c.h.s8.bf16 %v825_v3 }
 0x1b3   : > { %5844 = vmatprep.mubr.f32.mxu1 %v10489_v5 }
 0x1b4   : > { %8477 = vmatpush1.bf16.msra.mxu0 %v8476_v12  ;;  %v8512_v12 = vunpack.c.h.s8.bf16 %v696_v10 }
 0x1b5   : > { %8541 = vmatpush1.bf16.msra.mxu1 %v8540_v13  ;;  %8479 = vmatprep.subr.bf16.mxu0 %v8478_v14  ;;  %v8576_v13 = vunpack.c.h.s8.bf16 %v824_v11  ;;  %v8514_v14 = vunpack.c.l.s8.bf16 %v697_v2  ;;  %v378_v2 = vld [vmem:[%s10378_s26 + $0x130] sm:$0xff] }
 0x1b6   : > { %8543 = vmatprep.subr.bf16.mxu1 %v8542_v15  ;;  %v8578_v15 = vunpack.c.l.s8.bf16 %v825_v3  ;;  %v506_v3 = vld [vmem:[%s10378_s26 + $0x530] sm:$0xff] }
 0x1b8   : > { %8481 = vmatpush1.bf16.msra.mxu0 %v8480_v18  ;;  %v8516_v18 = vunpack.c.l.s8.bf16 %v696_v10  ;;  %v363_v10 = vld [vmem:[%s10378_s26 + $0xb8] sm:$0xff] }
 0x1b9   : > { %8545 = vmatpush1.bf16.msra.mxu1 %v8544_v19  ;;  %8483 = vmatprep.subr.bf16.mxu0 %v8482_v20  ;;  %v8580_v19 = vunpack.c.l.s8.bf16 %v824_v11  ;;  %v8518_v20 = vunpack.c.h.s8.bf16 %v681_v16  ;;  %v491_v11 = vld [vmem:[%s10378_s26 + $0x4b8] sm:$0xff] }
 0x1ba   : > { %8547 = vmatprep.subr.bf16.mxu1 %v8546_v21  ;;  %v8582_v21 = vunpack.c.h.s8.bf16 %v809_v17 }
 0x1bc   : > { %8485 = vmatpush1.bf16.msra.mxu0 %v8484_v24  ;;  %v8520_v24 = vunpack.c.h.s8.bf16 %v680_v22 }
 0x1bd   : > { %8549 = vmatpush1.bf16.msra.mxu1 %v8548_v25  ;;  %8487 = vmatprep.subr.bf16.mxu0 %v8486_v26  ;;  %v8584_v25 = vunpack.c.h.s8.bf16 %v808_v23  ;;  %v8522_v26 = vunpack.c.l.s8.bf16 %v681_v16  ;;  %v362_v16 = vld [vmem:[%s10378_s26 + $0xb0] sm:$0xff] }
 0x1be   : > { %8551 = vmatprep.subr.bf16.mxu1 %v8550_v27  ;;  %v8586_v27 = vunpack.c.l.s8.bf16 %v809_v17  ;;  %v490_v17 = vld [vmem:[%s10378_s26 + $0x4b0] sm:$0xff] }
 0x1c0   : > { %8489 = vmatpush1.bf16.msra.mxu0 %v8488_v30  ;;  %v8524_v30 = vunpack.c.l.s8.bf16 %v680_v22  ;;  %v347_v22 = vld [vmem:[%s10378_s26 + $0x38] sm:$0xff] }
 0x1c1   : > { %8553 = vmatpush1.bf16.msra.mxu1 %v8552_v31  ;;  %8491 = vmatprep.subr.bf16.mxu0 %v8490_v33  ;;  %v8588_v31 = vunpack.c.l.s8.bf16 %v808_v23  ;;  %v8526_v33 = vunpack.c.h.s8.bf16 %v665_v28  ;;  %v475_v23 = vld [vmem:[%s10378_s26 + $0x438] sm:$0xff] }
 0x1c2   : > { %8555 = vmatprep.subr.bf16.mxu1 %v8554_v34  ;;  %v8590_v34 = vunpack.c.h.s8.bf16 %v793_v29 }
 0x1c4   : > { %8493 = vmatpush1.bf16.msra.mxu0 %v8492_v37  ;;  %v8528_v37 = vunpack.c.h.s8.bf16 %v664_v35 }
 0x1c5   : > { %8557 = vmatpush1.bf16.msra.mxu1 %v8556_v38  ;;  %8495 = vmatprep.subr.bf16.mxu0 %v8494_v39  ;;  %v8592_v38 = vunpack.c.h.s8.bf16 %v792_v36  ;;  %v8530_v39 = vunpack.c.l.s8.bf16 %v665_v28  ;;  %v346_v28 = vld [vmem:[%s10378_s26 + $0x30] sm:$0xff] }
 0x1c6   : > { %8559 = vmatprep.subr.bf16.mxu1 %v8558_v41  ;;  %v8594_v41 = vunpack.c.l.s8.bf16 %v793_v29  ;;  %v474_v29 = vld [vmem:[%s10378_s26 + $0x430] sm:$0xff] }
 0x1c8   : > { %8497 = vmatpush1.bf16.msra.mxu0 %v8496_v44  ;;  %v8532_v44 = vunpack.c.l.s8.bf16 %v664_v35  ;;  %v459_v35 = vld [vmem:[%s10378_s26 + $0x3b8] sm:$0xff] }
 0x1c9   : > { %8561 = vmatpush1.bf16.msra.mxu1 %v8560_v45  ;;  %8499 = vmatprep.subr.bf16.mxu0 %v8498_v46  ;;  %v8596_v45 = vunpack.c.l.s8.bf16 %v792_v36  ;;  %v8598_v46 = vunpack.c.h.s8.bf16 %v395_v42  ;;  %v587_v36 = vld [vmem:[%s10378_s26 + $0x7b8] sm:$0xff] }
 0x1ca   : > { %8563 = vmatprep.subr.bf16.mxu1 %v8562_v47  ;;  %v8662_v47 = vunpack.c.h.s8.bf16 %v523_v43 }
 0x1cc   : > { %8501 = vmatpush1.bf16.msra.mxu0 %v8500_v50  ;;  %v8600_v50 = vunpack.c.h.s8.bf16 %v394_v48 }
 0x1cd   : > { %8565 = vmatpush1.bf16.msra.mxu1 %v8564_v54  ;;  %8503 = vmatprep.subr.bf16.mxu0 %v8502_v32  ;;  %v8664_v54 = vunpack.c.h.s8.bf16 %v522_v49  ;;  %v8602_v32 = vunpack.c.l.s8.bf16 %v395_v42  ;;  %v458_v42 = vld [vmem:[%s10378_s26 + $0x3b0] sm:$0xff] }
 0x1ce   : > { %8567 = vmatprep.subr.bf16.mxu1 %v8566_v55  ;;  %v8666_v55 = vunpack.c.l.s8.bf16 %v523_v43  ;;  %v586_v43 = vld [vmem:[%s10378_s26 + $0x7b0] sm:$0xff] }
 0x1d0   : > { %8505 = vmatpush2.bf16.msra.mxu0 %v8504_v62  ;;  %v8604_v62 = vunpack.c.l.s8.bf16 %v394_v48  ;;  %v443_v48 = vld [vmem:[%s10378_s26 + $0x338] sm:$0xff] }
 0x1d1   : > { %8569 = vmatpush2.bf16.msra.mxu1 %v8568_v63  ;;  %8507 = vmatprep.subr.bf16.mxu0 %v8506_v0  ;;  %v8668_v63 = vunpack.c.l.s8.bf16 %v522_v49  ;;  %v8606_v0 = vunpack.c.h.s8.bf16 %v379_v56  ;;  %v571_v49 = vld [vmem:[%s10378_s26 + $0x738] sm:$0xff] }
 0x1d2   : > { %8571 = vmatprep.subr.bf16.mxu1 %v8570_v1  ;;  %v8670_v1 = vunpack.c.h.s8.bf16 %v507_v57 }
 0x1d4   : > { %8509 = vmatpush2.bf16.msra.mxu0 %v8508_v6  ;;  %v8608_v6 = vunpack.c.h.s8.bf16 %v378_v2 }
 0x1d5   : > { %8573 = vmatpush2.bf16.msra.mxu1 %v8572_v7  ;;  %8511 = vmatprep.subr.bf16.mxu0 %v8510_v8  ;;  %v8672_v7 = vunpack.c.h.s8.bf16 %v506_v3  ;;  %v8610_v8 = vunpack.c.l.s8.bf16 %v379_v56  ;;  %v442_v56 = vld [vmem:[%s10378_s26 + $0x330] sm:$0xff] }
 0x1d6   : > { %8575 = vmatprep.subr.bf16.mxu1 %v8574_v9  ;;  %v8674_v9 = vunpack.c.l.s8.bf16 %v507_v57  ;;  %v570_v57 = vld [vmem:[%s10378_s26 + $0x730] sm:$0xff] }
 0x1d8   : > { %8513 = vmatpush2.bf16.msra.mxu0 %v8512_v12  ;;  %v8612_v12 = vunpack.c.l.s8.bf16 %v378_v2  ;;  %v427_v2 = vld [vmem:[%s10378_s26 + $0x2b8] sm:$0xff] }
 0x1d9   : > { %8577 = vmatpush2.bf16.msra.mxu1 %v8576_v13  ;;  %8515 = vmatprep.subr.bf16.mxu0 %v8514_v14  ;;  %v8676_v13 = vunpack.c.l.s8.bf16 %v506_v3  ;;  %v8614_v14 = vunpack.c.h.s8.bf16 %v363_v10  ;;  %v555_v3 = vld [vmem:[%s10378_s26 + $0x6b8] sm:$0xff] }
 0x1da   : > { %8579 = vmatprep.subr.bf16.mxu1 %v8578_v15  ;;  %v8678_v15 = vunpack.c.h.s8.bf16 %v491_v11 }
 0x1dc   : > { %8517 = vmatpush2.bf16.msra.mxu0 %v8516_v18  ;;  %v8616_v18 = vunpack.c.h.s8.bf16 %v362_v16 }
 0x1dd   : > { %8581 = vmatpush2.bf16.msra.mxu1 %v8580_v19  ;;  %8519 = vmatprep.subr.bf16.mxu0 %v8518_v20  ;;  %v8680_v19 = vunpack.c.h.s8.bf16 %v490_v17  ;;  %v8618_v20 = vunpack.c.l.s8.bf16 %v363_v10  ;;  %v426_v10 = vld [vmem:[%s10378_s26 + $0x2b0] sm:$0xff] }
 0x1de   : > { %8583 = vmatprep.subr.bf16.mxu1 %v8582_v21  ;;  %v8682_v21 = vunpack.c.l.s8.bf16 %v491_v11  ;;  %v554_v11 = vld [vmem:[%s10378_s26 + $0x6b0] sm:$0xff] }
 0x1e0   : > { %8521 = vmatpush2.bf16.msra.mxu0 %v8520_v24  ;;  %v8620_v24 = vunpack.c.l.s8.bf16 %v362_v16  ;;  %v8650_v16 = vunpack.c.l.s8.bf16 %v427_v2 }
 0x1e1   : > { %8585 = vmatpush2.bf16.msra.mxu1 %v8584_v25  ;;  %8523 = vmatprep.subr.bf16.mxu0 %v8522_v26  ;;  %v8684_v25 = vunpack.c.l.s8.bf16 %v490_v17  ;;  %v8622_v26 = vunpack.c.h.s8.bf16 %v347_v22  ;;  %v8714_v17 = vunpack.c.l.s8.bf16 %v555_v3 }
 0x1e2   : > { %8587 = vmatprep.subr.bf16.mxu1 %v8586_v27  ;;  %v8686_v27 = vunpack.c.h.s8.bf16 %v475_v23 }
 0x1e4   : > { %8525 = vmatpush2.bf16.msra.mxu0 %v8524_v30  ;;  %v8624_v30 = vunpack.c.h.s8.bf16 %v346_v28 }
 0x1e5   : > { %8589 = vmatpush2.bf16.msra.mxu1 %v8588_v31  ;;  %8527 = vmatprep.subr.bf16.mxu0 %v8526_v33  ;;  %v8688_v31 = vunpack.c.h.s8.bf16 %v474_v29  ;;  %v8626_v33 = vunpack.c.l.s8.bf16 %v347_v22 }
 0x1e6   : > { %8591 = vmatprep.subr.bf16.mxu1 %v8590_v34  ;;  %v8690_v34 = vunpack.c.l.s8.bf16 %v475_v23 }
 0x1e8   : > { %8529 = vmatpush2.bf16.msra.mxu0 %v8528_v37  ;;  %v8628_v37 = vunpack.c.l.s8.bf16 %v346_v28 }
 0x1e9   : > { %8593 = vmatpush2.bf16.msra.mxu1 %v8592_v38  ;;  %8531 = vmatprep.subr.bf16.mxu0 %v8530_v39  ;;  %v8692_v38 = vunpack.c.l.s8.bf16 %v474_v29  ;;  %v8630_v39 = vunpack.c.h.s8.bf16 %v459_v35 }
 0x1ea   : > { %8595 = vmatprep.subr.bf16.mxu1 %v8594_v41  ;;  %v8694_v41 = vunpack.c.h.s8.bf16 %v587_v36 }
 0x1ec   : > { %8533 = vmatpush2.bf16.msra.mxu0 %v8532_v44  ;;  %v8632_v44 = vunpack.c.h.s8.bf16 %v458_v42 }
 0x1ed   : > { %8597 = vmatpush2.bf16.msra.mxu1 %v8596_v45  ;;  %8599 = vmatprep.subr.bf16.mxu0 %v8598_v46  ;;  %v8696_v45 = vunpack.c.h.s8.bf16 %v586_v43  ;;  %v8634_v46 = vunpack.c.l.s8.bf16 %v459_v35  ;;  %v651_v35 = vld [vmem:[%s10378_s26 + $0x9b8] sm:$0xff] }
 0x1ee   : > { %8663 = vmatprep.subr.bf16.mxu1 %v8662_v47  ;;  %v8698_v47 = vunpack.c.l.s8.bf16 %v587_v36  ;;  %v779_v36 = vld [vmem:[%s10378_s26 + $0xdb8] sm:$0xff] }
 0x1ef   : > { %5774 = vmatmul.mubr.f32.vlgmr.msra.gmra.mxu0 %v10476_v60 }
 0x1f0   : > { %5845 = vmatmul.mubr.f32.vlgmr.msra.gmra.mxu1 %v10479_v61  ;;  %8601 = vmatpush1.bf16.msra.mxu0 %v8600_v50  ;;  %v8636_v50 = vunpack.c.l.s8.bf16 %v458_v42 }
 0x1f1   : > { %8665 = vmatpush1.bf16.msra.mxu1 %v8664_v54  ;;  %8603 = vmatprep.subr.bf16.mxu0 %v8602_v32  ;;  %v8700_v54 = vunpack.c.l.s8.bf16 %v586_v43  ;;  %v8638_v32 = vunpack.c.h.s8.bf16 %v443_v48 }
 0x1f2   : > { %8667 = vmatprep.subr.bf16.mxu1 %v8666_v55  ;;  %5915 = vmatprep.mubr.f32.mxu0 %v10446_v58  ;;  %v8702_v55 = vunpack.c.h.s8.bf16 %v571_v49 }
 0x1f3   : > { %5986 = vmatprep.mubr.f32.mxu1 %v10450_v59 }
 0x1f4   : > { %8605 = vmatpush1.bf16.msra.mxu0 %v8604_v62  ;;  %v8640_v62 = vunpack.c.h.s8.bf16 %v442_v56 }
 0x1f5   : > { %8669 = vmatpush1.bf16.msra.mxu1 %v8668_v63  ;;  %8607 = vmatprep.subr.bf16.mxu0 %v8606_v0  ;;  %v8704_v63 = vunpack.c.h.s8.bf16 %v570_v57  ;;  %v8642_v0 = vunpack.c.l.s8.bf16 %v443_v48  ;;  %v778_v48 = vld [vmem:[%s10378_s26 + $0xdb0] sm:$0xff] }
 0x1f6   : > { %8671 = vmatprep.subr.bf16.mxu1 %v8670_v1  ;;  %v8706_v1 = vunpack.c.l.s8.bf16 %v571_v49 }
 0x1f8   : > { %8609 = vmatpush1.bf16.msra.mxu0 %v8608_v6  ;;  %v8644_v6 = vunpack.c.l.s8.bf16 %v442_v56 }
 0x1f9   : > { %8673 = vmatpush1.bf16.msra.mxu1 %v8672_v7  ;;  %8611 = vmatprep.subr.bf16.mxu0 %v8610_v8  ;;  %v8708_v7 = vunpack.c.l.s8.bf16 %v570_v57  ;;  %v8646_v8 = vunpack.c.h.s8.bf16 %v427_v2  ;;  %v763_v2 = vld [vmem:[%s10378_s26 + $0xd38] sm:$0xff] }
 0x1fa   : > { %8675 = vmatprep.subr.bf16.mxu1 %v8674_v9  ;;  %v8710_v9 = vunpack.c.h.s8.bf16 %v555_v3 }
 0x1fc   : > { %8613 = vmatpush1.bf16.msra.mxu0 %v8612_v12  ;;  %v8648_v12 = vunpack.c.h.s8.bf16 %v426_v10 }
 0x1fd   : > { %8677 = vmatpush1.bf16.msra.mxu1 %v8676_v13  ;;  %8615 = vmatprep.subr.bf16.mxu0 %v8614_v14  ;;  %v8712_v13 = vunpack.c.h.s8.bf16 %v554_v11  ;;  %v5065_v14 = vpop.f32.mrf.mxu0 }
 0x1fe   : > { %8679 = vmatprep.subr.bf16.mxu1 %v8678_v15  ;;  %v5136_v15 = vpop.f32.mrf.mxu1 }
 0x1ff   : > { %v5067_v22 = vpop.f32.mrf.mxu0  ;;  %v5137_v49 = vadd.f32 %v5136_v15, %v5065_v14 }
 0x200   : > { %8617 = vmatpush1.bf16.msra.mxu0 %v8616_v18  ;;  %v411_v18 = vld [vmem:[%s10378_s26 + $0x238] sm:$0xff]  ;;  %v5138_v23 = vpop.f32.mrf.mxu1 }
 0x201   : > { %8681 = vmatpush1.bf16.msra.mxu1 %v8680_v19  ;;  %8619 = vmatprep.subr.bf16.mxu0 %v8618_v20  ;;  %v539_v19 = vld [vmem:[%s10378_s26 + $0x638] sm:$0xff]  ;;  %v8652_v20 = vunpack.c.l.s8.bf16 %v426_v10  ;;  %v5207_v28 = vpop.f32.mrf.mxu0  ;;  %v5139_v42 = vadd.f32 %v5138_v23, %v5067_v22 }
 0x202   : > { %8683 = vmatprep.subr.bf16.mxu1 %v8682_v21  ;;  %v8716_v21 = vunpack.c.l.s8.bf16 %v554_v11  ;;  %v5278_v29 = vpop.f32.mrf.mxu1  ;;  %v8796_v11 = vunpack.c.l.s8.bf16 %v778_v48 }
 0x204   : > { %8621 = vmatpush1.bf16.msra.mxu0 %v8620_v24  ;;  %v8654_v24 = vunpack.c.h.s8.bf16 %v411_v18 }
 0x205   : > { %8685 = vmatpush1.bf16.msra.mxu1 %v8684_v25  ;;  %8623 = vmatprep.subr.bf16.mxu0 %v8622_v26  ;;  %v8718_v25 = vunpack.c.h.s8.bf16 %v539_v19  ;;  %v410_v26 = vld [vmem:[%s10378_s26 + $0x230] sm:$0xff] }
 0x206   : > { %8687 = vmatprep.subr.bf16.mxu1 %v8686_v27  ;;  %v538_v27 = vld [vmem:[%s10378_s26 + $0x630] sm:$0xff] }
 0x208   : > { %8625 = vmatpush1.bf16.msra.mxu0 %v8624_v30  ;;  %v8656_v30 = vunpack.c.h.s8.bf16 %v410_v26 }
 0x209   : > { %8689 = vmatpush1.bf16.msra.mxu1 %v8688_v31  ;;  %8627 = vmatprep.subr.bf16.mxu0 %v8626_v33  ;;  %v8720_v31 = vunpack.c.h.s8.bf16 %v538_v27  ;;  %v8658_v33 = vunpack.c.l.s8.bf16 %v411_v18  ;;  %v762_v18 = vld [vmem:[%s10378_s26 + $0xd30] sm:$0xff] }
 0x20a   : > { %8691 = vmatprep.subr.bf16.mxu1 %v8690_v34  ;;  %v8722_v34 = vunpack.c.l.s8.bf16 %v539_v19 }
 0x20c   : > { %8629 = vmatpush1.bf16.msra.mxu0 %v8628_v37  ;;  %v5209_v37 = vpop.f32.mrf.mxu0 }
 0x20d   : > { %8693 = vmatpush1.bf16.msra.mxu1 %v8692_v38  ;;  %8631 = vmatprep.subr.bf16.mxu0 %v8630_v39  ;;  %v5280_v38 = vpop.f32.mrf.mxu1  ;;  %v8660_v39 = vunpack.c.l.s8.bf16 %v410_v26  ;;  %v8802_v26 = vunpack.c.l.s8.bf16 %v763_v2 }
 0x20e   : > { %8695 = vmatprep.subr.bf16.mxu1 %v8694_v41  ;;  %v8724_v41 = vunpack.c.l.s8.bf16 %v538_v27  ;;  %v5349_v43 = vpop.f32.mrf.mxu0 }
 0x210   : > { %8633 = vmatpush2.bf16.msra.mxu0 %v8632_v44  ;;  %v5420_v44 = vpop.f32.mrf.mxu1  ;;  %v5351_v56 = vpop.f32.mrf.mxu0 }
 0x211   : > { %8697 = vmatpush2.bf16.msra.mxu1 %v8696_v45  ;;  %8635 = vmatprep.subr.bf16.mxu0 %v8634_v46  ;;  %v8726_v45 = vunpack.c.h.s8.bf16 %v651_v35  ;;  %v8790_v46 = vunpack.c.h.s8.bf16 %v779_v36 }
 0x212   : > { %8699 = vmatprep.subr.bf16.mxu1 %v8698_v47  ;;  %v650_v47 = vld [vmem:[%s10378_s26 + $0x9b0] sm:$0xff]  ;;  %v5422_v57 = vpop.f32.mrf.mxu1 }
 0x213   : > { %v8732_v10 = vunpack.c.l.s8.bf16 %v650_v47 }
 0x214   : > { %8637 = vmatpush2.bf16.msra.mxu0 %v8636_v50  ;;  %v5210_v50 = vadd.f32 %v5209_v37, %v5139_v42 }
 0x215   : > { %8701 = vmatpush2.bf16.msra.mxu1 %v8700_v54  ;;  %8639 = vmatprep.subr.bf16.mxu0 %v8638_v32  ;;  %v8728_v54 = vunpack.c.h.s8.bf16 %v650_v47  ;;  %v8792_v32 = vunpack.c.h.s8.bf16 %v778_v48  ;;  %v603_v47 = vld [vmem:[%s10378_s26 + $0x838] sm:$0xff] }
 0x216   : > { %8703 = vmatprep.subr.bf16.mxu1 %v8702_v55  ;;  %v5208_v55 = vadd.f32 %v5207_v28, %v5137_v49  ;;  %v5281_v3 = vadd.f32 %v5280_v38, %v5210_v50  ;;  %v619_v28 = vld [vmem:[%s10378_s26 + $0x8b8] sm:$0xff]  ;;  %v618_v38 = vld [vmem:[%s10378_s26 + $0x8b0] sm:$0xff] }
 0x217   : > { %v731_v48 = vld [vmem:[%s10378_s26 + $0xc38] sm:$0xff]  ;;  %v8748_v49 = vunpack.c.l.s8.bf16 %v618_v38 }
 0x218   : > { %8641 = vmatpush2.bf16.msra.mxu0 %v8640_v62  ;;  %v8730_v62 = vunpack.c.l.s8.bf16 %v651_v35  ;;  %v4948_v35 = vld [vmem:[#allocation2 + $0x10] sm:$0xff] }
 0x219   : > { %8705 = vmatpush2.bf16.msra.mxu1 %v8704_v63  ;;  %8643 = vmatprep.subr.bf16.mxu0 %v8642_v0  ;;  %v8794_v63 = vunpack.c.l.s8.bf16 %v779_v36  ;;  %v5421_v0 = vadd.f32 %v5420_v44, %v5349_v43  ;;  %v8742_v36 = vunpack.c.h.s8.bf16 %v619_v28  ;;  %v8744_v43 = vunpack.c.h.s8.bf16 %v618_v38 }
 0x21a   : > { %8707 = vmatprep.subr.bf16.mxu1 %v8706_v1  ;;  %v635_v1 = vld [vmem:[%s10378_s26 + $0x938] sm:$0xff] }
 0x21b   : > { %v8734_v15 = vunpack.c.h.s8.bf16 %v635_v1 }
 0x21c   : > { %8645 = vmatpush2.bf16.msra.mxu0 %v8644_v6 }
 0x21d   : > { %8709 = vmatpush2.bf16.msra.mxu1 %v8708_v7  ;;  %8647 = vmatprep.subr.bf16.mxu0 %v8646_v8  ;;  %v5423_v8 = vadd.f32 %v5422_v57, %v5351_v56  ;;  %v730_v56 = vld [vmem:[%s10378_s26 + $0xc30] sm:$0xff] }
 0x21e   : > { %8711 = vmatprep.subr.bf16.mxu1 %v8710_v9 }
 0x220   : > { %8649 = vmatpush2.bf16.msra.mxu0 %v8648_v12  ;;  %v5279_v12 = vadd.f32 %v5278_v29, %v5208_v55  ;;  %v747_v29 = vld [vmem:[%s10378_s26 + $0xcb8] sm:$0xff]  ;;  %v602_v55 = vld [vmem:[%s10378_s26 + $0x830] sm:$0xff] }
 0x221   : > { %8713 = vmatpush2.bf16.msra.mxu1 %v8712_v13  ;;  %8651 = vmatprep.subr.bf16.mxu0 %v8650_v16  ;;  %v8798_v16 = vunpack.c.h.s8.bf16 %v763_v2  ;;  %v8806_v37 = vunpack.c.h.s8.bf16 %v747_v29  ;;  %v8752_v57 = vunpack.c.h.s8.bf16 %v602_v55  ;;  %v843_v2 = vld [vmem:[%s10378_s26 + $0xfb8] sm:$0xff] }
 0x222   : > { %8715 = vmatprep.subr.bf16.mxu1 %v8714_v17  ;;  %v634_v17 = vld [vmem:[%s10378_s26 + $0x930] sm:$0xff] }
 0x223   : > { %v8736_v23 = vunpack.c.h.s8.bf16 %v634_v17 }
 0x224   : > { %8653 = vmatpush2.bf16.msra.mxu0 %v8652_v20  ;;  %v7287_v20 = vcombine.low %v5279_v12, %v5281_v3  ;;  %v8756_v3 = vunpack.c.l.s8.bf16 %v602_v55  ;;  %v397_v55 = vld [vmem:[%s10378_s26 + $0x1c8] sm:$0xff] }
 0x225   : > { %8717 = vmatpush2.bf16.msra.mxu1 %v8716_v21  ;;  %8655 = vmatprep.subr.bf16.mxu0 %v8654_v24  ;;  %v8800_v24 = vunpack.c.h.s8.bf16 %v762_v18 }
 0x226   : > { %8719 = vmatprep.subr.bf16.mxu1 %v8718_v25  ;;  %v8738_v25 = vunpack.c.l.s8.bf16 %v635_v1  ;;  %v715_v1 = vld [vmem:[%s10378_s26 + $0xbb8] sm:$0xff] }
 0x228   : > { %8657 = vmatpush2.bf16.msra.mxu0 %v8656_v30  ;;  %v7295_v30 = vrot.slane %v7287_v20, %v10436_v51 }
 0x229   : > { %8721 = vmatpush2.bf16.msra.mxu1 %v8720_v31  ;;  %8659 = vmatprep.subr.bf16.mxu0 %v8658_v33  ;;  %v8740_v33 = vunpack.c.l.s8.bf16 %v634_v17 }
 0x22a   : > { %8723 = vmatprep.subr.bf16.mxu1 %v8722_v34  ;;  %v8804_v34 = vunpack.c.l.s8.bf16 %v762_v18 }
 0x22c   : > { %8661 = vmatpush2.bf16.msra.mxu0 %v8660_v39  ;;  %v746_v39 = vld [vmem:[%s10378_s26 + $0xcb0] sm:$0xff] }
 0x22d   : > { %8725 = vmatpush2.bf16.msra.mxu1 %v8724_v41  ;;  %8727 = vmatprep.subr.bf16.mxu0 %v8726_v45  ;;  %v8808_v44 = vunpack.c.h.s8.bf16 %v746_v39  ;;  %v8746_v45 = vunpack.c.l.s8.bf16 %v619_v28  ;;  %v8812_v50 = vunpack.c.l.s8.bf16 %v746_v39  ;;  %v811_v28 = vld [vmem:[%s10378_s26 + $0xeb8] sm:$0xff] }
 0x22e   : > { %8791 = vmatprep.subr.bf16.mxu1 %v8790_v46  ;;  %v8810_v46 = vunpack.c.l.s8.bf16 %v747_v29  ;;  %v8842_v39 = vunpack.c.l.s8.bf16 %v811_v28 }
 0x22f   : > { %v5491_v6 = vpop.f32.mrf.mxu0  ;;  %5916 = vmatmul.mubr.f32.vlgmr.msra.gmra.mxu0 %v10439_v52 }
 0x230   : > { %5987 = vmatmul.mubr.f32.vlgmr.msra.gmra.mxu1 %v10442_v53  ;;  %v5562_v7 = vpop.f32.mrf.mxu1  ;;  %v5492_v9 = vadd.f32 %v5491_v6, %v5421_v0  ;;  %8729 = vmatpush1.bf16.msra.mxu0 %v8728_v54  ;;  %v8750_v54 = vunpack.c.h.s8.bf16 %v603_v47  ;;  %v8818_v0 = vunpack.c.l.s8.bf16 %v731_v48  ;;  %v8820_v6 = vunpack.c.l.s8.bf16 %v730_v56 }
 0x231   : > { %8793 = vmatpush1.bf16.msra.mxu1 %v8792_v32  ;;  %v5493_v13 = vpop.f32.mrf.mxu0  ;;  %8731 = vmatprep.subr.bf16.mxu0 %v8730_v62  ;;  %v8814_v32 = vunpack.c.h.s8.bf16 %v731_v48  ;;  %v8816_v62 = vunpack.c.h.s8.bf16 %v730_v56  ;;  %v794_v48 = vld [vmem:[%s10378_s26 + $0xe30] sm:$0xff]  ;;  %v525_v56 = vld [vmem:[%s10378_s26 + $0x5c8] sm:$0xff] }
 0x232   : > { %v5564_v14 = vpop.f32.mrf.mxu1  ;;  %8795 = vmatprep.subr.bf16.mxu1 %v8794_v63  ;;  %v5494_v19 = vadd.f32 %v5493_v13, %v5423_v8  ;;  %6057 = vmatprep.mubr.f32.mxu0 %v10485_v4  ;;  %v5563_v21 = vadd.f32 %v5562_v7, %v5492_v9  ;;  %v8754_v63 = vunpack.c.l.s8.bf16 %v603_v47  ;;  %v8758_v7 = vunpack.c.h.s8.bf16 %v715_v1  ;;  %v714_v9 = vld [vmem:[%s10378_s26 + $0xbb0] sm:$0xff] }
 0x233   : > { %6128 = vmatprep.mubr.f32.mxu1 %v10489_v5  ;;  %v8822_v8 = vunpack.c.h.s8.bf16 %v843_v2  ;;  %v8762_v13 = vunpack.c.l.s8.bf16 %v715_v1  ;;  %v8764_v17 = vunpack.c.l.s8.bf16 %v714_v9  ;;  %v666_v47 = vld [vmem:[%s10378_s26 + $0xa30] sm:$0xff]  ;;  %v396_v1 = vld [vmem:[%s10378_s26 + $0x1c0] sm:$0xff] }
 0x234   : > { %v5565_v22 = vadd.f32 %v5564_v14, %v5494_v19  ;;  %8733 = vmatpush1.bf16.msra.mxu0 %v8732_v10  ;;  %v842_v10 = vld [vmem:[%s10378_s26 + $0xfb0] sm:$0xff]  ;;  %v8826_v14 = vunpack.c.l.s8.bf16 %v843_v2  ;;  %v524_v2 = vld [vmem:[%s10378_s26 + $0x5c0] sm:$0xff] }
 0x235   : > { %8797 = vmatpush1.bf16.msra.mxu1 %v8796_v11  ;;  %8735 = vmatprep.subr.bf16.mxu0 %v8734_v15  ;;  %v8760_v11 = vunpack.c.h.s8.bf16 %v714_v9  ;;  %v8824_v12 = vunpack.c.h.s8.bf16 %v842_v10  ;;  %v699_v15 = vld [vmem:[%s10378_s26 + $0xb38] sm:$0xff]  ;;  %v8828_v18 = vunpack.c.l.s8.bf16 %v842_v10  ;;  %v381_v9 = vld [vmem:[%s10378_s26 + $0x148] sm:$0xff] }
 0x236   : > { %8799 = vmatprep.subr.bf16.mxu1 %v8798_v16  ;;  %v7288_v27 = vcombine.low %v5563_v21, %v5565_v22  ;;  %v827_v16 = vld [vmem:[%s10378_s26 + $0xf38] sm:$0xff]  ;;  %v8766_v19 = vunpack.c.h.s8.bf16 %v699_v15  ;;  %v698_v21 = vld [vmem:[%s10378_s26 + $0xb30] sm:$0xff]  ;;  %v509_v10 = vld [vmem:[%s10378_s26 + $0x548] sm:$0xff] }
 0x237   : > { %v8830_v20 = vunpack.c.h.s8.bf16 %v827_v16  ;;  %v826_v22 = vld [vmem:[%s10378_s26 + $0xf30] sm:$0xff]  ;;  %v8772_v29 = vunpack.c.l.s8.bf16 %v698_v21 }
 0x238   : > { %v7302_v31 = vrot.slane %v7288_v27, %v10436_v51  ;;  %8737 = vmatpush1.bf16.msra.mxu0 %v8736_v23  ;;  %v8768_v23 = vunpack.c.h.s8.bf16 %v698_v21  ;;  %v683_v27 = vld [vmem:[%s10378_s26 + $0xab8] sm:$0xff]  ;;  %v365_v21 = vld [vmem:[%s10378_s26 + $0xc8] sm:$0xff] }
 0x239   : > { %8801 = vmatpush1.bf16.msra.mxu1 %v8800_v24  ;;  %8739 = vmatprep.subr.bf16.mxu0 %v8738_v25  ;;  %v8832_v24 = vunpack.c.h.s8.bf16 %v826_v22  ;;  %v8770_v25 = vunpack.c.l.s8.bf16 %v699_v15  ;;  %v8778_v38 = vunpack.c.l.s8.bf16 %v683_v27  ;;  %v380_v15 = vld [vmem:[%s10378_s26 + $0x140] sm:$0xff] }
 0x23a   : > { %8803 = vmatprep.subr.bf16.mxu1 %v8802_v26  ;;  %v7303_v41 = vcombine.low %v7295_v30, %v7302_v31  ;;  %v8834_v26 = vunpack.c.l.s8.bf16 %v827_v16  ;;  %v8836_v30 = vunpack.c.l.s8.bf16 %v826_v22  ;;  %v8774_v31 = vunpack.c.h.s8.bf16 %v683_v27  ;;  %v508_v16 = vld [vmem:[%s10378_s26 + $0x540] sm:$0xff]  ;;  %v493_v22 = vld [vmem:[%s10378_s26 + $0x4c8] sm:$0xff] }
 0x23b   : > { %v364_v27 = vld [vmem:[%s10378_s26 + $0xc0] sm:$0xff] }
 0x23c   : > { %v7359_v42 = vadd.f32 %v7303_v41, %v4948_v35  ;;  %8741 = vmatpush1.bf16.msra.mxu0 %v8740_v33  ;;  %v8838_v33 = vunpack.c.h.s8.bf16 %v811_v28  ;;  %v810_v35 = vld [vmem:[%s10378_s26 + $0xeb0] sm:$0xff]  ;;  %v667_v41 = vld [vmem:[%s10378_s26 + $0xa38] sm:$0xff]  ;;  %v492_v28 = vld [vmem:[%s10378_s26 + $0x4c0] sm:$0xff] }
 0x23d   : > { %8805 = vmatpush1.bf16.msra.mxu1 %v8804_v34  ;;  %8743 = vmatprep.subr.bf16.mxu0 %v8742_v36  ;;  %v682_v34 = vld [vmem:[%s10378_s26 + $0xab0] sm:$0xff] }
 0x23e   : > { %8807 = vmatprep.subr.bf16.mxu1 %v8806_v37  ;;  %7363 = vst [vmem:[#allocation2 + $0x10] sm:$0xff] %v7359_v42  ;;  %v8776_v36 = vunpack.c.h.s8.bf16 %v682_v34  ;;  %v8840_v37 = vunpack.c.h.s8.bf16 %v810_v35  ;;  %v795_v42 = vld [vmem:[%s10378_s26 + $0xe38] sm:$0xff] }
 0x240   : > { %8745 = vmatpush1.bf16.msra.mxu0 %v8744_v43  ;;  %v8780_v43 = vunpack.c.l.s8.bf16 %v682_v34  ;;  %v349_v34 = vld [vmem:[%s10378_s26 + $0x48] sm:$0xff] }
 0x241   : > { %8809 = vmatpush1.bf16.msra.mxu1 %v8808_v44  ;;  %8747 = vmatprep.subr.bf16.mxu0 %v8746_v45  ;;  %v8844_v44 = vunpack.c.l.s8.bf16 %v810_v35  ;;  %v8782_v45 = vunpack.c.h.s8.bf16 %v667_v41  ;;  %v477_v35 = vld [vmem:[%s10378_s26 + $0x448] sm:$0xff] }
 0x242   : > { %8811 = vmatprep.subr.bf16.mxu1 %v8810_v46  ;;  %v8846_v46 = vunpack.c.h.s8.bf16 %v795_v42 }
 0x244   : > { %8749 = vmatpush1.bf16.msra.mxu0 %v8748_v49  ;;  %v8784_v49 = vunpack.c.h.s8.bf16 %v666_v47 }
 0x245   : > { %8813 = vmatpush1.bf16.msra.mxu1 %v8812_v50  ;;  %8751 = vmatprep.subr.bf16.mxu0 %v8750_v54  ;;  %v8848_v50 = vunpack.c.h.s8.bf16 %v794_v48  ;;  %v8786_v54 = vunpack.c.l.s8.bf16 %v667_v41  ;;  %v348_v41 = vld [vmem:[%s10378_s26 + $0x40] sm:$0xff] }
 0x246   : > { %8815 = vmatprep.subr.bf16.mxu1 %v8814_v32  ;;  %v8850_v32 = vunpack.c.l.s8.bf16 %v795_v42  ;;  %v476_v42 = vld [vmem:[%s10378_s26 + $0x440] sm:$0xff] }
 0x248   : > { %8753 = vmatpush1.bf16.msra.mxu0 %v8752_v57  ;;  %v8788_v57 = vunpack.c.l.s8.bf16 %v666_v47  ;;  %v461_v47 = vld [vmem:[%s10378_s26 + $0x3c8] sm:$0xff] }
 0x249   : > { %8817 = vmatpush1.bf16.msra.mxu1 %v8816_v62  ;;  %8755 = vmatprep.subr.bf16.mxu0 %v8754_v63  ;;  %v8852_v62 = vunpack.c.l.s8.bf16 %v794_v48  ;;  %v8854_v63 = vunpack.c.h.s8.bf16 %v397_v55  ;;  %v589_v48 = vld [vmem:[%s10378_s26 + $0x7c8] sm:$0xff] }
 0x24a   : > { %8819 = vmatprep.subr.bf16.mxu1 %v8818_v0  ;;  %v8918_v0 = vunpack.c.h.s8.bf16 %v525_v56 }
 0x24c   : > { %8757 = vmatpush1.bf16.msra.mxu0 %v8756_v3  ;;  %v8856_v3 = vunpack.c.h.s8.bf16 %v396_v1 }
 0x24d   : > { %8821 = vmatpush1.bf16.msra.mxu1 %v8820_v6  ;;  %8759 = vmatprep.subr.bf16.mxu0 %v8758_v7  ;;  %v8920_v6 = vunpack.c.h.s8.bf16 %v524_v2  ;;  %v8858_v7 = vunpack.c.l.s8.bf16 %v397_v55  ;;  %v460_v55 = vld [vmem:[%s10378_s26 + $0x3c0] sm:$0xff] }
 0x24e   : > { %8823 = vmatprep.subr.bf16.mxu1 %v8822_v8  ;;  %v8922_v8 = vunpack.c.l.s8.bf16 %v525_v56  ;;  %v588_v56 = vld [vmem:[%s10378_s26 + $0x7c0] sm:$0xff] }
 0x250   : > { %8761 = vmatpush2.bf16.msra.mxu0 %v8760_v11  ;;  %v8860_v11 = vunpack.c.l.s8.bf16 %v396_v1  ;;  %v445_v1 = vld [vmem:[%s10378_s26 + $0x348] sm:$0xff] }
 0x251   : > { %8825 = vmatpush2.bf16.msra.mxu1 %v8824_v12  ;;  %8763 = vmatprep.subr.bf16.mxu0 %v8762_v13  ;;  %v8924_v12 = vunpack.c.l.s8.bf16 %v524_v2  ;;  %v8862_v13 = vunpack.c.h.s8.bf16 %v381_v9  ;;  %v573_v2 = vld [vmem:[%s10378_s26 + $0x748] sm:$0xff] }
 0x252   : > { %8827 = vmatprep.subr.bf16.mxu1 %v8826_v14  ;;  %v8926_v14 = vunpack.c.h.s8.bf16 %v509_v10 }
 0x254   : > { %8765 = vmatpush2.bf16.msra.mxu0 %v8764_v17  ;;  %v8864_v17 = vunpack.c.h.s8.bf16 %v380_v15 }
 0x255   : > { %8829 = vmatpush2.bf16.msra.mxu1 %v8828_v18  ;;  %8767 = vmatprep.subr.bf16.mxu0 %v8766_v19  ;;  %v8928_v18 = vunpack.c.h.s8.bf16 %v508_v16  ;;  %v8866_v19 = vunpack.c.l.s8.bf16 %v381_v9  ;;  %v444_v9 = vld [vmem:[%s10378_s26 + $0x340] sm:$0xff] }
 0x256   : > { %8831 = vmatprep.subr.bf16.mxu1 %v8830_v20  ;;  %v8930_v20 = vunpack.c.l.s8.bf16 %v509_v10  ;;  %v572_v10 = vld [vmem:[%s10378_s26 + $0x740] sm:$0xff] }
 0x258   : > { %8769 = vmatpush2.bf16.msra.mxu0 %v8768_v23  ;;  %v8868_v23 = vunpack.c.l.s8.bf16 %v380_v15  ;;  %v429_v15 = vld [vmem:[%s10378_s26 + $0x2c8] sm:$0xff] }
 0x259   : > { %8833 = vmatpush2.bf16.msra.mxu1 %v8832_v24  ;;  %8771 = vmatprep.subr.bf16.mxu0 %v8770_v25  ;;  %v8932_v24 = vunpack.c.l.s8.bf16 %v508_v16  ;;  %v8870_v25 = vunpack.c.h.s8.bf16 %v365_v21  ;;  %v557_v16 = vld [vmem:[%s10378_s26 + $0x6c8] sm:$0xff] }
 0x25a   : > { %8835 = vmatprep.subr.bf16.mxu1 %v8834_v26  ;;  %v8934_v26 = vunpack.c.h.s8.bf16 %v493_v22 }
 0x25c   : > { %8773 = vmatpush2.bf16.msra.mxu0 %v8772_v29  ;;  %v8872_v29 = vunpack.c.h.s8.bf16 %v364_v27 }
 0x25d   : > { %8837 = vmatpush2.bf16.msra.mxu1 %v8836_v30  ;;  %8775 = vmatprep.subr.bf16.mxu0 %v8774_v31  ;;  %v8936_v30 = vunpack.c.h.s8.bf16 %v492_v28  ;;  %v8874_v31 = vunpack.c.l.s8.bf16 %v365_v21  ;;  %v428_v21 = vld [vmem:[%s10378_s26 + $0x2c0] sm:$0xff] }
 0x25e   : > { %8839 = vmatprep.subr.bf16.mxu1 %v8838_v33  ;;  %v8938_v33 = vunpack.c.l.s8.bf16 %v493_v22  ;;  %v556_v22 = vld [vmem:[%s10378_s26 + $0x6c0] sm:$0xff] }
 0x260   : > { %8777 = vmatpush2.bf16.msra.mxu0 %v8776_v36  ;;  %v8876_v36 = vunpack.c.l.s8.bf16 %v364_v27  ;;  %v413_v27 = vld [vmem:[%s10378_s26 + $0x248] sm:$0xff] }
 0x261   : > { %8841 = vmatpush2.bf16.msra.mxu1 %v8840_v37  ;;  %8779 = vmatprep.subr.bf16.mxu0 %v8778_v38  ;;  %v8940_v37 = vunpack.c.l.s8.bf16 %v492_v28  ;;  %v8878_v38 = vunpack.c.h.s8.bf16 %v349_v34  ;;  %v541_v28 = vld [vmem:[%s10378_s26 + $0x648] sm:$0xff] }
 0x262   : > { %8843 = vmatprep.subr.bf16.mxu1 %v8842_v39  ;;  %v8942_v39 = vunpack.c.h.s8.bf16 %v477_v35 }
 0x264   : > { %8781 = vmatpush2.bf16.msra.mxu0 %v8780_v43  ;;  %v8880_v43 = vunpack.c.h.s8.bf16 %v348_v41 }
 0x265   : > { %8845 = vmatpush2.bf16.msra.mxu1 %v8844_v44  ;;  %8783 = vmatprep.subr.bf16.mxu0 %v8782_v45  ;;  %v8944_v44 = vunpack.c.h.s8.bf16 %v476_v42  ;;  %v8882_v45 = vunpack.c.l.s8.bf16 %v349_v34  ;;  %v412_v34 = vld [vmem:[%s10378_s26 + $0x240] sm:$0xff] }
 0x266   : > { %8847 = vmatprep.subr.bf16.mxu1 %v8846_v46  ;;  %v8946_v46 = vunpack.c.l.s8.bf16 %v477_v35  ;;  %v540_v35 = vld [vmem:[%s10378_s26 + $0x640] sm:$0xff] }
 0x268   : > { %8785 = vmatpush2.bf16.msra.mxu0 %v8784_v49  ;;  %v8884_v49 = vunpack.c.l.s8.bf16 %v348_v41  ;;  %v653_v41 = vld [vmem:[%s10378_s26 + $0x9c8] sm:$0xff] }
 0x269   : > { %8849 = vmatpush2.bf16.msra.mxu1 %v8848_v50  ;;  %8787 = vmatprep.subr.bf16.mxu0 %v8786_v54  ;;  %v8948_v50 = vunpack.c.l.s8.bf16 %v476_v42  ;;  %v8886_v54 = vunpack.c.h.s8.bf16 %v461_v47  ;;  %v781_v42 = vld [vmem:[%s10378_s26 + $0xdc8] sm:$0xff] }
 0x26a   : > { %8851 = vmatprep.subr.bf16.mxu1 %v8850_v32  ;;  %v8950_v32 = vunpack.c.h.s8.bf16 %v589_v48 }
 0x26c   : > { %8789 = vmatpush2.bf16.msra.mxu0 %v8788_v57  ;;  %v8888_v57 = vunpack.c.h.s8.bf16 %v460_v55 }
 0x26d   : > { %8853 = vmatpush2.bf16.msra.mxu1 %v8852_v62  ;;  %8855 = vmatprep.subr.bf16.mxu0 %v8854_v63  ;;  %v8952_v62 = vunpack.c.h.s8.bf16 %v588_v56  ;;  %v8890_v63 = vunpack.c.l.s8.bf16 %v461_v47  ;;  %v652_v47 = vld [vmem:[%s10378_s26 + $0x9c0] sm:$0xff] }
 0x26e   : > { %8919 = vmatprep.subr.bf16.mxu1 %v8918_v0  ;;  %v8954_v0 = vunpack.c.l.s8.bf16 %v589_v48  ;;  %v780_v48 = vld [vmem:[%s10378_s26 + $0xdc0] sm:$0xff] }
 0x26f   : > { %6058 = vmatmul.mubr.f32.vlgmr.msra.gmra.mxu0 %v10476_v60 }
 0x270   : > { %6129 = vmatmul.mubr.f32.vlgmr.msra.gmra.mxu1 %v10479_v61  ;;  %8857 = vmatpush1.bf16.msra.mxu0 %v8856_v3  ;;  %v8892_v3 = vunpack.c.l.s8.bf16 %v460_v55  ;;  %v637_v55 = vld [vmem:[%s10378_s26 + $0x948] sm:$0xff] }
 0x271   : > { %8921 = vmatpush1.bf16.msra.mxu1 %v8920_v6  ;;  %8859 = vmatprep.subr.bf16.mxu0 %v8858_v7  ;;  %v8956_v6 = vunpack.c.l.s8.bf16 %v588_v56  ;;  %v8894_v7 = vunpack.c.h.s8.bf16 %v445_v1  ;;  %v765_v56 = vld [vmem:[%s10378_s26 + $0xd48] sm:$0xff] }
 0x272   : > { %8923 = vmatprep.subr.bf16.mxu1 %v8922_v8  ;;  %6199 = vmatprep.mubr.f32.mxu0 %v10446_v58  ;;  %v8958_v8 = vunpack.c.h.s8.bf16 %v573_v2 }
 0x273   : > { %6270 = vmatprep.mubr.f32.mxu1 %v10450_v59 }
 0x274   : > { %8861 = vmatpush1.bf16.msra.mxu0 %v8860_v11  ;;  %v8896_v11 = vunpack.c.h.s8.bf16 %v444_v9 }
 0x275   : > { %8925 = vmatpush1.bf16.msra.mxu1 %v8924_v12  ;;  %8863 = vmatprep.subr.bf16.mxu0 %v8862_v13  ;;  %v8960_v12 = vunpack.c.h.s8.bf16 %v572_v10  ;;  %v8898_v13 = vunpack.c.l.s8.bf16 %v445_v1  ;;  %v636_v1 = vld [vmem:[%s10378_s26 + $0x940] sm:$0xff] }
 0x276   : > { %8927 = vmatprep.subr.bf16.mxu1 %v8926_v14  ;;  %v8962_v14 = vunpack.c.l.s8.bf16 %v573_v2  ;;  %v764_v2 = vld [vmem:[%s10378_s26 + $0xd40] sm:$0xff] }
 0x278   : > { %8865 = vmatpush1.bf16.msra.mxu0 %v8864_v17  ;;  %v8900_v17 = vunpack.c.l.s8.bf16 %v444_v9  ;;  %v621_v9 = vld [vmem:[%s10378_s26 + $0x8c8] sm:$0xff] }
 0x279   : > { %8929 = vmatpush1.bf16.msra.mxu1 %v8928_v18  ;;  %8867 = vmatprep.subr.bf16.mxu0 %v8866_v19  ;;  %v8964_v18 = vunpack.c.l.s8.bf16 %v572_v10  ;;  %v8902_v19 = vunpack.c.h.s8.bf16 %v429_v15  ;;  %v749_v10 = vld [vmem:[%s10378_s26 + $0xcc8] sm:$0xff] }
 0x27a   : > { %8931 = vmatprep.subr.bf16.mxu1 %v8930_v20  ;;  %v8966_v20 = vunpack.c.h.s8.bf16 %v557_v16 }
 0x27c   : > { %8869 = vmatpush1.bf16.msra.mxu0 %v8868_v23  ;;  %v8904_v23 = vunpack.c.h.s8.bf16 %v428_v21 }
 0x27d   : > { %8933 = vmatpush1.bf16.msra.mxu1 %v8932_v24  ;;  %8871 = vmatprep.subr.bf16.mxu0 %v8870_v25  ;;  %v8968_v24 = vunpack.c.h.s8.bf16 %v556_v22  ;;  %v8906_v25 = vunpack.c.l.s8.bf16 %v429_v15  ;;  %v620_v15 = vld [vmem:[%s10378_s26 + $0x8c0] sm:$0xff] }
 0x27e   : > { %8935 = vmatprep.subr.bf16.mxu1 %v8934_v26  ;;  %v8970_v26 = vunpack.c.l.s8.bf16 %v557_v16  ;;  %v748_v16 = vld [vmem:[%s10378_s26 + $0xcc0] sm:$0xff] }
 0x280   : > { %8873 = vmatpush1.bf16.msra.mxu0 %v8872_v29  ;;  %v8908_v29 = vunpack.c.l.s8.bf16 %v428_v21  ;;  %v605_v21 = vld [vmem:[%s10378_s26 + $0x848] sm:$0xff] }
 0x281   : > { %8937 = vmatpush1.bf16.msra.mxu1 %v8936_v30  ;;  %8875 = vmatprep.subr.bf16.mxu0 %v8874_v31  ;;  %v8972_v30 = vunpack.c.l.s8.bf16 %v556_v22  ;;  %v8910_v31 = vunpack.c.h.s8.bf16 %v413_v27  ;;  %v733_v22 = vld [vmem:[%s10378_s26 + $0xc48] sm:$0xff] }
 0x282   : > { %8939 = vmatprep.subr.bf16.mxu1 %v8938_v33  ;;  %v8974_v33 = vunpack.c.h.s8.bf16 %v541_v28 }
 0x284   : > { %8877 = vmatpush1.bf16.msra.mxu0 %v8876_v36  ;;  %v8912_v36 = vunpack.c.h.s8.bf16 %v412_v34 }
 0x285   : > { %8941 = vmatpush1.bf16.msra.mxu1 %v8940_v37  ;;  %8879 = vmatprep.subr.bf16.mxu0 %v8878_v38  ;;  %v8976_v37 = vunpack.c.h.s8.bf16 %v540_v35  ;;  %v8914_v38 = vunpack.c.l.s8.bf16 %v413_v27  ;;  %v604_v27 = vld [vmem:[%s10378_s26 + $0x840] sm:$0xff] }
 0x286   : > { %8943 = vmatprep.subr.bf16.mxu1 %v8942_v39  ;;  %v8978_v39 = vunpack.c.l.s8.bf16 %v541_v28  ;;  %v732_v28 = vld [vmem:[%s10378_s26 + $0xc40] sm:$0xff] }
 0x288   : > { %8881 = vmatpush1.bf16.msra.mxu0 %v8880_v43  ;;  %v8916_v43 = vunpack.c.l.s8.bf16 %v412_v34  ;;  %v717_v34 = vld [vmem:[%s10378_s26 + $0xbc8] sm:$0xff] }
 0x289   : > { %8945 = vmatpush1.bf16.msra.mxu1 %v8944_v44  ;;  %8883 = vmatprep.subr.bf16.mxu0 %v8882_v45  ;;  %v8980_v44 = vunpack.c.l.s8.bf16 %v540_v35  ;;  %v8982_v45 = vunpack.c.h.s8.bf16 %v653_v41  ;;  %v845_v35 = vld [vmem:[%s10378_s26 + $0xfc8] sm:$0xff] }
 0x28a   : > { %8947 = vmatprep.subr.bf16.mxu1 %v8946_v46  ;;  %v9046_v46 = vunpack.c.h.s8.bf16 %v781_v42 }
 0x28c   : > { %8885 = vmatpush1.bf16.msra.mxu0 %v8884_v49  ;;  %v8984_v49 = vunpack.c.h.s8.bf16 %v652_v47 }
 0x28d   : > { %8949 = vmatpush1.bf16.msra.mxu1 %v8948_v50  ;;  %8887 = vmatprep.subr.bf16.mxu0 %v8886_v54  ;;  %v9048_v50 = vunpack.c.h.s8.bf16 %v780_v48  ;;  %v8986_v54 = vunpack.c.l.s8.bf16 %v653_v41  ;;  %v716_v41 = vld [vmem:[%s10378_s26 + $0xbc0] sm:$0xff] }
 0x28e   : > { %8951 = vmatprep.subr.bf16.mxu1 %v8950_v32  ;;  %v9050_v32 = vunpack.c.l.s8.bf16 %v781_v42  ;;  %v844_v42 = vld [vmem:[%s10378_s26 + $0xfc0] sm:$0xff] }
 0x290   : > { %8889 = vmatpush2.bf16.msra.mxu0 %v8888_v57  ;;  %v8988_v57 = vunpack.c.l.s8.bf16 %v652_v47  ;;  %v701_v47 = vld [vmem:[%s10378_s26 + $0xb48] sm:$0xff] }
 0x291   : > { %8953 = vmatpush2.bf16.msra.mxu1 %v8952_v62  ;;  %8891 = vmatprep.subr.bf16.mxu0 %v8890_v63  ;;  %v9052_v62 = vunpack.c.l.s8.bf16 %v780_v48  ;;  %v8990_v63 = vunpack.c.h.s8.bf16 %v637_v55  ;;  %v829_v48 = vld [vmem:[%s10378_s26 + $0xf48] sm:$0xff] }
 0x292   : > { %8955 = vmatprep.subr.bf16.mxu1 %v8954_v0  ;;  %v9054_v0 = vunpack.c.h.s8.bf16 %v765_v56 }
 0x294   : > { %8893 = vmatpush2.bf16.msra.mxu0 %v8892_v3  ;;  %v8992_v3 = vunpack.c.h.s8.bf16 %v636_v1 }
 0x295   : > { %8957 = vmatpush2.bf16.msra.mxu1 %v8956_v6  ;;  %8895 = vmatprep.subr.bf16.mxu0 %v8894_v7  ;;  %v9056_v6 = vunpack.c.h.s8.bf16 %v764_v2  ;;  %v8994_v7 = vunpack.c.l.s8.bf16 %v637_v55  ;;  %v700_v55 = vld [vmem:[%s10378_s26 + $0xb40] sm:$0xff] }
 0x296   : > { %8959 = vmatprep.subr.bf16.mxu1 %v8958_v8  ;;  %v9058_v8 = vunpack.c.l.s8.bf16 %v765_v56  ;;  %v828_v56 = vld [vmem:[%s10378_s26 + $0xf40] sm:$0xff] }
 0x298   : > { %8897 = vmatpush2.bf16.msra.mxu0 %v8896_v11  ;;  %v8996_v11 = vunpack.c.l.s8.bf16 %v636_v1  ;;  %v685_v1 = vld [vmem:[%s10378_s26 + $0xac8] sm:$0xff] }
 0x299   : > { %8961 = vmatpush2.bf16.msra.mxu1 %v8960_v12  ;;  %8899 = vmatprep.subr.bf16.mxu0 %v8898_v13  ;;  %v9060_v12 = vunpack.c.l.s8.bf16 %v764_v2  ;;  %v8998_v13 = vunpack.c.h.s8.bf16 %v621_v9  ;;  %v813_v2 = vld [vmem:[%s10378_s26 + $0xec8] sm:$0xff] }
 0x29a   : > { %8963 = vmatprep.subr.bf16.mxu1 %v8962_v14  ;;  %v9062_v14 = vunpack.c.h.s8.bf16 %v749_v10 }
 0x29c   : > { %8901 = vmatpush2.bf16.msra.mxu0 %v8900_v17  ;;  %v9000_v17 = vunpack.c.h.s8.bf16 %v620_v15 }
 0x29d   : > { %8965 = vmatpush2.bf16.msra.mxu1 %v8964_v18  ;;  %8903 = vmatprep.subr.bf16.mxu0 %v8902_v19  ;;  %v9064_v18 = vunpack.c.h.s8.bf16 %v748_v16  ;;  %v9002_v19 = vunpack.c.l.s8.bf16 %v621_v9  ;;  %v684_v9 = vld [vmem:[%s10378_s26 + $0xac0] sm:$0xff] }
 0x29e   : > { %8967 = vmatprep.subr.bf16.mxu1 %v8966_v20  ;;  %v9066_v20 = vunpack.c.l.s8.bf16 %v749_v10  ;;  %v812_v10 = vld [vmem:[%s10378_s26 + $0xec0] sm:$0xff] }
 0x2a0   : > { %8905 = vmatpush2.bf16.msra.mxu0 %v8904_v23  ;;  %v9004_v23 = vunpack.c.l.s8.bf16 %v620_v15  ;;  %v669_v15 = vld [vmem:[%s10378_s26 + $0xa48] sm:$0xff] }
 0x2a1   : > { %8969 = vmatpush2.bf16.msra.mxu1 %v8968_v24  ;;  %8907 = vmatprep.subr.bf16.mxu0 %v8906_v25  ;;  %v9068_v24 = vunpack.c.l.s8.bf16 %v748_v16  ;;  %v9006_v25 = vunpack.c.h.s8.bf16 %v605_v21  ;;  %v797_v16 = vld [vmem:[%s10378_s26 + $0xe48] sm:$0xff] }
 0x2a2   : > { %8971 = vmatprep.subr.bf16.mxu1 %v8970_v26  ;;  %v9070_v26 = vunpack.c.h.s8.bf16 %v733_v22 }
 0x2a4   : > { %8909 = vmatpush2.bf16.msra.mxu0 %v8908_v29  ;;  %v9008_v29 = vunpack.c.h.s8.bf16 %v604_v27 }
 0x2a5   : > { %8973 = vmatpush2.bf16.msra.mxu1 %v8972_v30  ;;  %8911 = vmatprep.subr.bf16.mxu0 %v8910_v31  ;;  %v9072_v30 = vunpack.c.h.s8.bf16 %v732_v28  ;;  %v9010_v31 = vunpack.c.l.s8.bf16 %v605_v21  ;;  %v668_v21 = vld [vmem:[%s10378_s26 + $0xa40] sm:$0xff] }
 0x2a6   : > { %8975 = vmatprep.subr.bf16.mxu1 %v8974_v33  ;;  %v9074_v33 = vunpack.c.l.s8.bf16 %v733_v22  ;;  %v796_v22 = vld [vmem:[%s10378_s26 + $0xe40] sm:$0xff] }
 0x2a8   : > { %8913 = vmatpush2.bf16.msra.mxu0 %v8912_v36  ;;  %v9012_v36 = vunpack.c.l.s8.bf16 %v604_v27  ;;  %v399_v27 = vld [vmem:[%s10378_s26 + $0x1d8] sm:$0xff] }
 0x2a9   : > { %8977 = vmatpush2.bf16.msra.mxu1 %v8976_v37  ;;  %8915 = vmatprep.subr.bf16.mxu0 %v8914_v38  ;;  %v9076_v37 = vunpack.c.l.s8.bf16 %v732_v28  ;;  %v9014_v38 = vunpack.c.h.s8.bf16 %v717_v34  ;;  %v527_v28 = vld [vmem:[%s10378_s26 + $0x5d8] sm:$0xff] }
 0x2aa   : > { %8979 = vmatprep.subr.bf16.mxu1 %v8978_v39  ;;  %v9078_v39 = vunpack.c.h.s8.bf16 %v845_v35 }
 0x2ac   : > { %8917 = vmatpush2.bf16.msra.mxu0 %v8916_v43  ;;  %v9016_v43 = vunpack.c.h.s8.bf16 %v716_v41 }
 0x2ad   : > { %8981 = vmatpush2.bf16.msra.mxu1 %v8980_v44  ;;  %8983 = vmatprep.subr.bf16.mxu0 %v8982_v45  ;;  %v9080_v44 = vunpack.c.h.s8.bf16 %v844_v42  ;;  %v9018_v45 = vunpack.c.l.s8.bf16 %v717_v34  ;;  %v398_v34 = vld [vmem:[%s10378_s26 + $0x1d0] sm:$0xff] }
 0x2ae   : > { %9047 = vmatprep.subr.bf16.mxu1 %v9046_v46  ;;  %v9082_v46 = vunpack.c.l.s8.bf16 %v845_v35  ;;  %v526_v35 = vld [vmem:[%s10378_s26 + $0x5d0] sm:$0xff] }
 0x2af   : > { %6200 = vmatmul.mubr.f32.vlgmr.msra.gmra.mxu0 %v10439_v52 }
 0x2b0   : > { %6271 = vmatmul.mubr.f32.vlgmr.msra.gmra.mxu1 %v10442_v53  ;;  %8985 = vmatpush1.bf16.msra.mxu0 %v8984_v49  ;;  %v9020_v49 = vunpack.c.l.s8.bf16 %v716_v41  ;;  %v383_v41 = vld [vmem:[%s10378_s26 + $0x158] sm:$0xff] }
 0x2b1   : > { %9049 = vmatpush1.bf16.msra.mxu1 %v9048_v50  ;;  %8987 = vmatprep.subr.bf16.mxu0 %v8986_v54  ;;  %v9084_v50 = vunpack.c.l.s8.bf16 %v844_v42  ;;  %v9022_v54 = vunpack.c.h.s8.bf16 %v701_v47  ;;  %v511_v42 = vld [vmem:[%s10378_s26 + $0x558] sm:$0xff] }
 0x2b2   : > { %9051 = vmatprep.subr.bf16.mxu1 %v9050_v32  ;;  %6341 = vmatprep.mubr.f32.mxu0 %v10485_v4  ;;  %v9086_v32 = vunpack.c.h.s8.bf16 %v829_v48 }
 0x2b3   : > { %6412 = vmatprep.mubr.f32.mxu1 %v10489_v5 }
 0x2b4   : > { %8989 = vmatpush1.bf16.msra.mxu0 %v8988_v57  ;;  %v9024_v57 = vunpack.c.h.s8.bf16 %v700_v55 }
 0x2b5   : > { %9053 = vmatpush1.bf16.msra.mxu1 %v9052_v62  ;;  %8991 = vmatprep.subr.bf16.mxu0 %v8990_v63  ;;  %v9088_v62 = vunpack.c.h.s8.bf16 %v828_v56  ;;  %v9026_v63 = vunpack.c.l.s8.bf16 %v701_v47  ;;  %v382_v47 = vld [vmem:[%s10378_s26 + $0x150] sm:$0xff] }
 0x2b6   : > { %9055 = vmatprep.subr.bf16.mxu1 %v9054_v0  ;;  %v9090_v0 = vunpack.c.l.s8.bf16 %v829_v48  ;;  %v510_v48 = vld [vmem:[%s10378_s26 + $0x550] sm:$0xff] }
 0x2b8   : > { %8993 = vmatpush1.bf16.msra.mxu0 %v8992_v3  ;;  %v9028_v3 = vunpack.c.l.s8.bf16 %v700_v55  ;;  %v367_v55 = vld [vmem:[%s10378_s26 + $0xd8] sm:$0xff] }
 0x2b9   : > { %9057 = vmatpush1.bf16.msra.mxu1 %v9056_v6  ;;  %8995 = vmatprep.subr.bf16.mxu0 %v8994_v7  ;;  %v9092_v6 = vunpack.c.l.s8.bf16 %v828_v56  ;;  %v9030_v7 = vunpack.c.h.s8.bf16 %v685_v1  ;;  %v495_v56 = vld [vmem:[%s10378_s26 + $0x4d8] sm:$0xff] }
 0x2ba   : > { %9059 = vmatprep.subr.bf16.mxu1 %v9058_v8  ;;  %v9094_v8 = vunpack.c.h.s8.bf16 %v813_v2 }
 0x2bc   : > { %8997 = vmatpush1.bf16.msra.mxu0 %v8996_v11  ;;  %v9032_v11 = vunpack.c.h.s8.bf16 %v684_v9 }
 0x2bd   : > { %9061 = vmatpush1.bf16.msra.mxu1 %v9060_v12  ;;  %8999 = vmatprep.subr.bf16.mxu0 %v8998_v13  ;;  %v9096_v12 = vunpack.c.h.s8.bf16 %v812_v10  ;;  %v9034_v13 = vunpack.c.l.s8.bf16 %v685_v1  ;;  %v366_v1 = vld [vmem:[%s10378_s26 + $0xd0] sm:$0xff] }
 0x2be   : > { %9063 = vmatprep.subr.bf16.mxu1 %v9062_v14  ;;  %v9098_v14 = vunpack.c.l.s8.bf16 %v813_v2  ;;  %v494_v2 = vld [vmem:[%s10378_s26 + $0x4d0] sm:$0xff] }
 0x2c0   : > { %9001 = vmatpush1.bf16.msra.mxu0 %v9000_v17  ;;  %v9036_v17 = vunpack.c.l.s8.bf16 %v684_v9  ;;  %v351_v9 = vld [vmem:[%s10378_s26 + $0x58] sm:$0xff] }
 0x2c1   : > { %9065 = vmatpush1.bf16.msra.mxu1 %v9064_v18  ;;  %9003 = vmatprep.subr.bf16.mxu0 %v9002_v19  ;;  %v9100_v18 = vunpack.c.l.s8.bf16 %v812_v10  ;;  %v9038_v19 = vunpack.c.h.s8.bf16 %v669_v15  ;;  %v479_v10 = vld [vmem:[%s10378_s26 + $0x458] sm:$0xff] }
 0x2c2   : > { %9067 = vmatprep.subr.bf16.mxu1 %v9066_v20  ;;  %v9102_v20 = vunpack.c.h.s8.bf16 %v797_v16 }
 0x2c4   : > { %9005 = vmatpush1.bf16.msra.mxu0 %v9004_v23  ;;  %v9040_v23 = vunpack.c.h.s8.bf16 %v668_v21 }
 0x2c5   : > { %9069 = vmatpush1.bf16.msra.mxu1 %v9068_v24  ;;  %9007 = vmatprep.subr.bf16.mxu0 %v9006_v25  ;;  %v9104_v24 = vunpack.c.h.s8.bf16 %v796_v22  ;;  %v9042_v25 = vunpack.c.l.s8.bf16 %v669_v15  ;;  %v350_v15 = vld [vmem:[%s10378_s26 + $0x50] sm:$0xff] }
 0x2c6   : > { %9071 = vmatprep.subr.bf16.mxu1 %v9070_v26  ;;  %v9106_v26 = vunpack.c.l.s8.bf16 %v797_v16  ;;  %v478_v16 = vld [vmem:[%s10378_s26 + $0x450] sm:$0xff] }
 0x2c8   : > { %9009 = vmatpush1.bf16.msra.mxu0 %v9008_v29  ;;  %v9044_v29 = vunpack.c.l.s8.bf16 %v668_v21  ;;  %v463_v21 = vld [vmem:[%s10378_s26 + $0x3d8] sm:$0xff] }
 0x2c9   : > { %9073 = vmatpush1.bf16.msra.mxu1 %v9072_v30  ;;  %9011 = vmatprep.subr.bf16.mxu0 %v9010_v31  ;;  %v9108_v30 = vunpack.c.l.s8.bf16 %v796_v22  ;;  %v9110_v31 = vunpack.c.h.s8.bf16 %v399_v27  ;;  %v591_v22 = vld [vmem:[%s10378_s26 + $0x7d8] sm:$0xff] }
 0x2ca   : > { %9075 = vmatprep.subr.bf16.mxu1 %v9074_v33  ;;  %v9174_v33 = vunpack.c.h.s8.bf16 %v527_v28 }
 0x2cc   : > { %9013 = vmatpush1.bf16.msra.mxu0 %v9012_v36  ;;  %v9112_v36 = vunpack.c.h.s8.bf16 %v398_v34 }
 0x2cd   : > { %9077 = vmatpush1.bf16.msra.mxu1 %v9076_v37  ;;  %9015 = vmatprep.subr.bf16.mxu0 %v9014_v38  ;;  %v9176_v37 = vunpack.c.h.s8.bf16 %v526_v35  ;;  %v9114_v38 = vunpack.c.l.s8.bf16 %v399_v27  ;;  %v462_v27 = vld [vmem:[%s10378_s26 + $0x3d0] sm:$0xff] }
 0x2ce   : > { %9079 = vmatprep.subr.bf16.mxu1 %v9078_v39  ;;  %v9178_v39 = vunpack.c.l.s8.bf16 %v527_v28  ;;  %v590_v28 = vld [vmem:[%s10378_s26 + $0x7d0] sm:$0xff] }
 0x2d0   : > { %9017 = vmatpush2.bf16.msra.mxu0 %v9016_v43  ;;  %v9116_v43 = vunpack.c.l.s8.bf16 %v398_v34  ;;  %v447_v34 = vld [vmem:[%s10378_s26 + $0x358] sm:$0xff] }
 0x2d1   : > { %9081 = vmatpush2.bf16.msra.mxu1 %v9080_v44  ;;  %9019 = vmatprep.subr.bf16.mxu0 %v9018_v45  ;;  %v9180_v44 = vunpack.c.l.s8.bf16 %v526_v35  ;;  %v9118_v45 = vunpack.c.h.s8.bf16 %v383_v41  ;;  %v575_v35 = vld [vmem:[%s10378_s26 + $0x758] sm:$0xff] }
 0x2d2   : > { %9083 = vmatprep.subr.bf16.mxu1 %v9082_v46  ;;  %v9182_v46 = vunpack.c.h.s8.bf16 %v511_v42 }
 0x2d4   : > { %9021 = vmatpush2.bf16.msra.mxu0 %v9020_v49  ;;  %v9120_v49 = vunpack.c.h.s8.bf16 %v382_v47 }
 0x2d5   : > { %9085 = vmatpush2.bf16.msra.mxu1 %v9084_v50  ;;  %9023 = vmatprep.subr.bf16.mxu0 %v9022_v54  ;;  %v9184_v50 = vunpack.c.h.s8.bf16 %v510_v48  ;;  %v9122_v54 = vunpack.c.l.s8.bf16 %v383_v41  ;;  %v446_v41 = vld [vmem:[%s10378_s26 + $0x350] sm:$0xff] }
 0x2d6   : > { %9087 = vmatprep.subr.bf16.mxu1 %v9086_v32  ;;  %v9186_v32 = vunpack.c.l.s8.bf16 %v511_v42  ;;  %v574_v42 = vld [vmem:[%s10378_s26 + $0x750] sm:$0xff] }
 0x2d8   : > { %9025 = vmatpush2.bf16.msra.mxu0 %v9024_v57  ;;  %v9124_v57 = vunpack.c.l.s8.bf16 %v382_v47  ;;  %v431_v47 = vld [vmem:[%s10378_s26 + $0x2d8] sm:$0xff] }
 0x2d9   : > { %9089 = vmatpush2.bf16.msra.mxu1 %v9088_v62  ;;  %9027 = vmatprep.subr.bf16.mxu0 %v9026_v63  ;;  %v9188_v62 = vunpack.c.l.s8.bf16 %v510_v48  ;;  %v9126_v63 = vunpack.c.h.s8.bf16 %v367_v55  ;;  %v559_v48 = vld [vmem:[%s10378_s26 + $0x6d8] sm:$0xff] }
 0x2da   : > { %9091 = vmatprep.subr.bf16.mxu1 %v9090_v0  ;;  %v9190_v0 = vunpack.c.h.s8.bf16 %v495_v56 }
 0x2dc   : > { %9029 = vmatpush2.bf16.msra.mxu0 %v9028_v3  ;;  %v9128_v3 = vunpack.c.h.s8.bf16 %v366_v1 }
 0x2dd   : > { %9093 = vmatpush2.bf16.msra.mxu1 %v9092_v6  ;;  %9031 = vmatprep.subr.bf16.mxu0 %v9030_v7  ;;  %v9192_v6 = vunpack.c.h.s8.bf16 %v494_v2  ;;  %v9130_v7 = vunpack.c.l.s8.bf16 %v367_v55  ;;  %v430_v55 = vld [vmem:[%s10378_s26 + $0x2d0] sm:$0xff] }
 0x2de   : > { %9095 = vmatprep.subr.bf16.mxu1 %v9094_v8  ;;  %v9194_v8 = vunpack.c.l.s8.bf16 %v495_v56  ;;  %v558_v56 = vld [vmem:[%s10378_s26 + $0x6d0] sm:$0xff] }
 0x2e0   : > { %9033 = vmatpush2.bf16.msra.mxu0 %v9032_v11  ;;  %v9132_v11 = vunpack.c.l.s8.bf16 %v366_v1  ;;  %v9162_v1 = vunpack.c.l.s8.bf16 %v431_v47 }
 0x2e1   : > { %9097 = vmatpush2.bf16.msra.mxu1 %v9096_v12  ;;  %9035 = vmatprep.subr.bf16.mxu0 %v9034_v13  ;;  %v9196_v12 = vunpack.c.l.s8.bf16 %v494_v2  ;;  %v9134_v13 = vunpack.c.h.s8.bf16 %v351_v9  ;;  %v9226_v2 = vunpack.c.l.s8.bf16 %v559_v48 }
 0x2e2   : > { %9099 = vmatprep.subr.bf16.mxu1 %v9098_v14  ;;  %v9198_v14 = vunpack.c.h.s8.bf16 %v479_v10 }
 0x2e4   : > { %9037 = vmatpush2.bf16.msra.mxu0 %v9036_v17  ;;  %v9136_v17 = vunpack.c.h.s8.bf16 %v350_v15 }
 0x2e5   : > { %9101 = vmatpush2.bf16.msra.mxu1 %v9100_v18  ;;  %9039 = vmatprep.subr.bf16.mxu0 %v9038_v19  ;;  %v9200_v18 = vunpack.c.h.s8.bf16 %v478_v16  ;;  %v9138_v19 = vunpack.c.l.s8.bf16 %v351_v9 }
 0x2e6   : > { %9103 = vmatprep.subr.bf16.mxu1 %v9102_v20  ;;  %v9202_v20 = vunpack.c.l.s8.bf16 %v479_v10 }
 0x2e8   : > { %9041 = vmatpush2.bf16.msra.mxu0 %v9040_v23  ;;  %v9140_v23 = vunpack.c.l.s8.bf16 %v350_v15 }
 0x2e9   : > { %9105 = vmatpush2.bf16.msra.mxu1 %v9104_v24  ;;  %9043 = vmatprep.subr.bf16.mxu0 %v9042_v25  ;;  %v9204_v24 = vunpack.c.l.s8.bf16 %v478_v16  ;;  %v9142_v25 = vunpack.c.h.s8.bf16 %v463_v21 }
 0x2ea   : > { %9107 = vmatprep.subr.bf16.mxu1 %v9106_v26  ;;  %v9206_v26 = vunpack.c.h.s8.bf16 %v591_v22 }
 0x2ec   : > { %9045 = vmatpush2.bf16.msra.mxu0 %v9044_v29  ;;  %v9144_v29 = vunpack.c.h.s8.bf16 %v462_v27 }
 0x2ed   : > { %9109 = vmatpush2.bf16.msra.mxu1 %v9108_v30  ;;  %9111 = vmatprep.subr.bf16.mxu0 %v9110_v31  ;;  %v9208_v30 = vunpack.c.h.s8.bf16 %v590_v28  ;;  %v9146_v31 = vunpack.c.l.s8.bf16 %v463_v21  ;;  %v655_v21 = vld [vmem:[%s10378_s26 + $0x9d8] sm:$0xff] }
 0x2ee   : > { %9175 = vmatprep.subr.bf16.mxu1 %v9174_v33  ;;  %v9210_v33 = vunpack.c.l.s8.bf16 %v591_v22  ;;  %v783_v22 = vld [vmem:[%s10378_s26 + $0xdd8] sm:$0xff] }
 0x2ef   : > { %6342 = vmatmul.mubr.f32.vlgmr.msra.gmra.mxu0 %v10476_v60 }
 0x2f0   : > { %6413 = vmatmul.mubr.f32.vlgmr.msra.gmra.mxu1 %v10479_v61  ;;  %9113 = vmatpush1.bf16.msra.mxu0 %v9112_v36  ;;  %v9148_v36 = vunpack.c.l.s8.bf16 %v462_v27 }
 0x2f1   : > { %9177 = vmatpush1.bf16.msra.mxu1 %v9176_v37  ;;  %9115 = vmatprep.subr.bf16.mxu0 %v9114_v38  ;;  %v9212_v37 = vunpack.c.l.s8.bf16 %v590_v28  ;;  %v9150_v38 = vunpack.c.h.s8.bf16 %v447_v34 }
 0x2f2   : > { %9179 = vmatprep.subr.bf16.mxu1 %v9178_v39  ;;  %6483 = vmatprep.mubr.f32.mxu0 %v10446_v58  ;;  %v9214_v39 = vunpack.c.h.s8.bf16 %v575_v35 }
 0x2f3   : > { %6554 = vmatprep.mubr.f32.mxu1 %v10450_v59 }
 0x2f4   : > { %9117 = vmatpush1.bf16.msra.mxu0 %v9116_v43  ;;  %v9152_v43 = vunpack.c.h.s8.bf16 %v446_v41 }
 0x2f5   : > { %9181 = vmatpush1.bf16.msra.mxu1 %v9180_v44  ;;  %9119 = vmatprep.subr.bf16.mxu0 %v9118_v45  ;;  %v9216_v44 = vunpack.c.h.s8.bf16 %v574_v42  ;;  %v9154_v45 = vunpack.c.l.s8.bf16 %v447_v34  ;;  %v782_v34 = vld [vmem:[%s10378_s26 + $0xdd0] sm:$0xff] }
 0x2f6   : > { %9183 = vmatprep.subr.bf16.mxu1 %v9182_v46  ;;  %v9218_v46 = vunpack.c.l.s8.bf16 %v575_v35 }
 0x2f8   : > { %9121 = vmatpush1.bf16.msra.mxu0 %v9120_v49  ;;  %v9156_v49 = vunpack.c.l.s8.bf16 %v446_v41 }
 0x2f9   : > { %9185 = vmatpush1.bf16.msra.mxu1 %v9184_v50  ;;  %9123 = vmatprep.subr.bf16.mxu0 %v9122_v54  ;;  %v9220_v50 = vunpack.c.l.s8.bf16 %v574_v42  ;;  %v9158_v54 = vunpack.c.h.s8.bf16 %v431_v47  ;;  %v767_v47 = vld [vmem:[%s10378_s26 + $0xd58] sm:$0xff] }
 0x2fa   : > { %9187 = vmatprep.subr.bf16.mxu1 %v9186_v32  ;;  %v9222_v32 = vunpack.c.h.s8.bf16 %v559_v48 }
 0x2fc   : > { %9125 = vmatpush1.bf16.msra.mxu0 %v9124_v57  ;;  %v9160_v57 = vunpack.c.h.s8.bf16 %v430_v55 }
 0x2fd   : > { %9189 = vmatpush1.bf16.msra.mxu1 %v9188_v62  ;;  %9127 = vmatprep.subr.bf16.mxu0 %v9126_v63  ;;  %v9224_v62 = vunpack.c.h.s8.bf16 %v558_v56  ;;  %v5633_v63 = vpop.f32.mrf.mxu0 }
 0x2fe   : > { %9191 = vmatprep.subr.bf16.mxu1 %v9190_v0  ;;  %v5704_v0 = vpop.f32.mrf.mxu1 }
 0x2ff   : > { %v5635_v9 = vpop.f32.mrf.mxu0  ;;  %v5705_v35 = vadd.f32 %v5704_v0, %v5633_v63 }
 0x300   : > { %9129 = vmatpush1.bf16.msra.mxu0 %v9128_v3  ;;  %v415_v3 = vld [vmem:[%s10378_s26 + $0x258] sm:$0xff]  ;;  %v5706_v10 = vpop.f32.mrf.mxu1 }
 0x301   : > { %9193 = vmatpush1.bf16.msra.mxu1 %v9192_v6  ;;  %9131 = vmatprep.subr.bf16.mxu0 %v9130_v7  ;;  %v543_v6 = vld [vmem:[%s10378_s26 + $0x658] sm:$0xff]  ;;  %v9164_v7 = vunpack.c.l.s8.bf16 %v430_v55  ;;  %v5775_v15 = vpop.f32.mrf.mxu0  ;;  %v5707_v27 = vadd.f32 %v5706_v10, %v5635_v9 }
 0x302   : > { %9195 = vmatprep.subr.bf16.mxu1 %v9194_v8  ;;  %v9228_v8 = vunpack.c.l.s8.bf16 %v558_v56  ;;  %v5846_v16 = vpop.f32.mrf.mxu1  ;;  %v9308_v56 = vunpack.c.l.s8.bf16 %v782_v34 }
 0x304   : > { %9133 = vmatpush1.bf16.msra.mxu0 %v9132_v11  ;;  %v9166_v11 = vunpack.c.h.s8.bf16 %v415_v3 }
 0x305   : > { %9197 = vmatpush1.bf16.msra.mxu1 %v9196_v12  ;;  %9135 = vmatprep.subr.bf16.mxu0 %v9134_v13  ;;  %v9230_v12 = vunpack.c.h.s8.bf16 %v543_v6  ;;  %v414_v13 = vld [vmem:[%s10378_s26 + $0x250] sm:$0xff] }
 0x306   : > { %9199 = vmatprep.subr.bf16.mxu1 %v9198_v14  ;;  %v542_v14 = vld [vmem:[%s10378_s26 + $0x650] sm:$0xff] }
 0x308   : > { %9137 = vmatpush1.bf16.msra.mxu0 %v9136_v17  ;;  %v9168_v17 = vunpack.c.h.s8.bf16 %v414_v13 }
 0x309   : > { %9201 = vmatpush1.bf16.msra.mxu1 %v9200_v18  ;;  %9139 = vmatprep.subr.bf16.mxu0 %v9138_v19  ;;  %v9232_v18 = vunpack.c.h.s8.bf16 %v542_v14  ;;  %v9170_v19 = vunpack.c.l.s8.bf16 %v415_v3  ;;  %v766_v3 = vld [vmem:[%s10378_s26 + $0xd50] sm:$0xff] }
 0x30a   : > { %9203 = vmatprep.subr.bf16.mxu1 %v9202_v20  ;;  %v9234_v20 = vunpack.c.l.s8.bf16 %v543_v6 }
 0x30c   : > { %9141 = vmatpush1.bf16.msra.mxu0 %v9140_v23  ;;  %v5777_v23 = vpop.f32.mrf.mxu0 }
 0x30d   : > { %9205 = vmatpush1.bf16.msra.mxu1 %v9204_v24  ;;  %9143 = vmatprep.subr.bf16.mxu0 %v9142_v25  ;;  %v5848_v24 = vpop.f32.mrf.mxu1  ;;  %v9172_v25 = vunpack.c.l.s8.bf16 %v414_v13  ;;  %v9314_v13 = vunpack.c.l.s8.bf16 %v767_v47 }
 0x30e   : > { %9207 = vmatprep.subr.bf16.mxu1 %v9206_v26  ;;  %v9236_v26 = vunpack.c.l.s8.bf16 %v542_v14  ;;  %v5917_v28 = vpop.f32.mrf.mxu0 }
 0x310   : > { %9145 = vmatpush2.bf16.msra.mxu0 %v9144_v29  ;;  %v5988_v29 = vpop.f32.mrf.mxu1  ;;  %v5919_v41 = vpop.f32.mrf.mxu0 }
 0x311   : > { %9209 = vmatpush2.bf16.msra.mxu1 %v9208_v30  ;;  %9147 = vmatprep.subr.bf16.mxu0 %v9146_v31  ;;  %v9238_v30 = vunpack.c.h.s8.bf16 %v655_v21  ;;  %v9302_v31 = vunpack.c.h.s8.bf16 %v783_v22 }
 0x312   : > { %9211 = vmatprep.subr.bf16.mxu1 %v9210_v33  ;;  %v654_v33 = vld [vmem:[%s10378_s26 + $0x9d0] sm:$0xff]  ;;  %v5990_v42 = vpop.f32.mrf.mxu1 }
 0x313   : > { %v9244_v55 = vunpack.c.l.s8.bf16 %v654_v33 }
 0x314   : > { %9149 = vmatpush2.bf16.msra.mxu0 %v9148_v36  ;;  %v5778_v36 = vadd.f32 %v5777_v23, %v5707_v27 }
 0x315   : > { %9213 = vmatpush2.bf16.msra.mxu1 %v9212_v37  ;;  %9151 = vmatprep.subr.bf16.mxu0 %v9150_v38  ;;  %v9240_v37 = vunpack.c.h.s8.bf16 %v654_v33  ;;  %v9304_v38 = vunpack.c.h.s8.bf16 %v782_v34  ;;  %v607_v33 = vld [vmem:[%s10378_s26 + $0x858] sm:$0xff] }
 0x316   : > { %9215 = vmatprep.subr.bf16.mxu1 %v9214_v39  ;;  %v5776_v39 = vadd.f32 %v5775_v15, %v5705_v35  ;;  %v5849_v48 = vadd.f32 %v5848_v24, %v5778_v36  ;;  %v623_v15 = vld [vmem:[%s10378_s26 + $0x8d8] sm:$0xff]  ;;  %v622_v24 = vld [vmem:[%s10378_s26 + $0x8d0] sm:$0xff] }
 0x317   : > { %v735_v34 = vld [vmem:[%s10378_s26 + $0xc58] sm:$0xff]  ;;  %v9260_v35 = vunpack.c.l.s8.bf16 %v622_v24 }
 0x318   : > { %9153 = vmatpush2.bf16.msra.mxu0 %v9152_v43  ;;  %v9242_v43 = vunpack.c.l.s8.bf16 %v655_v21  ;;  %v4949_v21 = vld [vmem:[#allocation2] sm:$0xff] }
 0x319   : > { %9217 = vmatpush2.bf16.msra.mxu1 %v9216_v44  ;;  %9155 = vmatprep.subr.bf16.mxu0 %v9154_v45  ;;  %v9306_v44 = vunpack.c.l.s8.bf16 %v783_v22  ;;  %v5989_v45 = vadd.f32 %v5988_v29, %v5917_v28  ;;  %v9254_v22 = vunpack.c.h.s8.bf16 %v623_v15  ;;  %v9256_v28 = vunpack.c.h.s8.bf16 %v622_v24 }
 0x31a   : > { %9219 = vmatprep.subr.bf16.mxu1 %v9218_v46  ;;  %v639_v46 = vld [vmem:[%s10378_s26 + $0x958] sm:$0xff] }
 0x31b   : > { %v9246_v0 = vunpack.c.h.s8.bf16 %v639_v46 }
 0x31c   : > { %9157 = vmatpush2.bf16.msra.mxu0 %v9156_v49 }
 0x31d   : > { %9221 = vmatpush2.bf16.msra.mxu1 %v9220_v50  ;;  %9159 = vmatprep.subr.bf16.mxu0 %v9158_v54  ;;  %v5991_v54 = vadd.f32 %v5990_v42, %v5919_v41  ;;  %v734_v41 = vld [vmem:[%s10378_s26 + $0xc50] sm:$0xff] }
 0x31e   : > { %9223 = vmatprep.subr.bf16.mxu1 %v9222_v32 }
 0x320   : > { %9161 = vmatpush2.bf16.msra.mxu0 %v9160_v57  ;;  %v5847_v57 = vadd.f32 %v5846_v16, %v5776_v39  ;;  %v751_v16 = vld [vmem:[%s10378_s26 + $0xcd8] sm:$0xff]  ;;  %v606_v39 = vld [vmem:[%s10378_s26 + $0x850] sm:$0xff] }
 0x321   : > { %9225 = vmatpush2.bf16.msra.mxu1 %v9224_v62  ;;  %9163 = vmatprep.subr.bf16.mxu0 %v9162_v1  ;;  %v9310_v1 = vunpack.c.h.s8.bf16 %v767_v47  ;;  %v9318_v23 = vunpack.c.h.s8.bf16 %v751_v16  ;;  %v9264_v42 = vunpack.c.h.s8.bf16 %v606_v39  ;;  %v847_v47 = vld [vmem:[%s10378_s26 + $0xfd8] sm:$0xff] }
 0x322   : > { %9227 = vmatprep.subr.bf16.mxu1 %v9226_v2  ;;  %v638_v2 = vld [vmem:[%s10378_s26 + $0x950] sm:$0xff] }
 0x323   : > { %v9248_v10 = vunpack.c.h.s8.bf16 %v638_v2 }
 0x324   : > { %9165 = vmatpush2.bf16.msra.mxu0 %v9164_v7  ;;  %v7304_v7 = vcombine.low %v5847_v57, %v5849_v48  ;;  %v9268_v48 = vunpack.c.l.s8.bf16 %v606_v39  ;;  %v401_v39 = vld [vmem:[%s10378_s26 + $0x1e8] sm:$0xff] }
 0x325   : > { %9229 = vmatpush2.bf16.msra.mxu1 %v9228_v8  ;;  %9167 = vmatprep.subr.bf16.mxu0 %v9166_v11  ;;  %v9312_v11 = vunpack.c.h.s8.bf16 %v766_v3 }
 0x326   : > { %9231 = vmatprep.subr.bf16.mxu1 %v9230_v12  ;;  %v9250_v12 = vunpack.c.l.s8.bf16 %v639_v46  ;;  %v719_v46 = vld [vmem:[%s10378_s26 + $0xbd8] sm:$0xff] }
 0x328   : > { %9169 = vmatpush2.bf16.msra.mxu0 %v9168_v17  ;;  %v7312_v17 = vrot.slane %v7304_v7, %v10436_v51 }
 0x329   : > { %9233 = vmatpush2.bf16.msra.mxu1 %v9232_v18  ;;  %9171 = vmatprep.subr.bf16.mxu0 %v9170_v19  ;;  %v9252_v19 = vunpack.c.l.s8.bf16 %v638_v2 }
 0x32a   : > { %9235 = vmatprep.subr.bf16.mxu1 %v9234_v20  ;;  %v9316_v20 = vunpack.c.l.s8.bf16 %v766_v3 }
 0x32c   : > { %9173 = vmatpush2.bf16.msra.mxu0 %v9172_v25  ;;  %v750_v25 = vld [vmem:[%s10378_s26 + $0xcd0] sm:$0xff] }
 0x32d   : > { %9237 = vmatpush2.bf16.msra.mxu1 %v9236_v26  ;;  %9239 = vmatprep.subr.bf16.mxu0 %v9238_v30  ;;  %v9320_v29 = vunpack.c.h.s8.bf16 %v750_v25  ;;  %v9258_v30 = vunpack.c.l.s8.bf16 %v623_v15  ;;  %v9324_v36 = vunpack.c.l.s8.bf16 %v750_v25  ;;  %v815_v15 = vld [vmem:[%s10378_s26 + $0xed8] sm:$0xff] }
 0x32e   : > { %9303 = vmatprep.subr.bf16.mxu1 %v9302_v31  ;;  %v9322_v31 = vunpack.c.l.s8.bf16 %v751_v16  ;;  %v9354_v25 = vunpack.c.l.s8.bf16 %v815_v15 }
 0x32f   : > { %v6059_v49 = vpop.f32.mrf.mxu0  ;;  %6484 = vmatmul.mubr.f32.vlgmr.msra.gmra.mxu0 %v10439_v52 }
 0x330   : > { %6555 = vmatmul.mubr.f32.vlgmr.msra.gmra.mxu1 %v10442_v53  ;;  %v6130_v50 = vpop.f32.mrf.mxu1  ;;  %v6060_v32 = vadd.f32 %v6059_v49, %v5989_v45  ;;  %9241 = vmatpush1.bf16.msra.mxu0 %v9240_v37  ;;  %v9262_v37 = vunpack.c.h.s8.bf16 %v607_v33  ;;  %v9330_v45 = vunpack.c.l.s8.bf16 %v735_v34  ;;  %v9332_v49 = vunpack.c.l.s8.bf16 %v734_v41 }
 0x331   : > { %9305 = vmatpush1.bf16.msra.mxu1 %v9304_v38  ;;  %v6061_v62 = vpop.f32.mrf.mxu0  ;;  %9243 = vmatprep.subr.bf16.mxu0 %v9242_v43  ;;  %v9326_v38 = vunpack.c.h.s8.bf16 %v735_v34  ;;  %v9328_v43 = vunpack.c.h.s8.bf16 %v734_v41  ;;  %v798_v34 = vld [vmem:[%s10378_s26 + $0xe50] sm:$0xff]  ;;  %v529_v41 = vld [vmem:[%s10378_s26 + $0x5e8] sm:$0xff] }
 0x332   : > { %v6132_v63 = vpop.f32.mrf.mxu1  ;;  %9307 = vmatprep.subr.bf16.mxu1 %v9306_v44  ;;  %v6062_v6 = vadd.f32 %v6061_v62, %v5991_v54  ;;  %6625 = vmatprep.mubr.f32.mxu0 %v10485_v4  ;;  %v6131_v8 = vadd.f32 %v6130_v50, %v6060_v32  ;;  %v9266_v44 = vunpack.c.l.s8.bf16 %v607_v33  ;;  %v9270_v50 = vunpack.c.h.s8.bf16 %v719_v46  ;;  %v718_v32 = vld [vmem:[%s10378_s26 + $0xbd0] sm:$0xff] }
 0x333   : > { %6696 = vmatprep.mubr.f32.mxu1 %v10489_v5  ;;  %v9334_v54 = vunpack.c.h.s8.bf16 %v847_v47  ;;  %v9274_v62 = vunpack.c.l.s8.bf16 %v719_v46  ;;  %v9276_v2 = vunpack.c.l.s8.bf16 %v718_v32  ;;  %v670_v33 = vld [vmem:[%s10378_s26 + $0xa50] sm:$0xff]  ;;  %v400_v46 = vld [vmem:[%s10378_s26 + $0x1e0] sm:$0xff] }
 0x334   : > { %v6133_v9 = vadd.f32 %v6132_v63, %v6062_v6  ;;  %9245 = vmatpush1.bf16.msra.mxu0 %v9244_v55  ;;  %v846_v55 = vld [vmem:[%s10378_s26 + $0xfd0] sm:$0xff]  ;;  %v9338_v63 = vunpack.c.l.s8.bf16 %v847_v47  ;;  %v528_v47 = vld [vmem:[%s10378_s26 + $0x5e0] sm:$0xff] }
 0x335   : > { %9309 = vmatpush1.bf16.msra.mxu1 %v9308_v56  ;;  %9247 = vmatprep.subr.bf16.mxu0 %v9246_v0  ;;  %v9272_v56 = vunpack.c.h.s8.bf16 %v718_v32  ;;  %v9336_v57 = vunpack.c.h.s8.bf16 %v846_v55  ;;  %v703_v0 = vld [vmem:[%s10378_s26 + $0xb58] sm:$0xff]  ;;  %v9340_v3 = vunpack.c.l.s8.bf16 %v846_v55  ;;  %v385_v32 = vld [vmem:[%s10378_s26 + $0x168] sm:$0xff] }
 0x336   : > { %9311 = vmatprep.subr.bf16.mxu1 %v9310_v1  ;;  %v7305_v14 = vcombine.low %v6131_v8, %v6133_v9  ;;  %v831_v1 = vld [vmem:[%s10378_s26 + $0xf58] sm:$0xff]  ;;  %v9278_v6 = vunpack.c.h.s8.bf16 %v703_v0  ;;  %v702_v8 = vld [vmem:[%s10378_s26 + $0xb50] sm:$0xff]  ;;  %v513_v55 = vld [vmem:[%s10378_s26 + $0x568] sm:$0xff] }
 0x337   : > { %v9342_v7 = vunpack.c.h.s8.bf16 %v831_v1  ;;  %v830_v9 = vld [vmem:[%s10378_s26 + $0xf50] sm:$0xff]  ;;  %v9284_v16 = vunpack.c.l.s8.bf16 %v702_v8 }
 0x338   : > { %v7319_v18 = vrot.slane %v7305_v14, %v10436_v51  ;;  %9249 = vmatpush1.bf16.msra.mxu0 %v9248_v10  ;;  %v9280_v10 = vunpack.c.h.s8.bf16 %v702_v8  ;;  %v687_v14 = vld [vmem:[%s10378_s26 + $0xad8] sm:$0xff]  ;;  %v369_v8 = vld [vmem:[%s10378_s26 + $0xe8] sm:$0xff] }
 0x339   : > { %9313 = vmatpush1.bf16.msra.mxu1 %v9312_v11  ;;  %9251 = vmatprep.subr.bf16.mxu0 %v9250_v12  ;;  %v9344_v11 = vunpack.c.h.s8.bf16 %v830_v9  ;;  %v9282_v12 = vunpack.c.l.s8.bf16 %v703_v0  ;;  %v9290_v24 = vunpack.c.l.s8.bf16 %v687_v14  ;;  %v384_v0 = vld [vmem:[%s10378_s26 + $0x160] sm:$0xff] }
 0x33a   : > { %9315 = vmatprep.subr.bf16.mxu1 %v9314_v13  ;;  %v7320_v26 = vcombine.low %v7312_v17, %v7319_v18  ;;  %v9346_v13 = vunpack.c.l.s8.bf16 %v831_v1  ;;  %v9348_v17 = vunpack.c.l.s8.bf16 %v830_v9  ;;  %v9286_v18 = vunpack.c.h.s8.bf16 %v687_v14  ;;  %v512_v1 = vld [vmem:[%s10378_s26 + $0x560] sm:$0xff]  ;;  %v497_v9 = vld [vmem:[%s10378_s26 + $0x4e8] sm:$0xff] }
 0x33b   : > { %v368_v14 = vld [vmem:[%s10378_s26 + $0xe0] sm:$0xff] }
 0x33c   : > { %v7360_v27 = vadd.f32 %v7320_v26, %v4949_v21  ;;  %9253 = vmatpush1.bf16.msra.mxu0 %v9252_v19  ;;  %v9350_v19 = vunpack.c.h.s8.bf16 %v815_v15  ;;  %v814_v21 = vld [vmem:[%s10378_s26 + $0xed0] sm:$0xff]  ;;  %v671_v26 = vld [vmem:[%s10378_s26 + $0xa58] sm:$0xff]  ;;  %v496_v15 = vld [vmem:[%s10378_s26 + $0x4e0] sm:$0xff] }
 0x33d   : > { %9317 = vmatpush1.bf16.msra.mxu1 %v9316_v20  ;;  %9255 = vmatprep.subr.bf16.mxu0 %v9254_v22  ;;  %v686_v20 = vld [vmem:[%s10378_s26 + $0xad0] sm:$0xff] }
 0x33e   : > { %9319 = vmatprep.subr.bf16.mxu1 %v9318_v23  ;;  %7364 = vst [vmem:[#allocation2] sm:$0xff] %v7360_v27  ;;  %v9288_v22 = vunpack.c.h.s8.bf16 %v686_v20  ;;  %v9352_v23 = vunpack.c.h.s8.bf16 %v814_v21  ;;  %v799_v27 = vld [vmem:[%s10378_s26 + $0xe58] sm:$0xff] }
 0x340   : > { %9257 = vmatpush1.bf16.msra.mxu0 %v9256_v28  ;;  %v9292_v28 = vunpack.c.l.s8.bf16 %v686_v20  ;;  %v353_v20 = vld [vmem:[%s10378_s26 + $0x68] sm:$0xff] }
 0x341   : > { %9321 = vmatpush1.bf16.msra.mxu1 %v9320_v29  ;;  %9259 = vmatprep.subr.bf16.mxu0 %v9258_v30  ;;  %v9356_v29 = vunpack.c.l.s8.bf16 %v814_v21  ;;  %v9294_v30 = vunpack.c.h.s8.bf16 %v671_v26  ;;  %v481_v21 = vld [vmem:[%s10378_s26 + $0x468] sm:$0xff] }
 0x342   : > { %9323 = vmatprep.subr.bf16.mxu1 %v9322_v31  ;;  %v9358_v31 = vunpack.c.h.s8.bf16 %v799_v27 }
 0x344   : > { %9261 = vmatpush1.bf16.msra.mxu0 %v9260_v35  ;;  %v9296_v35 = vunpack.c.h.s8.bf16 %v670_v33 }
 0x345   : > { %9325 = vmatpush1.bf16.msra.mxu1 %v9324_v36  ;;  %9263 = vmatprep.subr.bf16.mxu0 %v9262_v37  ;;  %v9360_v36 = vunpack.c.h.s8.bf16 %v798_v34  ;;  %v9298_v37 = vunpack.c.l.s8.bf16 %v671_v26  ;;  %v352_v26 = vld [vmem:[%s10378_s26 + $0x60] sm:$0xff] }
 0x346   : > { %9327 = vmatprep.subr.bf16.mxu1 %v9326_v38  ;;  %v9362_v38 = vunpack.c.l.s8.bf16 %v799_v27  ;;  %v480_v27 = vld [vmem:[%s10378_s26 + $0x460] sm:$0xff] }
 0x348   : > { %9265 = vmatpush1.bf16.msra.mxu0 %v9264_v42  ;;  %v9300_v42 = vunpack.c.l.s8.bf16 %v670_v33  ;;  %v465_v33 = vld [vmem:[%s10378_s26 + $0x3e8] sm:$0xff] }
 0x349   : > { %9329 = vmatpush1.bf16.msra.mxu1 %v9328_v43  ;;  %9267 = vmatprep.subr.bf16.mxu0 %v9266_v44  ;;  %v9364_v43 = vunpack.c.l.s8.bf16 %v798_v34  ;;  %v9366_v44 = vunpack.c.h.s8.bf16 %v401_v39  ;;  %v593_v34 = vld [vmem:[%s10378_s26 + $0x7e8] sm:$0xff] }
 0x34a   : > { %9331 = vmatprep.subr.bf16.mxu1 %v9330_v45  ;;  %v9430_v45 = vunpack.c.h.s8.bf16 %v529_v41 }
 0x34c   : > { %9269 = vmatpush1.bf16.msra.mxu0 %v9268_v48  ;;  %v9368_v48 = vunpack.c.h.s8.bf16 %v400_v46 }
 0x34d   : > { %9333 = vmatpush1.bf16.msra.mxu1 %v9332_v49  ;;  %9271 = vmatprep.subr.bf16.mxu0 %v9270_v50  ;;  %v9432_v49 = vunpack.c.h.s8.bf16 %v528_v47  ;;  %v9370_v50 = vunpack.c.l.s8.bf16 %v401_v39  ;;  %v464_v39 = vld [vmem:[%s10378_s26 + $0x3e0] sm:$0xff] }
 0x34e   : > { %9335 = vmatprep.subr.bf16.mxu1 %v9334_v54  ;;  %v9434_v54 = vunpack.c.l.s8.bf16 %v529_v41  ;;  %v592_v41 = vld [vmem:[%s10378_s26 + $0x7e0] sm:$0xff] }
 0x350   : > { %9273 = vmatpush2.bf16.msra.mxu0 %v9272_v56  ;;  %v9372_v56 = vunpack.c.l.s8.bf16 %v400_v46  ;;  %v449_v46 = vld [vmem:[%s10378_s26 + $0x368] sm:$0xff] }
 0x351   : > { %9337 = vmatpush2.bf16.msra.mxu1 %v9336_v57  ;;  %9275 = vmatprep.subr.bf16.mxu0 %v9274_v62  ;;  %v9436_v57 = vunpack.c.l.s8.bf16 %v528_v47  ;;  %v9374_v62 = vunpack.c.h.s8.bf16 %v385_v32  ;;  %v577_v47 = vld [vmem:[%s10378_s26 + $0x768] sm:$0xff] }
 0x352   : > { %9339 = vmatprep.subr.bf16.mxu1 %v9338_v63  ;;  %v9438_v63 = vunpack.c.h.s8.bf16 %v513_v55 }
 0x354   : > { %9277 = vmatpush2.bf16.msra.mxu0 %v9276_v2  ;;  %v9376_v2 = vunpack.c.h.s8.bf16 %v384_v0 }
 0x355   : > { %9341 = vmatpush2.bf16.msra.mxu1 %v9340_v3  ;;  %9279 = vmatprep.subr.bf16.mxu0 %v9278_v6  ;;  %v9440_v3 = vunpack.c.h.s8.bf16 %v512_v1  ;;  %v9378_v6 = vunpack.c.l.s8.bf16 %v385_v32  ;;  %v448_v32 = vld [vmem:[%s10378_s26 + $0x360] sm:$0xff] }
 0x356   : > { %9343 = vmatprep.subr.bf16.mxu1 %v9342_v7  ;;  %v9442_v7 = vunpack.c.l.s8.bf16 %v513_v55  ;;  %v576_v55 = vld [vmem:[%s10378_s26 + $0x760] sm:$0xff] }
 0x358   : > { %9281 = vmatpush2.bf16.msra.mxu0 %v9280_v10  ;;  %v9380_v10 = vunpack.c.l.s8.bf16 %v384_v0  ;;  %v433_v0 = vld [vmem:[%s10378_s26 + $0x2e8] sm:$0xff] }
 0x359   : > { %9345 = vmatpush2.bf16.msra.mxu1 %v9344_v11  ;;  %9283 = vmatprep.subr.bf16.mxu0 %v9282_v12  ;;  %v9444_v11 = vunpack.c.l.s8.bf16 %v512_v1  ;;  %v9382_v12 = vunpack.c.h.s8.bf16 %v369_v8  ;;  %v561_v1 = vld [vmem:[%s10378_s26 + $0x6e8] sm:$0xff] }
 0x35a   : > { %9347 = vmatprep.subr.bf16.mxu1 %v9346_v13  ;;  %v9446_v13 = vunpack.c.h.s8.bf16 %v497_v9 }
 0x35c   : > { %9285 = vmatpush2.bf16.msra.mxu0 %v9284_v16  ;;  %v9384_v16 = vunpack.c.h.s8.bf16 %v368_v14 }
 0x35d   : > { %9349 = vmatpush2.bf16.msra.mxu1 %v9348_v17  ;;  %9287 = vmatprep.subr.bf16.mxu0 %v9286_v18  ;;  %v9448_v17 = vunpack.c.h.s8.bf16 %v496_v15  ;;  %v9386_v18 = vunpack.c.l.s8.bf16 %v369_v8  ;;  %v432_v8 = vld [vmem:[%s10378_s26 + $0x2e0] sm:$0xff] }
 0x35e   : > { %9351 = vmatprep.subr.bf16.mxu1 %v9350_v19  ;;  %v9450_v19 = vunpack.c.l.s8.bf16 %v497_v9  ;;  %v560_v9 = vld [vmem:[%s10378_s26 + $0x6e0] sm:$0xff] }
 0x360   : > { %9289 = vmatpush2.bf16.msra.mxu0 %v9288_v22  ;;  %v9388_v22 = vunpack.c.l.s8.bf16 %v368_v14  ;;  %v417_v14 = vld [vmem:[%s10378_s26 + $0x268] sm:$0xff] }
 0x361   : > { %9353 = vmatpush2.bf16.msra.mxu1 %v9352_v23  ;;  %9291 = vmatprep.subr.bf16.mxu0 %v9290_v24  ;;  %v9452_v23 = vunpack.c.l.s8.bf16 %v496_v15  ;;  %v9390_v24 = vunpack.c.h.s8.bf16 %v353_v20  ;;  %v545_v15 = vld [vmem:[%s10378_s26 + $0x668] sm:$0xff] }
 0x362   : > { %9355 = vmatprep.subr.bf16.mxu1 %v9354_v25  ;;  %v9454_v25 = vunpack.c.h.s8.bf16 %v481_v21 }
 0x364   : > { %9293 = vmatpush2.bf16.msra.mxu0 %v9292_v28  ;;  %v9392_v28 = vunpack.c.h.s8.bf16 %v352_v26 }
 0x365   : > { %9357 = vmatpush2.bf16.msra.mxu1 %v9356_v29  ;;  %9295 = vmatprep.subr.bf16.mxu0 %v9294_v30  ;;  %v9456_v29 = vunpack.c.h.s8.bf16 %v480_v27  ;;  %v9394_v30 = vunpack.c.l.s8.bf16 %v353_v20  ;;  %v416_v20 = vld [vmem:[%s10378_s26 + $0x260] sm:$0xff] }
 0x366   : > { %9359 = vmatprep.subr.bf16.mxu1 %v9358_v31  ;;  %v9458_v31 = vunpack.c.l.s8.bf16 %v481_v21  ;;  %v544_v21 = vld [vmem:[%s10378_s26 + $0x660] sm:$0xff] }
 0x368   : > { %9297 = vmatpush2.bf16.msra.mxu0 %v9296_v35  ;;  %v9396_v35 = vunpack.c.l.s8.bf16 %v352_v26  ;;  %v657_v26 = vld [vmem:[%s10378_s26 + $0x9e8] sm:$0xff] }
 0x369   : > { %9361 = vmatpush2.bf16.msra.mxu1 %v9360_v36  ;;  %9299 = vmatprep.subr.bf16.mxu0 %v9298_v37  ;;  %v9460_v36 = vunpack.c.l.s8.bf16 %v480_v27  ;;  %v9398_v37 = vunpack.c.h.s8.bf16 %v465_v33  ;;  %v785_v27 = vld [vmem:[%s10378_s26 + $0xde8] sm:$0xff] }
 0x36a   : > { %9363 = vmatprep.subr.bf16.mxu1 %v9362_v38  ;;  %v9462_v38 = vunpack.c.h.s8.bf16 %v593_v34 }
 0x36c   : > { %9301 = vmatpush2.bf16.msra.mxu0 %v9300_v42  ;;  %v9400_v42 = vunpack.c.h.s8.bf16 %v464_v39 }
 0x36d   : > { %9365 = vmatpush2.bf16.msra.mxu1 %v9364_v43  ;;  %9367 = vmatprep.subr.bf16.mxu0 %v9366_v44  ;;  %v9464_v43 = vunpack.c.h.s8.bf16 %v592_v41  ;;  %v9402_v44 = vunpack.c.l.s8.bf16 %v465_v33  ;;  %v656_v33 = vld [vmem:[%s10378_s26 + $0x9e0] sm:$0xff] }
 0x36e   : > { %9431 = vmatprep.subr.bf16.mxu1 %v9430_v45  ;;  %v9466_v45 = vunpack.c.l.s8.bf16 %v593_v34  ;;  %v784_v34 = vld [vmem:[%s10378_s26 + $0xde0] sm:$0xff] }
 0x36f   : > { %6626 = vmatmul.mubr.f32.vlgmr.msra.gmra.mxu0 %v10476_v60 }
 0x370   : > { %6697 = vmatmul.mubr.f32.vlgmr.msra.gmra.mxu1 %v10479_v61  ;;  %9369 = vmatpush1.bf16.msra.mxu0 %v9368_v48  ;;  %v9404_v48 = vunpack.c.l.s8.bf16 %v464_v39  ;;  %v641_v39 = vld [vmem:[%s10378_s26 + $0x968] sm:$0xff] }
 0x371   : > { %9433 = vmatpush1.bf16.msra.mxu1 %v9432_v49  ;;  %9371 = vmatprep.subr.bf16.mxu0 %v9370_v50  ;;  %v9468_v49 = vunpack.c.l.s8.bf16 %v592_v41  ;;  %v9406_v50 = vunpack.c.h.s8.bf16 %v449_v46  ;;  %v769_v41 = vld [vmem:[%s10378_s26 + $0xd68] sm:$0xff] }
 0x372   : > { %9435 = vmatprep.subr.bf16.mxu1 %v9434_v54  ;;  %6767 = vmatprep.mubr.f32.mxu0 %v10446_v58  ;;  %v9470_v54 = vunpack.c.h.s8.bf16 %v577_v47 }
 0x373   : > { %6838 = vmatprep.mubr.f32.mxu1 %v10450_v59 }
 0x374   : > { %9373 = vmatpush1.bf16.msra.mxu0 %v9372_v56  ;;  %v9408_v56 = vunpack.c.h.s8.bf16 %v448_v32 }
 0x375   : > { %9437 = vmatpush1.bf16.msra.mxu1 %v9436_v57  ;;  %9375 = vmatprep.subr.bf16.mxu0 %v9374_v62  ;;  %v9472_v57 = vunpack.c.h.s8.bf16 %v576_v55  ;;  %v9410_v62 = vunpack.c.l.s8.bf16 %v449_v46  ;;  %v640_v46 = vld [vmem:[%s10378_s26 + $0x960] sm:$0xff] }
 0x376   : > { %9439 = vmatprep.subr.bf16.mxu1 %v9438_v63  ;;  %v9474_v63 = vunpack.c.l.s8.bf16 %v577_v47  ;;  %v768_v47 = vld [vmem:[%s10378_s26 + $0xd60] sm:$0xff] }
 0x378   : > { %9377 = vmatpush1.bf16.msra.mxu0 %v9376_v2  ;;  %v9412_v2 = vunpack.c.l.s8.bf16 %v448_v32  ;;  %v625_v32 = vld [vmem:[%s10378_s26 + $0x8e8] sm:$0xff] }
 0x379   : > { %9441 = vmatpush1.bf16.msra.mxu1 %v9440_v3  ;;  %9379 = vmatprep.subr.bf16.mxu0 %v9378_v6  ;;  %v9476_v3 = vunpack.c.l.s8.bf16 %v576_v55  ;;  %v9414_v6 = vunpack.c.h.s8.bf16 %v433_v0  ;;  %v753_v55 = vld [vmem:[%s10378_s26 + $0xce8] sm:$0xff] }
 0x37a   : > { %9443 = vmatprep.subr.bf16.mxu1 %v9442_v7  ;;  %v9478_v7 = vunpack.c.h.s8.bf16 %v561_v1 }
 0x37c   : > { %9381 = vmatpush1.bf16.msra.mxu0 %v9380_v10  ;;  %v9416_v10 = vunpack.c.h.s8.bf16 %v432_v8 }
 0x37d   : > { %9445 = vmatpush1.bf16.msra.mxu1 %v9444_v11  ;;  %9383 = vmatprep.subr.bf16.mxu0 %v9382_v12  ;;  %v9480_v11 = vunpack.c.h.s8.bf16 %v560_v9  ;;  %v9418_v12 = vunpack.c.l.s8.bf16 %v433_v0  ;;  %v624_v0 = vld [vmem:[%s10378_s26 + $0x8e0] sm:$0xff] }
 0x37e   : > { %9447 = vmatprep.subr.bf16.mxu1 %v9446_v13  ;;  %v9482_v13 = vunpack.c.l.s8.bf16 %v561_v1  ;;  %v752_v1 = vld [vmem:[%s10378_s26 + $0xce0] sm:$0xff] }
 0x380   : > { %9385 = vmatpush1.bf16.msra.mxu0 %v9384_v16  ;;  %v9420_v16 = vunpack.c.l.s8.bf16 %v432_v8  ;;  %v609_v8 = vld [vmem:[%s10378_s26 + $0x868] sm:$0xff] }
 0x381   : > { %9449 = vmatpush1.bf16.msra.mxu1 %v9448_v17  ;;  %9387 = vmatprep.subr.bf16.mxu0 %v9386_v18  ;;  %v9484_v17 = vunpack.c.l.s8.bf16 %v560_v9  ;;  %v9422_v18 = vunpack.c.h.s8.bf16 %v417_v14  ;;  %v737_v9 = vld [vmem:[%s10378_s26 + $0xc68] sm:$0xff] }
 0x382   : > { %9451 = vmatprep.subr.bf16.mxu1 %v9450_v19  ;;  %v9486_v19 = vunpack.c.h.s8.bf16 %v545_v15 }
 0x384   : > { %9389 = vmatpush1.bf16.msra.mxu0 %v9388_v22  ;;  %v9424_v22 = vunpack.c.h.s8.bf16 %v416_v20 }
 0x385   : > { %9453 = vmatpush1.bf16.msra.mxu1 %v9452_v23  ;;  %9391 = vmatprep.subr.bf16.mxu0 %v9390_v24  ;;  %v9488_v23 = vunpack.c.h.s8.bf16 %v544_v21  ;;  %v9426_v24 = vunpack.c.l.s8.bf16 %v417_v14  ;;  %v608_v14 = vld [vmem:[%s10378_s26 + $0x860] sm:$0xff] }
 0x386   : > { %9455 = vmatprep.subr.bf16.mxu1 %v9454_v25  ;;  %v9490_v25 = vunpack.c.l.s8.bf16 %v545_v15  ;;  %v736_v15 = vld [vmem:[%s10378_s26 + $0xc60] sm:$0xff] }
 0x388   : > { %9393 = vmatpush1.bf16.msra.mxu0 %v9392_v28  ;;  %v9428_v28 = vunpack.c.l.s8.bf16 %v416_v20  ;;  %v721_v20 = vld [vmem:[%s10378_s26 + $0xbe8] sm:$0xff] }
 0x389   : > { %9457 = vmatpush1.bf16.msra.mxu1 %v9456_v29  ;;  %9395 = vmatprep.subr.bf16.mxu0 %v9394_v30  ;;  %v9492_v29 = vunpack.c.l.s8.bf16 %v544_v21  ;;  %v9494_v30 = vunpack.c.h.s8.bf16 %v657_v26  ;;  %v849_v21 = vld [vmem:[%s10378_s26 + $0xfe8] sm:$0xff] }
 0x38a   : > { %9459 = vmatprep.subr.bf16.mxu1 %v9458_v31  ;;  %v9558_v31 = vunpack.c.h.s8.bf16 %v785_v27 }
 0x38c   : > { %9397 = vmatpush1.bf16.msra.mxu0 %v9396_v35  ;;  %v9496_v35 = vunpack.c.h.s8.bf16 %v656_v33 }
 0x38d   : > { %9461 = vmatpush1.bf16.msra.mxu1 %v9460_v36  ;;  %9399 = vmatprep.subr.bf16.mxu0 %v9398_v37  ;;  %v9560_v36 = vunpack.c.h.s8.bf16 %v784_v34  ;;  %v9498_v37 = vunpack.c.l.s8.bf16 %v657_v26  ;;  %v720_v26 = vld [vmem:[%s10378_s26 + $0xbe0] sm:$0xff] }
 0x38e   : > { %9463 = vmatprep.subr.bf16.mxu1 %v9462_v38  ;;  %v9562_v38 = vunpack.c.l.s8.bf16 %v785_v27  ;;  %v848_v27 = vld [vmem:[%s10378_s26 + $0xfe0] sm:$0xff] }
 0x390   : > { %9401 = vmatpush2.bf16.msra.mxu0 %v9400_v42  ;;  %v9500_v42 = vunpack.c.l.s8.bf16 %v656_v33  ;;  %v705_v33 = vld [vmem:[%s10378_s26 + $0xb68] sm:$0xff] }
 0x391   : > { %9465 = vmatpush2.bf16.msra.mxu1 %v9464_v43  ;;  %9403 = vmatprep.subr.bf16.mxu0 %v9402_v44  ;;  %v9564_v43 = vunpack.c.l.s8.bf16 %v784_v34  ;;  %v9502_v44 = vunpack.c.h.s8.bf16 %v641_v39  ;;  %v833_v34 = vld [vmem:[%s10378_s26 + $0xf68] sm:$0xff] }
 0x392   : > { %9467 = vmatprep.subr.bf16.mxu1 %v9466_v45  ;;  %v9566_v45 = vunpack.c.h.s8.bf16 %v769_v41 }
 0x394   : > { %9405 = vmatpush2.bf16.msra.mxu0 %v9404_v48  ;;  %v9504_v48 = vunpack.c.h.s8.bf16 %v640_v46 }
 0x395   : > { %9469 = vmatpush2.bf16.msra.mxu1 %v9468_v49  ;;  %9407 = vmatprep.subr.bf16.mxu0 %v9406_v50  ;;  %v9568_v49 = vunpack.c.h.s8.bf16 %v768_v47  ;;  %v9506_v50 = vunpack.c.l.s8.bf16 %v641_v39  ;;  %v704_v39 = vld [vmem:[%s10378_s26 + $0xb60] sm:$0xff] }
 0x396   : > { %9471 = vmatprep.subr.bf16.mxu1 %v9470_v54  ;;  %v9570_v54 = vunpack.c.l.s8.bf16 %v769_v41  ;;  %v832_v41 = vld [vmem:[%s10378_s26 + $0xf60] sm:$0xff] }
 0x398   : > { %9409 = vmatpush2.bf16.msra.mxu0 %v9408_v56  ;;  %v9508_v56 = vunpack.c.l.s8.bf16 %v640_v46  ;;  %v689_v46 = vld [vmem:[%s10378_s26 + $0xae8] sm:$0xff] }
 0x399   : > { %9473 = vmatpush2.bf16.msra.mxu1 %v9472_v57  ;;  %9411 = vmatprep.subr.bf16.mxu0 %v9410_v62  ;;  %v9572_v57 = vunpack.c.l.s8.bf16 %v768_v47  ;;  %v9510_v62 = vunpack.c.h.s8.bf16 %v625_v32  ;;  %v817_v47 = vld [vmem:[%s10378_s26 + $0xee8] sm:$0xff] }
 0x39a   : > { %9475 = vmatprep.subr.bf16.mxu1 %v9474_v63  ;;  %v9574_v63 = vunpack.c.h.s8.bf16 %v753_v55 }
 0x39c   : > { %9413 = vmatpush2.bf16.msra.mxu0 %v9412_v2  ;;  %v9512_v2 = vunpack.c.h.s8.bf16 %v624_v0 }
 0x39d   : > { %9477 = vmatpush2.bf16.msra.mxu1 %v9476_v3  ;;  %9415 = vmatprep.subr.bf16.mxu0 %v9414_v6  ;;  %v9576_v3 = vunpack.c.h.s8.bf16 %v752_v1  ;;  %v9514_v6 = vunpack.c.l.s8.bf16 %v625_v32  ;;  %v688_v32 = vld [vmem:[%s10378_s26 + $0xae0] sm:$0xff] }
 0x39e   : > { %9479 = vmatprep.subr.bf16.mxu1 %v9478_v7  ;;  %v9578_v7 = vunpack.c.l.s8.bf16 %v753_v55  ;;  %v816_v55 = vld [vmem:[%s10378_s26 + $0xee0] sm:$0xff] }
 0x3a0   : > { %9417 = vmatpush2.bf16.msra.mxu0 %v9416_v10  ;;  %v9516_v10 = vunpack.c.l.s8.bf16 %v624_v0  ;;  %v673_v0 = vld [vmem:[%s10378_s26 + $0xa68] sm:$0xff] }
 0x3a1   : > { %9481 = vmatpush2.bf16.msra.mxu1 %v9480_v11  ;;  %9419 = vmatprep.subr.bf16.mxu0 %v9418_v12  ;;  %v9580_v11 = vunpack.c.l.s8.bf16 %v752_v1  ;;  %v9518_v12 = vunpack.c.h.s8.bf16 %v609_v8  ;;  %v801_v1 = vld [vmem:[%s10378_s26 + $0xe68] sm:$0xff] }
 0x3a2   : > { %9483 = vmatprep.subr.bf16.mxu1 %v9482_v13  ;;  %v9582_v13 = vunpack.c.h.s8.bf16 %v737_v9 }
 0x3a4   : > { %9421 = vmatpush2.bf16.msra.mxu0 %v9420_v16  ;;  %v9520_v16 = vunpack.c.h.s8.bf16 %v608_v14 }
 0x3a5   : > { %9485 = vmatpush2.bf16.msra.mxu1 %v9484_v17  ;;  %9423 = vmatprep.subr.bf16.mxu0 %v9422_v18  ;;  %v9584_v17 = vunpack.c.h.s8.bf16 %v736_v15  ;;  %v9522_v18 = vunpack.c.l.s8.bf16 %v609_v8  ;;  %v672_v8 = vld [vmem:[%s10378_s26 + $0xa60] sm:$0xff] }
 0x3a6   : > { %9487 = vmatprep.subr.bf16.mxu1 %v9486_v19  ;;  %v9586_v19 = vunpack.c.l.s8.bf16 %v737_v9  ;;  %v800_v9 = vld [vmem:[%s10378_s26 + $0xe60] sm:$0xff] }
 0x3a8   : > { %9425 = vmatpush2.bf16.msra.mxu0 %v9424_v22  ;;  %v9524_v22 = vunpack.c.l.s8.bf16 %v608_v14  ;;  %v403_v14 = vld [vmem:[%s10378_s26 + $0x1f8] sm:$0xff] }
 0x3a9   : > { %9489 = vmatpush2.bf16.msra.mxu1 %v9488_v23  ;;  %9427 = vmatprep.subr.bf16.mxu0 %v9426_v24  ;;  %v9588_v23 = vunpack.c.l.s8.bf16 %v736_v15  ;;  %v9526_v24 = vunpack.c.h.s8.bf16 %v721_v20  ;;  %v531_v15 = vld [vmem:[%s10378_s26 + $0x5f8] sm:$0xff] }
 0x3aa   : > { %9491 = vmatprep.subr.bf16.mxu1 %v9490_v25  ;;  %v9590_v25 = vunpack.c.h.s8.bf16 %v849_v21 }
 0x3ac   : > { %9429 = vmatpush2.bf16.msra.mxu0 %v9428_v28  ;;  %v9528_v28 = vunpack.c.h.s8.bf16 %v720_v26 }
 0x3ad   : > { %9493 = vmatpush2.bf16.msra.mxu1 %v9492_v29  ;;  %9495 = vmatprep.subr.bf16.mxu0 %v9494_v30  ;;  %v9592_v29 = vunpack.c.h.s8.bf16 %v848_v27  ;;  %v9530_v30 = vunpack.c.l.s8.bf16 %v721_v20  ;;  %v402_v20 = vld [vmem:[%s10378_s26 + $0x1f0] sm:$0xff] }
 0x3ae   : > { %9559 = vmatprep.subr.bf16.mxu1 %v9558_v31  ;;  %v9594_v31 = vunpack.c.l.s8.bf16 %v849_v21  ;;  %v530_v21 = vld [vmem:[%s10378_s26 + $0x5f0] sm:$0xff] }
 0x3af   : > { %6768 = vmatmul.mubr.f32.vlgmr.msra.gmra.mxu0 %v10439_v52 }
 0x3b0   : > { %6839 = vmatmul.mubr.f32.vlgmr.msra.gmra.mxu1 %v10442_v53  ;;  %9497 = vmatpush1.bf16.msra.mxu0 %v9496_v35  ;;  %v9532_v35 = vunpack.c.l.s8.bf16 %v720_v26  ;;  %v387_v26 = vld [vmem:[%s10378_s26 + $0x178] sm:$0xff] }
 0x3b1   : > { %9561 = vmatpush1.bf16.msra.mxu1 %v9560_v36  ;;  %9499 = vmatprep.subr.bf16.mxu0 %v9498_v37  ;;  %v9596_v36 = vunpack.c.l.s8.bf16 %v848_v27  ;;  %v9534_v37 = vunpack.c.h.s8.bf16 %v705_v33  ;;  %v515_v27 = vld [vmem:[%s10378_s26 + $0x578] sm:$0xff] }
 0x3b2   : > { %9563 = vmatprep.subr.bf16.mxu1 %v9562_v38  ;;  %6909 = vmatprep.mubr.f32.mxu0 %v10485_v4  ;;  %v9598_v38 = vunpack.c.h.s8.bf16 %v833_v34 }
 0x3b3   : > { %6980 = vmatprep.mubr.f32.mxu1 %v10489_v5 }
 0x3b4   : > { %9501 = vmatpush1.bf16.msra.mxu0 %v9500_v42  ;;  %v9536_v42 = vunpack.c.h.s8.bf16 %v704_v39 }
 0x3b5   : > { %9565 = vmatpush1.bf16.msra.mxu1 %v9564_v43  ;;  %9503 = vmatprep.subr.bf16.mxu0 %v9502_v44  ;;  %v9600_v43 = vunpack.c.h.s8.bf16 %v832_v41  ;;  %v9538_v44 = vunpack.c.l.s8.bf16 %v705_v33  ;;  %v386_v33 = vld [vmem:[%s10378_s26 + $0x170] sm:$0xff] }
 0x3b6   : > { %9567 = vmatprep.subr.bf16.mxu1 %v9566_v45  ;;  %v9602_v45 = vunpack.c.l.s8.bf16 %v833_v34  ;;  %v514_v34 = vld [vmem:[%s10378_s26 + $0x570] sm:$0xff] }
 0x3b8   : > { %9505 = vmatpush1.bf16.msra.mxu0 %v9504_v48  ;;  %v9540_v48 = vunpack.c.l.s8.bf16 %v704_v39  ;;  %v371_v39 = vld [vmem:[%s10378_s26 + $0xf8] sm:$0xff] }
 0x3b9   : > { %9569 = vmatpush1.bf16.msra.mxu1 %v9568_v49  ;;  %9507 = vmatprep.subr.bf16.mxu0 %v9506_v50  ;;  %v9604_v49 = vunpack.c.l.s8.bf16 %v832_v41  ;;  %v9542_v50 = vunpack.c.h.s8.bf16 %v689_v46  ;;  %v499_v41 = vld [vmem:[%s10378_s26 + $0x4f8] sm:$0xff] }
 0x3ba   : > { %9571 = vmatprep.subr.bf16.mxu1 %v9570_v54  ;;  %v9606_v54 = vunpack.c.h.s8.bf16 %v817_v47 }
 0x3bc   : > { %9509 = vmatpush1.bf16.msra.mxu0 %v9508_v56  ;;  %v9544_v56 = vunpack.c.h.s8.bf16 %v688_v32 }
 0x3bd   : > { %9573 = vmatpush1.bf16.msra.mxu1 %v9572_v57  ;;  %9511 = vmatprep.subr.bf16.mxu0 %v9510_v62  ;;  %v9608_v57 = vunpack.c.h.s8.bf16 %v816_v55  ;;  %v9546_v62 = vunpack.c.l.s8.bf16 %v689_v46 }
 0x3be   : > { %9575 = vmatprep.subr.bf16.mxu1 %v9574_v63  ;;  %v9610_v63 = vunpack.c.l.s8.bf16 %v817_v47 }
 0x3c0   : > { %9513 = vmatpush1.bf16.msra.mxu0 %v9512_v2  ;;  %v9548_v2 = vunpack.c.l.s8.bf16 %v688_v32 }
 0x3c1   : > { %9577 = vmatpush1.bf16.msra.mxu1 %v9576_v3  ;;  %9515 = vmatprep.subr.bf16.mxu0 %v9514_v6  ;;  %v9612_v3 = vunpack.c.l.s8.bf16 %v816_v55  ;;  %v9550_v6 = vunpack.c.h.s8.bf16 %v673_v0 }
 0x3c2   : > { %9579 = vmatprep.subr.bf16.mxu1 %v9578_v7  ;;  %v9614_v7 = vunpack.c.h.s8.bf16 %v801_v1 }
 0x3c4   : > { %9517 = vmatpush1.bf16.msra.mxu0 %v9516_v10  ;;  %v9552_v10 = vunpack.c.h.s8.bf16 %v672_v8 }
 0x3c5   : > { %9581 = vmatpush1.bf16.msra.mxu1 %v9580_v11  ;;  %9519 = vmatprep.subr.bf16.mxu0 %v9518_v12  ;;  %v9616_v11 = vunpack.c.h.s8.bf16 %v800_v9  ;;  %v9554_v12 = vunpack.c.l.s8.bf16 %v673_v0 }
 0x3c6   : > { %9583 = vmatprep.subr.bf16.mxu1 %v9582_v13  ;;  %v9618_v13 = vunpack.c.l.s8.bf16 %v801_v1 }
 0x3c8   : > { %9521 = vmatpush1.bf16.msra.mxu0 %v9520_v16  ;;  %v9556_v16 = vunpack.c.l.s8.bf16 %v672_v8 }
 0x3c9   : > { %9585 = vmatpush1.bf16.msra.mxu1 %v9584_v17  ;;  %9523 = vmatprep.subr.bf16.mxu0 %v9522_v18  ;;  %v9620_v17 = vunpack.c.l.s8.bf16 %v800_v9  ;;  %v9622_v18 = vunpack.c.h.s8.bf16 %v403_v14 }
 0x3ca   : > { %9587 = vmatprep.subr.bf16.mxu1 %v9586_v19  ;;  %v9686_v19 = vunpack.c.h.s8.bf16 %v531_v15 }
 0x3cc   : > { %9525 = vmatpush1.bf16.msra.mxu0 %v9524_v22  ;;  %v9624_v22 = vunpack.c.h.s8.bf16 %v402_v20 }
 0x3cd   : > { %9589 = vmatpush1.bf16.msra.mxu1 %v9588_v23  ;;  %9527 = vmatprep.subr.bf16.mxu0 %v9526_v24  ;;  %v9688_v23 = vunpack.c.h.s8.bf16 %v530_v21  ;;  %v9626_v24 = vunpack.c.l.s8.bf16 %v403_v14 }
 0x3ce   : > { %9591 = vmatprep.subr.bf16.mxu1 %v9590_v25  ;;  %v9690_v25 = vunpack.c.l.s8.bf16 %v531_v15 }
 0x3d0   : > { %9529 = vmatpush2.bf16.msra.mxu0 %v9528_v28  ;;  %v9628_v28 = vunpack.c.l.s8.bf16 %v402_v20 }
 0x3d1   : > { %9593 = vmatpush2.bf16.msra.mxu1 %v9592_v29  ;;  %9531 = vmatprep.subr.bf16.mxu0 %v9530_v30  ;;  %v9692_v29 = vunpack.c.l.s8.bf16 %v530_v21  ;;  %v9630_v30 = vunpack.c.h.s8.bf16 %v387_v26 }
 0x3d2   : > { %9595 = vmatprep.subr.bf16.mxu1 %v9594_v31  ;;  %v9694_v31 = vunpack.c.h.s8.bf16 %v515_v27 }
 0x3d4   : > { %9533 = vmatpush2.bf16.msra.mxu0 %v9532_v35  ;;  %v9632_v35 = vunpack.c.h.s8.bf16 %v386_v33 }
 0x3d5   : > { %9597 = vmatpush2.bf16.msra.mxu1 %v9596_v36  ;;  %9535 = vmatprep.subr.bf16.mxu0 %v9534_v37  ;;  %v9696_v36 = vunpack.c.h.s8.bf16 %v514_v34  ;;  %v9634_v37 = vunpack.c.l.s8.bf16 %v387_v26 }
 0x3d6   : > { %9599 = vmatprep.subr.bf16.mxu1 %v9598_v38  ;;  %v9698_v38 = vunpack.c.l.s8.bf16 %v515_v27 }
 0x3d8   : > { %9537 = vmatpush2.bf16.msra.mxu0 %v9536_v42  ;;  %v9636_v42 = vunpack.c.l.s8.bf16 %v386_v33 }
 0x3d9   : > { %9601 = vmatpush2.bf16.msra.mxu1 %v9600_v43  ;;  %9539 = vmatprep.subr.bf16.mxu0 %v9538_v44  ;;  %v9700_v43 = vunpack.c.l.s8.bf16 %v514_v34  ;;  %v370_v44 = vld [vmem:[%s10378_s26 + $0xf0] sm:$0xff] }
 0x3da   : > { %9603 = vmatprep.subr.bf16.mxu1 %v9602_v45  ;;  %v498_v45 = vld [vmem:[%s10378_s26 + $0x4f0] sm:$0xff]  ;;  %v9640_v46 = vunpack.c.h.s8.bf16 %v370_v44  ;;  %v9644_v32 = vunpack.c.l.s8.bf16 %v370_v44  ;;  %v419_v44 = vld [vmem:[%s10378_s26 + $0x278] sm:$0xff] }
 0x3db   : > { %v9704_v47 = vunpack.c.h.s8.bf16 %v498_v45  ;;  %v9708_v55 = vunpack.c.l.s8.bf16 %v498_v45  ;;  %v547_v45 = vld [vmem:[%s10378_s26 + $0x678] sm:$0xff] }
 0x3dc   : > { %9541 = vmatpush2.bf16.msra.mxu0 %v9540_v48  ;;  %v9642_v48 = vunpack.c.l.s8.bf16 %v371_v39 }
 0x3dd   : > { %9605 = vmatpush2.bf16.msra.mxu1 %v9604_v49  ;;  %9543 = vmatprep.subr.bf16.mxu0 %v9542_v50  ;;  %v9706_v49 = vunpack.c.l.s8.bf16 %v499_v41  ;;  %v355_v50 = vld [vmem:[%s10378_s26 + $0x78] sm:$0xff] }
 0x3de   : > { %9607 = vmatprep.subr.bf16.mxu1 %v9606_v54  ;;  %v483_v54 = vld [vmem:[%s10378_s26 + $0x478] sm:$0xff] }
 0x3e0   : > { %9545 = vmatpush2.bf16.msra.mxu0 %v9544_v56  ;;  %v9646_v56 = vunpack.c.h.s8.bf16 %v355_v50 }
 0x3e1   : > { %9609 = vmatpush2.bf16.msra.mxu1 %v9608_v57  ;;  %9547 = vmatprep.subr.bf16.mxu0 %v9546_v62  ;;  %v9710_v57 = vunpack.c.h.s8.bf16 %v483_v54  ;;  %v354_v62 = vld [vmem:[%s10378_s26 + $0x70] sm:$0xff] }
 0x3e2   : > { %9611 = vmatprep.subr.bf16.mxu1 %v9610_v63  ;;  %v482_v63 = vld [vmem:[%s10378_s26 + $0x470] sm:$0xff]  ;;  %v9648_v0 = vunpack.c.h.s8.bf16 %v354_v62  ;;  %v9652_v8 = vunpack.c.l.s8.bf16 %v354_v62 }
 0x3e3   : > { %v9712_v1 = vunpack.c.h.s8.bf16 %v482_v63  ;;  %v9716_v9 = vunpack.c.l.s8.bf16 %v482_v63 }
 0x3e4   : > { %9549 = vmatpush2.bf16.msra.mxu0 %v9548_v2  ;;  %v9650_v2 = vunpack.c.l.s8.bf16 %v355_v50  ;;  %v9678_v50 = vunpack.c.h.s8.bf16 %v419_v44 }
 0x3e5   : > { %9613 = vmatpush2.bf16.msra.mxu1 %v9612_v3  ;;  %9551 = vmatprep.subr.bf16.mxu0 %v9550_v6  ;;  %v9714_v3 = vunpack.c.l.s8.bf16 %v483_v54  ;;  %v467_v6 = vld [vmem:[%s10378_s26 + $0x3f8] sm:$0xff]  ;;  %v9742_v54 = vunpack.c.h.s8.bf16 %v547_v45 }
 0x3e6   : > { %9615 = vmatprep.subr.bf16.mxu1 %v9614_v7  ;;  %v595_v7 = vld [vmem:[%s10378_s26 + $0x7f8] sm:$0xff] }
 0x3e8   : > { %9553 = vmatpush2.bf16.msra.mxu0 %v9552_v10  ;;  %v9654_v10 = vunpack.c.h.s8.bf16 %v467_v6 }
 0x3e9   : > { %9617 = vmatpush2.bf16.msra.mxu1 %v9616_v11  ;;  %9555 = vmatprep.subr.bf16.mxu0 %v9554_v12  ;;  %v9718_v11 = vunpack.c.h.s8.bf16 %v595_v7  ;;  %v466_v12 = vld [vmem:[%s10378_s26 + $0x3f0] sm:$0xff] }
 0x3ea   : > { %9619 = vmatprep.subr.bf16.mxu1 %v9618_v13  ;;  %v594_v13 = vld [vmem:[%s10378_s26 + $0x7f0] sm:$0xff]  ;;  %v9656_v14 = vunpack.c.h.s8.bf16 %v466_v12  ;;  %v9660_v20 = vunpack.c.l.s8.bf16 %v466_v12 }
 0x3eb   : > { %v9720_v15 = vunpack.c.h.s8.bf16 %v594_v13  ;;  %v9724_v21 = vunpack.c.l.s8.bf16 %v594_v13 }
 0x3ec   : > { %9557 = vmatpush2.bf16.msra.mxu0 %v9556_v16  ;;  %v9658_v16 = vunpack.c.l.s8.bf16 %v467_v6 }
 0x3ed   : > { %9621 = vmatpush2.bf16.msra.mxu1 %v9620_v17  ;;  %9623 = vmatprep.subr.bf16.mxu0 %v9622_v18  ;;  %v9722_v17 = vunpack.c.l.s8.bf16 %v595_v7  ;;  %v451_v18 = vld [vmem:[%s10378_s26 + $0x378] sm:$0xff] }
 0x3ee   : > { %9687 = vmatprep.subr.bf16.mxu1 %v9686_v19  ;;  %v579_v19 = vld [vmem:[%s10378_s26 + $0x778] sm:$0xff] }
 0x3ef   : > { %6910 = vmatmul.mubr.f32.vlgmr.msra.gmra.mxu0 %v10476_v60 }
 0x3f0   : > { %6981 = vmatmul.mubr.f32.vlgmr.msra.gmra.mxu1 %v10479_v61  ;;  %9625 = vmatpush1.bf16.msra.mxu0 %v9624_v22  ;;  %v9662_v22 = vunpack.c.h.s8.bf16 %v451_v18 }
 0x3f1   : > { %9689 = vmatpush1.bf16.msra.mxu1 %v9688_v23  ;;  %9627 = vmatprep.subr.bf16.mxu0 %v9626_v24  ;;  %v9726_v23 = vunpack.c.h.s8.bf16 %v579_v19  ;;  %v450_v24 = vld [vmem:[%s10378_s26 + $0x370] sm:$0xff] }
 0x3f2   : > { %9691 = vmatprep.subr.bf16.mxu1 %v9690_v25  ;;  %7051 = vmatprep.mubr.f32.mxu0 %v10446_v58  ;;  %v9638_v58 = vunpack.c.h.s8.bf16 %v371_v39  ;;  %v578_v25 = vld [vmem:[%s10378_s26 + $0x770] sm:$0xff]  ;;  %v9664_v26 = vunpack.c.h.s8.bf16 %v450_v24  ;;  %v9668_v33 = vunpack.c.l.s8.bf16 %v450_v24 }
 0x3f3   : > { %7122 = vmatprep.mubr.f32.mxu1 %v10450_v59  ;;  %v9702_v59 = vunpack.c.h.s8.bf16 %v499_v41  ;;  %v9728_v27 = vunpack.c.h.s8.bf16 %v578_v25  ;;  %v9732_v34 = vunpack.c.l.s8.bf16 %v578_v25 }
 0x3f4   : > { %9629 = vmatpush1.bf16.msra.mxu0 %v9628_v28  ;;  %v9666_v28 = vunpack.c.l.s8.bf16 %v451_v18 }
 0x3f5   : > { %9693 = vmatpush1.bf16.msra.mxu1 %v9692_v29  ;;  %9631 = vmatprep.subr.bf16.mxu0 %v9630_v30  ;;  %v9730_v29 = vunpack.c.l.s8.bf16 %v579_v19  ;;  %v435_v30 = vld [vmem:[%s10378_s26 + $0x2f8] sm:$0xff] }
 0x3f6   : > { %9695 = vmatprep.subr.bf16.mxu1 %v9694_v31  ;;  %v563_v31 = vld [vmem:[%s10378_s26 + $0x6f8] sm:$0xff] }
 0x3f8   : > { %9633 = vmatpush1.bf16.msra.mxu0 %v9632_v35  ;;  %v9670_v35 = vunpack.c.h.s8.bf16 %v435_v30 }
 0x3f9   : > { %9697 = vmatpush1.bf16.msra.mxu1 %v9696_v36  ;;  %9635 = vmatprep.subr.bf16.mxu0 %v9634_v37  ;;  %v9734_v36 = vunpack.c.h.s8.bf16 %v563_v31  ;;  %v434_v37 = vld [vmem:[%s10378_s26 + $0x2f0] sm:$0xff] }
 0x3fa   : > { %9699 = vmatprep.subr.bf16.mxu1 %v9698_v38  ;;  %v562_v38 = vld [vmem:[%s10378_s26 + $0x6f0] sm:$0xff]  ;;  %v9672_v39 = vunpack.c.h.s8.bf16 %v434_v37 }
 0x3fb   : > { %v9736_v41 = vunpack.c.h.s8.bf16 %v562_v38 }
 0x3fc   : > { %9637 = vmatpush1.bf16.msra.mxu0 %v9636_v42  ;;  %v6201_v42 = vpop.f32.mrf.mxu0 }
 0x3fd   : > { %9701 = vmatpush1.bf16.msra.mxu1 %v9700_v43  ;;  %9639 = vmatprep.subr.bf16.mxu0 %v9638_v58  ;;  %v6272_v43 = vpop.f32.mrf.mxu1  ;;  %v9674_v58 = vunpack.c.l.s8.bf16 %v435_v30 }
 0x3fe   : > { %9703 = vmatprep.subr.bf16.mxu1 %v9702_v59  ;;  %v9738_v59 = vunpack.c.l.s8.bf16 %v563_v31 }
 0x400   : > { %9641 = vmatpush1.bf16.msra.mxu0 %v9640_v46  ;;  %v9676_v46 = vunpack.c.l.s8.bf16 %v434_v37 }
 0x401   : > { %9705 = vmatpush1.bf16.msra.mxu1 %v9704_v47  ;;  %9643 = vmatprep.subr.bf16.mxu0 %v9642_v48  ;;  %v9740_v47 = vunpack.c.l.s8.bf16 %v562_v38  ;;  %v6203_v48 = vpop.f32.mrf.mxu0 }
 0x402   : > { %9707 = vmatprep.subr.bf16.mxu1 %v9706_v49  ;;  %v6274_v49 = vpop.f32.mrf.mxu1 }
 0x404   : > { %9645 = vmatpush1.bf16.msra.mxu0 %v9644_v32  ;;  %v418_v32 = vld [vmem:[%s10378_s26 + $0x270] sm:$0xff] }
 0x405   : > { %9709 = vmatpush1.bf16.msra.mxu1 %v9708_v55  ;;  %9647 = vmatprep.subr.bf16.mxu0 %v9646_v56  ;;  %v546_v55 = vld [vmem:[%s10378_s26 + $0x670] sm:$0xff]  ;;  %v6343_v56 = vpop.f32.mrf.mxu0  ;;  %v9680_v62 = vunpack.c.h.s8.bf16 %v418_v32 }
 0x406   : > { %9711 = vmatprep.subr.bf16.mxu1 %v9710_v57  ;;  %v6414_v57 = vpop.f32.mrf.mxu1  ;;  %v9744_v63 = vunpack.c.h.s8.bf16 %v546_v55 }
 0x407   : > { %v6345_v6 = vpop.f32.mrf.mxu0 }
 0x408   : > { %9649 = vmatpush1.bf16.msra.mxu0 %v9648_v0  ;;  %v9682_v0 = vunpack.c.l.s8.bf16 %v419_v44  ;;  %v6416_v7 = vpop.f32.mrf.mxu1 }
 0x409   : > { %9713 = vmatpush1.bf16.msra.mxu1 %v9712_v1  ;;  %9651 = vmatprep.subr.bf16.mxu0 %v9650_v2  ;;  %v9746_v1 = vunpack.c.l.s8.bf16 %v547_v45  ;;  %v659_v2 = vld [vmem:[%s10378_s26 + $0x9f8] sm:$0xff] }
 0x40a   : > { %9715 = vmatprep.subr.bf16.mxu1 %v9714_v3  ;;  %v787_v3 = vld [vmem:[%s10378_s26 + $0xdf8] sm:$0xff]  ;;  %v6556_v12 = vpop.f32.mrf.mxu1  ;;  %v9750_v13 = vunpack.c.h.s8.bf16 %v659_v2  ;;  %v9754_v24 = vunpack.c.l.s8.bf16 %v659_v2 }
 0x40b   : > { %v9818_v25 = vunpack.c.l.s8.bf16 %v787_v3 }
 0x40c   : > { %9653 = vmatpush1.bf16.msra.mxu0 %v9652_v8  ;;  %v9684_v8 = vunpack.c.l.s8.bf16 %v418_v32 }
 0x40d   : > { %9717 = vmatpush1.bf16.msra.mxu1 %v9716_v9  ;;  %9655 = vmatprep.subr.bf16.mxu0 %v9654_v10  ;;  %v9748_v9 = vunpack.c.l.s8.bf16 %v546_v55  ;;  %v6275_v10 = vadd.f32 %v6274_v49, %v6203_v48 }
 0x40e   : > { %9719 = vmatprep.subr.bf16.mxu1 %v9718_v11  ;;  %v6485_v11 = vpop.f32.mrf.mxu0 }
 0x40f   : > { %v6346_v18 = vadd.f32 %v6345_v6, %v6275_v10  ;;  %v739_v10 = vld [vmem:[%s10378_s26 + $0xc78] sm:$0xff] }
 0x410   : > { %9657 = vmatpush2.bf16.msra.mxu0 %v9656_v14  ;;  %v9814_v14 = vunpack.c.h.s8.bf16 %v787_v3 }
 0x411   : > { %9721 = vmatpush2.bf16.msra.mxu1 %v9720_v15  ;;  %9659 = vmatprep.subr.bf16.mxu0 %v9658_v16  ;;  %v658_v15 = vld [vmem:[%s10378_s26 + $0x9f0] sm:$0xff] }
 0x412   : > { %9723 = vmatprep.subr.bf16.mxu1 %v9722_v17  ;;  %v786_v16 = vld [vmem:[%s10378_s26 + $0xdf0] sm:$0xff]  ;;  %v6273_v17 = vadd.f32 %v6272_v43, %v6201_v42  ;;  %v9752_v19 = vunpack.c.h.s8.bf16 %v658_v15 }
 0x413   : > { %v642_v43 = vld [vmem:[%s10378_s26 + $0x970] sm:$0xff] }
 0x414   : > { %9661 = vmatpush2.bf16.msra.mxu0 %v9660_v20  ;;  %v9816_v20 = vunpack.c.h.s8.bf16 %v786_v16  ;;  %v9760_v45 = vunpack.c.h.s8.bf16 %v642_v43  ;;  %v9764_v32 = vunpack.c.l.s8.bf16 %v642_v43 }
 0x415   : > { %9725 = vmatpush2.bf16.msra.mxu1 %v9724_v21  ;;  %9663 = vmatprep.subr.bf16.mxu0 %v9662_v22  ;;  %v6344_v21 = vadd.f32 %v6343_v56, %v6273_v17  ;;  %v6487_v22 = vpop.f32.mrf.mxu0  ;;  %v4950_v56 = vld [vmem:[#allocation2 + $0x18] sm:$0xff] }
 0x416   : > { %9727 = vmatprep.subr.bf16.mxu1 %v9726_v23  ;;  %v6558_v23 = vpop.f32.mrf.mxu1 }
 0x417   : > { %v6415_v37 = vadd.f32 %v6414_v57, %v6344_v21  ;;  %v723_v21 = vld [vmem:[%s10378_s26 + $0xbf8] sm:$0xff] }
 0x418   : > { %9665 = vmatpush2.bf16.msra.mxu0 %v9664_v26  ;;  %v6557_v26 = vadd.f32 %v6556_v12, %v6485_v11 }
 0x419   : > { %9729 = vmatpush2.bf16.msra.mxu1 %v9728_v27  ;;  %9667 = vmatprep.subr.bf16.mxu0 %v9666_v28  ;;  %v643_v27 = vld [vmem:[%s10378_s26 + $0x978] sm:$0xff] }
 0x41a   : > { %9731 = vmatprep.subr.bf16.mxu1 %v9730_v29  ;;  %v771_v28 = vld [vmem:[%s10378_s26 + $0xd78] sm:$0xff]  ;;  %v6417_v29 = vadd.f32 %v6416_v7, %v6346_v18 }
 0x41b   : > { %v9822_v42 = vunpack.c.h.s8.bf16 %v771_v28  ;;  %v9826_v48 = vunpack.c.l.s8.bf16 %v771_v28  ;;  %v850_v28 = vld [vmem:[%s10378_s26 + $0xff0] sm:$0xff] }
 0x41c   : > { %9669 = vmatpush2.bf16.msra.mxu0 %v9668_v33  ;;  %v6559_v33 = vadd.f32 %v6558_v23, %v6487_v22  ;;  %v851_v22 = vld [vmem:[%s10378_s26 + $0xff8] sm:$0xff] }
 0x41d   : > { %9733 = vmatpush2.bf16.msra.mxu1 %v9732_v34  ;;  %9671 = vmatprep.subr.bf16.mxu0 %v9670_v35  ;;  %v9756_v35 = vunpack.c.l.s8.bf16 %v658_v15  ;;  %v610_v15 = vld [vmem:[%s10378_s26 + $0x870] sm:$0xff] }
 0x41e   : > { %9735 = vmatprep.subr.bf16.mxu1 %v9734_v36  ;;  %v9820_v36 = vunpack.c.l.s8.bf16 %v786_v16  ;;  %v738_v16 = vld [vmem:[%s10378_s26 + $0xc70] sm:$0xff]  ;;  %v9776_v17 = vunpack.c.h.s8.bf16 %v610_v15  ;;  %v9780_v23 = vunpack.c.l.s8.bf16 %v610_v15 }
 0x41f   : > { %v9840_v18 = vunpack.c.h.s8.bf16 %v738_v16 }
 0x420   : > { %9673 = vmatpush2.bf16.msra.mxu0 %v9672_v39 }
 0x421   : > { %9737 = vmatpush2.bf16.msra.mxu1 %v9736_v41  ;;  %9675 = vmatprep.subr.bf16.mxu0 %v9674_v58  ;;  %v9758_v41 = vunpack.c.h.s8.bf16 %v643_v27 }
 0x422   : > { %9739 = vmatprep.subr.bf16.mxu1 %v9738_v59 }
 0x424   : > { %9677 = vmatpush2.bf16.msra.mxu0 %v9676_v46 }
 0x425   : > { %9741 = vmatpush2.bf16.msra.mxu1 %v9740_v47  ;;  %9679 = vmatprep.subr.bf16.mxu0 %v9678_v50  ;;  %v9762_v47 = vunpack.c.l.s8.bf16 %v643_v27  ;;  %v627_v50 = vld [vmem:[%s10378_s26 + $0x8f8] sm:$0xff]  ;;  %v722_v27 = vld [vmem:[%s10378_s26 + $0xbf0] sm:$0xff] }
 0x426   : > { %9743 = vmatprep.subr.bf16.mxu1 %v9742_v54  ;;  %v755_v54 = vld [vmem:[%s10378_s26 + $0xcf8] sm:$0xff]  ;;  %v9766_v57 = vunpack.c.h.s8.bf16 %v627_v50  ;;  %v9770_v7 = vunpack.c.l.s8.bf16 %v627_v50  ;;  %v818_v50 = vld [vmem:[%s10378_s26 + $0xef0] sm:$0xff] }
 0x428   : > { %9681 = vmatpush2.bf16.msra.mxu0 %v9680_v62  ;;  %v9830_v62 = vunpack.c.h.s8.bf16 %v755_v54 }
 0x429   : > { %9745 = vmatpush2.bf16.msra.mxu1 %v9744_v63  ;;  %9683 = vmatprep.subr.bf16.mxu0 %v9682_v0  ;;  %v626_v63 = vld [vmem:[%s10378_s26 + $0x8f0] sm:$0xff] }
 0x42a   : > { %9747 = vmatprep.subr.bf16.mxu1 %v9746_v1  ;;  %v754_v0 = vld [vmem:[%s10378_s26 + $0xcf0] sm:$0xff]  ;;  %v9768_v3 = vunpack.c.h.s8.bf16 %v626_v63  ;;  %v9772_v11 = vunpack.c.l.s8.bf16 %v626_v63 }
 0x42b   : > { %v9832_v6 = vunpack.c.h.s8.bf16 %v754_v0  ;;  %v9836_v12 = vunpack.c.l.s8.bf16 %v754_v0 }
 0x42c   : > { %9685 = vmatpush2.bf16.msra.mxu0 %v9684_v8  ;;  %v9834_v8 = vunpack.c.l.s8.bf16 %v755_v54 }
 0x42d   : > { %9749 = vmatpush2.bf16.msra.mxu1 %v9748_v9  ;;  %9751 = vmatprep.subr.bf16.mxu0 %v9750_v13  ;;  %v611_v9 = vld [vmem:[%s10378_s26 + $0x878] sm:$0xff] }
 0x42e   : > { %9815 = vmatprep.subr.bf16.mxu1 %v9814_v14  ;;  %v9774_v13 = vunpack.c.h.s8.bf16 %v611_v9  ;;  %v9838_v14 = vunpack.c.h.s8.bf16 %v739_v10 }
 0x42f   : > { %v6627_v30 = vpop.f32.mrf.mxu0  ;;  %7052 = vmatmul.mubr.f32.vlgmr.msra.gmra.mxu0 %v10439_v52  ;;  %v770_v52 = vld [vmem:[%s10378_s26 + $0xd70] sm:$0xff] }
 0x430   : > { %7123 = vmatmul.mubr.f32.vlgmr.msra.gmra.mxu1 %v10442_v53  ;;  %v6698_v31 = vpop.f32.mrf.mxu1  ;;  %v6628_v34 = vadd.f32 %v6627_v30, %v6557_v26  ;;  %9753 = vmatpush1.bf16.msra.mxu0 %v9752_v19  ;;  %v7321_v53 = vcombine.low %v6415_v37, %v6417_v29  ;;  %v9824_v46 = vunpack.c.h.s8.bf16 %v770_v52  ;;  %v9828_v55 = vunpack.c.l.s8.bf16 %v770_v52 }
 0x431   : > { %9817 = vmatpush1.bf16.msra.mxu1 %v9816_v20  ;;  %v6629_v38 = vpop.f32.mrf.mxu0  ;;  %9755 = vmatprep.subr.bf16.mxu0 %v9754_v24  ;;  %v9778_v19 = vunpack.c.l.s8.bf16 %v611_v9  ;;  %v9842_v20 = vunpack.c.l.s8.bf16 %v739_v10  ;;  %v9844_v24 = vunpack.c.l.s8.bf16 %v738_v16  ;;  %v9846_v26 = vunpack.c.h.s8.bf16 %v851_v22 }
 0x432   : > { %v6700_v39 = vpop.f32.mrf.mxu1  ;;  %9819 = vmatprep.subr.bf16.mxu1 %v9818_v25  ;;  %v6630_v58 = vadd.f32 %v6629_v38, %v6559_v33  ;;  %7193 = vmatprep.mubr.f32.mxu0 %v10485_v4  ;;  %v6699_v59 = vadd.f32 %v6698_v31, %v6628_v34  ;;  %v7329_v4 = vrot.slane %v7321_v53, %v10436_v51  ;;  %v9782_v25 = vunpack.c.h.s8.bf16 %v723_v21  ;;  %v707_v34 = vld [vmem:[%s10378_s26 + $0xb78] sm:$0xff] }
 0x433   : > { %7264 = vmatprep.mubr.f32.mxu1 %v10489_v5  ;;  %v9784_v29 = vunpack.c.h.s8.bf16 %v722_v27  ;;  %v9848_v30 = vunpack.c.h.s8.bf16 %v850_v28  ;;  %v9786_v31 = vunpack.c.l.s8.bf16 %v723_v21  ;;  %v9850_v33 = vunpack.c.l.s8.bf16 %v851_v22 }
 0x434   : > { %v6701_v44 = vadd.f32 %v6700_v39, %v6630_v58  ;;  %9757 = vmatpush1.bf16.msra.mxu0 %v9756_v35  ;;  %v835_v35 = vld [vmem:[%s10378_s26 + $0xf78] sm:$0xff]  ;;  %v9852_v37 = vunpack.c.l.s8.bf16 %v850_v28  ;;  %v9790_v38 = vunpack.c.h.s8.bf16 %v707_v34  ;;  %v9794_v58 = vunpack.c.l.s8.bf16 %v707_v34 }
 0x435   : > { %9821 = vmatpush1.bf16.msra.mxu1 %v9820_v36  ;;  %9759 = vmatprep.subr.bf16.mxu0 %v9758_v41  ;;  %v9788_v36 = vunpack.c.l.s8.bf16 %v722_v27  ;;  %v9854_v39 = vunpack.c.h.s8.bf16 %v835_v35  ;;  %v706_v41 = vld [vmem:[%s10378_s26 + $0xb70] sm:$0xff]  ;;  %v9858_v53 = vunpack.c.l.s8.bf16 %v835_v35 }
 0x436   : > { %9823 = vmatprep.subr.bf16.mxu1 %v9822_v42  ;;  %v7322_v49 = vcombine.low %v6699_v59, %v6701_v44  ;;  %v834_v42 = vld [vmem:[%s10378_s26 + $0xf70] sm:$0xff]  ;;  %v9792_v43 = vunpack.c.h.s8.bf16 %v706_v41  ;;  %v691_v59 = vld [vmem:[%s10378_s26 + $0xaf8] sm:$0xff] }
 0x437   : > { %v9856_v52 = vunpack.c.h.s8.bf16 %v834_v42  ;;  %v819_v44 = vld [vmem:[%s10378_s26 + $0xef8] sm:$0xff] }
 0x438   : > { %v7336_v5 = vrot.slane %v7322_v49, %v10436_v51  ;;  %9761 = vmatpush1.bf16.msra.mxu0 %v9760_v45  ;;  %v9796_v45 = vunpack.c.l.s8.bf16 %v706_v41  ;;  %v690_v49 = vld [vmem:[%s10378_s26 + $0xaf0] sm:$0xff] }
 0x439   : > { %9825 = vmatpush1.bf16.msra.mxu1 %v9824_v46  ;;  %9763 = vmatprep.subr.bf16.mxu0 %v9762_v47  ;;  %v9860_v46 = vunpack.c.l.s8.bf16 %v834_v42  ;;  %v9798_v47 = vunpack.c.h.s8.bf16 %v691_v59  ;;  %v9800_v54 = vunpack.c.h.s8.bf16 %v690_v49 }
 0x43a   : > { %9827 = vmatprep.subr.bf16.mxu1 %v9826_v48  ;;  %v7337_v1 = vcombine.low %v7329_v4, %v7336_v5  ;;  %v9862_v48 = vunpack.c.h.s8.bf16 %v819_v44  ;;  %v9864_v4 = vunpack.c.h.s8.bf16 %v818_v50  ;;  %v9802_v5 = vunpack.c.l.s8.bf16 %v691_v59 }
 0x43c   : > { %v7361_v2 = vadd.f32 %v7337_v1, %v4950_v56  ;;  %9765 = vmatpush1.bf16.msra.mxu0 %v9764_v32  ;;  %v9866_v32 = vunpack.c.l.s8.bf16 %v819_v44  ;;  %v803_v56 = vld [vmem:[%s10378_s26 + $0xe78] sm:$0xff]  ;;  %v674_v1 = vld [vmem:[%s10378_s26 + $0xa70] sm:$0xff] }
 0x43d   : > { %9829 = vmatpush1.bf16.msra.mxu1 %v9828_v55  ;;  %9767 = vmatprep.subr.bf16.mxu0 %v9766_v57  ;;  %v675_v55 = vld [vmem:[%s10378_s26 + $0xa78] sm:$0xff]  ;;  %v9804_v57 = vunpack.c.l.s8.bf16 %v690_v49  ;;  %v9870_v0 = vunpack.c.h.s8.bf16 %v803_v56  ;;  %v9812_v9 = vunpack.c.l.s8.bf16 %v674_v1 }
 0x43e   : > { %9831 = vmatprep.subr.bf16.mxu1 %v9830_v62  ;;  %7365 = vst [vmem:[#allocation2 + $0x18] sm:$0xff] %v7361_v2  ;;  %v9868_v62 = vunpack.c.l.s8.bf16 %v818_v50  ;;  %v9806_v63 = vunpack.c.h.s8.bf16 %v675_v55  ;;  %v802_v2 = vld [vmem:[%s10378_s26 + $0xe70] sm:$0xff] }
 0x43f   : > { %v9876_v10 = vunpack.c.l.s8.bf16 %v802_v2 }
 0x440   : > { %9769 = vmatpush1.bf16.msra.mxu0 %v9768_v3  ;;  %v9808_v3 = vunpack.c.h.s8.bf16 %v674_v1 }
 0x441   : > { %9833 = vmatpush1.bf16.msra.mxu1 %v9832_v6  ;;  %9771 = vmatprep.subr.bf16.mxu0 %v9770_v7  ;;  %v9872_v6 = vunpack.c.h.s8.bf16 %v802_v2  ;;  %v9810_v7 = vunpack.c.l.s8.bf16 %v675_v55 }
 0x442   : > { %9835 = vmatprep.subr.bf16.mxu1 %v9834_v8  ;;  %v9874_v8 = vunpack.c.l.s8.bf16 %v803_v56 }
 0x444   : > { %9773 = vmatpush1.bf16.msra.mxu0 %v9772_v11 }
 0x445   : > { %9837 = vmatpush1.bf16.msra.mxu1 %v9836_v12  ;;  %9775 = vmatprep.subr.bf16.mxu0 %v9774_v13 }
 0x446   : > { %9839 = vmatprep.subr.bf16.mxu1 %v9838_v14 }
 0x448   : > { %9777 = vmatpush1.bf16.msra.mxu0 %v9776_v17 }
 0x449   : > { %9841 = vmatpush1.bf16.msra.mxu1 %v9840_v18  ;;  %9779 = vmatprep.subr.bf16.mxu0 %v9778_v19 }
 0x44a   : > { %9843 = vmatprep.subr.bf16.mxu1 %v9842_v20 }
 0x44c   : > { %9781 = vmatpush1.bf16.msra.mxu0 %v9780_v23 }
 0x44d   : > { %9845 = vmatpush1.bf16.msra.mxu1 %v9844_v24  ;;  %9783 = vmatprep.subr.bf16.mxu0 %v9782_v25 }
 0x44e   : > { %9847 = vmatprep.subr.bf16.mxu1 %v9846_v26 }
 0x450   : > { %9785 = vmatpush2.bf16.msra.mxu0 %v9784_v29 }
 0x451   : > { %9849 = vmatpush2.bf16.msra.mxu1 %v9848_v30  ;;  %9787 = vmatprep.subr.bf16.mxu0 %v9786_v31 }
 0x452   : > { %9851 = vmatprep.subr.bf16.mxu1 %v9850_v33 }
 0x454   : > { %9789 = vmatpush2.bf16.msra.mxu0 %v9788_v36 }
 0x455   : > { %9853 = vmatpush2.bf16.msra.mxu1 %v9852_v37  ;;  %9791 = vmatprep.subr.bf16.mxu0 %v9790_v38 }
 0x456   : > { %9855 = vmatprep.subr.bf16.mxu1 %v9854_v39 }
 0x458   : > { %9793 = vmatpush2.bf16.msra.mxu0 %v9792_v43  ;;  %v4951_v43 = vld [vmem:[#allocation2 + $0x8] sm:$0xff] }
 0x459   : > { %9857 = vmatpush2.bf16.msra.mxu1 %v9856_v52  ;;  %9795 = vmatprep.subr.bf16.mxu0 %v9794_v58 }
 0x45a   : > { %9859 = vmatprep.subr.bf16.mxu1 %v9858_v53 }
 0x45c   : > { %9797 = vmatpush2.bf16.msra.mxu0 %v9796_v45 }
 0x45d   : > { %9861 = vmatpush2.bf16.msra.mxu1 %v9860_v46  ;;  %9799 = vmatprep.subr.bf16.mxu0 %v9798_v47 }
 0x45e   : > { %9863 = vmatprep.subr.bf16.mxu1 %v9862_v48 }
 0x460   : > { %9801 = vmatpush2.bf16.msra.mxu0 %v9800_v54 }
 0x461   : > { %9865 = vmatpush2.bf16.msra.mxu1 %v9864_v4  ;;  %9803 = vmatprep.subr.bf16.mxu0 %v9802_v5 }
 0x462   : > { %9867 = vmatprep.subr.bf16.mxu1 %v9866_v32 }
 0x464   : > { %9805 = vmatpush2.bf16.msra.mxu0 %v9804_v57 }
 0x465   : > { %9869 = vmatpush2.bf16.msra.mxu1 %v9868_v62  ;;  %9807 = vmatprep.subr.bf16.mxu0 %v9806_v63 }
 0x466   : > { %9871 = vmatprep.subr.bf16.mxu1 %v9870_v0 }
 0x468   : > { %9809 = vmatpush2.bf16.msra.mxu0 %v9808_v3 }
 0x469   : > { %9873 = vmatpush2.bf16.msra.mxu1 %v9872_v6  ;;  %9811 = vmatprep.subr.bf16.mxu0 %v9810_v7 }
 0x46a   : > { %9875 = vmatprep.subr.bf16.mxu1 %v9874_v8 }
 0x46c   : > { %9813 = vmatpush2.bf16.msra.mxu0 %v9812_v9 }
 0x46d   : > { %9877 = vmatpush2.bf16.msra.mxu1 %v9876_v10 }
 0x46f   : > { %7194 = vmatmul.mubr.f32.vlgmr.msra.gmra.mxu0 %v10476_v60  ;;  %v6769_v11 = vpop.f32.mrf.mxu0 }
 0x470   : > { %7265 = vmatmul.mubr.f32.vlgmr.msra.gmra.mxu1 %v10479_v61  ;;  %v6840_v12 = vpop.f32.mrf.mxu1 }
 0x471   : > { %v6771_v13 = vpop.f32.mrf.mxu0  ;;  %v6841_v22 = vadd.f32 %v6840_v12, %v6769_v11 }
 0x472   : > { %v6842_v14 = vpop.f32.mrf.mxu1 }
 0x473   : > { %v6843_v21 = vadd.f32 %v6842_v14, %v6771_v13 }
 0x4af   : > { %v6911_v15 = vpop.f32.mrf.mxu0 }
 0x4b0   : > { %v6982_v16 = vpop.f32.mrf.mxu1  ;;  %v6912_v26 = vadd.f32 %v6911_v15, %v6841_v22 }
 0x4b1   : > { %v6913_v17 = vpop.f32.mrf.mxu0 }
 0x4b2   : > { %v6984_v18 = vpop.f32.mrf.mxu1  ;;  %v6914_v23 = vadd.f32 %v6913_v17, %v6843_v21  ;;  %v6983_v33 = vadd.f32 %v6982_v16, %v6912_v26 }
 0x4b4   : > { %v6985_v61 = vadd.f32 %v6984_v18, %v6914_v23 }
 0x4b6   : > { %v7338_v36 = vcombine.low %v6983_v33, %v6985_v61 }
 0x4b8   : > { %v7346_v41 = vrot.slane %v7338_v36, %v10436_v51 }
 0x4ef   : > { %v7053_v19 = vpop.f32.mrf.mxu0 }
 0x4f0   : > { %v7124_v20 = vpop.f32.mrf.mxu1 }
 0x4f1   : > { %v7055_v24 = vpop.f32.mrf.mxu0  ;;  %v7125_v27 = vadd.f32 %v7124_v20, %v7053_v19 }
 0x4f2   : > { %v7126_v25 = vpop.f32.mrf.mxu1 }
 0x4f3   : > { %v7127_v29 = vadd.f32 %v7126_v25, %v7055_v24 }
 0x52f   : > { %v7195_v60 = vpop.f32.mrf.mxu0 }
 0x530   : > { %v7266_v28 = vpop.f32.mrf.mxu1  ;;  %v7196_v30 = vadd.f32 %v7195_v60, %v7125_v27 }
 0x531   : > { %v7197_v31 = vpop.f32.mrf.mxu0 }
 0x532   : > { %v7198_v34 = vadd.f32 %v7197_v31, %v7127_v29  ;;  %v7268_v35 = vpop.f32.mrf.mxu1  ;;  %v7267_v37 = vadd.f32 %v7266_v28, %v7196_v30 }
 0x534   : > { %v7269_v38 = vadd.f32 %v7268_v35, %v7198_v34 }
 0x536   : > { %v7339_v39 = vcombine.low %v7267_v37, %v7269_v38 }
 0x538   : > { %v7353_v42 = vrot.slane %v7339_v39, %v10436_v51 }
 0x53a   : > { %v7354_v52 = vcombine.low %v7346_v41, %v7353_v42  ;;  %7370 = sbr.rel (%p7824_p2) target bundleno = 1372 (0x55c), region = 56 }
 0x53c   : > { %v7362_v58 = vadd.f32 %v7354_v52, %v4951_v43 }
 0x53e   : > { %7366 = vst [vmem:[#allocation2 + $0x8] sm:$0xff] %v7362_v58 }
 0x53f   : > { %v7375_v53 = vld [vmem:[%s269_s11] sm:$0xff]  ;;  %v11039_v59 = vsub.s32 0, %v10429_v40  ;;  %v11042_v44 = vsub.s32 1, %v10429_v40  ;;  %v11045_v45 = vsub.s32 2, %v10429_v40  ;;  %v11048_v46 = vsub.s32 3, %v10429_v40  ;;  %v7376_v13 = vld [vmem:[%s269_s11 + $0x8] sm:$0xff] }
 0x540   : > { %v7519_v47 = vld [vmem:[%s278_s5] sm:$0xff]  ;;  %v11053_v48 = vsub.s32 4, %v10429_v40  ;;  %v11056_v49 = vsub.s32 5, %v10429_v40  ;;  %v11059_v50 = vsub.s32 6, %v10429_v40  ;;  %v11062_v54 = vsub.s32 7, %v10429_v40  ;;  %v7520_v23 = vld [vmem:[%s278_s5 + $0x8] sm:$0xff] }
 0x541   : > { %v7382_v4 = vrot.slane %v7375_v53, %v11039_v59  ;;  %v7386_v5 = vrot.slane %v7375_v53, %v11042_v44  ;;  %v7390_v32 = vrot.slane %v7375_v53, %v11045_v45  ;;  %v7394_v55 = vrot.slane %v7375_v53, %v11048_v46  ;;  %v7371_v14 = vld [vmem:[#allocation2 + $0x10] sm:$0xff]  ;;  %v7372_v28 = vld [vmem:[#allocation2] sm:$0xff] }
 0x542   : > { %v7526_v56 = vrot.slane %v7519_v47, %v11039_v59  ;;  %v7530_v57 = vrot.slane %v7519_v47, %v11042_v44  ;;  %v7534_v62 = vrot.slane %v7519_v47, %v11045_v45  ;;  %v7538_v63 = vrot.slane %v7519_v47, %v11048_v46 }
 0x543   : > { %v7443_v0 = vcombine.low %v7382_v4, %v7386_v5  ;;  %v7444_v40 = vcombine.low %v7390_v32, %v7394_v55  ;;  %v7398_v1 = vrot.slane %v7375_v53, %v11053_v48  ;;  %v7402_v2 = vrot.slane %v7375_v53, %v11056_v49 }
 0x544   : > { %v7587_v3 = vcombine.low %v7526_v56, %v7530_v57  ;;  %v7588_v6 = vcombine.low %v7534_v62, %v7538_v63  ;;  %v7406_v7 = vrot.slane %v7375_v53, %v11059_v50  ;;  %v7410_v8 = vrot.slane %v7375_v53, %v11062_v54  ;;  %v7373_v56 = vld [vmem:[#allocation2 + $0x18] sm:$0xff] }
 0x545   : > { %v7451_v9 = vrot.slane %v7443_v0, %v10436_v51  ;;  %v7458_v10 = vrot.slane %v7444_v40, %v10436_v51  ;;  %v7460_v11 = vcombine.low %v7398_v1, %v7402_v2  ;;  %v7542_v12 = vrot.slane %v7519_v47, %v11053_v48 }
 0x546   : > { %v7595_v15 = vrot.slane %v7587_v3, %v10436_v51  ;;  %v7602_v16 = vrot.slane %v7588_v6, %v10436_v51  ;;  %v7461_v17 = vcombine.low %v7406_v7, %v7410_v8  ;;  %v7546_v18 = vrot.slane %v7519_v47, %v11056_v49 }
 0x547   : > { %v7459_v19 = vcombine.low %v7451_v9, %v7458_v10  ;;  %v7468_v20 = vrot.slane %v7460_v11, %v10436_v51  ;;  %v7550_v21 = vrot.slane %v7519_v47, %v11059_v50  ;;  %v7554_v22 = vrot.slane %v7519_v47, %v11062_v54 }
 0x548   : > { %v7603_v24 = vcombine.low %v7595_v15, %v7602_v16  ;;  %v7475_v25 = vrot.slane %v7461_v17, %v10436_v51  ;;  %v7604_v26 = vcombine.low %v7542_v12, %v7546_v18  ;;  %v7414_v27 = vrot.slane %v7376_v13, %v11039_v59  ;;  %v7374_v12 = vld [vmem:[#allocation2 + $0x8] sm:$0xff] }
 0x549   : > { %v7515_v60 = vmul.f32 %v7459_v19, %v7371_v14  ;;  %v7605_v61 = vcombine.low %v7550_v21, %v7554_v22  ;;  %v7418_v29 = vrot.slane %v7376_v13, %v11042_v44  ;;  %v7422_v30 = vrot.slane %v7376_v13, %v11045_v45 }
 0x54a   : > { %v7476_v31 = vcombine.low %v7468_v20, %v7475_v25  ;;  %v7612_v33 = vrot.slane %v7604_v26, %v10436_v51  ;;  %v7426_v34 = vrot.slane %v7376_v13, %v11048_v46  ;;  %v7558_v35 = vrot.slane %v7520_v23, %v11039_v59 }
 0x54b   : > { %v7659_v36 = vadd.f32 %v7603_v24, %v7515_v60  ;;  %v7619_v37 = vrot.slane %v7605_v61, %v10436_v51  ;;  %v7477_v38 = vcombine.low %v7414_v27, %v7418_v29  ;;  %v7562_v39 = vrot.slane %v7520_v23, %v11042_v44 }
 0x54c   : > { %v7516_v41 = vmul.f32 %v7476_v31, %v7372_v28  ;;  %v7478_v42 = vcombine.low %v7422_v30, %v7426_v34  ;;  %v7566_v43 = vrot.slane %v7520_v23, %v11045_v45  ;;  %v7570_v52 = vrot.slane %v7520_v23, %v11048_v46 }
 0x54d   : > { %7663 = vst [vmem:[%s10405_s14] sm:$0xff] %v7659_v36  ;;  %v7620_v58 = vcombine.low %v7612_v33, %v7619_v37  ;;  %v7485_v53 = vrot.slane %v7477_v38, %v10436_v51  ;;  %v7621_v47 = vcombine.low %v7558_v35, %v7562_v39  ;;  %v7430_v59 = vrot.slane %v7376_v13, %v11053_v48 }
 0x54e   : > { %v7492_v4 = vrot.slane %v7478_v42, %v10436_v51  ;;  %v7622_v5 = vcombine.low %v7566_v43, %v7570_v52  ;;  %v7434_v32 = vrot.slane %v7376_v13, %v11056_v49  ;;  %v7438_v44 = vrot.slane %v7376_v13, %v11059_v50 }
 0x54f   : > { %v7660_v55 = vadd.f32 %v7620_v58, %v7516_v41  ;;  %v7629_v45 = vrot.slane %v7621_v47, %v10436_v51  ;;  %v7442_v46 = vrot.slane %v7376_v13, %v11062_v54  ;;  %v7574_v57 = vrot.slane %v7520_v23, %v11053_v48 }
 0x550   : > { %v7493_v62 = vcombine.low %v7485_v53, %v7492_v4  ;;  %v7636_v63 = vrot.slane %v7622_v5, %v10436_v51  ;;  %v7494_v0 = vcombine.low %v7430_v59, %v7434_v32  ;;  %v7578_v40 = vrot.slane %v7520_v23, %v11056_v49 }
 0x551   : > { %7664 = vst [vmem:[%s10405_s14 + $0x8] sm:$0xff] %v7660_v55  ;;  %v7495_v1 = vcombine.low %v7438_v44, %v7442_v46  ;;  %v7582_v2 = vrot.slane %v7520_v23, %v11059_v50  ;;  %v7586_v3 = vrot.slane %v7520_v23, %v11062_v54 }
 0x552   : > { %v7517_v6 = vmul.f32 %v7493_v62, %v7373_v56  ;;  %v7637_v7 = vcombine.low %v7629_v45, %v7636_v63  ;;  %v7502_v8 = vrot.slane %v7494_v0, %v10436_v51  ;;  %v7638_v9 = vcombine.low %v7574_v57, %v7578_v40 }
 0x553   : > { %v7509_v48 = vrot.slane %v7495_v1, %v10436_v51  ;;  %v7639_v10 = vcombine.low %v7582_v2, %v7586_v3 }
 0x554   : > { %v7661_v11 = vadd.f32 %v7637_v7, %v7517_v6  ;;  %v7646_v49 = vrot.slane %v7638_v9, %v10436_v51 }
 0x555   : > { %v7510_v13 = vcombine.low %v7502_v8, %v7509_v48  ;;  %v7653_v14 = vrot.slane %v7639_v10, %v10436_v51 }
 0x556   : > { %7665 = vst [vmem:[%s10405_s14 + $0x10] sm:$0xff] %v7661_v11 }
 0x557   : > { %v7518_v50 = vmul.f32 %v7510_v13, %v7374_v12  ;;  %v7654_v15 = vcombine.low %v7646_v49, %v7653_v14 }
 0x559   : > { %v7662_v54 = vadd.f32 %v7654_v15, %v7518_v50 }
 0x55b   : > { %7666 = vst [vmem:[%s10405_s14 + $0x18] sm:$0xff] %v7662_v54 }
 0x55c PF: > { %s20_s25 = sadd.s32 1, %s10166_s25   ;;  %s11188_s21 = sld [smem:[#allocation10_spill]] }
 0x55d   : > { %p17_p4 = scmp.ge.s32.totalorder %s20_s25, 10   ;;  %s11189_s17 = sld [smem:[#allocation16_spill]] }
 0x55e   : > { %s11190_s23 = sld [smem:[#allocation11_spill]]  ;;  %s11196_s15 = smov %s10130_s16 }
 0x55f   : > { %s11191_s20 = sld [smem:[#allocation17_spill]]  ;;  %s11198_s18 = smov %s10142_s19 }
 0x560   : > { %s11192_s24 = sld [smem:[#allocation12_spill]] }
 0x561   : > { %s11193_s22 = sld [smem:[#allocation13_spill]] }
 0x562   : > { %s11194_s4 = sld [smem:[#allocation14_spill]]  ;;  %s11197_s16 = smov %s11188_s21 }
 0x563   : > { %s11195_s30 = sld [smem:[#allocation15_spill]] }
 0x564   : > { %s11199_s19 = smov %s11190_s23 }
 0x565   :  { %19 = sbr.rel (!%p17_p4) target bundleno = 13 (0xd), region = 111 }
 0x566   : > { %s11200_s21 = smov %s11192_s24 }
 0x568   : > { %s11201_s23 = smov %s11194_s4 }
 0x569   : > { %s11202_s24 = smov %s11195_s30 }
 0x56a   :  { %7689 = vsyncpa [#allocation4], 1 }
 0x56b   :  { %7691 = vsyncpa [#allocation4 + $0x1], 1 }
 0x56c   :  { %7692 = vsyncpa [#allocation6], 1 }
 0x56d   :  { %7694 = vsyncpa [#allocation6 + $0x1], 1 }

// kernel: chess_dqn_forward.2
= control target key start
LH: loop header
LB: loop body
LE: loop exit
PB: predicated region body
PF: predicated region fallthrough
CT: control target
= control target key end

     0   :  { %10 = vsyncpa [#allocation5], 0  ;;  %s6256_s0 = inlined_call_operand.vmem [shape: f32[2,8,8,24], index: 0, kind: input, shape index: {}]   ;;  %s6257_s1 = inlined_call_operand.hbm [shape: f32[9,24,128], index: 1, kind: input, shape index: {}]   ;;  %s6258_s2 = inlined_call_operand.hbm [shape: f32[1,128], index: 2, kind: input, shape index: {}]   ;;  %s6259_s3 = inlined_call_operand.vmem [shape: f32[1152,64], index: 3, kind: input, shape index: {}]   ;;  %s6260_s4 = inlined_call_operand.hbm [shape: f32[1,64], index: 4, kind: input, shape index: {}]   ;;  %s6261_s5 = inlined_call_operand.vmem [shape: bf16[2,8,8,64], index: 5, kind: output, shape index: {}]  }
   0x1   :  { %11 = vsyncpa [#allocation7], 0  ;;  %s4399_s18 = smov [#allocation6]   ;;  %s4400_s20 = smov [#allocation4]  }
   0x2   :  { %s32_s19 = sshll.u32 %s4399_s18, 4  ;;  %s19_s21 = sshll.u32 %s4400_s20, 4  ;;  %s33_s19 = int_to_ptr.vmem [resolvable:$true] %s32_s19  ;;  %s20_s21 = int_to_ptr.vmem [resolvable:$true] %s19_s21 }
   0x3   :  { %s4343_s22 = scalar_lea.vmem %s33_s19, 16  ;;  %s4347_s23 = scalar_lea.vmem %s33_s19, 32 }
   0x4   :  { %p4344_p0 = scmp.ne.s32.totalorder %s33_s19, %s4343_s22  ;;  %p4348_p1 = scmp.lt.s32.totalorder %s33_s19, %s33_s19 }
   0x5   :  { %p4349_p2 = scmp.lt.s32.totalorder %s4347_s23, %s4343_s22 }
   0x7   :  { %p4350_p3 = por %p4349_p2, %p4348_p1 }
   0x9   :  { %p4351_p4 = pnand %p4350_p3, %p4344_p0 }
   0xb   :  { %4354 = shalt.err (!%p4351_p4)
}
   0xc   :  { %35 = dma.hbm_to_vmem [thread:$0]  %s6258_s2, 16, %s33_s19, [#allocation7]  }
   0xd   :  { %s4363_s26 = scalar_lea.vmem %s20_s21, 3456  ;;  %p4368_p6 = scmp.lt.s32.totalorder %s20_s21, %s20_s21 }
   0xe   :  { %p4364_p5 = scmp.ne.s32.totalorder %s20_s21, %s4363_s26  ;;  %p4369_p7 = scmp.lt.s32.totalorder %s4363_s26, %s4363_s26 }
  0x10   :  { %p4370_p8 = por %p4369_p7, %p4368_p6 }
  0x12   :  { %p4371_p9 = pnand %p4370_p8, %p4364_p5 }
  0x14   :  { %4374 = shalt.err (!%p4371_p9)
}
  0x15   :  { %s4401_s27 = smov 128   ;;  %s4402_s28 = smov 8  }
  0x16   :  { %25 = dma.hbm_to_vmem [thread:$0]  %s6257_s1, 3456, %s20_s21, [#allocation5], %s4401_s27, %s4401_s27, %s4402_s28  }
  0x17   :  { %s4403_s6 = smov [#allocation8]  }
  0x18   :  { %s44_s7 = sshll.u32 %s4403_s6, 4  ;;  %s45_s7 = int_to_ptr.vmem [resolvable:$true] %s44_s7 }
  0x19   :  { %s4383_s8 = scalar_lea.vmem %s45_s7, 16  ;;  %s4387_s9 = scalar_lea.vmem %s45_s7, 32 }
  0x1a   :  { %p4384_p10 = scmp.ne.s32.totalorder %s45_s7, %s4383_s8  ;;  %p4388_p11 = scmp.lt.s32.totalorder %s45_s7, %s45_s7 }
  0x1b   :  { %p4389_p12 = scmp.lt.s32.totalorder %s4387_s9, %s4383_s8 }
  0x1d   :  { %p4390_p13 = por %p4389_p12, %p4388_p11 }
  0x1f   :  { %p4391_p0 = pnand %p4390_p13, %p4384_p10 }
  0x21   :  { %4394 = shalt.err (!%p4391_p0)
}
  0x22   :  { %47 = dma.hbm_to_vmem [thread:$0]  %s6260_s4, 16, %s45_s7, [#allocation7]  }
  0x23   :  { %4395 = dma.done.wait [#allocation5], 3456  }
  0x24   :  { %4396 = vsyncadd [#allocation5], 4294963840 }
  0x25   :  { %4397 = dma.done.wait [#allocation7], 32  }
  0x26   :  { %4398 = vsyncadd [#allocation7], 4294967264  ;;  %vm57_vm0 = vcmask 195584   ;;  %vm59_vm1 = vcmask 189440   ;;  %v4404_v0 = vmov 0.0   ;;  %v170_v1 = vld [vmem:[#allocation4 + $0x28] sm:$0xff] }
  0x27   :  { %58 = vst.msk [vmem:[#allocation2] sm:$0xff] %vm57_vm0, %v4404_v0  ;;  %61 = vst.msk [vmem:[#allocation2 + $0x10] sm:$0xff] %vm57_vm0, %v4404_v0  ;;  %v150_v2 = vld [vmem:[#allocation4 + $0x10] sm:$0xff]  ;;  %v169_v3 = vld [vmem:[#allocation4 + $0x20] sm:$0xff]  ;;  %4002 = vmatprep.subr.mxu0 %v170_v1  ;;  %vm3310_vm2 = vcmask 519168  }
  0x28   :  { %60 = vst.msk [vmem:[#allocation2 + $0x8] sm:$0x3] %vm59_vm1, %v4404_v0  ;;  %62 = vst.msk [vmem:[#allocation2 + $0x18] sm:$0x3] %vm59_vm1, %v4404_v0  ;;  %4032 = vmatprep.subr.mxu1 %v150_v2  ;;  %v149_v4 = vld [vmem:[#allocation4 + $0x8] sm:$0xff]  ;;  %4003 = vmatpush3.msra.mxu0 %v170_v1  ;;  %v168_v5 = vld [vmem:[#allocation4 + $0x18] sm:$0xff] }
  0x29   :  { %63 = vst.msk [vmem:[#allocation2 + $0x20] sm:$0xff] %vm57_vm0, %v4404_v0  ;;  %65 = vst.msk [vmem:[#allocation2 + $0x30] sm:$0xff] %vm57_vm0, %v4404_v0  ;;  %4033 = vmatpush3.msra.mxu1 %v150_v2  ;;  %v148_v6 = vld [vmem:[#allocation4] sm:$0xff]  ;;  %4004 = vmatprep.subr.mxu0 %v169_v3  ;;  %v100_v9 = vld [vmem:[%s6256_s0 + $0x8] sm:$0xff] }
  0x2a   :  { %64 = vst.msk [vmem:[#allocation2 + $0x28] sm:$0x3] %vm59_vm1, %v4404_v0  ;;  %66 = vst.msk [vmem:[#allocation2 + $0x38] sm:$0x3] %vm59_vm1, %v4404_v0  ;;  %4034 = vmatprep.subr.mxu1 %v149_v4  ;;  %v99_v8 = vld [vmem:[%s6256_s0] sm:$0xff]  ;;  %v101_v10 = vld [vmem:[%s6256_s0 + $0x10] sm:$0xff]  ;;  %4005 = vmatpush3.msra.mxu0 %v169_v3 }
  0x2b   :  { %67 = vst.msk [vmem:[#allocation2 + $0x40] sm:$0xff] %vm57_vm0, %v4404_v0  ;;  %69 = vst.msk [vmem:[#allocation2 + $0x50] sm:$0xff] %vm57_vm0, %v4404_v0  ;;  %4035 = vmatpush3.msra.mxu1 %v149_v4  ;;  %v102_v12 = vld [vmem:[%s6256_s0 + $0x18] sm:$0xff]  ;;  %v103_v13 = vld [vmem:[%s6256_s0 + $0x20] sm:$0xff]  ;;  %4006 = vmatprep.subr.mxu0 %v168_v5 }
  0x2c   :  { %68 = vst.msk [vmem:[#allocation2 + $0x48] sm:$0x3] %vm59_vm1, %v4404_v0  ;;  %70 = vst.msk [vmem:[#allocation2 + $0x58] sm:$0x3] %vm59_vm1, %v4404_v0  ;;  %4036 = vmatprep.subr.mxu1 %v148_v6  ;;  %v576_v14 = vld [vmem:[#allocation4 + $0x40] sm:$0xff]  ;;  %v104_v15 = vld [vmem:[%s6256_s0 + $0x28] sm:$0xff]  ;;  %4007 = vmatpush3.msra.mxu0 %v168_v5 }
  0x2d   :  { %71 = vst.msk [vmem:[#allocation2 + $0x60] sm:$0xff] %vm57_vm0, %v4404_v0  ;;  %73 = vst.msk [vmem:[#allocation2 + $0x70] sm:$0xff] %vm57_vm0, %v4404_v0  ;;  %v105_v16 = vld [vmem:[%s6256_s0 + $0x30] sm:$0xff]  ;;  %v107_v17 = vld [vmem:[%s6256_s0 + $0x40] sm:$0xff]  ;;  %4037 = vmatpush3.msra.mxu1 %v148_v6  ;;  %4062 = vmatprep.subr.mxu0 %v576_v14 }
  0x2e   :  { %72 = vst.msk [vmem:[#allocation2 + $0x68] sm:$0x3] %vm59_vm1, %v4404_v0  ;;  %74 = vst.msk [vmem:[#allocation2 + $0x78] sm:$0x3] %vm59_vm1, %v4404_v0  ;;  %v132_v11 = vld [vmem:[#allocation2] sm:$0xff]  ;;  %v108_v18 = vld [vmem:[%s6256_s0 + $0x48] sm:$0xff] }
  0x2f   :  { %75 = vst.msk [vmem:[#allocation2 + $0x80] sm:$0xff] %vm57_vm0, %v4404_v0  ;;  %77 = vst.msk [vmem:[#allocation2 + $0x90] sm:$0xff] %vm57_vm0, %v4404_v0  ;;  %v151_v7 = vld [vmem:[#allocation2 + $0x1] sm:$0xff]  ;;  %4038 = vmatprep.mubr.msk.f32.mxu1 %vm57_vm0, %v132_v11  ;;  %v109_v19 = vld [vmem:[%s6256_s0 + $0x50] sm:$0xff] }
  0x30   :  { %76 = vst.msk [vmem:[#allocation2 + $0x88] sm:$0x3] %vm59_vm1, %v4404_v0  ;;  %78 = vst.msk [vmem:[#allocation2 + $0x98] sm:$0x3] %vm59_vm1, %v4404_v0  ;;  %4008 = vmatprep.mubr.msk.f32.mxu0 %vm57_vm0, %v151_v7  ;;  %v110_v20 = vld [vmem:[%s6256_s0 + $0x58] sm:$0xff]  ;;  %v111_v21 = vld [vmem:[%s6256_s0 + $0x60] sm:$0xff] }
  0x31   :  { %79 = vst.msk [vmem:[#allocation2 + $0xa0] sm:$0xff] %vm57_vm0, %v4404_v0  ;;  %81 = vst.msk [vmem:[#allocation2 + $0xb0] sm:$0xff] %vm57_vm0, %v4404_v0  ;;  %v112_v22 = vld [vmem:[%s6256_s0 + $0x68] sm:$0xff]  ;;  %v113_v23 = vld [vmem:[%s6256_s0 + $0x70] sm:$0xff] }
  0x32   :  { %80 = vst.msk [vmem:[#allocation2 + $0xa8] sm:$0x3] %vm59_vm1, %v4404_v0  ;;  %82 = vst.msk [vmem:[#allocation2 + $0xb8] sm:$0x3] %vm59_vm1, %v4404_v0  ;;  %v805_v24 = vld [vmem:[#allocation4 + $0x58] sm:$0xff]  ;;  %v574_v34 = vld [vmem:[#allocation4 + $0x30] sm:$0xff] }
  0x33   :  { %83 = vst.msk [vmem:[#allocation2 + $0xc0] sm:$0xff] %vm57_vm0, %v4404_v0  ;;  %85 = vst.msk [vmem:[#allocation2 + $0xd0] sm:$0xff] %vm57_vm0, %v4404_v0  ;;  %v575_v25 = vld [vmem:[#allocation4 + $0x38] sm:$0xff]  ;;  %4092 = vmatprep.subr.mxu1 %v805_v24  ;;  %v804_v35 = vld [vmem:[#allocation4 + $0x50] sm:$0xff] }
  0x34   :  { %84 = vst.msk [vmem:[#allocation2 + $0xc8] sm:$0x3] %vm59_vm1, %v4404_v0  ;;  %86 = vst.msk [vmem:[#allocation2 + $0xd8] sm:$0x3] %vm59_vm1, %v4404_v0  ;;  %v1034_v40 = vld [vmem:[#allocation4 + $0x70] sm:$0xff]  ;;  %v803_v41 = vld [vmem:[#allocation4 + $0x48] sm:$0xff] }
  0x35   :  { %87 = vst.msk [vmem:[#allocation2 + $0xe0] sm:$0xff] %vm57_vm0, %v4404_v0  ;;  %89 = vst.msk [vmem:[#allocation2 + $0xf0] sm:$0xff] %vm57_vm0, %v4404_v0  ;;  %v106_v46 = vld [vmem:[%s6256_s0 + $0x38] sm:$0xff]  ;;  %v1263_v51 = vld [vmem:[#allocation4 + $0x88] sm:$0xff] }
  0x36   :  { %88 = vst.msk [vmem:[#allocation2 + $0xe8] sm:$0x3] %vm59_vm1, %v4404_v0  ;;  %90 = vst.msk [vmem:[#allocation2 + $0xf8] sm:$0x3] %vm59_vm1, %v4404_v0  ;;  %v114_v52 = vld [vmem:[%s6256_s0 + $0x78] sm:$0xff]  ;;  %v557_v63 = vld [vmem:[#allocation2 + $0x2] sm:$0xff] }
  0x37   :  { %91 = vst.msk [vmem:[#allocation2 + $0x100] sm:$0xff] %vm57_vm0, %v4404_v0  ;;  %93 = vst.msk [vmem:[#allocation2 + $0x110] sm:$0xff] %vm57_vm0, %v4404_v0  ;;  %v1033_v3 = vld [vmem:[#allocation4 + $0x68] sm:$0xff]  ;;  %v1032_v6 = vld [vmem:[#allocation4 + $0x60] sm:$0xff] }
  0x38   :  { %92 = vst.msk [vmem:[#allocation2 + $0x108] sm:$0x3] %vm59_vm1, %v4404_v0  ;;  %94 = vst.msk [vmem:[#allocation2 + $0x118] sm:$0x3] %vm59_vm1, %v4404_v0  ;;  %v140_v45 = vld [vmem:[#allocation2 + $0xa0] sm:$0xff]  ;;  %v1261_v11 = vld [vmem:[#allocation4 + $0x78] sm:$0xff] }
  0x39   :  { %95 = vst.msk [vmem:[#allocation2 + $0x120] sm:$0xff] %vm57_vm0, %v4404_v0  ;;  %97 = vst.msk [vmem:[#allocation2 + $0x130] sm:$0xff] %vm57_vm0, %v4404_v0  ;;  %v159_v44 = vld [vmem:[#allocation2 + $0xa1] sm:$0xff] }
  0x3a   :  { %96 = vst.msk [vmem:[#allocation2 + $0x128] sm:$0x3] %vm59_vm1, %v4404_v0  ;;  %98 = vst.msk [vmem:[#allocation2 + $0x138] sm:$0x3] %vm59_vm1, %v4404_v0  ;;  %v1262_v7 = vld [vmem:[#allocation4 + $0x80] sm:$0xff] }
  0x3b   :  { %2200 = vst [vmem:[#allocation3] sm:$0xff] %v4404_v0  ;;  %2201 = vst [vmem:[#allocation3 + $0x8] sm:$0x3] %v4404_v0 }
  0x3c   :  { %2202 = vst [vmem:[#allocation3 + $0x10] sm:$0xff] %v4404_v0  ;;  %2203 = vst [vmem:[#allocation3 + $0x18] sm:$0x3] %v4404_v0 }
  0x3d   :  { %2204 = vst [vmem:[#allocation3 + $0x20] sm:$0xff] %v4404_v0  ;;  %2205 = vst [vmem:[#allocation3 + $0x28] sm:$0x3] %v4404_v0 }
  0x3e   :  { %2206 = vst [vmem:[#allocation3 + $0x30] sm:$0xff] %v4404_v0  ;;  %2207 = vst [vmem:[#allocation3 + $0x38] sm:$0x3] %v4404_v0 }
  0x3f   :  { %2208 = vst [vmem:[#allocation3 + $0x40] sm:$0xff] %v4404_v0  ;;  %2209 = vst [vmem:[#allocation3 + $0x48] sm:$0x3] %v4404_v0 }
  0x40   :  { %2210 = vst [vmem:[#allocation3 + $0x50] sm:$0xff] %v4404_v0  ;;  %2211 = vst [vmem:[#allocation3 + $0x58] sm:$0x3] %v4404_v0 }
  0x41   :  { %2212 = vst [vmem:[#allocation3 + $0x60] sm:$0xff] %v4404_v0  ;;  %2213 = vst [vmem:[#allocation3 + $0x68] sm:$0x3] %v4404_v0 }
  0x42   :  { %2214 = vst [vmem:[#allocation3 + $0x70] sm:$0xff] %v4404_v0  ;;  %2215 = vst [vmem:[#allocation3 + $0x78] sm:$0x3] %v4404_v0 }
  0x43   :  { %2216 = vst [vmem:[#allocation3 + $0x80] sm:$0xff] %v4404_v0  ;;  %2217 = vst [vmem:[#allocation3 + $0x88] sm:$0x3] %v4404_v0 }
  0x44   :  { %2218 = vst [vmem:[#allocation3 + $0x90] sm:$0xff] %v4404_v0  ;;  %2219 = vst [vmem:[#allocation3 + $0x98] sm:$0x3] %v4404_v0 }
  0x45   :  { %2220 = vst [vmem:[#allocation3 + $0xa0] sm:$0xff] %v4404_v0  ;;  %2221 = vst [vmem:[#allocation3 + $0xa8] sm:$0x3] %v4404_v0 }
  0x46   :  { %2222 = vst [vmem:[#allocation3 + $0xb0] sm:$0xff] %v4404_v0  ;;  %2223 = vst [vmem:[#allocation3 + $0xb8] sm:$0x3] %v4404_v0 }
  0x47   :  { %2224 = vst [vmem:[#allocation3 + $0xc0] sm:$0xff] %v4404_v0  ;;  %2225 = vst [vmem:[#allocation3 + $0xc8] sm:$0x3] %v4404_v0 }
  0x48   :  { %2226 = vst [vmem:[#allocation3 + $0xd0] sm:$0xff] %v4404_v0  ;;  %2227 = vst [vmem:[#allocation3 + $0xd8] sm:$0x3] %v4404_v0 }
  0x49   :  { %2228 = vst [vmem:[#allocation3 + $0xe0] sm:$0xff] %v4404_v0  ;;  %2229 = vst [vmem:[#allocation3 + $0xe8] sm:$0x3] %v4404_v0 }
  0x4a   :  { %2230 = vst [vmem:[#allocation3 + $0xf0] sm:$0xff] %v4404_v0  ;;  %2231 = vst [vmem:[#allocation3 + $0xf8] sm:$0x3] %v4404_v0 }
  0x4b   :  { %2232 = vst [vmem:[#allocation3 + $0x100] sm:$0xff] %v4404_v0  ;;  %2233 = vst [vmem:[#allocation3 + $0x108] sm:$0x3] %v4404_v0 }
  0x4c   :  { %2234 = vst [vmem:[#allocation3 + $0x110] sm:$0xff] %v4404_v0  ;;  %2235 = vst [vmem:[#allocation3 + $0x118] sm:$0x3] %v4404_v0 }
  0x4d   :  { %2236 = vst [vmem:[#allocation3 + $0x120] sm:$0xff] %v4404_v0  ;;  %2237 = vst [vmem:[#allocation3 + $0x128] sm:$0x3] %v4404_v0 }
  0x4e   :  { %2238 = vst [vmem:[#allocation3 + $0x130] sm:$0xff] %v4404_v0  ;;  %2239 = vst [vmem:[#allocation3 + $0x138] sm:$0x3] %v4404_v0 }
  0x4f   :  { %116 = vst.msk [vmem:[#allocation2 + $0x11] sm:$0xff] %vm57_vm0, %v99_v8  ;;  %117 = vst.msk [vmem:[#allocation2 + $0x21] sm:$0xff] %vm57_vm0, %v100_v9 }
  0x50   :  { %118 = vst.msk [vmem:[#allocation2 + $0x31] sm:$0xff] %vm57_vm0, %v101_v10  ;;  %119 = vst.msk [vmem:[#allocation2 + $0x41] sm:$0xff] %vm57_vm0, %v102_v12  ;;  %v1493_v10 = vld [vmem:[#allocation4 + $0xa0] sm:$0xff] }
  0x51   :  { %120 = vst.msk [vmem:[#allocation2 + $0x51] sm:$0xff] %vm57_vm0, %v103_v13  ;;  %121 = vst.msk [vmem:[#allocation2 + $0x61] sm:$0xff] %vm57_vm0, %v104_v15  ;;  %v1722_v15 = vld [vmem:[#allocation4 + $0xb8] sm:$0xff] }
  0x52   :  { %122 = vst.msk [vmem:[#allocation2 + $0x71] sm:$0xff] %vm57_vm0, %v105_v16  ;;  %124 = vst.msk [vmem:[#allocation2 + $0xb1] sm:$0xff] %vm57_vm0, %v107_v17 }
  0x53   :  { %125 = vst.msk [vmem:[#allocation2 + $0xc1] sm:$0xff] %vm57_vm0, %v108_v18  ;;  %126 = vst.msk [vmem:[#allocation2 + $0xd1] sm:$0xff] %vm57_vm0, %v109_v19 }
  0x54   :  { %127 = vst.msk [vmem:[#allocation2 + $0xe1] sm:$0xff] %vm57_vm0, %v110_v20  ;;  %128 = vst.msk [vmem:[#allocation2 + $0xf1] sm:$0xff] %vm57_vm0, %v111_v21 }
  0x55   :  { %129 = vst.msk [vmem:[#allocation2 + $0x101] sm:$0xff] %vm57_vm0, %v112_v22  ;;  %130 = vst.msk [vmem:[#allocation2 + $0x111] sm:$0xff] %vm57_vm0, %v113_v23 }
  0x56   :  { %v4622_v26 = vld [vmem:[#allocation2 + $0x11] sm:$0xff]  ;;  %v4626_v28 = vld [vmem:[#allocation2 + $0x21] sm:$0xff]  ;;  %123 = vst.msk [vmem:[#allocation2 + $0x81] sm:$0xff] %vm57_vm0, %v106_v46  ;;  %131 = vst.msk [vmem:[#allocation2 + $0x121] sm:$0xff] %vm57_vm0, %v114_v52 }
  0x57   :  { %v4624_v27 = vld [vmem:[#allocation2 + $0x10] sm:$0xff]  ;;  %4009 = vmatmul.mubr.msk.f32.vlgmr.msra.gmra.mxu0 %vm57_vm0, %v4622_v26  ;;  %v4632_v29 = vld [vmem:[#allocation2 + $0x20] sm:$0xff]  ;;  %v2415_v46 = vld [vmem:[%s6259_s3 + $0x68] sm:$0xff] }
  0x58   :  { %4039 = vmatmul.mubr.msk.f32.vlgmr.msra.gmra.mxu1 %vm57_vm0, %v4624_v27  ;;  %4063 = vmatpush3.msra.mxu0 %v576_v14  ;;  %v4636_v30 = vld [vmem:[#allocation2 + $0x31] sm:$0xff]  ;;  %v4642_v32 = vld [vmem:[#allocation2 + $0x41] sm:$0xff] }
  0x59   :  { %4011 = vmatprep.mubr.msk.f32.mxu0 %vm57_vm0, %v4626_v28  ;;  %v4638_v31 = vld [vmem:[#allocation2 + $0x30] sm:$0xff]  ;;  %4041 = vmatprep.mubr.msk.f32.mxu1 %vm57_vm0, %v4632_v29  ;;  %v4644_v33 = vld [vmem:[#allocation2 + $0x40] sm:$0xff] }
  0x5a   :  { %4064 = vmatprep.subr.mxu0 %v575_v25  ;;  %4093 = vmatpush3.msra.mxu1 %v805_v24  ;;  %v4654_v36 = vld [vmem:[#allocation2 + $0x51] sm:$0xff]  ;;  %v4658_v38 = vld [vmem:[#allocation2 + $0x61] sm:$0xff] }
  0x5b   :  { %4065 = vmatpush3.msra.mxu0 %v575_v25  ;;  %v4656_v37 = vld [vmem:[#allocation2 + $0x50] sm:$0xff]  ;;  %v4660_v39 = vld [vmem:[#allocation2 + $0x60] sm:$0xff]  ;;  %4094 = vmatprep.subr.mxu1 %v804_v35  ;;  %v1492_v24 = vld [vmem:[#allocation4 + $0x98] sm:$0xff] }
  0x5c   :  { %4012 = vmatmul.mubr.msk.f32.gmra.mxu0 %vm57_vm0, %v4636_v30  ;;  %4042 = vmatmul.mubr.msk.f32.gmra.mxu1 %vm57_vm0, %v4638_v31  ;;  %v4670_v42 = vld [vmem:[#allocation2 + $0x71] sm:$0xff]  ;;  %v4688_v49 = vld [vmem:[#allocation2 + $0xc1] sm:$0xff] }
  0x5d   :  { %4014 = vmatprep.mubr.msk.f32.mxu0 %vm57_vm0, %v4642_v32  ;;  %4044 = vmatprep.mubr.msk.f32.mxu1 %vm57_vm0, %v4644_v33  ;;  %v4672_v43 = vld [vmem:[#allocation2 + $0x70] sm:$0xff]  ;;  %v4690_v50 = vld [vmem:[#allocation2 + $0xc0] sm:$0xff] }
  0x5e   :  { %4066 = vmatprep.subr.mxu0 %v574_v34  ;;  %4095 = vmatpush3.msra.mxu1 %v804_v35  ;;  %v4684_v47 = vld [vmem:[#allocation2 + $0xb1] sm:$0xff]  ;;  %v4708_v55 = vld [vmem:[#allocation2 + $0xe1] sm:$0xff] }
  0x5f   :  { %4067 = vmatpush3.msra.mxu0 %v574_v34  ;;  %4096 = vmatprep.subr.mxu1 %v803_v41  ;;  %v4686_v48 = vld [vmem:[#allocation2 + $0xb0] sm:$0xff]  ;;  %v4710_v56 = vld [vmem:[#allocation2 + $0xe0] sm:$0xff]  ;;  %v1720_v34 = vld [vmem:[#allocation4 + $0xa8] sm:$0xff] }
  0x60   :  { %4015 = vmatmul.mubr.msk.f32.gmra.mxu0 %vm57_vm0, %v4654_v36  ;;  %4045 = vmatmul.mubr.msk.f32.gmra.mxu1 %vm57_vm0, %v4656_v37  ;;  %v4704_v53 = vld [vmem:[#allocation2 + $0xd1] sm:$0xff]  ;;  %v4724_v59 = vld [vmem:[#allocation2 + $0x101] sm:$0xff] }
  0x61   :  { %4017 = vmatprep.mubr.msk.f32.mxu0 %vm57_vm0, %v4658_v38  ;;  %4047 = vmatprep.mubr.msk.f32.mxu1 %vm57_vm0, %v4660_v39  ;;  %v4706_v54 = vld [vmem:[#allocation2 + $0xd0] sm:$0xff]  ;;  %v4726_v60 = vld [vmem:[#allocation2 + $0x100] sm:$0xff] }
  0x62   :  { %4122 = vmatprep.subr.mxu0 %v1034_v40  ;;  %4097 = vmatpush3.msra.mxu1 %v803_v41  ;;  %v4720_v57 = vld [vmem:[#allocation2 + $0xf1] sm:$0xff]  ;;  %v4749_v2 = vld [vmem:[#allocation2 + $0x22] sm:$0xff] }
  0x63   :  { %4152 = vmatprep.subr.mxu1 %v1263_v51  ;;  %v4722_v58 = vld [vmem:[#allocation2 + $0xf0] sm:$0xff]  ;;  %v4761_v5 = vld [vmem:[#allocation2 + $0x42] sm:$0xff] }
  0x64   :  { %4018 = vmatmul.mubr.msk.f32.gmra.mxu0 %vm57_vm0, %v4670_v42  ;;  %4048 = vmatmul.mubr.msk.f32.gmra.mxu1 %vm57_vm0, %v4672_v43  ;;  %v4736_v61 = vld [vmem:[#allocation2 + $0x111] sm:$0xff]  ;;  %v4773_v9 = vld [vmem:[#allocation2 + $0x62] sm:$0xff] }
  0x65   :  { %4020 = vmatprep.mubr.msk.f32.mxu0 %vm57_vm0, %v159_v44  ;;  %4050 = vmatprep.mubr.msk.f32.mxu1 %vm57_vm0, %v140_v45  ;;  %v4738_v62 = vld [vmem:[#allocation2 + $0x110] sm:$0xff]  ;;  %v4785_v13 = vld [vmem:[#allocation2 + $0x80] sm:$0xff]  ;;  %v1950_v45 = vld [vmem:[#allocation4 + $0xc8] sm:$0xff] }
  0x66   :  { %v4745_v1 = vld [vmem:[#allocation2 + $0x12] sm:$0xff]  ;;  %v565_v14 = vld [vmem:[#allocation2 + $0xa2] sm:$0xff] }
  0x67   :  { %v4757_v4 = vld [vmem:[#allocation2 + $0x32] sm:$0xff]  ;;  %v4794_v17 = vld [vmem:[#allocation2 + $0xc2] sm:$0xff] }
  0x68   :  { %4021 = vmatmul.mubr.msk.f32.gmra.mxu0 %vm57_vm0, %v4684_v47  ;;  %4051 = vmatmul.mubr.msk.f32.gmra.mxu1 %vm57_vm0, %v4686_v48  ;;  %v4769_v8 = vld [vmem:[#allocation2 + $0x52] sm:$0xff]  ;;  %v4805_v19 = vld [vmem:[#allocation2 + $0xe2] sm:$0xff] }
  0x69   :  { %4023 = vmatprep.mubr.msk.f32.mxu0 %vm57_vm0, %v4688_v49  ;;  %4053 = vmatprep.mubr.msk.f32.mxu1 %vm57_vm0, %v4690_v50  ;;  %v4781_v12 = vld [vmem:[#allocation2 + $0x72] sm:$0xff]  ;;  %v4817_v21 = vld [vmem:[#allocation2 + $0x102] sm:$0xff] }
  0x6a   :  { %v566_v16 = vld [vmem:[#allocation2 + $0xb2] sm:$0xff]  ;;  %v4829_v23 = vld [vmem:[#allocation2 + $0x120] sm:$0xff] }
  0x6b   :  { %v4801_v18 = vld [vmem:[#allocation2 + $0xd2] sm:$0xff]  ;;  %v1022_v35 = vld [vmem:[#allocation2 + $0x81] sm:$0xff] }
  0x6c   :  { %4024 = vmatmul.mubr.msk.f32.gmra.mxu0 %vm57_vm0, %v4704_v53  ;;  %4054 = vmatmul.mubr.msk.f32.gmra.mxu1 %vm57_vm0, %v4706_v54  ;;  %v4813_v20 = vld [vmem:[#allocation2 + $0xf2] sm:$0xff]  ;;  %v1030_v41 = vld [vmem:[#allocation2 + $0x121] sm:$0xff] }
  0x6d   :  { %4026 = vmatprep.mubr.msk.f32.mxu0 %vm57_vm0, %v4708_v55  ;;  %4056 = vmatprep.mubr.msk.f32.mxu1 %vm57_vm0, %v4710_v56  ;;  %v4825_v22 = vld [vmem:[#allocation2 + $0x112] sm:$0xff]  ;;  %v1259_v44 = vld [vmem:[#allocation2 + $0x122] sm:$0xff] }
  0x6e   :  { %v1491_v25 = vld [vmem:[#allocation4 + $0x90] sm:$0xff] }
  0x6f   :  { %v2428_v52 = vld [vmem:[%s6259_s3 + $0xd0] sm:$0xff] }
  0x70   :  { %4027 = vmatmul.mubr.msk.f32.gmra.mxu0 %vm57_vm0, %v4720_v57  ;;  %4057 = vmatmul.mubr.msk.f32.gmra.mxu1 %vm57_vm0, %v4722_v58 }
  0x71   :  { %4029 = vmatprep.mubr.msk.f32.mxu0 %vm57_vm0, %v4724_v59  ;;  %4059 = vmatprep.mubr.msk.f32.mxu1 %vm57_vm0, %v4726_v60 }
  0x74   :  { %4030 = vmatmul.mubr.msk.f32.gmra.mxu0 %vm57_vm0, %v4736_v61  ;;  %4060 = vmatmul.mubr.msk.f32.gmra.mxu1 %vm57_vm0, %v4738_v62 }
  0x75   :  { %4068 = vmatprep.mubr.msk.f32.mxu0 %vm57_vm0, %v557_v63  ;;  %4098 = vmatprep.mubr.msk.f32.mxu1 %vm57_vm0, %v4624_v27  ;;  %v1951_v27 = vld [vmem:[#allocation4 + $0xd0] sm:$0xff]  ;;  %v2462_v63 = vld [vmem:[%s6259_s3 + $0x1e0] sm:$0xff] }
  0x78   :  { %4069 = vmatmul.mubr.msk.f32.vlgmr.msra.gmra.mxu0 %vm57_vm0, %v4745_v1  ;;  %4099 = vmatmul.mubr.msk.f32.vlgmr.msra.gmra.mxu1 %vm57_vm0, %v4632_v29 }
  0x79   :  { %4123 = vmatpush3.msra.mxu0 %v1034_v40  ;;  %4071 = vmatprep.mubr.msk.f32.mxu0 %vm57_vm0, %v4749_v2  ;;  %v4863_v40 = vld [vmem:[#allocation2 + $0x82] sm:$0xff] }
  0x7a   :  { %4101 = vmatprep.mubr.msk.f32.mxu1 %vm57_vm0, %v4638_v31  ;;  %4124 = vmatprep.subr.mxu0 %v1033_v3 }
  0x7b   :  { %4125 = vmatpush3.msra.mxu0 %v1033_v3  ;;  %4153 = vmatpush3.msra.mxu1 %v1263_v51  ;;  %v2465_v51 = vld [vmem:[%s6259_s3 + $0x1f8] sm:$0xff] }
  0x7c   :  { %4072 = vmatmul.mubr.msk.f32.gmra.mxu0 %vm57_vm0, %v4757_v4  ;;  %4102 = vmatmul.mubr.msk.f32.gmra.mxu1 %vm57_vm0, %v4644_v33  ;;  %v2409_v3 = vld [vmem:[%s6259_s3 + $0x38] sm:$0xff] }
  0x7d   :  { %4074 = vmatprep.mubr.msk.f32.mxu0 %vm57_vm0, %v4761_v5  ;;  %4104 = vmatprep.mubr.msk.f32.mxu1 %vm57_vm0, %v4656_v37 }
  0x7e   :  { %4126 = vmatprep.subr.mxu0 %v1032_v6  ;;  %4154 = vmatprep.subr.mxu1 %v1262_v7 }
  0x7f   :  { %4127 = vmatpush3.msra.mxu0 %v1032_v6  ;;  %4155 = vmatpush3.msra.mxu1 %v1262_v7  ;;  %v2445_v6 = vld [vmem:[%s6259_s3 + $0x158] sm:$0xff]  ;;  %v2408_v7 = vld [vmem:[%s6259_s3 + $0x30] sm:$0xff] }
  0x80   :  { %4075 = vmatmul.mubr.msk.f32.gmra.mxu0 %vm57_vm0, %v4769_v8  ;;  %4105 = vmatmul.mubr.msk.f32.gmra.mxu1 %vm57_vm0, %v4660_v39 }
  0x81   :  { %4077 = vmatprep.mubr.msk.f32.mxu0 %vm57_vm0, %v4773_v9  ;;  %4107 = vmatprep.mubr.msk.f32.mxu1 %vm57_vm0, %v4672_v43 }
  0x82   :  { %4182 = vmatprep.subr.mxu0 %v1493_v10  ;;  %4156 = vmatprep.subr.mxu1 %v1261_v11 }
  0x83   :  { %4157 = vmatpush3.msra.mxu1 %v1261_v11  ;;  %v2407_v11 = vld [vmem:[%s6259_s3 + $0x28] sm:$0xff] }
  0x84   :  { %4078 = vmatmul.mubr.msk.f32.gmra.mxu0 %vm57_vm0, %v4781_v12  ;;  %4108 = vmatmul.mubr.msk.f32.gmra.mxu1 %vm57_vm0, %v4785_v13 }
  0x85   :  { %4080 = vmatprep.mubr.msk.f32.mxu0 %vm57_vm0, %v565_v14  ;;  %4110 = vmatprep.mubr.msk.f32.mxu1 %vm57_vm0, %v4686_v48  ;;  %v2414_v48 = vld [vmem:[%s6259_s3 + $0x60] sm:$0xff]  ;;  %v2443_v14 = vld [vmem:[%s6259_s3 + $0x148] sm:$0xff] }
  0x86   :  { %4212 = vmatprep.subr.mxu1 %v1722_v15 }
  0x88   :  { %4081 = vmatmul.mubr.msk.f32.gmra.mxu0 %vm57_vm0, %v566_v16  ;;  %4111 = vmatmul.mubr.msk.f32.gmra.mxu1 %vm57_vm0, %v4690_v50 }
  0x89   :  { %4083 = vmatprep.mubr.msk.f32.mxu0 %vm57_vm0, %v4794_v17  ;;  %4113 = vmatprep.mubr.msk.f32.mxu1 %vm57_vm0, %v4706_v54 }
  0x8c   :  { %4084 = vmatmul.mubr.msk.f32.gmra.mxu0 %vm57_vm0, %v4801_v18  ;;  %4114 = vmatmul.mubr.msk.f32.gmra.mxu1 %vm57_vm0, %v4710_v56 }
  0x8d   :  { %4086 = vmatprep.mubr.msk.f32.mxu0 %vm57_vm0, %v4805_v19  ;;  %4116 = vmatprep.mubr.msk.f32.mxu1 %vm57_vm0, %v4722_v58 }
  0x90   :  { %4087 = vmatmul.mubr.msk.f32.gmra.mxu0 %vm57_vm0, %v4813_v20  ;;  %4117 = vmatmul.mubr.msk.f32.gmra.mxu1 %vm57_vm0, %v4726_v60 }
  0x91   :  { %4089 = vmatprep.mubr.msk.f32.mxu0 %vm57_vm0, %v4817_v21  ;;  %4119 = vmatprep.mubr.msk.f32.mxu1 %vm57_vm0, %v4738_v62 }
  0x94   :  { %4090 = vmatmul.mubr.msk.f32.gmra.mxu0 %vm57_vm0, %v4825_v22  ;;  %4120 = vmatmul.mubr.msk.f32.gmra.mxu1 %vm57_vm0, %v4829_v23 }
  0x95   :  { %4128 = vmatprep.mubr.msk.f32.mxu0 %vm57_vm0, %v4622_v26  ;;  %4158 = vmatprep.mubr.msk.f32.mxu1 %vm57_vm0, %v4745_v1  ;;  %v1721_v26 = vld [vmem:[#allocation4 + $0xb0] sm:$0xff]  ;;  %v2425_v1 = vld [vmem:[%s6259_s3 + $0xb8] sm:$0xff] }
  0x98   :  { %4129 = vmatmul.mubr.msk.f32.vlgmr.msra.gmra.mxu0 %vm57_vm0, %v4626_v28  ;;  %4159 = vmatmul.mubr.msk.f32.vlgmr.msra.gmra.mxu1 %vm57_vm0, %v4749_v2 }
  0x99   :  { %4183 = vmatpush3.msra.mxu0 %v1493_v10  ;;  %4131 = vmatprep.mubr.msk.f32.mxu0 %vm57_vm0, %v4636_v30  ;;  %v2444_v10 = vld [vmem:[%s6259_s3 + $0x150] sm:$0xff] }
  0x9a   :  { %4161 = vmatprep.mubr.msk.f32.mxu1 %vm57_vm0, %v4757_v4  ;;  %4184 = vmatprep.subr.mxu0 %v1492_v24 }
  0x9b   :  { %4185 = vmatpush3.msra.mxu0 %v1492_v24  ;;  %4213 = vmatpush3.msra.mxu1 %v1722_v15  ;;  %v2406_v15 = vld [vmem:[%s6259_s3 + $0x20] sm:$0xff]  ;;  %v2420_v24 = vld [vmem:[%s6259_s3 + $0x90] sm:$0xff] }
  0x9c   :  { %4132 = vmatmul.mubr.msk.f32.gmra.mxu0 %vm57_vm0, %v4642_v32  ;;  %4162 = vmatmul.mubr.msk.f32.gmra.mxu1 %vm57_vm0, %v4761_v5 }
  0x9d   :  { %4134 = vmatprep.mubr.msk.f32.mxu0 %vm57_vm0, %v4654_v36  ;;  %4164 = vmatprep.mubr.msk.f32.mxu1 %vm57_vm0, %v4769_v8 }
  0x9e   :  { %4186 = vmatprep.subr.mxu0 %v1491_v25  ;;  %4214 = vmatprep.subr.mxu1 %v1721_v26 }
  0x9f   :  { %4187 = vmatpush3.msra.mxu0 %v1491_v25  ;;  %4215 = vmatpush3.msra.mxu1 %v1721_v26 }
  0xa0   :  { %4135 = vmatmul.mubr.msk.f32.gmra.mxu0 %vm57_vm0, %v4658_v38  ;;  %4165 = vmatmul.mubr.msk.f32.gmra.mxu1 %vm57_vm0, %v4773_v9 }
  0xa1   :  { %4137 = vmatprep.mubr.msk.f32.mxu0 %vm57_vm0, %v4670_v42  ;;  %4167 = vmatprep.mubr.msk.f32.mxu1 %vm57_vm0, %v4781_v12 }
  0xa2   :  { %4242 = vmatprep.subr.mxu0 %v1951_v27  ;;  %4216 = vmatprep.subr.mxu1 %v1720_v34 }
  0xa3   :  { %4217 = vmatpush3.msra.mxu1 %v1720_v34  ;;  %v2404_v34 = vld [vmem:[%s6259_s3 + $0x10] sm:$0xff] }
  0xa4   :  { %4138 = vmatmul.mubr.msk.f32.gmra.mxu0 %vm57_vm0, %v1022_v35  ;;  %4168 = vmatmul.mubr.msk.f32.gmra.mxu1 %vm57_vm0, %v4863_v40 }
  0xa5   :  { %4140 = vmatprep.mubr.msk.f32.mxu0 %vm57_vm0, %v4684_v47  ;;  %4170 = vmatprep.mubr.msk.f32.mxu1 %vm57_vm0, %v566_v16  ;;  %v2430_v47 = vld [vmem:[%s6259_s3 + $0xe0] sm:$0xff] }
  0xa6   :  { %v2458_v16 = vld [vmem:[%s6259_s3 + $0x1c0] sm:$0xff] }
  0xa8   :  { %4141 = vmatmul.mubr.msk.f32.gmra.mxu0 %vm57_vm0, %v4688_v49  ;;  %4171 = vmatmul.mubr.msk.f32.gmra.mxu1 %vm57_vm0, %v4794_v17 }
  0xa9   :  { %4143 = vmatprep.mubr.msk.f32.mxu0 %vm57_vm0, %v4704_v53  ;;  %4173 = vmatprep.mubr.msk.f32.mxu1 %vm57_vm0, %v4801_v18 }
  0xac   :  { %4144 = vmatmul.mubr.msk.f32.gmra.mxu0 %vm57_vm0, %v4708_v55  ;;  %4174 = vmatmul.mubr.msk.f32.gmra.mxu1 %vm57_vm0, %v4805_v19 }
  0xad   :  { %4146 = vmatprep.mubr.msk.f32.mxu0 %vm57_vm0, %v4720_v57  ;;  %4176 = vmatprep.mubr.msk.f32.mxu1 %vm57_vm0, %v4813_v20 }
  0xb0   :  { %4147 = vmatmul.mubr.msk.f32.gmra.mxu0 %vm57_vm0, %v4724_v59  ;;  %4177 = vmatmul.mubr.msk.f32.gmra.mxu1 %vm57_vm0, %v4817_v21 }
  0xb1   :  { %4149 = vmatprep.mubr.msk.f32.mxu0 %vm57_vm0, %v4736_v61  ;;  %4179 = vmatprep.mubr.msk.f32.mxu1 %vm57_vm0, %v4825_v22 }
  0xb4   :  { %4150 = vmatmul.mubr.msk.f32.gmra.mxu0 %vm57_vm0, %v1030_v41  ;;  %4180 = vmatmul.mubr.msk.f32.gmra.mxu1 %vm57_vm0, %v1259_v44 }
  0xb5   :  { %4188 = vmatprep.mubr.msk.f32.mxu0 %vm57_vm0, %v4632_v29  ;;  %4218 = vmatprep.mubr.msk.f32.mxu1 %vm57_vm0, %v4626_v28  ;;  %v1949_v29 = vld [vmem:[#allocation4 + $0xc0] sm:$0xff]  ;;  %v1481_v28 = vld [vmem:[#allocation2 + $0x90] sm:$0xff] }
  0xb8   :  { %4189 = vmatmul.mubr.msk.f32.vlgmr.msra.gmra.mxu0 %vm57_vm0, %v4638_v31  ;;  %4219 = vmatmul.mubr.msk.f32.vlgmr.msra.gmra.mxu1 %vm57_vm0, %v4636_v30  ;;  %v1710_v30 = vld [vmem:[#allocation2 + $0x91] sm:$0xff] }
  0xb9   :  { %4243 = vmatpush3.msra.mxu0 %v1951_v27  ;;  %4191 = vmatprep.mubr.msk.f32.mxu0 %vm57_vm0, %v4644_v33  ;;  %v1489_v31 = vld [vmem:[#allocation2 + $0x130] sm:$0xff]  ;;  %v2441_v27 = vld [vmem:[%s6259_s3 + $0x138] sm:$0xff] }
  0xba   :  { %4221 = vmatprep.mubr.msk.f32.mxu1 %vm57_vm0, %v4642_v32  ;;  %4244 = vmatprep.subr.mxu0 %v1950_v45  ;;  %v1718_v32 = vld [vmem:[#allocation2 + $0x131] sm:$0xff] }
  0xbb   :  { %4245 = vmatpush3.msra.mxu0 %v1950_v45  ;;  %v1939_v33 = vld [vmem:[#allocation2 + $0x92] sm:$0xff] }
  0xbc   :  { %4192 = vmatmul.mubr.msk.f32.gmra.mxu0 %vm57_vm0, %v4656_v37  ;;  %4222 = vmatmul.mubr.msk.f32.gmra.mxu1 %vm57_vm0, %v4654_v36  ;;  %v1947_v36 = vld [vmem:[#allocation2 + $0x132] sm:$0xff] }
  0xbd   :  { %4194 = vmatprep.mubr.msk.f32.mxu0 %vm57_vm0, %v4660_v39  ;;  %4224 = vmatprep.mubr.msk.f32.mxu1 %vm57_vm0, %v4658_v38  ;;  %v2433_v37 = vld [vmem:[%s6259_s3 + $0xf8] sm:$0xff]  ;;  %v2432_v39 = vld [vmem:[%s6259_s3 + $0xf0] sm:$0xff] }
  0xbe   :  { %4246 = vmatprep.subr.mxu0 %v1949_v29  ;;  %3650 = vmatprep.subr.mxu1 %v2433_v37  ;;  %v2417_v38 = vld [vmem:[%s6259_s3 + $0x78] sm:$0xff]  ;;  %v2440_v45 = vld [vmem:[%s6259_s3 + $0x130] sm:$0xff]  ;;  %v2402_v37 = vld [vmem:[%s6259_s3] sm:$0xff] }
  0xbf   :  { %4247 = vmatpush3.msra.mxu0 %v1949_v29  ;;  %3651 = vmatpush3.msra.mxu1 %v2417_v38  ;;  %v2403_v29 = vld [vmem:[%s6259_s3 + $0x8] sm:$0xff] }
  0xc0   :  { %4195 = vmatmul.mubr.msk.f32.gmra.mxu0 %vm57_vm0, %v4672_v43  ;;  %4225 = vmatmul.mubr.msk.f32.gmra.mxu1 %vm57_vm0, %v4670_v42  ;;  %v2416_v42 = vld [vmem:[%s6259_s3 + $0x70] sm:$0xff]  ;;  %v2431_v43 = vld [vmem:[%s6259_s3 + $0xe8] sm:$0xff] }
  0xc1   :  { %4197 = vmatprep.mubr.msk.f32.mxu0 %vm57_vm0, %v4785_v13  ;;  %4227 = vmatprep.mubr.msk.f32.mxu1 %vm57_vm0, %v1022_v35  ;;  %v2422_v13 = vld [vmem:[%s6259_s3 + $0xa0] sm:$0xff]  ;;  %v2456_v35 = vld [vmem:[%s6259_s3 + $0x1b0] sm:$0xff] }
  0xc2   :  { %3652 = vmatprep.subr.mxu1 %v2432_v39  ;;  %3730 = vmatprep.subr.mxu0 %v2465_v51  ;;  %v2273_v38 = vld [vmem:[#allocation3 + $0x1] sm:$0xff]  ;;  %v2437_v51 = vld [vmem:[%s6259_s3 + $0x118] sm:$0xff] }
  0xc3   :  { %3653 = vmatpush3.msra.mxu1 %v2416_v42  ;;  %v2454_v39 = vld [vmem:[%s6259_s3 + $0x1a0] sm:$0xff] }
  0xc4   :  { %4198 = vmatmul.mubr.msk.f32.gmra.mxu0 %vm57_vm0, %v1481_v28  ;;  %4228 = vmatmul.mubr.msk.f32.gmra.mxu1 %vm57_vm0, %v1710_v30  ;;  %v2455_v30 = vld [vmem:[%s6259_s3 + $0x1a8] sm:$0xff] }
  0xc5   :  { %4200 = vmatprep.mubr.msk.f32.mxu0 %vm57_vm0, %v4690_v50  ;;  %4230 = vmatprep.mubr.msk.f32.mxu1 %vm57_vm0, %v4688_v49  ;;  %v2429_v49 = vld [vmem:[%s6259_s3 + $0xd8] sm:$0xff] }
  0xc6   :  { %3654 = vmatprep.subr.mxu1 %v2431_v43  ;;  %v2413_v50 = vld [vmem:[%s6259_s3 + $0x58] sm:$0xff] }
  0xc7   :  { %3655 = vmatpush3.msra.mxu1 %v2415_v46  ;;  %v2438_v46 = vld [vmem:[%s6259_s3 + $0x120] sm:$0xff] }
  0xc8   :  { %4201 = vmatmul.mubr.msk.f32.gmra.mxu0 %vm57_vm0, %v4706_v54  ;;  %4231 = vmatmul.mubr.msk.f32.gmra.mxu1 %vm57_vm0, %v4704_v53  ;;  %v2449_v53 = vld [vmem:[%s6259_s3 + $0x178] sm:$0xff]  ;;  %v2412_v54 = vld [vmem:[%s6259_s3 + $0x50] sm:$0xff] }
  0xc9   :  { %4203 = vmatprep.mubr.msk.f32.mxu0 %vm57_vm0, %v4710_v56  ;;  %4233 = vmatprep.mubr.msk.f32.mxu1 %vm57_vm0, %v4708_v55  ;;  %v2464_v55 = vld [vmem:[%s6259_s3 + $0x1f0] sm:$0xff]  ;;  %v2427_v56 = vld [vmem:[%s6259_s3 + $0xc8] sm:$0xff] }
  0xca   :  { %3656 = vmatprep.subr.mxu1 %v2430_v47 }
  0xcb   :  { %3657 = vmatpush3.msra.mxu1 %v2414_v48  ;;  %v2453_v48 = vld [vmem:[%s6259_s3 + $0x198] sm:$0xff] }
  0xcc   :  { %4204 = vmatmul.mubr.msk.f32.gmra.mxu0 %vm57_vm0, %v4722_v58  ;;  %4234 = vmatmul.mubr.msk.f32.gmra.mxu1 %vm57_vm0, %v4720_v57  ;;  %v2448_v57 = vld [vmem:[%s6259_s3 + $0x170] sm:$0xff]  ;;  %v2411_v58 = vld [vmem:[%s6259_s3 + $0x48] sm:$0xff] }
  0xcd   :  { %4206 = vmatprep.mubr.msk.f32.mxu0 %vm57_vm0, %v4726_v60  ;;  %4236 = vmatprep.mubr.msk.f32.mxu1 %vm57_vm0, %v4724_v59  ;;  %v2463_v59 = vld [vmem:[%s6259_s3 + $0x1e8] sm:$0xff]  ;;  %v2426_v60 = vld [vmem:[%s6259_s3 + $0xc0] sm:$0xff] }
  0xce   :  { %3658 = vmatprep.subr.mxu1 %v2429_v49 }
  0xcf   :  { %3659 = vmatpush3.msra.mxu1 %v2413_v50 }
  0xd0   :  { %4207 = vmatmul.mubr.msk.f32.gmra.mxu0 %vm57_vm0, %v4738_v62  ;;  %4237 = vmatmul.mubr.msk.f32.gmra.mxu1 %vm57_vm0, %v4736_v61  ;;  %v2447_v61 = vld [vmem:[%s6259_s3 + $0x168] sm:$0xff]  ;;  %v2410_v62 = vld [vmem:[%s6259_s3 + $0x40] sm:$0xff] }
  0xd1   :  { %4209 = vmatprep.mubr.msk.f32.mxu0 %vm57_vm0, %v4829_v23  ;;  %4239 = vmatprep.mubr.msk.f32.mxu1 %vm57_vm0, %v1030_v41  ;;  %v2457_v23 = vld [vmem:[%s6259_s3 + $0x1b8] sm:$0xff] }
  0xd2   :  { %3660 = vmatprep.subr.mxu1 %v2428_v52  ;;  %v2452_v52 = vld [vmem:[%s6259_s3 + $0x190] sm:$0xff] }
  0xd3   :  { %3661 = vmatpush3.msra.mxu1 %v2412_v54 }
  0xd4   :  { %4210 = vmatmul.mubr.msk.f32.gmra.mxu0 %vm57_vm0, %v1489_v31  ;;  %4240 = vmatmul.mubr.msk.f32.gmra.mxu1 %vm57_vm0, %v1718_v32  ;;  %v2418_v31 = vld [vmem:[%s6259_s3 + $0x80] sm:$0xff] }
  0xd5   :  { %4248 = vmatprep.mubr.msk.f32.mxu0 %vm57_vm0, %v4749_v2  ;;  %3662 = vmatprep.subr.mxu1 %v2427_v56  ;;  %v2446_v2 = vld [vmem:[%s6259_s3 + $0x160] sm:$0xff]  ;;  %v2451_v56 = vld [vmem:[%s6259_s3 + $0x188] sm:$0xff] }
  0xd6   :  { %3663 = vmatpush3.msra.mxu1 %v2411_v58  ;;  %2617 = vmatprep.mubr.f32.mxu1 %v2273_v38  ;;  %v2492_v38 = vld [vmem:[%s6259_s3 + $0x2d0] sm:$0xff] }
  0xd7   :  { %3664 = vmatprep.subr.mxu1 %v2426_v60  ;;  %v2450_v60 = vld [vmem:[%s6259_s3 + $0x180] sm:$0xff] }
  0xd8   :  { %4249 = vmatmul.mubr.msk.f32.vlgmr.msra.gmra.mxu0 %vm57_vm0, %v4757_v4  ;;  %3665 = vmatpush3.msra.mxu1 %v2410_v62  ;;  %v2461_v4 = vld [vmem:[%s6259_s3 + $0x1d8] sm:$0xff] }
  0xd9   :  { %4251 = vmatprep.mubr.msk.f32.mxu0 %vm57_vm0, %v4761_v5  ;;  %3731 = vmatpush3.msra.mxu0 %v2449_v53  ;;  %v2424_v5 = vld [vmem:[%s6259_s3 + $0xb0] sm:$0xff] }
  0xda   :  { %3732 = vmatprep.subr.mxu0 %v2464_v55  ;;  %3666 = vmatprep.subr.mxu1 %v2425_v1 }
  0xdb   :  { %3733 = vmatpush3.msra.mxu0 %v2448_v57  ;;  %3667 = vmatpush3.msra.mxu1 %v2409_v3 }
  0xdc   :  { %4252 = vmatmul.mubr.msk.f32.gmra.mxu0 %vm57_vm0, %v4769_v8  ;;  %3734 = vmatprep.subr.mxu0 %v2463_v59  ;;  %v2460_v8 = vld [vmem:[%s6259_s3 + $0x1d0] sm:$0xff]  ;;  %v2435_v59 = vld [vmem:[%s6259_s3 + $0x108] sm:$0xff] }
  0xdd   :  { %4254 = vmatprep.mubr.msk.f32.mxu0 %vm57_vm0, %v4773_v9  ;;  %3735 = vmatpush3.msra.mxu0 %v2447_v61  ;;  %v2423_v9 = vld [vmem:[%s6259_s3 + $0xa8] sm:$0xff] }
  0xde   :  { %3736 = vmatprep.subr.mxu0 %v2462_v63  ;;  %3668 = vmatprep.subr.mxu1 %v2424_v5  ;;  %v2434_v63 = vld [vmem:[%s6259_s3 + $0x100] sm:$0xff] }
  0xdf   :  { %3737 = vmatpush3.msra.mxu0 %v2446_v2  ;;  %3669 = vmatpush3.msra.mxu1 %v2408_v7 }
  0xe0   :  { %4255 = vmatmul.mubr.msk.f32.gmra.mxu0 %vm57_vm0, %v4781_v12  ;;  %3738 = vmatprep.subr.mxu0 %v2461_v4  ;;  %v2459_v12 = vld [vmem:[%s6259_s3 + $0x1c8] sm:$0xff]  ;;  %v2497_v4 = vld [vmem:[%s6259_s3 + $0x2f8] sm:$0xff] }
  0xe1   :  { %4257 = vmatprep.mubr.msk.f32.mxu0 %vm57_vm0, %v4863_v40  ;;  %3739 = vmatpush3.msra.mxu0 %v2445_v6  ;;  %v2419_v40 = vld [vmem:[%s6259_s3 + $0x88] sm:$0xff] }
  0xe2   :  { %3740 = vmatprep.subr.mxu0 %v2460_v8  ;;  %3670 = vmatprep.subr.mxu1 %v2423_v9  ;;  %v2481_v8 = vld [vmem:[%s6259_s3 + $0x278] sm:$0xff] }
  0xe3   :  { %3741 = vmatpush3.msra.mxu0 %v2444_v10  ;;  %3671 = vmatpush3.msra.mxu1 %v2407_v11  ;;  %v2496_v11 = vld [vmem:[%s6259_s3 + $0x2f0] sm:$0xff] }
  0xe4   :  { %4258 = vmatmul.mubr.msk.f32.gmra.mxu0 %vm57_vm0, %v1939_v33  ;;  %3742 = vmatprep.subr.mxu0 %v2459_v12 }
  0xe5   :  { %4260 = vmatprep.mubr.msk.f32.mxu0 %vm57_vm0, %v4794_v17  ;;  %3672 = vmatprep.subr.mxu1 %v2422_v13  ;;  %v2421_v17 = vld [vmem:[%s6259_s3 + $0x98] sm:$0xff] }
  0xe6   :  { %3743 = vmatpush3.msra.mxu0 %v2443_v14  ;;  %3673 = vmatpush3.msra.mxu1 %v2406_v15  ;;  %v2480_v15 = vld [vmem:[%s6259_s3 + $0x270] sm:$0xff] }
  0xe7   :  { %3744 = vmatprep.subr.mxu0 %v2458_v16  ;;  %3674 = vmatprep.subr.mxu1 %v2421_v17 }
  0xe8   :  { %4261 = vmatmul.mubr.msk.f32.gmra.mxu0 %vm57_vm0, %v4801_v18 }
  0xe9   :  { %4263 = vmatprep.mubr.msk.f32.mxu0 %vm57_vm0, %v4805_v19 }
  0xec   :  { %4264 = vmatmul.mubr.msk.f32.gmra.mxu0 %vm57_vm0, %v4813_v20  ;;  %v2442_v20 = vld [vmem:[%s6259_s3 + $0x140] sm:$0xff] }
  0xed   :  { %4266 = vmatprep.mubr.msk.f32.mxu0 %vm57_vm0, %v4817_v21  ;;  %v2405_v21 = vld [vmem:[%s6259_s3 + $0x18] sm:$0xff]  ;;  %3745 = vmatpush3.msra.mxu0 %v2442_v20 }
  0xee   :  { %3675 = vmatpush3.msra.mxu1 %v2405_v21  ;;  %3746 = vmatprep.subr.mxu0 %v2457_v23  ;;  %v2479_v23 = vld [vmem:[%s6259_s3 + $0x268] sm:$0xff] }
  0xef   :  { %3676 = vmatprep.subr.mxu1 %v2420_v24  ;;  %3747 = vmatpush3.msra.mxu0 %v2441_v27 }
  0xf0   :  { %4267 = vmatmul.mubr.msk.f32.gmra.mxu0 %vm57_vm0, %v4825_v22  ;;  %3677 = vmatpush3.msra.mxu1 %v2404_v34  ;;  %v2494_v34 = vld [vmem:[%s6259_s3 + $0x2e0] sm:$0xff] }
  0xf1   :  { %4269 = vmatprep.mubr.msk.f32.mxu0 %vm57_vm0, %v1259_v44  ;;  %3748 = vmatprep.subr.mxu0 %v2456_v35 }
  0xf2   :  { %3678 = vmatprep.subr.mxu1 %v2419_v40  ;;  %3749 = vmatpush3.msra.mxu0 %v2440_v45 }
  0xf3   :  { %3679 = vmatpush3.msra.mxu1 %v2403_v29  ;;  %3750 = vmatprep.subr.mxu0 %v2455_v30  ;;  %v2493_v30 = vld [vmem:[%s6259_s3 + $0x2d8] sm:$0xff] }
  0xf4   :  { %4270 = vmatmul.mubr.msk.f32.gmra.mxu0 %vm57_vm0, %v1947_v36  ;;  %v2439_v36 = vld [vmem:[%s6259_s3 + $0x128] sm:$0xff]  ;;  %3680 = vmatprep.subr.mxu1 %v2418_v31 }
  0xf5   :  { %3751 = vmatpush3.msra.mxu0 %v2439_v36  ;;  %3681 = vmatpush3.msra.mxu1 %v2402_v37  ;;  %v2477_v37 = vld [vmem:[%s6259_s3 + $0x258] sm:$0xff] }
  0xf6   :  { %3752 = vmatprep.subr.mxu0 %v2454_v39  ;;  %2618 = vmatmul.mubr.f32.vlgmr.msra.gmra.mxu1 %v4404_v0  ;;  %v2436_v0 = vld [vmem:[%s6259_s3 + $0x110] sm:$0xff] }
  0xf7   :  { %3753 = vmatpush3.msra.mxu0 %v2438_v46  ;;  %3810 = vmatprep.subr.mxu1 %v2497_v4  ;;  %v2476_v39 = vld [vmem:[%s6259_s3 + $0x250] sm:$0xff]  ;;  %v2475_v46 = vld [vmem:[%s6259_s3 + $0x248] sm:$0xff] }
  0xf8   :  { %3754 = vmatprep.subr.mxu0 %v2453_v48  ;;  %3811 = vmatpush3.msra.mxu1 %v2481_v8  ;;  %v2529_v48 = vld [vmem:[%s6259_s3 + $0x3f8] sm:$0xff] }
  0xf9   :  { %3755 = vmatpush3.msra.mxu0 %v2437_v51  ;;  %3812 = vmatprep.subr.mxu1 %v2496_v11 }
  0xfa   :  { %3756 = vmatprep.subr.mxu0 %v2452_v52  ;;  %3813 = vmatpush3.msra.mxu1 %v2480_v15  ;;  %v2472_v15 = vld [vmem:[%s6259_s3 + $0x230] sm:$0xff] }
  0xfb   :  { %3757 = vmatpush3.msra.mxu0 %v2436_v0 }
  0xfc   :  { %3758 = vmatprep.subr.mxu0 %v2451_v56 }
  0xfd   :  { %3759 = vmatpush3.msra.mxu0 %v2435_v59  ;;  %v2474_v59 = vld [vmem:[%s6259_s3 + $0x240] sm:$0xff] }
  0xfe   :  { %3760 = vmatprep.subr.mxu0 %v2450_v60  ;;  %v2489_v60 = vld [vmem:[%s6259_s3 + $0x2b8] sm:$0xff] }
  0xff   :  { %3761 = vmatpush3.msra.mxu0 %v2434_v63 }
 0x100   :  { %3890 = vmatprep.subr.mxu0 %v2529_v48 }
 0x117   :  { %v4010_v18 = vpop.f32.mrf.mxu0 }
 0x118   :  { %v4040_v19 = vpop.f32.mrf.mxu1 }
 0x119   :  { %v5110_v22 = vadd.f32 %v4040_v19, %v4010_v18  ;;  %v5118_v25 = vpop.f32.mrf.mxu0  ;;  %v2495_v18 = vld [vmem:[%s6259_s3 + $0x2e8] sm:$0xff] }
 0x11a   :  { %v5120_v26 = vpop.f32.mrf.mxu1  ;;  %3814 = vmatprep.subr.mxu1 %v2495_v18  ;;  %v2487_v18 = vld [vmem:[%s6259_s3 + $0x2a8] sm:$0xff] }
 0x11b   :  { %3815 = vmatpush3.msra.mxu1 %v2479_v23 }
 0x11c   :  { %v4013_v41 = vpop.f32.mrf.mxu0  ;;  %v4043_v44 = vpop.f32.mrf.mxu1  ;;  %3816 = vmatprep.subr.mxu1 %v2494_v34 }
 0x11d   :  { %v5140_v28 = vadd.f32 %v4043_v44, %v4013_v41  ;;  %v2478_v44 = vld [vmem:[%s6259_s3 + $0x260] sm:$0xff] }
 0x11e   :  { %v5148_v32 = vpop.f32.mrf.mxu0  ;;  %v5150_v33 = vpop.f32.mrf.mxu1  ;;  %3817 = vmatpush3.msra.mxu1 %v2478_v44  ;;  %v2486_v44 = vld [vmem:[%s6259_s3 + $0x2a0] sm:$0xff] }
 0x11f   :  { %3818 = vmatprep.subr.mxu1 %v2493_v30 }
 0x120   :  { %v4016_v42 = vpop.f32.mrf.mxu0  ;;  %v4046_v43 = vpop.f32.mrf.mxu1  ;;  %3819 = vmatpush3.msra.mxu1 %v2477_v37 }
 0x121   :  { %v5164_v47 = vadd.f32 %v4046_v43, %v4016_v42  ;;  %3820 = vmatprep.subr.mxu1 %v2492_v38 }
 0x122   :  { %v5170_v49 = vpop.f32.mrf.mxu0  ;;  %v5172_v50 = vpop.f32.mrf.mxu1  ;;  %3821 = vmatpush3.msra.mxu1 %v2476_v39  ;;  %v2470_v39 = vld [vmem:[%s6259_s3 + $0x220] sm:$0xff] }
 0x124   :  { %v4019_v53 = vpop.f32.mrf.mxu0  ;;  %v4049_v54 = vpop.f32.mrf.mxu1 }
 0x125   :  { %v5183_v55 = vadd.f32 %v4049_v54, %v4019_v53  ;;  %v2490_v53 = vld [vmem:[%s6259_s3 + $0x2c0] sm:$0xff] }
 0x126   :  { %v5188_v57 = vpop.f32.mrf.mxu0  ;;  %v5190_v58 = vpop.f32.mrf.mxu1 }
 0x128   :  { %v4022_v61 = vpop.f32.mrf.mxu0  ;;  %v4052_v62 = vpop.f32.mrf.mxu1 }
 0x129   :  { %v5201_v1 = vadd.f32 %v4052_v62, %v4022_v61 }
 0x12a   :  { %v5203_v2 = vpop.f32.mrf.mxu0  ;;  %v5205_v3 = vpop.f32.mrf.mxu1 }
 0x12c   :  { %v4025_v5 = vpop.f32.mrf.mxu0  ;;  %v4055_v6 = vpop.f32.mrf.mxu1 }
 0x12d   :  { %v5210_v7 = vadd.f32 %v4055_v6, %v4025_v5  ;;  %v2473_v5 = vld [vmem:[%s6259_s3 + $0x238] sm:$0xff]  ;;  %v2488_v6 = vld [vmem:[%s6259_s3 + $0x2b0] sm:$0xff] }
 0x12e   :  { %v5215_v9 = vpop.f32.mrf.mxu0  ;;  %v5217_v10 = vpop.f32.mrf.mxu1 }
 0x130   :  { %v4028_v12 = vpop.f32.mrf.mxu0  ;;  %v4058_v13 = vpop.f32.mrf.mxu1 }
 0x131   :  { %v5222_v14 = vadd.f32 %v4058_v13, %v4028_v12 }
 0x132   :  { %v5227_v16 = vpop.f32.mrf.mxu0  ;;  %v5229_v17 = vpop.f32.mrf.mxu1 }
 0x134   :  { %v4031_v19 = vpop.f32.mrf.mxu0  ;;  %v4061_v20 = vpop.f32.mrf.mxu1 }
 0x135   :  { %v5234_v21 = vadd.f32 %v4061_v20, %v4031_v19 }
 0x136   :  { %v5239_v24 = vpop.f32.mrf.mxu0  ;;  %v5241_v27 = vpop.f32.mrf.mxu1 }
 0x138   :  { %v4070_v35 = vpop.f32.mrf.mxu0  ;;  %v5246_v40 = vpop.f32.mrf.mxu1 }
 0x139   :  { %v5249_v41 = vadd.f32 %v4070_v35, %v5110_v22  ;;  %v2471_v35 = vld [vmem:[%s6259_s3 + $0x228] sm:$0xff] }
 0x13a   :  { %v5254_v45 = vpop.f32.mrf.mxu0  ;;  %v5256_v29 = vpop.f32.mrf.mxu1 }
 0x13c   :  { %v4073_v31 = vpop.f32.mrf.mxu0  ;;  %v5261_v36 = vpop.f32.mrf.mxu1 }
 0x13d   :  { %v5264_v22 = vadd.f32 %v4073_v31, %v5140_v28  ;;  %v2491_v28 = vld [vmem:[%s6259_s3 + $0x2c8] sm:$0xff] }
 0x13e   :  { %v5275_v42 = vpop.f32.mrf.mxu0  ;;  %v5277_v43 = vpop.f32.mrf.mxu1  ;;  %3822 = vmatprep.subr.mxu1 %v2491_v28  ;;  %v2485_v28 = vld [vmem:[%s6259_s3 + $0x298] sm:$0xff] }
 0x13f   :  { %3823 = vmatpush3.msra.mxu1 %v2475_v46 }
 0x140   :  { %v4076_v51 = vpop.f32.mrf.mxu0  ;;  %v5288_v52 = vpop.f32.mrf.mxu1  ;;  %3824 = vmatprep.subr.mxu1 %v2490_v53 }
 0x141   :  { %v5294_v54 = vadd.f32 %v4076_v51, %v5164_v47  ;;  %3825 = vmatpush3.msra.mxu1 %v2474_v59  ;;  %v2469_v59 = vld [vmem:[%s6259_s3 + $0x218] sm:$0xff] }
 0x142   :  { %v5296_v0 = vpop.f32.mrf.mxu0  ;;  %v5298_v56 = vpop.f32.mrf.mxu1  ;;  %3826 = vmatprep.subr.mxu1 %v2489_v60  ;;  %v2484_v60 = vld [vmem:[%s6259_s3 + $0x290] sm:$0xff] }
 0x143   :  { %3827 = vmatpush3.msra.mxu1 %v2473_v5 }
 0x144   :  { %v4079_v61 = vpop.f32.mrf.mxu0  ;;  %v5306_v62 = vpop.f32.mrf.mxu1  ;;  %3828 = vmatprep.subr.mxu1 %v2488_v6 }
 0x145   :  { %v5309_v47 = vadd.f32 %v4079_v61, %v5183_v55  ;;  %3829 = vmatpush3.msra.mxu1 %v2472_v15  ;;  %v2483_v15 = vld [vmem:[%s6259_s3 + $0x288] sm:$0xff] }
 0x146   :  { %v5311_v63 = vpop.f32.mrf.mxu0  ;;  %v5313_v4 = vpop.f32.mrf.mxu1  ;;  %3830 = vmatprep.subr.mxu1 %v2487_v18 }
 0x147   :  { %3831 = vmatpush3.msra.mxu1 %v2471_v35 }
 0x148   :  { %v4082_v8 = vpop.f32.mrf.mxu0  ;;  %v5321_v11 = vpop.f32.mrf.mxu1  ;;  %3832 = vmatprep.subr.mxu1 %v2486_v44 }
 0x149   :  { %v5324_v55 = vadd.f32 %v4082_v8, %v5201_v1  ;;  %3833 = vmatpush3.msra.mxu1 %v2470_v39  ;;  %v2468_v8 = vld [vmem:[%s6259_s3 + $0x210] sm:$0xff]  ;;  %v2482_v39 = vld [vmem:[%s6259_s3 + $0x280] sm:$0xff] }
 0x14a   :  { %v5326_v12 = vpop.f32.mrf.mxu0  ;;  %v5328_v13 = vpop.f32.mrf.mxu1  ;;  %3834 = vmatprep.subr.mxu1 %v2485_v28 }
 0x14b   :  { %6264 = vst [vmem:[#allocation11_spill] sm:$0xff] %v5328_v13  ;;  %3835 = vmatpush3.msra.mxu1 %v2469_v59 }
 0x14c   :  { %v4085_v19 = vpop.f32.mrf.mxu0  ;;  %v5336_v20 = vpop.f32.mrf.mxu1  ;;  %3836 = vmatprep.subr.mxu1 %v2484_v60 }
 0x14d   :  { %6265 = vst [vmem:[#allocation12_spill] sm:$0xff] %v5336_v20  ;;  %v5339_v1 = vadd.f32 %v4085_v19, %v5210_v7  ;;  %3837 = vmatpush3.msra.mxu1 %v2468_v8  ;;  %v2466_v8 = vld [vmem:[%s6259_s3 + $0x200] sm:$0xff] }
 0x14e   :  { %v5341_v23 = vpop.f32.mrf.mxu0  ;;  %v5343_v34 = vpop.f32.mrf.mxu1  ;;  %3838 = vmatprep.subr.mxu1 %v2483_v15  ;;  %v5423_v15 = vld [vmem:[%s6259_s3 + $0x478] sm:$0xff] }
 0x14f   :  { %6266 = vst [vmem:[#allocation13_spill] sm:$0xff] %v5339_v1  ;;  %6267 = vst [vmem:[#allocation14_spill] sm:$0xff] %v5343_v34 }
 0x150   :  { %v4088_v30 = vpop.f32.mrf.mxu0  ;;  %v5351_v31 = vpop.f32.mrf.mxu1  ;;  %6277 = vst [vmem:[#allocation24_spill] sm:$0xff] %v5423_v15 }
 0x151   :  { %6268 = vst [vmem:[#allocation15_spill] sm:$0xff] %v5351_v31  ;;  %v5354_v7 = vadd.f32 %v4088_v30, %v5222_v14  ;;  %v2467_v30 = vld [vmem:[%s6259_s3 + $0x208] sm:$0xff] }
 0x152   :  { %v5356_v37 = vpop.f32.mrf.mxu0  ;;  %v5358_v38 = vpop.f32.mrf.mxu1  ;;  %3839 = vmatpush3.msra.mxu1 %v2467_v30 }
 0x153   :  { %6269 = vst [vmem:[#allocation16_spill] sm:$0xff] %v5354_v7  ;;  %6270 = vst [vmem:[#allocation17_spill] sm:$0xff] %v5356_v37  ;;  %3840 = vmatprep.subr.mxu1 %v2482_v39 }
 0x154   :  { %6271 = vst [vmem:[#allocation18_spill] sm:$0xff] %v5358_v38  ;;  %v4091_v46 = vpop.f32.mrf.mxu0  ;;  %v5366_v48 = vpop.f32.mrf.mxu1  ;;  %3841 = vmatpush3.msra.mxu1 %v2466_v8 }
 0x155   :  { %6272 = vst [vmem:[#allocation19_spill] sm:$0xff] %v5366_v48  ;;  %v5369_v14 = vadd.f32 %v4091_v46, %v5234_v21  ;;  %4272 = vmatprep.subr.mxu1 %v5423_v15 }
 0x156   :  { %v5371_v51 = vpop.f32.mrf.mxu0  ;;  %v5373_v53 = vpop.f32.mrf.mxu1 }
 0x157   :  { %6273 = vst [vmem:[#allocation20_spill] sm:$0xff] %v5369_v14  ;;  %6274 = vst [vmem:[#allocation21_spill] sm:$0xff] %v5371_v51 }
 0x158   :  { %6275 = vst [vmem:[#allocation22_spill] sm:$0xff] %v5373_v53  ;;  %v5381_v61 = vpop.f32.mrf.mxu0  ;;  %v5383_v5 = vpop.f32.mrf.mxu1 }
 0x15a   :  { %v5385_v21 = vpop.f32.mrf.mxu0  ;;  %v5387_v6 = vpop.f32.mrf.mxu1 }
 0x15c   :  { %v5395_v18 = vpop.f32.mrf.mxu0  ;;  %v5397_v19 = vpop.f32.mrf.mxu1 }
 0x15e   :  { %v5399_v35 = vpop.f32.mrf.mxu0  ;;  %v5401_v44 = vpop.f32.mrf.mxu1 }
 0x160   :  { %v5409_v28 = vpop.f32.mrf.mxu0  ;;  %v5411_v46 = vpop.f32.mrf.mxu1 }
 0x162   :  { %v5413_v59 = vpop.f32.mrf.mxu0  ;;  %v5415_v60 = vpop.f32.mrf.mxu1 }
 0x163   :  { %6276 = vst [vmem:[#allocation23_spill] sm:$0xff] %v5415_v60 }
 0x164   :  { %v5425_v30 = vpop.f32.mrf.mxu0  ;;  %v5427_v53 = vpop.f32.mrf.mxu1 }
 0x165   :  { %6278 = vst [vmem:[#allocation25_spill] sm:$0xff] %v5427_v53 }
 0x166   :  { %v5430_v39 = vpop.f32.mrf.mxu0  ;;  %v5432_v48 = vpop.f32.mrf.mxu1 }
 0x167   :  { %6279 = vst [vmem:[#allocation26_spill] sm:$0xff] %v5430_v39  ;;  %6280 = vst [vmem:[#allocation27_spill] sm:$0xff] %v5432_v48  ;;  %v479_v39 = vadd.f32 %v5120_v26, %v5118_v25 }
 0x168   :  { %v5434_v14 = vpop.f32.mrf.mxu0  ;;  %v5436_v51 = vpop.f32.mrf.mxu1 }
 0x169   :  { %6281 = vst [vmem:[#allocation28_spill] sm:$0xff] %v5434_v14  ;;  %6282 = vst [vmem:[#allocation29_spill] sm:$0xff] %v5436_v51  ;;  %v770_v13 = vadd.f32 %v5254_v45, %v479_v39  ;;  %v499_v45 = vadd.f32 %v5172_v50, %v5170_v49  ;;  %v509_v49 = vadd.f32 %v5190_v58, %v5188_v57 }
 0x16a   :  { %v5438_v8 = vpop.f32.mrf.mxu0  ;;  %v5440_v38 = vpop.f32.mrf.mxu1  ;;  %v1004_v50 = vadd.f32 %v5288_v52, %v5294_v54  ;;  %v529_v52 = vadd.f32 %v5217_v10, %v5215_v9  ;;  %v5547_v9 = vadd.f32 %v5241_v27, %v5239_v24 }
 0x16b   :  { %6283 = vst [vmem:[#allocation30_spill] sm:$0xff] %v5438_v8  ;;  %6284 = vst [vmem:[#allocation31_spill] sm:$0xff] %v5440_v38 }
 0x16c   :  { %v5442_v31 = vpop.f32.mrf.mxu0  ;;  %v5444_v7 = vpop.f32.mrf.mxu1  ;;  %v1233_v57 = vadd.f32 %v5409_v28, %v1004_v50 }
 0x16d   :  { %6285 = vst [vmem:[#allocation32_spill] sm:$0xff] %v5442_v31  ;;  %6286 = vst [vmem:[#allocation33_spill] sm:$0xff] %v5444_v7 }
 0x16e   :  { %v5446_v37 = vpop.f32.mrf.mxu0  ;;  %v5448_v53 = vpop.f32.mrf.mxu1 }
 0x16f   :  { %6287 = vst [vmem:[#allocation34_spill] sm:$0xff] %v5446_v37  ;;  %6288 = vst [vmem:[#allocation35_spill] sm:$0xff] %v5448_v53 }
 0x170   :  { %v5450_v15 = vpop.f32.mrf.mxu0  ;;  %v5452_v34 = vpop.f32.mrf.mxu1 }
 0x171   :  { %6289 = vst [vmem:[#allocation36_spill] sm:$0xff] %v5450_v15  ;;  %6290 = vst [vmem:[#allocation37_spill] sm:$0xff] %v5452_v34 }
 0x172   :  { %v5454_v48 = vpop.f32.mrf.mxu0  ;;  %v5456_v14 = vpop.f32.mrf.mxu1 }
 0x173   :  { %6291 = vst [vmem:[#allocation38_spill] sm:$0xff] %v5454_v48  ;;  %6292 = vst [vmem:[#allocation39_spill] sm:$0xff] %v5456_v14 }
 0x174   :  { %v5458_v51 = vpop.f32.mrf.mxu0  ;;  %v5460_v8 = vpop.f32.mrf.mxu1 }
 0x175   :  { %6293 = vst [vmem:[#allocation40_spill] sm:$0xff] %v5458_v51  ;;  %6294 = vst [vmem:[#allocation41_spill] sm:$0xff] %v5460_v8 }
 0x176   :  { %v5462_v38 = vpop.f32.mrf.mxu0  ;;  %v5464_v31 = vpop.f32.mrf.mxu1 }
 0x177   :  { %6295 = vst [vmem:[#allocation42_spill] sm:$0xff] %v5462_v38  ;;  %6296 = vst [vmem:[#allocation43_spill] sm:$0xff] %v5464_v31 }
 0x178   :  { %v4190_v7 = vpop.f32.mrf.mxu0  ;;  %v4220_v37 = vpop.f32.mrf.mxu1 }
 0x17a   :  { %v1608_v20 = vpop.f32.mrf.mxu0  ;;  %v5466_v53 = vpop.f32.mrf.mxu1 }
 0x17c   :  { %v4193_v15 = vpop.f32.mrf.mxu0  ;;  %v5468_v34 = vpop.f32.mrf.mxu1 }
 0x17d   :  { %6297 = vst [vmem:[#allocation44_spill] sm:$0xff] %v5468_v34 }
 0x17e   :  { %v1618_v1 = vpop.f32.mrf.mxu0  ;;  %v5472_v14 = vpop.f32.mrf.mxu1 }
 0x17f   :  { %6299 = vst [vmem:[#allocation46_spill] sm:$0xff] %v5472_v14  ;;  %v489_v14 = vadd.f32 %v5150_v33, %v5148_v32  ;;  %v1002_v32 = vadd.f32 %v5261_v36, %v5264_v22 }
 0x180   :  { %v5470_v48 = vpop.f32.mrf.mxu0  ;;  %v5478_v38 = vpop.f32.mrf.mxu1 }
 0x181   :  { %6298 = vst [vmem:[#allocation45_spill] sm:$0xff] %v5470_v48  ;;  %6301 = vst [vmem:[#allocation48_spill] sm:$0xff] %v5478_v38  ;;  %v772_v25 = vadd.f32 %v5275_v42, %v489_v14 }
 0x182   :  { %v5474_v51 = vpop.f32.mrf.mxu0  ;;  %v5487_v34 = vpop.f32.mrf.mxu1 }
 0x184   :  { %v5476_v8 = vpop.f32.mrf.mxu0  ;;  %v5502_v39 = vpop.f32.mrf.mxu1 }
 0x185   :  { %6300 = vst [vmem:[#allocation47_spill] sm:$0xff] %v5476_v8  ;;  %v1000_v8 = vadd.f32 %v5246_v40, %v5249_v41  ;;  %v774_v40 = vadd.f32 %v5296_v0, %v499_v45  ;;  %v6309_v45 = vld [vmem:[#allocation12_spill] sm:$0xff] }
 0x186   :  { %v5480_v31 = vpop.f32.mrf.mxu0  ;;  %v5519_v14 = vpop.f32.mrf.mxu1 }
 0x187   :  { %6302 = vst [vmem:[#allocation49_spill] sm:$0xff] %v5480_v31  ;;  %v999_v31 = vadd.f32 %v5256_v29, %v770_v13  ;;  %v1229_v26 = vadd.f32 %v5381_v61, %v1000_v8  ;;  %v1001_v29 = vadd.f32 %v5277_v43, %v772_v25  ;;  %v1231_v13 = vadd.f32 %v5395_v18, %v1002_v32 }
 0x188   :  { %v5484_v60 = vpop.f32.mrf.mxu0  ;;  %v519_v43 = vadd.f32 %v5205_v3, %v5203_v2  ;;  %v1003_v61 = vadd.f32 %v5298_v56, %v774_v40  ;;  %v1006_v2 = vadd.f32 %v5306_v62, %v5309_v47  ;;  %v1462_v62 = vadd.f32 %v5411_v46, %v1233_v57  ;;  %v6307_v8 = vld [vmem:[#allocation45_spill] sm:$0xff] }
 0x189   :  { %v1228_v33 = vadd.f32 %v5385_v21, %v999_v31  ;;  %v1458_v42 = vadd.f32 %v5383_v5, %v1229_v26  ;;  %v1230_v0 = vadd.f32 %v5399_v35, %v1001_v29  ;;  %v776_v5 = vadd.f32 %v5311_v63, %v509_v49  ;;  %v5541_v63 = vpop.f32.mrf.mxu1  ;;  %v6308_v26 = vld [vmem:[#allocation13_spill] sm:$0xff] }
 0x18a   :  { %v5489_v48 = vpop.f32.mrf.mxu0  ;;  %v1460_v54 = vadd.f32 %v5397_v19, %v1231_v13  ;;  %v778_v3 = vadd.f32 %v5326_v12, %v519_v43  ;;  %v1232_v56 = vadd.f32 %v5413_v59, %v1003_v61  ;;  %v1235_v47 = vadd.f32 %v5425_v30, %v1006_v2  ;;  %v5554_v19 = vld [vmem:[#allocation6] ss:$0 sm:$0xff]  ;;  %v6305_v59 = vld [vmem:[#allocation23_spill] sm:$0xff]  ;;  %v6312_v29 = vld [vmem:[#allocation25_spill] sm:$0xff] }
 0x18b   :  { %6303 = vst [vmem:[#allocation50_spill] sm:$0xff] %v5489_v48  ;;  %v1457_v22 = vadd.f32 %v5387_v6, %v1228_v33  ;;  %v1688_v31 = vadd.f32 %v4190_v7, %v1458_v42  ;;  %v539_v7 = vadd.f32 %v5229_v17, %v5227_v16  ;;  %v1459_v10 = vadd.f32 %v5401_v44, %v1230_v0  ;;  %v5563_v25 = vpop.f32.mrf.mxu1  ;;  %v6310_v33 = vld [vmem:[#allocation44_spill] sm:$0xff]  ;;  %v6314_v0 = vld [vmem:[#allocation46_spill] sm:$0xff]  ;;  %v6315_v57 = vld [vmem:[#allocation17_spill] sm:$0xff] }
 0x18c   :  { %v5495_v38 = vpop.f32.mrf.mxu0  ;;  %v1690_v18 = vadd.f32 %v4193_v15, %v1460_v54  ;;  %v1005_v16 = vadd.f32 %v5313_v4, %v776_v5  ;;  %v780_v17 = vadd.f32 %v5341_v23, %v529_v52  ;;  %v1008_v35 = vadd.f32 %v5321_v11, %v5324_v55  ;;  %v6306_v15 = vld [vmem:[#allocation26_spill] sm:$0xff]  ;;  %v6313_v13 = vld [vmem:[#allocation28_spill] sm:$0xff]  ;;  %v6316_v54 = vld [vmem:[#allocation27_spill] sm:$0xff] }
 0x18d   :  { %v1687_v21 = vadd.f32 %v1608_v20, %v1457_v22  ;;  %v1917_v20 = vadd.f32 %v4220_v37, %v1688_v31  ;;  %v1689_v27 = vadd.f32 %v1618_v1, %v1459_v10  ;;  %v6304_v37 = vld [vmem:[#allocation11_spill] sm:$0xff]  ;;  %v1461_v4 = vadd.f32 %v6305_v59, %v1232_v56  ;;  %v6317_v2 = vld [vmem:[#allocation30_spill] sm:$0xff]  ;;  %v6318_v56 = vld [vmem:[#allocation48_spill] sm:$0xff] }
 0x18e   :  { %v5504_v48 = vpop.f32.mrf.mxu0  ;;  %v1007_v28 = vadd.f32 %v6304_v37, %v778_v3  ;;  %v1234_v23 = vadd.f32 %v6306_v15, %v1005_v16  ;;  %v1692_v46 = vadd.f32 %v6307_v8, %v1462_v62  ;;  %v1010_v32 = vadd.f32 %v6309_v45, %v6308_v26  ;;  %v6326_v45 = vld [vmem:[#allocation31_spill] sm:$0xff] }
 0x18f   :  { %v1916_v24 = vadd.f32 %v5466_v53, %v1687_v21  ;;  %v1919_v11 = vadd.f32 %v6310_v33, %v1690_v18  ;;  %v6311_v53 = vld [vmem:[#allocation14_spill] sm:$0xff]  ;;  %v1464_v42 = vadd.f32 %v6312_v29, %v1235_v47  ;;  %v1237_v49 = vadd.f32 %v6313_v13, %v1008_v35 }
 0x190   :  { %v5510_v41 = vpop.f32.mrf.mxu0  ;;  %v1009_v40 = vadd.f32 %v6311_v53, %v780_v17  ;;  %v1691_v50 = vadd.f32 %v5474_v51, %v1461_v4  ;;  %v1918_v31 = vadd.f32 %v6314_v0, %v1689_v27  ;;  %v782_v52 = vadd.f32 %v6315_v57, %v539_v7  ;;  %v6319_v51 = vld [vmem:[#allocation47_spill] sm:$0xff]  ;;  %v6324_v4 = vld [vmem:[#allocation49_spill] sm:$0xff] }
 0x191   :  { %v1463_v21 = vadd.f32 %v6316_v54, %v1234_v23  ;;  %v1236_v3 = vadd.f32 %v6317_v2, %v1007_v28  ;;  %v1921_v10 = vadd.f32 %v6318_v56, %v1692_v46  ;;  %v1694_v16 = vadd.f32 %v6319_v51, %v1464_v42  ;;  %v6321_v7 = vld [vmem:[#allocation15_spill] sm:$0xff] }
 0x192   :  { %v5521_v36 = vpop.f32.mrf.mxu0  ;;  %v1920_v28 = vadd.f32 %v5487_v34, %v1691_v50  ;;  %v6333_v2 = vld [vmem:[#allocation19_spill] sm:$0xff] }
 0x193   :  { %v1693_v15 = vadd.f32 %v6324_v4, %v1463_v21  ;;  %v1465_v33 = vadd.f32 %v6326_v45, %v1236_v3  ;;  %v1923_v53 = vadd.f32 %v5502_v39, %v1694_v16  ;;  %v6332_v21 = vld [vmem:[#allocation20_spill] sm:$0xff]  ;;  %v6339_v45 = vld [vmem:[#allocation39_spill] sm:$0xff] }
 0x194   :  { %v5530_v58 = vpop.f32.mrf.mxu0  ;;  %v1014_v3 = vadd.f32 %v6333_v2, %v6332_v21 }
 0x195   :  { %v1922_v57 = vadd.f32 %v5519_v14, %v1693_v15 }
 0x196   :  { %v5543_v6 = vpop.f32.mrf.mxu0 }
 0x198   :  { %v4250_v12 = vpop.f32.mrf.mxu0 }
 0x199   :  { %v2146_v44 = vadd.f32 %v4250_v12, %v1917_v20  ;;  %v5581_v20 = vpop.f32.mrf.mxu1  ;;  %v6320_v12 = vld [vmem:[#allocation16_spill] sm:$0xff] }
 0x19a   :  { %v2066_v30 = vpop.f32.mrf.mxu0  ;;  %v1012_v35 = vadd.f32 %v6321_v7, %v6320_v12 }
 0x19b   :  { %v2169_v55 = vadd.f32 %v5554_v19, %v2146_v44  ;;  %v2145_v1 = vadd.f32 %v2066_v30, %v1916_v24  ;;  %v6322_v24 = vld [vmem:[#allocation29_spill] sm:$0xff]  ;;  %v6323_v44 = vld [vmem:[#allocation32_spill] sm:$0xff]  ;;  %v6325_v30 = vld [vmem:[#allocation18_spill] sm:$0xff] }
 0x19c   :  { %v4253_v22 = vpop.f32.mrf.mxu0  ;;  %v1466_v27 = vadd.f32 %v6322_v24, %v1237_v49  ;;  %v1239_v37 = vadd.f32 %v6323_v44, %v1010_v32  ;;  %v1011_v26 = vadd.f32 %v6325_v30, %v782_v52  ;;  %v6328_v49 = vld [vmem:[#allocation21_spill] sm:$0xff]  ;;  %v6336_v24 = vld [vmem:[#allocation22_spill] sm:$0xff] }
 0x19d   :  { %v5574_v43 = vmax.f32 %v2169_v55, 0.0  ;;  %v2168_v61 = vadd.f32 %v5554_v19, %v2145_v1  ;;  %v2148_v5 = vadd.f32 %v4253_v22, %v1919_v11  ;;  %v6327_v11 = vld [vmem:[#allocation34_spill] sm:$0xff]  ;;  %v5603_v55 = vpop.f32.mrf.mxu1  ;;  %v784_v50 = vadd.f32 %v6328_v49, %v5547_v9  ;;  %v6329_v22 = vld [vmem:[#allocation33_spill] sm:$0xff]  ;;  %v6334_v9 = vld [vmem:[#allocation35_spill] sm:$0xff] }
 0x19e   :  { %v2076_v18 = vpop.f32.mrf.mxu0  ;;  %v1238_v32 = vadd.f32 %v6327_v11, %v1009_v40  ;;  %v1696_v34 = vadd.f32 %v5484_v60, %v1466_v27  ;;  %v1468_v0 = vadd.f32 %v6329_v22, %v1239_v37  ;;  %v6330_v40 = vld [vmem:[#allocation36_spill] sm:$0xff]  ;;  %v6331_v60 = vld [vmem:[#allocation50_spill] sm:$0xff]  ;;  %v6337_v44 = vld [vmem:[#allocation37_spill] sm:$0xff] }
 0x19f   :  { %2242 = vst [vmem:[#allocation3 + $0x21] sm:$0xff] %v5574_v43  ;;  %v5585_v17 = vmax.f32 %v2168_v61, 0.0  ;;  %v2171_v62 = vadd.f32 %v5554_v19, %v2148_v5  ;;  %v2147_v47 = vadd.f32 %v2076_v18, %v1918_v31  ;;  %v1241_v31 = vadd.f32 %v6330_v40, %v1012_v35  ;;  %v4238_v16 = vpop.f32.mrf.mxu1  ;;  %v2289_v35 = vld [vmem:[#allocation3 + $0x2] sm:$0xff]  ;;  %v6340_v11 = vld [vmem:[#allocation42_spill] sm:$0xff]  ;;  %v6341_v22 = vld [vmem:[#allocation41_spill] sm:$0xff] }
 0x1a0   :  { %v4256_v59 = vpop.f32.mrf.mxu0  ;;  %v1695_v61 = vadd.f32 %v6331_v60, %v1465_v33  ;;  %v1467_v56 = vadd.f32 %v6334_v9, %v1238_v32  ;;  %v1925_v51 = vadd.f32 %v5541_v63, %v1696_v34  ;;  %v1698_v14 = vadd.f32 %v5495_v38, %v1468_v0  ;;  %v2513_v38 = vld [vmem:[%s6259_s3 + $0x378] sm:$0xff] }
 0x1a1   :  { %2241 = vst [vmem:[#allocation3 + $0x11] sm:$0xff] %v5585_v17  ;;  %v5595_v23 = vmax.f32 %v2171_v62, 0.0  ;;  %v2170_v8 = vadd.f32 %v5554_v19, %v2147_v47  ;;  %v2150_v46 = vadd.f32 %v4256_v59, %v1921_v10  ;;  %2622 = vmatprep.mubr.f32.mxu1 %v5585_v17  ;;  %v6335_v10 = vld [vmem:[#allocation38_spill] sm:$0xff]  ;;  %v1013_v27 = vadd.f32 %v6336_v24, %v784_v50 }
 0x1a2   :  { %v2086_v1 = vpop.f32.mrf.mxu0  ;;  %v1240_v18 = vadd.f32 %v6335_v10, %v1011_v26  ;;  %v1470_v37 = vadd.f32 %v6337_v44, %v1241_v31  ;;  %v1924_v63 = vadd.f32 %v5563_v25, %v1695_v61  ;;  %v2528_v25 = vld [vmem:[%s6259_s3 + $0x3f0] sm:$0xff]  ;;  %v2525_v44 = vld [vmem:[%s6259_s3 + $0x3d8] sm:$0xff] }
 0x1a3   :  { %2244 = vst [vmem:[#allocation3 + $0x41] sm:$0xff] %v5595_v23  ;;  %v5607_v29 = vmax.f32 %v2170_v8, 0.0  ;;  %v2173_v42 = vadd.f32 %v5554_v19, %v2150_v46  ;;  %v2149_v13 = vadd.f32 %v2086_v1, %v1920_v28  ;;  %v6338_v28 = vld [vmem:[#allocation40_spill] sm:$0xff]  ;;  %v1697_v8 = vadd.f32 %v5504_v48, %v1467_v56  ;;  %v1897_v48 = vpop.f32.mrf.mxu1 }
 0x1a4   :  { %v4259_v5 = vpop.f32.mrf.mxu0  ;;  %v1243_v59 = vadd.f32 %v6338_v28, %v1014_v3  ;;  %v1469_v33 = vadd.f32 %v6339_v45, %v1240_v18  ;;  %v1242_v32 = vadd.f32 %v6340_v11, %v1013_v27  ;;  %v1700_v34 = vadd.f32 %v5510_v41, %v1470_v37  ;;  %v2526_v56 = vld [vmem:[%s6259_s3 + $0x3e0] sm:$0xff] }
 0x1a5   :  { %2243 = vst [vmem:[#allocation3 + $0x31] sm:$0xff] %v5607_v29  ;;  %v5617_v39 = vmax.f32 %v2173_v42, 0.0  ;;  %v2172_v52 = vadd.f32 %v5554_v19, %v2149_v13  ;;  %v2152_v54 = vadd.f32 %v4259_v5, %v1923_v53  ;;  %v2512_v42 = vld [vmem:[%s6259_s3 + $0x370] sm:$0xff]  ;;  %v1927_v13 = vadd.f32 %v5581_v20, %v1698_v14  ;;  %v2527_v20 = vld [vmem:[%s6259_s3 + $0x3e8] sm:$0xff] }
 0x1a6   :  { %v2096_v62 = vpop.f32.mrf.mxu0  ;;  %v5649_v53 = vld [vmem:[#allocation3 + $0x20] sm:$0xff]  ;;  %v1472_v0 = vadd.f32 %v6341_v22, %v1243_v59  ;;  %v1699_v40 = vadd.f32 %v5521_v36, %v1469_v33  ;;  %v1926_v60 = vadd.f32 %v5603_v55, %v1697_v8  ;;  %v2511_v36 = vld [vmem:[%s6259_s3 + $0x368] sm:$0xff]  ;;  %v1929_v2 = vadd.f32 %v4238_v16, %v1700_v34  ;;  %v4241_v55 = vpop.f32.mrf.mxu1  ;;  %v2509_v59 = vld [vmem:[%s6259_s3 + $0x358] sm:$0xff] }
 0x1a7   :  { %2246 = vst [vmem:[#allocation3 + $0x61] sm:$0xff] %v5617_v39  ;;  %v5627_v47 = vmax.f32 %v2172_v52, 0.0  ;;  %v2175_v12 = vadd.f32 %v5554_v19, %v2152_v54  ;;  %v2151_v7 = vadd.f32 %v2096_v62, %v1922_v57  ;;  %v6342_v54 = vld [vmem:[#allocation43_spill] sm:$0xff] }
 0x1a8   :  { %v4262_v4 = vpop.f32.mrf.mxu0  ;;  %v2305_v15 = vld [vmem:[#allocation3 + $0x10] sm:$0xff]  ;;  %v1471_v21 = vadd.f32 %v6342_v54, %v1242_v32  ;;  %v1702_v10 = vadd.f32 %v5530_v58, %v1472_v0  ;;  %v1928_v62 = vadd.f32 %v1897_v48, %v1699_v40  ;;  %v5699_v27 = vld [vmem:[#allocation3 + $0x22] sm:$0xff]  ;;  %v1907_v37 = vpop.f32.mrf.mxu1 }
 0x1a9   :  { %2245 = vst [vmem:[#allocation3 + $0x51] sm:$0xff] %v5627_v47  ;;  %v5639_v46 = vmax.f32 %v2175_v12, 0.0  ;;  %v2174_v30 = vadd.f32 %v5554_v19, %v2151_v7  ;;  %v2154_v26 = vadd.f32 %v4262_v4, %v1925_v51  ;;  %2762 = vmatprep.mubr.f32.mxu0 %v2305_v15  ;;  %2623 = vmatmul.mubr.f32.gmra.mxu1 %v2305_v15  ;;  %v5671_v52 = vld [vmem:[#allocation3 + $0x12] sm:$0xff]  ;;  %v2510_v12 = vld [vmem:[%s6259_s3 + $0x360] sm:$0xff] }
 0x1aa   :  { %v2106_v1 = vpop.f32.mrf.mxu0  ;;  %2763 = vmatmul.mubr.f32.vlgmr.msra.gmra.mxu0 %v2289_v35  ;;  %2627 = vmatprep.mubr.f32.mxu1 %v5574_v43  ;;  %v1701_v7 = vadd.f32 %v5543_v6, %v1471_v21  ;;  %v5706_v6 = vld [vmem:[#allocation3 + $0x40] sm:$0xff]  ;;  %v2508_v32 = vld [vmem:[%s6259_s3 + $0x350] sm:$0xff] }
 0x1ab   :  { %2248 = vst [vmem:[#allocation3 + $0x81] sm:$0xff] %v5639_v46  ;;  %v5656_v49 = vmax.f32 %v2174_v30, 0.0  ;;  %v2177_v50 = vadd.f32 %v5554_v19, %v2154_v26  ;;  %v2153_v41 = vadd.f32 %v2106_v1, %v1924_v63  ;;  %2767 = vmatprep.mubr.f32.mxu0 %v5649_v53  ;;  %3891 = vmatpush3.msra.mxu0 %v2513_v38  ;;  %v2524_v30 = vld [vmem:[%s6259_s3 + $0x3d0] sm:$0xff]  ;;  %v2523_v1 = vld [vmem:[%s6259_s3 + $0x3c8] sm:$0xff] }
 0x1ac   :  { %v4265_v31 = vpop.f32.mrf.mxu0  ;;  %3892 = vmatprep.subr.mxu0 %v2528_v25  ;;  %v5679_v9 = vld [vmem:[#allocation3 + $0x30] sm:$0xff]  ;;  %v1931_v63 = vadd.f32 %v4241_v55, %v1702_v10  ;;  %v1930_v26 = vadd.f32 %v1907_v37, %v1701_v7  ;;  %v5749_v40 = vld [vmem:[#allocation3 + $0x42] sm:$0xff] }
 0x1ad   :  { %2247 = vst [vmem:[#allocation3 + $0x71] sm:$0xff] %v5656_v49  ;;  %v5667_v61 = vmax.f32 %v2177_v50, 0.0  ;;  %v2176_v5 = vadd.f32 %v5554_v19, %v2153_v41  ;;  %v2156_v57 = vadd.f32 %v4265_v31, %v1927_v13  ;;  %2628 = vmatmul.mubr.f32.gmra.mxu1 %v5649_v53  ;;  %3893 = vmatpush3.msra.mxu0 %v2512_v42  ;;  %v5724_v11 = vld [vmem:[#allocation3 + $0x32] sm:$0xff]  ;;  %v2507_v41 = vld [vmem:[%s6259_s3 + $0x348] sm:$0xff]  ;;  %v2522_v31 = vld [vmem:[%s6259_s3 + $0x3c0] sm:$0xff] }
 0x1ae   :  { %v2116_v3 = vpop.f32.mrf.mxu0  ;;  %2768 = vmatmul.mubr.f32.gmra.mxu0 %v5671_v52  ;;  %2632 = vmatprep.mubr.f32.mxu1 %v5607_v29  ;;  %v2520_v21 = vld [vmem:[%s6259_s3 + $0x3b0] sm:$0xff] }
 0x1af   :  { %2250 = vst [vmem:[#allocation3 + $0xc1] sm:$0xff] %v5667_v61  ;;  %v5686_v18 = vmax.f32 %v2176_v5, 0.0  ;;  %v2179_v51 = vadd.f32 %v5554_v19, %v2156_v57  ;;  %v2155_v16 = vadd.f32 %v2116_v3, %v1926_v60  ;;  %2772 = vmatprep.mubr.f32.mxu0 %v5679_v9  ;;  %3894 = vmatprep.subr.mxu0 %v2527_v20  ;;  %v5756_v20 = vld [vmem:[#allocation3 + $0x60] sm:$0xff]  ;;  %v2521_v5 = vld [vmem:[%s6259_s3 + $0x3b8] sm:$0xff]  ;;  %v2504_v55 = vld [vmem:[%s6259_s3 + $0x330] sm:$0xff] }
 0x1b0   :  { %v4268_v14 = vpop.f32.mrf.mxu0  ;;  %3895 = vmatpush3.msra.mxu0 %v2511_v36  ;;  %v5731_v48 = vld [vmem:[#allocation3 + $0x50] sm:$0xff]  ;;  %v2506_v60 = vld [vmem:[%s6259_s3 + $0x340] sm:$0xff]  ;;  %v2505_v36 = vld [vmem:[%s6259_s3 + $0x338] sm:$0xff] }
 0x1b1   :  { %2249 = vst [vmem:[#allocation3 + $0xb1] sm:$0xff] %v5686_v18  ;;  %v5695_v58 = vmax.f32 %v2179_v51, 0.0  ;;  %v2178_v35 = vadd.f32 %v5554_v19, %v2155_v16  ;;  %v2158_v24 = vadd.f32 %v4268_v14, %v1929_v2  ;;  %2633 = vmatmul.mubr.f32.gmra.mxu1 %v5679_v9  ;;  %3896 = vmatprep.subr.mxu0 %v2526_v56  ;;  %v5770_v57 = vld [vmem:[#allocation3 + $0x52] sm:$0xff]  ;;  %v2281_v2 = vld [vmem:[#allocation3 + $0xa1] sm:$0xff] }
 0x1b2   :  { %v2126_v28 = vpop.f32.mrf.mxu0  ;;  %2773 = vmatmul.mubr.f32.gmra.mxu0 %v5699_v27  ;;  %2637 = vmatprep.mubr.f32.mxu1 %v5595_v23  ;;  %v5787_v3 = vld [vmem:[#allocation3 + $0x62] sm:$0xff]  ;;  %v2516_v37 = vld [vmem:[%s6259_s3 + $0x390] sm:$0xff] }
 0x1b3   :  { %2252 = vst [vmem:[#allocation3 + $0xe1] sm:$0xff] %v5695_v58  ;;  %v5712_v4 = vmax.f32 %v2178_v35, 0.0  ;;  %v2181_v15 = vadd.f32 %v5554_v19, %v2158_v24  ;;  %v2157_v38 = vadd.f32 %v2126_v28, %v1928_v62  ;;  %2777 = vmatprep.mubr.f32.mxu0 %v5706_v6  ;;  %3897 = vmatpush3.msra.mxu0 %v2510_v12  ;;  %v2519_v56 = vld [vmem:[%s6259_s3 + $0x3a8] sm:$0xff]  ;;  %v5793_v10 = vld [vmem:[#allocation3 + $0x80] sm:$0xff]  ;;  %v2517_v35 = vld [vmem:[%s6259_s3 + $0x398] sm:$0xff] }
 0x1b4   :  { %v4271_v8 = vpop.f32.mrf.mxu0  ;;  %3898 = vmatprep.subr.mxu0 %v2525_v44  ;;  %v5777_v54 = vld [vmem:[#allocation3 + $0x70] sm:$0xff]  ;;  %v2503_v51 = vld [vmem:[%s6259_s3 + $0x328] sm:$0xff]  ;;  %v2518_v16 = vld [vmem:[%s6259_s3 + $0x3a0] sm:$0xff] }
 0x1b5   :  { %2251 = vst [vmem:[#allocation3 + $0xd1] sm:$0xff] %v5712_v4  ;;  %v5720_v25 = vmax.f32 %v2181_v15, 0.0  ;;  %v2180_v45 = vadd.f32 %v5554_v19, %v2157_v38  ;;  %v2160_v33 = vadd.f32 %v4271_v8, %v1931_v63  ;;  %2638 = vmatmul.mubr.f32.gmra.mxu1 %v5706_v6  ;;  %3899 = vmatpush3.msra.mxu0 %v2509_v59  ;;  %v5802_v62 = vld [vmem:[#allocation3] sm:$0xff]  ;;  %v5805_v14 = vld [vmem:[#allocation3 + $0x72] sm:$0xff]  ;;  %v2515_v63 = vld [vmem:[%s6259_s3 + $0x388] sm:$0xff] }
 0x1b6   :  { %v2136_v34 = vpop.f32.mrf.mxu0  ;;  %2778 = vmatmul.mubr.f32.gmra.mxu0 %v5724_v11  ;;  %2642 = vmatprep.mubr.f32.mxu1 %v5627_v47  ;;  %v2502_v12 = vld [vmem:[%s6259_s3 + $0x320] sm:$0xff]  ;;  %v2501_v44 = vld [vmem:[%s6259_s3 + $0x318] sm:$0xff]  ;;  %v2500_v59 = vld [vmem:[%s6259_s3 + $0x310] sm:$0xff] }
 0x1b7   :  { %2254 = vst [vmem:[#allocation3 + $0x101] sm:$0xff] %v5720_v25  ;;  %v5737_v42 = vmax.f32 %v2180_v45, 0.0  ;;  %v2183_v13 = vadd.f32 %v5554_v19, %v2160_v33  ;;  %v2159_v50 = vadd.f32 %v2136_v34, %v1930_v26  ;;  %2782 = vmatprep.mubr.f32.mxu0 %v5731_v48  ;;  %3900 = vmatprep.subr.mxu0 %v2524_v30  ;;  %v2297_v24 = vld [vmem:[#allocation3 + $0xa2] sm:$0xff] }
 0x1b8   :  { %3901 = vmatpush3.msra.mxu0 %v2508_v32  ;;  %v2313_v7 = vld [vmem:[#allocation3 + $0xb0] sm:$0xff]  ;;  %v5822_v28 = vld [vmem:[#allocation3 + $0xc0] sm:$0xff]  ;;  %v2499_v38 = vld [vmem:[%s6259_s3 + $0x308] sm:$0xff] }
 0x1b9   :  { %2253 = vst [vmem:[#allocation3 + $0xf1] sm:$0xff] %v5737_v42  ;;  %v5745_v22 = vmax.f32 %v2183_v13, 0.0  ;;  %v2182_v0 = vadd.f32 %v5554_v19, %v2159_v50  ;;  %2643 = vmatmul.mubr.f32.gmra.mxu1 %v5731_v48  ;;  %3902 = vmatprep.subr.mxu0 %v2523_v1  ;;  %v5832_v15 = vld [vmem:[#allocation3 + $0xb2] sm:$0xff]  ;;  %v2514_v30 = vld [vmem:[%s6259_s3 + $0x380] sm:$0xff] }
 0x1ba   :  { %2783 = vmatmul.mubr.f32.gmra.mxu0 %v5749_v40  ;;  %2647 = vmatprep.mubr.f32.mxu1 %v5617_v39  ;;  %v2498_v26 = vld [vmem:[%s6259_s3 + $0x300] sm:$0xff] }
 0x1bb   :  { %2256 = vst [vmem:[#allocation3 + $0x121] sm:$0xff] %v5745_v22  ;;  %v5762_v19 = vmax.f32 %v2182_v0, 0.0  ;;  %2787 = vmatprep.mubr.f32.mxu0 %v5756_v20  ;;  %3903 = vmatpush3.msra.mxu0 %v2507_v41  ;;  %v5849_v45 = vld [vmem:[#allocation3 + $0xc2] sm:$0xff] }
 0x1bc   :  { %3904 = vmatprep.subr.mxu0 %v2522_v31  ;;  %v5839_v8 = vld [vmem:[#allocation3 + $0xd0] sm:$0xff]  ;;  %v5853_v33 = vld [vmem:[#allocation3 + $0xe0] sm:$0xff] }
 0x1bd   :  { %2255 = vst [vmem:[#allocation3 + $0x111] sm:$0xff] %v5762_v19  ;;  %2648 = vmatmul.mubr.f32.gmra.mxu1 %v5756_v20  ;;  %3905 = vmatpush3.msra.mxu0 %v2506_v60  ;;  %v5857_v32 = vld [vmem:[#allocation3 + $0xd2] sm:$0xff]  ;;  %v5865_v1 = vld [vmem:[#allocation3 + $0xe2] sm:$0xff] }
 0x1be   :  { %2788 = vmatmul.mubr.f32.gmra.mxu0 %v5770_v57  ;;  %2652 = vmatprep.mubr.f32.mxu1 %v5656_v49  ;;  %v5869_v13 = vld [vmem:[#allocation3 + $0x100] sm:$0xff] }
 0x1bf   :  { %2792 = vmatprep.mubr.f32.mxu0 %v5777_v54  ;;  %3906 = vmatprep.subr.mxu0 %v2521_v5  ;;  %v5881_v0 = vld [vmem:[#allocation3 + $0x102] sm:$0xff]  ;;  %v2544_v5 = vld [vmem:[%s6259_s3 + $0x470] sm:$0xff] }
 0x1c0   :  { %3907 = vmatpush3.msra.mxu0 %v2505_v36  ;;  %v5861_v34 = vld [vmem:[#allocation3 + $0xf0] sm:$0xff]  ;;  %v6343_v36 = vld [vmem:[#allocation24_spill] sm:$0xff] }
 0x1c1   :  { %2653 = vmatmul.mubr.f32.gmra.mxu1 %v5777_v54  ;;  %3908 = vmatprep.subr.mxu0 %v2520_v21  ;;  %v5873_v50 = vld [vmem:[#allocation3 + $0xf2] sm:$0xff] }
 0x1c2   :  { %2793 = vmatmul.mubr.f32.gmra.mxu0 %v5787_v3  ;;  %2657 = vmatprep.mubr.f32.mxu1 %v2281_v2  ;;  %v5884_v31 = vld [vmem:[#allocation3 + $0x120] sm:$0xff] }
 0x1c3   :  { %2797 = vmatprep.mubr.f32.mxu0 %v5793_v10  ;;  %3909 = vmatpush3.msra.mxu0 %v2504_v55 }
 0x1c4   :  { %3910 = vmatprep.subr.mxu0 %v2519_v56  ;;  %v5877_v41 = vld [vmem:[#allocation3 + $0x110] sm:$0xff] }
 0x1c5   :  { %2658 = vmatmul.mubr.f32.gmra.mxu1 %v5802_v62  ;;  %3911 = vmatpush3.msra.mxu0 %v2503_v51  ;;  %v5888_v60 = vld [vmem:[#allocation3 + $0x112] sm:$0xff] }
 0x1c6   :  { %2798 = vmatmul.mubr.f32.gmra.mxu0 %v5805_v14  ;;  %2662 = vmatprep.mubr.f32.mxu1 %v5686_v18 }
 0x1c7   :  { %2802 = vmatprep.mubr.f32.mxu0 %v2313_v7  ;;  %3912 = vmatprep.subr.mxu0 %v2518_v16 }
 0x1c8   :  { %3913 = vmatpush3.msra.mxu0 %v2502_v12 }
 0x1c9   :  { %2663 = vmatmul.mubr.f32.gmra.mxu1 %v2313_v7  ;;  %3914 = vmatprep.subr.mxu0 %v2517_v35 }
 0x1ca   :  { %2803 = vmatmul.mubr.f32.gmra.mxu0 %v2297_v24  ;;  %2667 = vmatprep.mubr.f32.mxu1 %v5667_v61 }
 0x1cb   :  { %2807 = vmatprep.mubr.f32.mxu0 %v5822_v28  ;;  %3915 = vmatpush3.msra.mxu0 %v2501_v44 }
 0x1cc   :  { %3916 = vmatprep.subr.mxu0 %v2516_v37 }
 0x1cd   :  { %2668 = vmatmul.mubr.f32.gmra.mxu1 %v5822_v28  ;;  %3917 = vmatpush3.msra.mxu0 %v2500_v59 }
 0x1ce   :  { %2808 = vmatmul.mubr.f32.gmra.mxu0 %v5832_v15  ;;  %2672 = vmatprep.mubr.f32.mxu1 %v5712_v4 }
 0x1cf   :  { %2812 = vmatprep.mubr.f32.mxu0 %v5839_v8  ;;  %3918 = vmatprep.subr.mxu0 %v2515_v63 }
 0x1d0   :  { %3919 = vmatpush3.msra.mxu0 %v2499_v38 }
 0x1d1   :  { %2673 = vmatmul.mubr.f32.gmra.mxu1 %v5839_v8  ;;  %3920 = vmatprep.subr.mxu0 %v2514_v30 }
 0x1d2   :  { %2813 = vmatmul.mubr.f32.gmra.mxu0 %v5849_v45  ;;  %2677 = vmatprep.mubr.f32.mxu1 %v5695_v58 }
 0x1d3   :  { %2817 = vmatprep.mubr.f32.mxu0 %v5853_v33  ;;  %3921 = vmatpush3.msra.mxu0 %v2498_v26 }
 0x1d5   :  { %2678 = vmatmul.mubr.f32.gmra.mxu1 %v5853_v33 }
 0x1d6   :  { %2818 = vmatmul.mubr.f32.gmra.mxu0 %v5857_v32  ;;  %2682 = vmatprep.mubr.f32.mxu1 %v5737_v42 }
 0x1d7   :  { %2822 = vmatprep.mubr.f32.mxu0 %v5861_v34 }
 0x1d9   :  { %2683 = vmatmul.mubr.f32.gmra.mxu1 %v5861_v34 }
 0x1da   :  { %2823 = vmatmul.mubr.f32.gmra.mxu0 %v5865_v1  ;;  %2687 = vmatprep.mubr.f32.mxu1 %v5720_v25 }
 0x1db   :  { %2827 = vmatprep.mubr.f32.mxu0 %v5869_v13 }
 0x1dd   :  { %2688 = vmatmul.mubr.f32.gmra.mxu1 %v5869_v13 }
 0x1de   :  { %2828 = vmatmul.mubr.f32.gmra.mxu0 %v5873_v50  ;;  %2692 = vmatprep.mubr.f32.mxu1 %v5762_v19 }
 0x1df   :  { %2832 = vmatprep.mubr.f32.mxu0 %v5877_v41 }
 0x1e1   :  { %2693 = vmatmul.mubr.f32.gmra.mxu1 %v5877_v41 }
 0x1e2   :  { %2833 = vmatmul.mubr.f32.gmra.mxu0 %v5881_v0  ;;  %2907 = vmatprep.mubr.f32.mxu1 %v5671_v52  ;;  %v2543_v52 = vld [vmem:[%s6259_s3 + $0x468] sm:$0xff] }
 0x1e3   :  { %2837 = vmatprep.mubr.f32.mxu0 %v5884_v31 }
 0x1e5   :  { %2908 = vmatmul.mubr.f32.vlgmr.msra.gmra.mxu1 %v5585_v17  ;;  %v2542_v17 = vld [vmem:[%s6259_s3 + $0x460] sm:$0xff] }
 0x1e6   :  { %2838 = vmatmul.mubr.f32.gmra.mxu0 %v5888_v60  ;;  %4273 = vmatpush3.msra.mxu1 %v6343_v36 }
 0x1e7   :  { %2912 = vmatprep.mubr.f32.mxu1 %v5699_v27  ;;  %3052 = vmatprep.mubr.f32.mxu0 %v5574_v43 }
 0x1e8   :  { %4274 = vmatprep.subr.mxu1 %v2544_v5 }
 0x1e9   :  { %2913 = vmatmul.mubr.f32.gmra.mxu1 %v5574_v43  ;;  %v2541_v43 = vld [vmem:[%s6259_s3 + $0x458] sm:$0xff] }
 0x1ea   :  { %3053 = vmatmul.mubr.f32.vlgmr.msra.gmra.mxu0 %v5649_v53  ;;  %4275 = vmatpush3.msra.mxu1 %v2544_v5  ;;  %v2377_v53 = vld [vmem:[#allocation3 + $0x91] sm:$0xff] }
 0x1eb   :  { %2917 = vmatprep.mubr.f32.mxu1 %v5724_v11  ;;  %3057 = vmatprep.mubr.f32.mxu0 %v5607_v29 }
 0x1ec   :  { %4276 = vmatprep.subr.mxu1 %v2543_v52 }
 0x1ed   :  { %2918 = vmatmul.mubr.f32.gmra.mxu1 %v5607_v29  ;;  %v2540_v29 = vld [vmem:[%s6259_s3 + $0x450] sm:$0xff] }
 0x1ee   :  { %3058 = vmatmul.mubr.f32.gmra.mxu0 %v5679_v9  ;;  %4277 = vmatpush3.msra.mxu1 %v2543_v52  ;;  %v2536_v9 = vld [vmem:[%s6259_s3 + $0x430] sm:$0xff] }
 0x1ef   :  { %2922 = vmatprep.mubr.f32.mxu1 %v5749_v40  ;;  %3062 = vmatprep.mubr.f32.mxu0 %v5595_v23 }
 0x1f0   :  { %4278 = vmatprep.subr.mxu1 %v2542_v17 }
 0x1f1   :  { %2923 = vmatmul.mubr.f32.gmra.mxu1 %v5595_v23  ;;  %v2539_v23 = vld [vmem:[%s6259_s3 + $0x448] sm:$0xff] }
 0x1f2   :  { %3063 = vmatmul.mubr.f32.gmra.mxu0 %v5706_v6  ;;  %4279 = vmatpush3.msra.mxu1 %v2542_v17  ;;  %v2532_v6 = vld [vmem:[%s6259_s3 + $0x410] sm:$0xff] }
 0x1f3   :  { %2927 = vmatprep.mubr.f32.mxu1 %v5770_v57  ;;  %3067 = vmatprep.mubr.f32.mxu0 %v5627_v47 }
 0x1f4   :  { %4280 = vmatprep.subr.mxu1 %v2541_v43 }
 0x1f5   :  { %2928 = vmatmul.mubr.f32.gmra.mxu1 %v5627_v47  ;;  %v2538_v47 = vld [vmem:[%s6259_s3 + $0x440] sm:$0xff] }
 0x1f6   :  { %3068 = vmatmul.mubr.f32.gmra.mxu0 %v5731_v48  ;;  %4281 = vmatpush3.msra.mxu1 %v2541_v43  ;;  %v2385_v48 = vld [vmem:[#allocation3 + $0x131] sm:$0xff] }
 0x1f7   :  { %2932 = vmatprep.mubr.f32.mxu1 %v5787_v3  ;;  %3072 = vmatprep.mubr.f32.mxu0 %v5617_v39 }
 0x1f8   :  { %4282 = vmatprep.subr.mxu1 %v2540_v29 }
 0x1f9   :  { %2933 = vmatmul.mubr.f32.gmra.mxu1 %v5617_v39  ;;  %v5938_v39 = vld [vmem:[#allocation3 + $0x82] sm:$0xff] }
 0x1fa   :  { %3073 = vmatmul.mubr.f32.gmra.mxu0 %v5756_v20  ;;  %4283 = vmatpush3.msra.mxu1 %v2540_v29 }
 0x1fb   :  { %2937 = vmatprep.mubr.f32.mxu1 %v5805_v14  ;;  %3077 = vmatprep.mubr.f32.mxu0 %v5656_v49 }
 0x1fc   :  { %4284 = vmatprep.subr.mxu1 %v2539_v23 }
 0x1fd   :  { %2938 = vmatmul.mubr.f32.gmra.mxu1 %v5656_v49  ;;  %v2537_v49 = vld [vmem:[%s6259_s3 + $0x438] sm:$0xff] }
 0x1fe   :  { %3078 = vmatmul.mubr.f32.gmra.mxu0 %v5777_v54  ;;  %4285 = vmatpush3.msra.mxu1 %v2539_v23 }
 0x1ff   :  { %2942 = vmatprep.mubr.f32.mxu1 %v5938_v39  ;;  %3082 = vmatprep.mubr.f32.mxu0 %v5639_v46 }
 0x200   :  { %4286 = vmatprep.subr.mxu1 %v2538_v47 }
 0x201   :  { %2943 = vmatmul.mubr.f32.gmra.mxu1 %v5639_v46  ;;  %v2535_v46 = vld [vmem:[%s6259_s3 + $0x428] sm:$0xff] }
 0x202   :  { %3083 = vmatmul.mubr.f32.gmra.mxu0 %v5793_v10  ;;  %4287 = vmatpush3.msra.mxu1 %v2538_v47 }
 0x203   :  { %2947 = vmatprep.mubr.f32.mxu1 %v5832_v15  ;;  %3087 = vmatprep.mubr.f32.mxu0 %v2377_v53 }
 0x204   :  { %4288 = vmatprep.subr.mxu1 %v2537_v49 }
 0x205   :  { %2948 = vmatmul.mubr.f32.gmra.mxu1 %v5686_v18  ;;  %v2534_v18 = vld [vmem:[%s6259_s3 + $0x420] sm:$0xff] }
 0x206   :  { %3088 = vmatmul.mubr.f32.gmra.mxu0 %v5802_v62  ;;  %4289 = vmatpush3.msra.mxu1 %v2537_v49 }
 0x207   :  { %2952 = vmatprep.mubr.f32.mxu1 %v5849_v45  ;;  %3092 = vmatprep.mubr.f32.mxu0 %v5667_v61 }
 0x208   :  { %4290 = vmatprep.subr.mxu1 %v2536_v9 }
 0x209   :  { %2953 = vmatmul.mubr.f32.gmra.mxu1 %v5667_v61  ;;  %v2533_v61 = vld [vmem:[%s6259_s3 + $0x418] sm:$0xff] }
 0x20a   :  { %3093 = vmatmul.mubr.f32.gmra.mxu0 %v5822_v28  ;;  %4291 = vmatpush3.msra.mxu1 %v2536_v9 }
 0x20b   :  { %2957 = vmatprep.mubr.f32.mxu1 %v5857_v32  ;;  %3097 = vmatprep.mubr.f32.mxu0 %v5712_v4 }
 0x20c   :  { %4292 = vmatprep.subr.mxu1 %v2535_v46 }
 0x20d   :  { %2958 = vmatmul.mubr.f32.gmra.mxu1 %v5712_v4  ;;  %v2530_v4 = vld [vmem:[%s6259_s3 + $0x400] sm:$0xff] }
 0x20e   :  { %3098 = vmatmul.mubr.f32.gmra.mxu0 %v5839_v8  ;;  %4293 = vmatpush3.msra.mxu1 %v2535_v46 }
 0x20f   :  { %2962 = vmatprep.mubr.f32.mxu1 %v5865_v1  ;;  %3102 = vmatprep.mubr.f32.mxu0 %v5695_v58 }
 0x210   :  { %4294 = vmatprep.subr.mxu1 %v2534_v18 }
 0x211   :  { %2963 = vmatmul.mubr.f32.gmra.mxu1 %v5695_v58  ;;  %v2531_v58 = vld [vmem:[%s6259_s3 + $0x408] sm:$0xff] }
 0x212   :  { %3103 = vmatmul.mubr.f32.gmra.mxu0 %v5853_v33  ;;  %4295 = vmatpush3.msra.mxu1 %v2534_v18 }
 0x213   :  { %2967 = vmatprep.mubr.f32.mxu1 %v5873_v50  ;;  %3107 = vmatprep.mubr.f32.mxu0 %v5737_v42 }
 0x214   :  { %4296 = vmatprep.subr.mxu1 %v2533_v61 }
 0x215   :  { %2968 = vmatmul.mubr.f32.gmra.mxu1 %v5737_v42  ;;  %v2393_v42 = vld [vmem:[#allocation3 + $0x92] sm:$0xff] }
 0x216   :  { %3108 = vmatmul.mubr.f32.gmra.mxu0 %v5861_v34  ;;  %4297 = vmatpush3.msra.mxu1 %v2533_v61 }
 0x217   :  { %2972 = vmatprep.mubr.f32.mxu1 %v5881_v0  ;;  %3112 = vmatprep.mubr.f32.mxu0 %v5720_v25 }
 0x218   :  { %4298 = vmatprep.subr.mxu1 %v2532_v6 }
 0x219   :  { %2973 = vmatmul.mubr.f32.gmra.mxu1 %v5720_v25  ;;  %v2352_v25 = vld [vmem:[#allocation3 + $0x122] sm:$0xff] }
 0x21a   :  { %3113 = vmatmul.mubr.f32.gmra.mxu0 %v5869_v13  ;;  %4299 = vmatpush3.msra.mxu1 %v2532_v6 }
 0x21b   :  { %2977 = vmatprep.mubr.f32.mxu1 %v5888_v60  ;;  %3117 = vmatprep.mubr.f32.mxu0 %v5762_v19 }
 0x21c   :  { %4300 = vmatprep.subr.mxu1 %v2531_v58 }
 0x21d   :  { %2978 = vmatmul.mubr.f32.gmra.mxu1 %v5762_v19  ;;  %v6012_v19 = vld [vmem:[#allocation8] ss:$0 sm:$0xff] }
 0x21e   :  { %3118 = vmatmul.mubr.f32.gmra.mxu0 %v5877_v41  ;;  %4301 = vmatpush3.msra.mxu1 %v2531_v58  ;;  %6344 = vst [vmem:[#allocation11_spill] sm:$0xff] %v6012_v19 }
 0x21f   :  { %2982 = vmatprep.mubr.f32.mxu1 %v2352_v25  ;;  %3122 = vmatprep.mubr.f32.mxu0 %v5745_v22 }
 0x220   :  { %4302 = vmatprep.subr.mxu1 %v2530_v4 }
 0x221   :  { %2983 = vmatmul.mubr.f32.gmra.mxu1 %v5745_v22 }
 0x222   :  { %3123 = vmatmul.mubr.f32.gmra.mxu0 %v5884_v31  ;;  %4303 = vmatpush3.msra.mxu1 %v2530_v4 }
 0x223   :  { %4304 = vmatprep.mubr.f32.mxu1 %v5699_v27  ;;  %3127 = vmatprep.mubr.f32.mxu0 %v2385_v48  ;;  %v2401_v27 = vld [vmem:[#allocation3 + $0x132] sm:$0xff] }
 0x225   :  { %4305 = vmatmul.mubr.f32.vlgmr.msra.gmra.mxu1 %v5724_v11  ;;  %v3682_v11 = vpop.f32.mrf.mxu1 }
 0x226   :  { %3128 = vmatmul.mubr.f32.gmra.mxu0 %v5802_v62  ;;  %4307 = vmatprep.mubr.f32.mxu1 %v5749_v40 }
 0x227   :  { %v3683_v22 = vpop.f32.mrf.mxu1 }
 0x228   :  { %v3684_v40 = vadd.f32 %v3683_v22, %v3682_v11 }
 0x229   :  { %4308 = vmatmul.mubr.f32.gmra.mxu1 %v5770_v57 }
 0x22a   :  { %4310 = vmatprep.mubr.f32.mxu1 %v5787_v3  ;;  %v2620_v55 = vadd.f32 %v3684_v40, %v6012_v19 }
 0x22d   :  { %4311 = vmatmul.mubr.f32.gmra.mxu1 %v5805_v14 }
 0x22e   :  { %4313 = vmatprep.mubr.f32.mxu1 %v5938_v39 }
 0x231   :  { %4314 = vmatmul.mubr.f32.gmra.mxu1 %v2393_v42 }
 0x232   :  { %4316 = vmatprep.mubr.f32.mxu1 %v5849_v45 }
 0x235   :  { %4317 = vmatmul.mubr.f32.gmra.mxu1 %v5857_v32 }
 0x236   :  { %4319 = vmatprep.mubr.f32.mxu1 %v5865_v1 }
 0x239   :  { %4320 = vmatmul.mubr.f32.gmra.mxu1 %v5873_v50 }
 0x23a   :  { %4322 = vmatprep.mubr.f32.mxu1 %v5881_v0 }
 0x23d   :  { %4323 = vmatmul.mubr.f32.gmra.mxu1 %v5888_v60 }
 0x23e   :  { %4325 = vmatprep.mubr.f32.mxu1 %v2352_v25 }
 0x241   :  { %4326 = vmatmul.mubr.f32.gmra.mxu1 %v2401_v27 }
 0x269   :  { %v3685_v20 = vpop.f32.mrf.mxu1 }
 0x26a   :  { %v3762_v57 = vpop.f32.mrf.mxu0 }
 0x26b   :  { %v3686_v54 = vpop.f32.mrf.mxu1 }
 0x26c   :  { %v3687_v21 = vadd.f32 %v3686_v54, %v3685_v20  ;;  %v3763_v2 = vpop.f32.mrf.mxu0 }
 0x26d   :  { %v3764_v3 = vadd.f32 %v3763_v2, %v3762_v57  ;;  %v3688_v56 = vpop.f32.mrf.mxu1 }
 0x26e   :  { %v3765_v10 = vpop.f32.mrf.mxu0  ;;  %v2625_v12 = vadd.f32 %v3687_v21, %v6012_v19 }
 0x26f   :  { %v6015_v51 = vadd.f32 %v3764_v3, %v2620_v55  ;;  %v3689_v16 = vpop.f32.mrf.mxu1 }
 0x270   :  { %v3690_v62 = vadd.f32 %v3689_v16, %v3688_v56  ;;  %v3766_v14 = vpop.f32.mrf.mxu0 }
 0x271   :  { %v3767_v7 = vadd.f32 %v3766_v14, %v3765_v10  ;;  %v3691_v35 = vpop.f32.mrf.mxu1 }
 0x272   :  { %v3768_v24 = vpop.f32.mrf.mxu0  ;;  %v2630_v63 = vadd.f32 %v3690_v62, %v6012_v19 }
 0x273   :  { %v6018_v44 = vadd.f32 %v3767_v7, %v2625_v12  ;;  %v3692_v37 = vpop.f32.mrf.mxu1 }
 0x274   :  { %v3693_v28 = vadd.f32 %v3692_v37, %v3691_v35  ;;  %v3769_v59 = vpop.f32.mrf.mxu0 }
 0x275   :  { %v3770_v15 = vadd.f32 %v3769_v59, %v3768_v24  ;;  %v3694_v38 = vpop.f32.mrf.mxu1 }
 0x276   :  { %v3771_v8 = vpop.f32.mrf.mxu0  ;;  %v2635_v32 = vadd.f32 %v3693_v28, %v6012_v19 }
 0x277   :  { %v6021_v30 = vadd.f32 %v3770_v15, %v2630_v63  ;;  %v3695_v26 = vpop.f32.mrf.mxu1 }
 0x278   :  { %v3696_v45 = vadd.f32 %v3695_v26, %v3694_v38  ;;  %v3772_v33 = vpop.f32.mrf.mxu0 }
 0x279   :  { %v3773_v34 = vadd.f32 %v3772_v33, %v3771_v8  ;;  %v3697_v1 = vpop.f32.mrf.mxu1 }
 0x27a   :  { %v3774_v13 = vpop.f32.mrf.mxu0  ;;  %v2640_v60 = vadd.f32 %v3696_v45, %v6012_v19 }
 0x27b   :  { %v6024_v50 = vadd.f32 %v3773_v34, %v2635_v32  ;;  %v3698_v41 = vpop.f32.mrf.mxu1 }
 0x27c   :  { %v3699_v0 = vadd.f32 %v3698_v41, %v3697_v1  ;;  %v3775_v31 = vpop.f32.mrf.mxu0 }
 0x27d   :  { %v3776_v5 = vadd.f32 %v3775_v31, %v3774_v13  ;;  %v3700_v36 = vpop.f32.mrf.mxu1 }
 0x27e   :  { %v3777_v52 = vpop.f32.mrf.mxu0  ;;  %v2645_v47 = vadd.f32 %v3699_v0, %v6012_v19 }
 0x27f   :  { %v6027_v17 = vadd.f32 %v3776_v5, %v2640_v60  ;;  %v3701_v43 = vpop.f32.mrf.mxu1 }
 0x280   :  { %v3702_v29 = vadd.f32 %v3701_v43, %v3700_v36  ;;  %v3778_v23 = vpop.f32.mrf.mxu0 }
 0x281   :  { %v3779_v39 = vadd.f32 %v3778_v23, %v3777_v52  ;;  %v3703_v53 = vpop.f32.mrf.mxu1 }
 0x282   :  { %v3780_v49 = vpop.f32.mrf.mxu0  ;;  %v2650_v6 = vadd.f32 %v3702_v29, %v6012_v19 }
 0x283   :  { %v6030_v9 = vadd.f32 %v3779_v39, %v2645_v47  ;;  %v3704_v46 = vpop.f32.mrf.mxu1 }
 0x284   :  { %v3705_v18 = vadd.f32 %v3704_v46, %v3703_v53  ;;  %v3781_v61 = vpop.f32.mrf.mxu0 }
 0x285   :  { %v3782_v58 = vadd.f32 %v3781_v61, %v3780_v49  ;;  %v3706_v4 = vpop.f32.mrf.mxu1 }
 0x286   :  { %v3783_v25 = vpop.f32.mrf.mxu0  ;;  %v2655_v22 = vadd.f32 %v3705_v18, %v6012_v19 }
 0x287   :  { %v6033_v48 = vadd.f32 %v3782_v58, %v2650_v6  ;;  %v3707_v42 = vpop.f32.mrf.mxu1 }
 0x288   :  { %v3708_v27 = vadd.f32 %v3707_v42, %v3706_v4  ;;  %v3784_v11 = vpop.f32.mrf.mxu0 }
 0x289   :  { %v3785_v40 = vadd.f32 %v3784_v11, %v3783_v25  ;;  %v3709_v20 = vpop.f32.mrf.mxu1 }
 0x28a   :  { %v3786_v57 = vpop.f32.mrf.mxu0  ;;  %v2660_v3 = vadd.f32 %v3708_v27, %v6012_v19 }
 0x28b   :  { %v6036_v54 = vadd.f32 %v3785_v40, %v2655_v22  ;;  %v3710_v21 = vpop.f32.mrf.mxu1 }
 0x28c   :  { %v3711_v2 = vadd.f32 %v3710_v21, %v3709_v20  ;;  %v3787_v55 = vpop.f32.mrf.mxu0 }
 0x28d   :  { %v3788_v56 = vadd.f32 %v3787_v55, %v3786_v57  ;;  %v3712_v10 = vpop.f32.mrf.mxu1 }
 0x28e   :  { %v3789_v16 = vpop.f32.mrf.mxu0  ;;  %v2665_v35 = vadd.f32 %v3711_v2, %v6012_v19 }
 0x28f   :  { %v6039_v62 = vadd.f32 %v3788_v56, %v2660_v3  ;;  %v3713_v14 = vpop.f32.mrf.mxu1 }
 0x290   :  { %v3714_v12 = vadd.f32 %v3713_v14, %v3712_v10  ;;  %v3790_v7 = vpop.f32.mrf.mxu0 }
 0x291   :  { %6345 = vst [vmem:[#allocation23_spill] sm:$0xff] %v6039_v62  ;;  %v3791_v24 = vadd.f32 %v3790_v7, %v3789_v16  ;;  %v3715_v37 = vpop.f32.mrf.mxu1 }
 0x292   :  { %v3792_v28 = vpop.f32.mrf.mxu0  ;;  %v2670_v8 = vadd.f32 %v3714_v12, %v6012_v19 }
 0x293   :  { %v6042_v59 = vadd.f32 %v3791_v24, %v2665_v35  ;;  %v3716_v63 = vpop.f32.mrf.mxu1 }
 0x294   :  { %v3717_v15 = vadd.f32 %v3716_v63, %v3715_v37  ;;  %v3793_v38 = vpop.f32.mrf.mxu0 }
 0x295   :  { %v3794_v26 = vadd.f32 %v3793_v38, %v3792_v28  ;;  %v3718_v45 = vpop.f32.mrf.mxu1 }
 0x296   :  { %v3795_v33 = vpop.f32.mrf.mxu0  ;;  %v2675_v41 = vadd.f32 %v3717_v15, %v6012_v19 }
 0x297   :  { %v6045_v32 = vadd.f32 %v3794_v26, %v2670_v8  ;;  %v3719_v34 = vpop.f32.mrf.mxu1 }
 0x298   :  { %v3720_v1 = vadd.f32 %v3719_v34, %v3718_v45  ;;  %v3796_v13 = vpop.f32.mrf.mxu0 }
 0x299   :  { %6346 = vst [vmem:[#allocation26_spill] sm:$0xff] %v6045_v32  ;;  %v3797_v0 = vadd.f32 %v3796_v13, %v3795_v33  ;;  %v3721_v31 = vpop.f32.mrf.mxu1 }
 0x29a   :  { %v3798_v60 = vpop.f32.mrf.mxu0  ;;  %v2680_v29 = vadd.f32 %v3720_v1, %v6012_v19 }
 0x29b   :  { %v6048_v5 = vadd.f32 %v3797_v0, %v2675_v41  ;;  %v3722_v36 = vpop.f32.mrf.mxu1 }
 0x29c   :  { %v3723_v52 = vadd.f32 %v3722_v36, %v3721_v31  ;;  %v3799_v43 = vpop.f32.mrf.mxu0 }
 0x29d   :  { %6347 = vst [vmem:[#allocation45_spill] sm:$0xff] %v6048_v5  ;;  %v3800_v23 = vadd.f32 %v3799_v43, %v3798_v60  ;;  %v3724_v47 = vpop.f32.mrf.mxu1 }
 0x29e   :  { %v3801_v39 = vpop.f32.mrf.mxu0  ;;  %v2685_v61 = vadd.f32 %v3723_v52, %v6012_v19 }
 0x29f   :  { %v6051_v53 = vadd.f32 %v3800_v23, %v2680_v29  ;;  %v3725_v49 = vpop.f32.mrf.mxu1 }
 0x2a0   :  { %v3726_v46 = vadd.f32 %v3725_v49, %v3724_v47  ;;  %v3802_v18 = vpop.f32.mrf.mxu0 }
 0x2a1   :  { %6348 = vst [vmem:[#allocation13_spill] sm:$0xff] %v6051_v53  ;;  %v3803_v6 = vadd.f32 %v3802_v18, %v3801_v39  ;;  %v3727_v58 = vpop.f32.mrf.mxu1 }
 0x2a2   :  { %v3804_v4 = vpop.f32.mrf.mxu0  ;;  %v2690_v22 = vadd.f32 %v3726_v46, %v6012_v19 }
 0x2a3   :  { %v6054_v25 = vadd.f32 %v3803_v6, %v2685_v61  ;;  %v3728_v42 = vpop.f32.mrf.mxu1 }
 0x2a4   :  { %v6056_v27 = vadd.f32 %v3728_v42, %v3727_v58  ;;  %v3805_v11 = vpop.f32.mrf.mxu0 }
 0x2a5   :  { %6349 = vst [vmem:[#allocation12_spill] sm:$0xff] %v6054_v25  ;;  %v3806_v40 = vadd.f32 %v3805_v11, %v3804_v4  ;;  %v3842_v20 = vpop.f32.mrf.mxu1 }
 0x2a6   :  { %6350 = vst [vmem:[#allocation44_spill] sm:$0xff] %v6056_v27  ;;  %v6059_v57 = vpop.f32.mrf.mxu0 }
 0x2a7   :  { %6351 = vst [vmem:[#allocation14_spill] sm:$0xff] %v6059_v57  ;;  %v6061_v21 = vadd.f32 %v3806_v40, %v2690_v22  ;;  %v3843_v2 = vpop.f32.mrf.mxu1 }
 0x2a8   :  { %v6063_v55 = vpop.f32.mrf.mxu0 }
 0x2a9   :  { %6352 = vst [vmem:[#allocation25_spill] sm:$0xff] %v6061_v21  ;;  %6353 = vst [vmem:[#allocation28_spill] sm:$0xff] %v6063_v55  ;;  %v3845_v3 = vpop.f32.mrf.mxu1 }
 0x2aa   :  { %v3922_v56 = vpop.f32.mrf.mxu0 }
 0x2ab   :  { %v3846_v10 = vpop.f32.mrf.mxu1 }
 0x2ac   :  { %v3923_v16 = vpop.f32.mrf.mxu0 }
 0x2ad   :  { %v3848_v14 = vpop.f32.mrf.mxu1 }
 0x2ae   :  { %v3925_v12 = vpop.f32.mrf.mxu0 }
 0x2af   :  { %v3849_v7 = vpop.f32.mrf.mxu1 }
 0x2b0   :  { %v3926_v35 = vpop.f32.mrf.mxu0 }
 0x2b1   :  { %v3851_v24 = vpop.f32.mrf.mxu1 }
 0x2b2   :  { %v3928_v37 = vpop.f32.mrf.mxu0 }
 0x2b3   :  { %v3852_v28 = vpop.f32.mrf.mxu1 }
 0x2b4   :  { %v3929_v63 = vpop.f32.mrf.mxu0  ;;  %v3853_v62 = vadd.f32 %v3852_v28, %v3851_v24 }
 0x2b5   :  { %v3854_v15 = vpop.f32.mrf.mxu1 }
 0x2b6   :  { %v3931_v38 = vpop.f32.mrf.mxu0 }
 0x2b7   :  { %v3855_v8 = vpop.f32.mrf.mxu1 }
 0x2b8   :  { %v3932_v26 = vpop.f32.mrf.mxu0 }
 0x2b9   :  { %v3857_v45 = vpop.f32.mrf.mxu1 }
 0x2ba   :  { %v6065_v33 = vpop.f32.mrf.mxu0 }
 0x2bb   :  { %v3858_v34 = vpop.f32.mrf.mxu1 }
 0x2bc   :  { %v3935_v1 = vpop.f32.mrf.mxu0 }
 0x2bd   :  { %v6067_v13 = vpop.f32.mrf.mxu1 }
 0x2be   :  { %v3937_v41 = vpop.f32.mrf.mxu0 }
 0x2bf   :  { %v6069_v0 = vpop.f32.mrf.mxu1 }
 0x2c0   :  { %v3938_v31 = vpop.f32.mrf.mxu0 }
 0x2c1   :  { %v3863_v60 = vpop.f32.mrf.mxu1 }
 0x2c2   :  { %v6071_v36 = vpop.f32.mrf.mxu0 }
 0x2c3   :  { %v3864_v52 = vpop.f32.mrf.mxu1 }
 0x2c4   :  { %v6073_v43 = vpop.f32.mrf.mxu0 }
 0x2c5   :  { %v6075_v29 = vpop.f32.mrf.mxu1 }
 0x2c6   :  { %v6077_v23 = vpop.f32.mrf.mxu0 }
 0x2c7   :  { %v6079_v47 = vpop.f32.mrf.mxu1 }
 0x2c8   :  { %v6081_v39 = vpop.f32.mrf.mxu0 }
 0x2c9   :  { %v6083_v49 = vpop.f32.mrf.mxu1 }
 0x2ca   :  { %v6085_v46 = vpop.f32.mrf.mxu0 }
 0x2cb   :  { %v6087_v18 = vpop.f32.mrf.mxu1 }
 0x2cc   :  { %v6089_v61 = vpop.f32.mrf.mxu0 }
 0x2cd   :  { %v6091_v6 = vpop.f32.mrf.mxu1 }
 0x2ce   :  { %6354 = vst [vmem:[#allocation46_spill] sm:$0xff] %v6091_v6  ;;  %v6093_v58 = vpop.f32.mrf.mxu0  ;;  %v3927_v6 = vadd.f32 %v3926_v35, %v3925_v12 }
 0x2cf   :  { %v6095_v4 = vpop.f32.mrf.mxu1 }
 0x2d0   :  { %6355 = vst [vmem:[#allocation17_spill] sm:$0xff] %v6095_v4  ;;  %v6097_v42 = vpop.f32.mrf.mxu0 }
 0x2d1   :  { %v6099_v11 = vpop.f32.mrf.mxu1 }
 0x2d2   :  { %v6101_v22 = vpop.f32.mrf.mxu0 }
 0x2d3   :  { %6356 = vst [vmem:[#allocation27_spill] sm:$0xff] %v6101_v22  ;;  %v6103_v40 = vpop.f32.mrf.mxu1  ;;  %v3847_v22 = vadd.f32 %v3846_v10, %v3845_v3  ;;  %v3930_v3 = vadd.f32 %v3929_v63, %v3928_v37  ;;  %v3859_v10 = vadd.f32 %v3858_v34, %v3857_v45 }
 0x2d4   :  { %6357 = vst [vmem:[#allocation30_spill] sm:$0xff] %v6103_v40  ;;  %v6105_v21 = vpop.f32.mrf.mxu0 }
 0x2d5   :  { %6358 = vst [vmem:[#allocation48_spill] sm:$0xff] %v6105_v21  ;;  %v6107_v53 = vpop.f32.mrf.mxu1  ;;  %v3844_v21 = vadd.f32 %v3843_v2, %v3842_v20  ;;  %v2925_v2 = vadd.f32 %v3853_v62, %v6024_v50  ;;  %v3865_v50 = vadd.f32 %v3864_v52, %v3863_v60  ;;  %v3868_v60 = vadd.f32 %v6079_v47, %v6075_v29 }
 0x2d6   :  { %6359 = vst [vmem:[#allocation47_spill] sm:$0xff] %v6107_v53  ;;  %v6109_v25 = vpop.f32.mrf.mxu0 }
 0x2d7   :  { %6360 = vst [vmem:[#allocation16_spill] sm:$0xff] %v6109_v25  ;;  %v6111_v27 = vpop.f32.mrf.mxu1 }
 0x2d8   :  { %6361 = vst [vmem:[#allocation15_spill] sm:$0xff] %v6111_v27  ;;  %v6113_v19 = vpop.f32.mrf.mxu0  ;;  %v2915_v27 = vadd.f32 %v3847_v22, %v6018_v44 }
 0x2d9   :  { %6362 = vst [vmem:[#allocation29_spill] sm:$0xff] %v6113_v19  ;;  %v6115_v32 = vpop.f32.mrf.mxu1  ;;  %v3924_v19 = vadd.f32 %v3923_v16, %v3922_v56  ;;  %v3856_v56 = vadd.f32 %v3855_v8, %v3854_v15  ;;  %v3939_v16 = vadd.f32 %v3938_v31, %v3937_v41 }
 0x2da   :  { %6363 = vst [vmem:[#allocation32_spill] sm:$0xff] %v6115_v32  ;;  %v6119_v57 = vpop.f32.mrf.mxu0  ;;  %v3850_v32 = vadd.f32 %v3849_v7, %v3848_v14 }
 0x2db   :  { %v6117_v55 = vpop.f32.mrf.mxu1  ;;  %6365 = vst [vmem:[#allocation18_spill] sm:$0xff] %v6119_v57  ;;  %v2910_v57 = vadd.f32 %v3844_v21, %v6015_v51  ;;  %v2935_v51 = vadd.f32 %v3859_v10, %v6030_v9  ;;  %v3945_v9 = vadd.f32 %v6081_v39, %v6077_v23  ;;  %v6369_v10 = vld [vmem:[#allocation23_spill] sm:$0xff] }
 0x2dc   :  { %6364 = vst [vmem:[#allocation49_spill] sm:$0xff] %v6117_v55  ;;  %v6125_v53 = vpop.f32.mrf.mxu0  ;;  %v3933_v55 = vadd.f32 %v3932_v26, %v3931_v38  ;;  %v2920_v44 = vadd.f32 %v3850_v32, %v6021_v30  ;;  %v2930_v30 = vadd.f32 %v3856_v56, %v6027_v17  ;;  %v3862_v32 = vadd.f32 %v6069_v0, %v6067_v13 }
 0x2dd   :  { %v6121_v5 = vpop.f32.mrf.mxu1  ;;  %v3055_v35 = vadd.f32 %v3924_v19, %v2910_v57  ;;  %v3942_v26 = vadd.f32 %v6073_v43, %v6071_v36  ;;  %v3871_v17 = vadd.f32 %v6087_v18, %v6083_v49  ;;  %v3951_v36 = vadd.f32 %v6097_v42, %v6093_v58 }
 0x2de   :  { %6366 = vst [vmem:[#allocation31_spill] sm:$0xff] %v6121_v5  ;;  %v3060_v5 = vadd.f32 %v3927_v6, %v2915_v27  ;;  %v3070_v28 = vadd.f32 %v3933_v55, %v2925_v2  ;;  %v3936_v27 = vadd.f32 %v3935_v1, %v6065_v33  ;;  %v3065_v63 = vadd.f32 %v3930_v3, %v2920_v44  ;;  %v6368_v6 = vld [vmem:[#allocation30_spill] sm:$0xff]  ;;  %v6371_v2 = vld [vmem:[#allocation17_spill] sm:$0xff] }
 0x2df   :  { %v6123_v4 = vpop.f32.mrf.mxu1  ;;  %v3080_v55 = vadd.f32 %v3939_v16, %v2935_v51  ;;  %v2945_v1 = vadd.f32 %v3865_v50, %v6036_v54  ;;  %v2940_v31 = vadd.f32 %v3862_v32, %v6033_v48  ;;  %v2955_v49 = vadd.f32 %v3871_v17, %v6042_v59  ;;  %v6370_v59 = vld [vmem:[#allocation46_spill] sm:$0xff]  ;;  %v6383_v17 = vld [vmem:[#allocation15_spill] sm:$0xff] }
 0x2e0   :  { %6367 = vst [vmem:[#allocation34_spill] sm:$0xff] %v6123_v4  ;;  %v6133_v4 = vpop.f32.mrf.mxu0  ;;  %v3075_v34 = vadd.f32 %v3936_v27, %v2930_v30  ;;  %v3948_v48 = vadd.f32 %v6089_v61, %v6085_v46  ;;  %v3877_v58 = vadd.f32 %v6368_v6, %v6099_v11  ;;  %v6373_v44 = vld [vmem:[#allocation29_spill] sm:$0xff] }
 0x2e1   :  { %v6127_v25 = vpop.f32.mrf.mxu1  ;;  %v3090_v39 = vadd.f32 %v3945_v9, %v2945_v1  ;;  %v3085_v47 = vadd.f32 %v3942_v26, %v2940_v31  ;;  %v3100_v61 = vadd.f32 %v3951_v36, %v2955_v49  ;;  %v6376_v51 = vld [vmem:[#allocation32_spill] sm:$0xff]  ;;  %v6382_v26 = vld [vmem:[#allocation47_spill] sm:$0xff] }
 0x2e2   :  { %v6139_v21 = vpop.f32.mrf.mxu0  ;;  %v6380_v9 = vld [vmem:[#allocation28_spill] sm:$0xff] }
 0x2e3   :  { %v6130_v40 = vpop.f32.mrf.mxu1  ;;  %v6377_v27 = vld [vmem:[#allocation49_spill] sm:$0xff]  ;;  %v6385_v36 = vld [vmem:[#allocation44_spill] sm:$0xff] }
 0x2e4   :  { %v6154_v45 = vpop.f32.mrf.mxu0 }
 0x2e5   :  { %v4306_v20 = vpop.f32.mrf.mxu1 }
 0x2e6   :  { %v3205_v12 = vadd.f32 %v4306_v20, %v3060_v5  ;;  %v3965_v18 = vpop.f32.mrf.mxu0  ;;  %v2950_v20 = vadd.f32 %v3868_v60, %v6369_v10  ;;  %v6384_v60 = vld [vmem:[#allocation11_spill] sm:$0xff] }
 0x2e7   :  { %v3199_v14 = vpop.f32.mrf.mxu1  ;;  %v6390_v10 = vld [vmem:[#allocation34_spill] sm:$0xff] }
 0x2e8   :  { %v3279_v7 = vmax.f32 %v3205_v12, 0.0  ;;  %v3200_v24 = vadd.f32 %v3199_v14, %v3055_v35  ;;  %v3874_v12 = vadd.f32 %v6371_v2, %v6370_v59  ;;  %v6372_v35 = vld [vmem:[#allocation16_spill] sm:$0xff] }
 0x2e9   :  { %v4309_v37 = vpop.f32.mrf.mxu1  ;;  %v3957_v56 = vadd.f32 %v6373_v44, %v6372_v35 }
 0x2ea   :  { %v3295_v62 = vpack.c.bf16 %v3279_v7, %v3279_v7  ;;  %v3278_v19 = vmax.f32 %v3200_v24, 0.0  ;;  %v3215_v5 = vadd.f32 %v4309_v37, %v3070_v28  ;;  %v6374_v7 = vld [vmem:[#allocation27_spill] sm:$0xff]  ;;  %v6375_v24 = vld [vmem:[#allocation48_spill] sm:$0xff]  ;;  %v3883_v37 = vadd.f32 %v6377_v27, %v6376_v51 }
 0x2eb   :  { %v3209_v57 = vpop.f32.mrf.mxu1  ;;  %v3954_v28 = vadd.f32 %v6375_v24, %v6374_v7 }
 0x2ec   :  { %3312 = vst.msk [vmem:[%s6261_s5 + $0x4] sm:$0xf] %vm3310_vm2, %v3295_v62  ;;  %v3294_v15 = vpack.c.bf16 %v3278_v19, %v3278_v19  ;;  %v3281_v38 = vmax.f32 %v3215_v5, 0.0  ;;  %v3210_v8 = vadd.f32 %v3209_v57, %v3065_v63  ;;  %v3967_v63 = vpop.f32.mrf.mxu0  ;;  %v3095_v62 = vadd.f32 %v3948_v48, %v2950_v20  ;;  %v6378_v19 = vld [vmem:[#allocation45_spill] sm:$0xff] }
 0x2ed   :  { %v4312_v33 = vpop.f32.mrf.mxu1  ;;  %v2965_v5 = vadd.f32 %v3877_v58, %v6378_v19  ;;  %v3889_v48 = vadd.f32 %v6130_v40, %v6127_v25 }
 0x2ee   :  { %3311 = vst.msk [vmem:[%s6261_s5] sm:$0xf] %vm3310_vm2, %v3294_v15  ;;  %v3297_v13 = vpack.c.bf16 %v3281_v38, %v3281_v38  ;;  %v3280_v41 = vmax.f32 %v3210_v8, 0.0  ;;  %v3225_v0 = vadd.f32 %v4312_v33, %v3080_v55  ;;  %v6379_v55 = vld [vmem:[#allocation14_spill] sm:$0xff]  ;;  %v3880_v33 = vadd.f32 %v6383_v17, %v6382_v26  ;;  %v3968_v49 = vpop.f32.mrf.mxu0 }
 0x2ef   :  { %v3219_v52 = vpop.f32.mrf.mxu1  ;;  %v3809_v15 = vadd.f32 %v6380_v9, %v6379_v55  ;;  %v6381_v38 = vld [vmem:[#allocation26_spill] sm:$0xff]  ;;  %v3110_v31 = vadd.f32 %v3957_v56, %v2965_v5  ;;  %v3969_v2 = vadd.f32 %v3968_v49, %v3967_v63 }
 0x2f0   :  { %3314 = vst.msk [vmem:[%s6261_s5 + $0xc] sm:$0xf] %vm3310_vm2, %v3297_v13  ;;  %v3296_v54 = vpack.c.bf16 %v3280_v41, %v3280_v41  ;;  %v3283_v43 = vmax.f32 %v3225_v0, 0.0  ;;  %v3220_v23 = vadd.f32 %v3219_v52, %v3075_v34  ;;  %v2960_v8 = vadd.f32 %v3874_v12, %v6381_v38 }
 0x2f1   :  { %v4315_v29 = vpop.f32.mrf.mxu1  ;;  %v3963_v34 = vadd.f32 %v6139_v21, %v6133_v4  ;;  %v2695_v52 = vadd.f32 %v6385_v36, %v6384_v60 }
 0x2f2   :  { %3313 = vst.msk [vmem:[%s6261_s5 + $0x8] sm:$0xf] %vm3310_vm2, %v3296_v54  ;;  %v3299_v42 = vpack.c.bf16 %v3283_v43, %v3283_v43  ;;  %v3282_v22 = vmax.f32 %v3220_v23, 0.0  ;;  %v3235_v3 = vadd.f32 %v4315_v29, %v3090_v39  ;;  %v6386_v54 = vld [vmem:[#allocation12_spill] sm:$0xff]  ;;  %v6387_v23 = vld [vmem:[#allocation18_spill] sm:$0xff]  ;;  %v3105_v21 = vadd.f32 %v3954_v28, %v2960_v8 }
 0x2f3   :  { %v3229_v46 = vpop.f32.mrf.mxu1  ;;  %v2975_v43 = vadd.f32 %v3883_v37, %v6386_v54  ;;  %v3960_v39 = vadd.f32 %v6125_v53, %v6387_v23  ;;  %v2840_v58 = vadd.f32 %v3809_v15, %v2695_v52 }
 0x2f4   :  { %3316 = vst.msk [vmem:[%s6261_s5 + $0x14] sm:$0xf] %vm3310_vm2, %v3299_v42  ;;  %v3298_v11 = vpack.c.bf16 %v3282_v22, %v3282_v22  ;;  %v3285_v16 = vmax.f32 %v3235_v3, 0.0  ;;  %v3230_v14 = vadd.f32 %v3229_v46, %v3085_v47  ;;  %v6388_v42 = vld [vmem:[#allocation13_spill] sm:$0xff]  ;;  %v6389_v3 = vld [vmem:[#allocation31_spill] sm:$0xff]  ;;  %v3966_v46 = vadd.f32 %v3965_v18, %v6154_v45 }
 0x2f5   :  { %v4318_v50 = vpop.f32.mrf.mxu1  ;;  %v2970_v22 = vadd.f32 %v3880_v33, %v6388_v42  ;;  %v3886_v53 = vadd.f32 %v6390_v10, %v6389_v3  ;;  %v3120_v59 = vadd.f32 %v3963_v34, %v2975_v43  ;;  %v2985_v44 = vadd.f32 %v3889_v48, %v2840_v58 }
 0x2f6   :  { %3315 = vst.msk [vmem:[%s6261_s5 + $0x10] sm:$0xf] %vm3310_vm2, %v3298_v11  ;;  %v3301_v30 = vpack.c.bf16 %v3285_v16, %v3285_v16  ;;  %v3284_v32 = vmax.f32 %v3230_v14, 0.0  ;;  %v3245_v57 = vadd.f32 %v4318_v50, %v3100_v61  ;;  %v6391_v14 = vld [vmem:[#allocation25_spill] sm:$0xff] }
 0x2f7   :  { %v3239_v1 = vpop.f32.mrf.mxu1  ;;  %v3115_v35 = vadd.f32 %v3960_v39, %v2970_v22  ;;  %v2980_v7 = vadd.f32 %v3886_v53, %v6391_v14  ;;  %v3130_v51 = vadd.f32 %v3969_v2, %v2985_v44 }
 0x2f8   :  { %3318 = vst.msk [vmem:[%s6261_s5 + $0x1c] sm:$0xf] %vm3310_vm2, %v3301_v30  ;;  %v3300_v13 = vpack.c.bf16 %v3284_v32, %v3284_v32  ;;  %v3287_v41 = vmax.f32 %v3245_v57, 0.0  ;;  %v3240_v0 = vadd.f32 %v3239_v1, %v3095_v62 }
 0x2f9   :  { %v4321_v4 = vpop.f32.mrf.mxu1  ;;  %v3125_v62 = vadd.f32 %v3966_v46, %v2980_v7 }
 0x2fa   :  { %3317 = vst.msk [vmem:[%s6261_s5 + $0x18] sm:$0xf] %vm3310_vm2, %v3300_v13  ;;  %v3303_v29 = vpack.c.bf16 %v3287_v41, %v3287_v41  ;;  %v3286_v47 = vmax.f32 %v3240_v0, 0.0  ;;  %v3255_v6 = vadd.f32 %v4321_v4, %v3110_v31 }
 0x2fb   :  { %v3249_v20 = vpop.f32.mrf.mxu1 }
 0x2fc   :  { %3320 = vst.msk [vmem:[%s6261_s5 + $0x24] sm:$0xf] %vm3310_vm2, %v3303_v29  ;;  %v3302_v25 = vpack.c.bf16 %v3286_v47, %v3286_v47  ;;  %v3289_v40 = vmax.f32 %v3255_v6, 0.0  ;;  %v3250_v12 = vadd.f32 %v3249_v20, %v3105_v21 }
 0x2fd   :  { %v4324_v61 = vpop.f32.mrf.mxu1 }
 0x2fe   :  { %3319 = vst.msk [vmem:[%s6261_s5 + $0x20] sm:$0xf] %vm3310_vm2, %v3302_v25  ;;  %v3305_v56 = vpack.c.bf16 %v3289_v40, %v3289_v40  ;;  %v3288_v11 = vmax.f32 %v3250_v12, 0.0  ;;  %v3265_v16 = vadd.f32 %v4324_v61, %v3120_v59 }
 0x2ff   :  { %v3259_v24 = vpop.f32.mrf.mxu1 }
 0x300   :  { %3322 = vst.msk [vmem:[%s6261_s5 + $0x2c] sm:$0xf] %vm3310_vm2, %v3305_v56  ;;  %v3304_v45 = vpack.c.bf16 %v3288_v11, %v3288_v11  ;;  %v3291_v18 = vmax.f32 %v3265_v16, 0.0  ;;  %v3260_v28 = vadd.f32 %v3259_v24, %v3115_v35 }
 0x301   :  { %v4327_v27 = vpop.f32.mrf.mxu1 }
 0x302   :  { %3321 = vst.msk [vmem:[%s6261_s5 + $0x28] sm:$0xf] %vm3310_vm2, %v3304_v45  ;;  %v3307_v37 = vpack.c.bf16 %v3291_v18, %v3291_v18  ;;  %v3290_v63 = vmax.f32 %v3260_v28, 0.0  ;;  %v3275_v50 = vadd.f32 %v4327_v27, %v3130_v51 }
 0x303   :  { %v3269_v19 = vpop.f32.mrf.mxu1 }
 0x304   :  { %3324 = vst.msk [vmem:[%s6261_s5 + $0x34] sm:$0xf] %vm3310_vm2, %v3307_v37  ;;  %v3306_v5 = vpack.c.bf16 %v3290_v63, %v3290_v63  ;;  %v3293_v30 = vmax.f32 %v3275_v50, 0.0  ;;  %v3270_v32 = vadd.f32 %v3269_v19, %v3125_v62 }
 0x306   :  { %3323 = vst.msk [vmem:[%s6261_s5 + $0x30] sm:$0xf] %vm3310_vm2, %v3306_v5  ;;  %v3309_v57 = vpack.c.bf16 %v3293_v30, %v3293_v30  ;;  %v3292_v55 = vmax.f32 %v3270_v32, 0.0 }
 0x308   :  { %3326 = vst.msk [vmem:[%s6261_s5 + $0x3c] sm:$0xf] %vm3310_vm2, %v3309_v57  ;;  %v3308_v9 = vpack.c.bf16 %v3292_v55, %v3292_v55 }
 0x30a   :  { %3325 = vst.msk [vmem:[%s6261_s5 + $0x38] sm:$0xf] %vm3310_vm2, %v3308_v9 }
 0x30b   :  { %3331 = vsyncpa [#allocation5], 1 }
 0x30c   :  { %3332 = vsyncpa [#allocation7], 1 }

</bundles_post_ra>
